<compile_context>
chip_gen: v5e
topology: v5e:2x2
jax: 0.10.0
libtpu: 0.0.40
codegen_flags: <defaults>
</compile_context>

<pallas_src>
import numpy as np
import jax
import jax.numpy as jnp
from jax import lax
from jax.experimental import pallas as pl
from jax.experimental.pallas import tpu as pltpu

jax.config.update("jax_default_matmul_precision", "highest")


# ---------------------------------------------------------------------------
# Fused kernel: conv1+relu+pool -> conv2+relu+pool -> conv3+relu+pool
#               -> NCHW flatten -> fc1+relu -> fc2        (one image per step)
# Activation layout in-kernel: 2-D slab, rows = padded image row (H+2),
# cols = (padded col, channel) -> (W+2)*C.  A 3x3 conv is then
#     sum_{kh=0..2}  slab[kh:kh+H, :] @ Wband[kh]
# with Wband[kh] a ((W+2)*Cin, W*Cout) banded block matrix built host-side.
# ---------------------------------------------------------------------------
def _fused_forward_kernel(
        x_ref,                                    # (26, 104) padded input slab
        wr1_ref, bt1_ref, rs1_ref, cs1_ref,       # layer 1 weights / pool selectors
        wr2_ref, bt2_ref, rs2_ref, cs2_ref,       # layer 2
        wr3_ref, bt3_ref, rs3_ref, cs3_ref,       # layer 3
        w1p_ref, fb1_ref, w2_ref, fb2_ref,        # fc1 (permuted), fc2
        o_ref,                                    # (1, 10) logits for this image
        cr_ref, p2_ref, p3_ref, pf_ref):          # VMEM scratch
    f32 = jnp.float32

    def conv_relu_pool(in_ref, h, wr_ref, bt_ref, rs_ref, cs_ref, dst_ref):
        # 3x3 conv (pad=1, stride=1) as 3 banded matmuls + bias + ReLU
        acc = jnp.dot(in_ref[0:h, :], wr_ref[0], preferred_element_type=f32)
        acc = acc + jnp.dot(in_ref[1:h + 1, :], wr_ref[1],
                            preferred_element_type=f32)
        acc = acc + jnp.dot(in_ref[2:h + 2, :], wr_ref[2],
                            preferred_element_type=f32)
        conv = jnp.maximum(acc + bt_ref[...], 0.0)             # (h, W*Cout)
        cr_ref[0:h, :] = conv
        # 2x2 / stride-2 max pool: adjacent-row max, then exact 0/1 selection
        # matmuls (rs picks even rows, cs[0]/cs[1] pick even/odd column
        # blocks) which also emit the next layer's zero padding.
        rm = jnp.maximum(cr_ref[0:h - 1, :], cr_ref[1:h, :])   # (h-1, W*Cout)
        pr = jnp.dot(rs_ref[...], rm, preferred_element_type=f32)
        pooled = jnp.maximum(
            jnp.dot(pr, cs_ref[0], preferred_element_type=f32),
            jnp.dot(pr, cs_ref[1], preferred_element_type=f32))
        dst_ref[...] = pooled

    conv_relu_pool(x_ref, 24, wr1_ref, bt1_ref, rs1_ref, cs1_ref, p2_ref)   # (14,112)
    conv_relu_pool(p2_ref, 12, wr2_ref, bt2_ref, rs2_ref, cs2_ref, p3_ref)  # (8,128)
    conv_relu_pool(p3_ref, 6, wr3_ref, bt3_ref, rs3_ref, cs3_ref, pf_ref)   # (3,96)

    # fc1 (torch's NCHW flatten folded into the host-permuted weight) + ReLU
    hid = fb1_ref[...]                                          # (1, 128)
    for r in range(3):
        hid = hid + jnp.dot(pf_ref[r:r + 1, :], w1p_ref[r],
                            preferred_element_type=f32)
    hid = jnp.maximum(hid, 0.0)
    # fc2
    o_ref[...] = (jnp.dot(hid, w2_ref[...], preferred_element_type=f32)
                  + fb2_ref[...])


# ---------------------------------------------------------------------------
# Host-side (weight-only) preprocessing — tiny, traced once under jit.
# ---------------------------------------------------------------------------
def _band_weight(w, width):
    """w: (3, 3, Cin, Cout) -> (3, (width+2)*Cin, width*Cout) banded blocks."""
    kh_n, kw_n, _, _ = w.shape
    mats = []
    for kh in range(kh_n):
        acc = None
        for kw in range(kw_n):
            sel = np.zeros((width + 2, width), np.float32)
            sel[np.arange(width) + kw, np.arange(width)] = 1.0
            term = jnp.kron(jnp.asarray(sel), w[kh, kw])
            acc = term if acc is None else acc + term
        mats.append(acc)
    return jnp.stack(mats)


def _pool_selectors(h, w, c, pad_next):
    """0/1 selection matrices for the 2x2 stride-2 max pool (the max itself is
    done in-kernel); when pad_next they also emit the next conv's zero border."""
    ho, wo = h // 2, w // 2
    off = 1 if pad_next else 0
    rs = np.zeros((ho + 2 * off, h - 1), np.float32)
    rs[np.arange(ho) + off, 2 * np.arange(ho)] = 1.0
    ee = np.zeros((w, wo + 2 * off), np.float32)
    eo = np.zeros((w, wo + 2 * off), np.float32)
    ee[2 * np.arange(wo), np.arange(wo) + off] = 1.0
    eo[2 * np.arange(wo) + 1, np.arange(wo) + off] = 1.0
    eye = np.eye(c, dtype=np.float32)
    cs = np.stack([np.kron(ee, eye), np.kron(eo, eye)])
    return jnp.asarray(rs), jnp.asarray(cs)


def _tiled_bias(b, width):
    return jnp.tile(b, width).reshape(1, width * b.shape[0])


def _permuted_fc1(fc1_w):
    """fc1_w: (288, 128) indexed by torch's flatten c*9 + h*3 + w.
    Returns (3, 96, 128): [h, w*32 + c, :]."""
    perm = np.zeros((3, 3, 32), np.int32)
    for h in range(3):
        for w in range(3):
            for c in range(32):
                perm[h, w, c] = c * 9 + h * 3 + w
    return fc1_w[perm.reshape(-1)].reshape(3, 96, 128)


# ---------------------------------------------------------------------------
# Parameters & forward
# ---------------------------------------------------------------------------
def init_params(key, in_channels):
    def uniform(k, shape, fan_in):
        bound = 1.0 / np.sqrt(fan_in)
        return jax.random.uniform(k, shape, jnp.float32, -bound, bound)

    keys = jax.random.split(key, 10)
    p = {}
    p['w1'] = uniform(keys[0], (3, 3, in_channels, 8), 3 * 3 * in_channels)
    p['b1'] = uniform(keys[1], (8,), 3 * 3 * in_channels)
    p['w2'] = uniform(keys[2], (3, 3, 8, 16), 3 * 3 * 8)
    p['b2'] = uniform(keys[3], (16,), 3 * 3 * 8)
    p['w3'] = uniform(keys[4], (3, 3, 16, 32), 3 * 3 * 16)
    p['b3'] = uniform(keys[5], (32,), 3 * 3 * 16)
    p['fc1_w'] = uniform(keys[6], (32 * 3 * 3, 128), 32 * 3 * 3)
    p['fc1_b'] = uniform(keys[7], (128,), 32 * 3 * 3)
    p['fc2_w'] = uniform(keys[8], (128, 10), 128)
    p['fc2_b'] = uniform(keys[9], (10,), 128)
    return p


@jax.jit
def forward(params, x_nchw):
    n, cin, hh, ww = x_nchw.shape
    assert hh == 24 and ww == 24, "fc1 (32*3*3) requires 24x24 spatial inputs"

    # weight-only host prep (banded conv weights, pool selectors, permuted fc1)
    wr1 = _band_weight(params['w1'], 24)
    wr2 = _band_weight(params['w2'], 12)
    wr3 = _band_weight(params['w3'], 6)
    bt1 = _tiled_bias(params['b1'], 24)
    bt2 = _tiled_bias(params['b2'], 12)
    bt3 = _tiled_bias(params['b3'], 6)
    rs1, cs1 = _pool_selectors(24, 24, 8, True)
    rs2, cs2 = _pool_selectors(12, 12, 16, True)
    rs3, cs3 = _pool_selectors(6, 6, 32, False)
    fw1p = _permuted_fc1(params['fc1_w'])
    fb1 = params['fc1_b'].reshape(1, 128)
    fw2 = params['fc2_w']
    fb2 = params['fc2_b'].reshape(1, 10)

    # input: NCHW -> zero-padded row-major slab (n, H+2, (W+2)*Cin)
    xp = jnp.pad(jnp.transpose(x_nchw, (0, 2, 3, 1)),
                 ((0, 0), (1, 1), (1, 1), (0, 0)))
    x3 = xp.reshape(n, hh + 2, (ww + 2) * cin)

    consts = (wr1, bt1, rs1, cs1, wr2, bt2, rs2, cs2,
              wr3, bt3, rs3, cs3, fw1p, fb1, fw2, fb2)

    def _full(arr):
        zero = (0,) * arr.ndim
        return pl.BlockSpec(arr.shape, lambda i, _z=zero: _z)

    out = pl.pallas_call(
        _fused_forward_kernel,
        out_shape=jax.ShapeDtypeStruct((n, 1, 10), jnp.float32),
        grid=(n,),
        in_specs=[pl.BlockSpec((None, hh + 2, (ww + 2) * cin),
                               lambda i: (i, 0, 0))] + [_full(a) for a in consts],
        out_specs=pl.BlockSpec((None, 1, 10), lambda i: (i, 0, 0)),
        scratch_shapes=[pltpu.VMEM((24, 192), jnp.float32),   # conv output slab
                        pltpu.VMEM((14, 112), jnp.float32),   # padded pool-1 slab
                        pltpu.VMEM((8, 128), jnp.float32),    # padded pool-2 slab
                        pltpu.VMEM((3, 96), jnp.float32)],    # pool-3 (fc input)
        compiler_params=pltpu.CompilerParams(
            dimension_semantics=("parallel",)),
    )(x3, *consts)
    return out.reshape(n, 10)


def reference_forward(params, x_nchw):
    """Plain-JAX reference (mirrors the PyTorch forward) for validation."""
    x = jnp.transpose(x_nchw, (0, 2, 3, 1))

    def conv(v, w, b):
        y = lax.conv_general_dilated(v, w, (1, 1), 'SAME',
                                     dimension_numbers=('NHWC', 'HWIO', 'NHWC'))
        return jnp.maximum(y + b, 0.0)

    def pool(v):
        return lax.reduce_window(v, -jnp.inf, lax.max,
                                 (1, 2, 2, 1), (1, 2, 2, 1), 'VALID')

    h1 = pool(conv(x, params['w1'], params['b1']))
    h2 = pool(conv(h1, params['w2'], params['b2']))
    h3 = pool(conv(h2, params['w3'], params['b3']))
    flat = jnp.transpose(h3, (0, 3, 1, 2)).reshape(h3.shape[0], -1)
    hid = jnp.maximum(flat @ params['fc1_w'] + params['fc1_b'], 0.0)
    return hid @ params['fc2_w'] + params['fc2_b']


if __name__ == "__main__":
    key = jax.random.PRNGKey(0)
    k_x, k_p = jax.random.split(key)

    # in_channels is unspecified in the module; pick 4. spatial=24 so that
    # after three 2x2 pools we get 3x3 -> 32*3*3 = 288 features for fc1.
    batch, in_channels, spatial = 2, 4, 24
    x = jax.random.normal(k_x, (batch, in_channels, spatial, spatial), jnp.float32)
    params = init_params(k_p, in_channels)

    out = jax.block_until_ready(forward(params, x))

    ref = reference_forward(params, x)
    if out.shape != (batch, 10):
        raise AssertionError(f"unexpected output shape {out.shape}")
    if not np.allclose(np.asarray(out), np.asarray(ref), rtol=1e-3, atol=1e-3):
        err = float(np.max(np.abs(np.asarray(out) - np.asarray(ref))))
        raise AssertionError(f"Pallas output does not match reference (max err {err})")

    print("KERNEL_OK")
</pallas_src>

<mosaic_0001>
module attributes {stable_mosaic.version = 11 : i64} {
  func.func @_fused_forward_kernel(%arg0: i32, %arg1: memref<1x26x104xf32, #tpu.memory_space<vmem>>, %arg2: memref<3x104x192xf32, #tpu.memory_space<vmem>>, %arg3: memref<1x192xf32, #tpu.memory_space<vmem>>, %arg4: memref<14x23xf32, #tpu.memory_space<vmem>>, %arg5: memref<2x192x112xf32, #tpu.memory_space<vmem>>, %arg6: memref<3x112x192xf32, #tpu.memory_space<vmem>>, %arg7: memref<1x192xf32, #tpu.memory_space<vmem>>, %arg8: memref<8x11xf32, #tpu.memory_space<vmem>>, %arg9: memref<2x192x128xf32, #tpu.memory_space<vmem>>, %arg10: memref<3x128x192xf32, #tpu.memory_space<vmem>>, %arg11: memref<1x192xf32, #tpu.memory_space<vmem>>, %arg12: memref<3x5xf32, #tpu.memory_space<vmem>>, %arg13: memref<2x192x96xf32, #tpu.memory_space<vmem>>, %arg14: memref<3x96x128xf32, #tpu.memory_space<vmem>>, %arg15: memref<1x128xf32, #tpu.memory_space<vmem>>, %arg16: memref<128x10xf32, #tpu.memory_space<vmem>>, %arg17: memref<1x10xf32, #tpu.memory_space<vmem>>, %arg18: memref<1x1x10xf32, #tpu.memory_space<vmem>>, %arg19: memref<24x192xf32, #tpu.memory_space<vmem>>, %arg20: memref<14x112xf32, #tpu.memory_space<vmem>>, %arg21: memref<8x128xf32, #tpu.memory_space<vmem>>, %arg22: memref<3x96xf32, #tpu.memory_space<vmem>>) attributes {dimension_semantics = [#tpu.dimension_semantics<parallel>], iteration_bounds = array<i64: 2>, scalar_prefetch = 0 : i64, scratch_operands = 4 : i64, tpu.core_type = #tpu.core_type<tc>, window_params = [{transform_indices = @transform_0, window_bounds = array<i64: 1, 26, 104>}, {pipeline_mode = #tpu.pipeline_mode<synchronous>, transform_indices = @transform_1, window_bounds = array<i64: 3, 104, 192>}, {pipeline_mode = #tpu.pipeline_mode<synchronous>, transform_indices = @transform_2, window_bounds = array<i64: 1, 192>}, {pipeline_mode = #tpu.pipeline_mode<synchronous>, transform_indices = @transform_3, window_bounds = array<i64: 14, 23>}, {pipeline_mode = #tpu.pipeline_mode<synchronous>, transform_indices = @transform_4, window_bounds = array<i64: 2, 192, 112>}, {pipeline_mode = #tpu.pipeline_mode<synchronous>, transform_indices = @transform_5, window_bounds = array<i64: 3, 112, 192>}, {pipeline_mode = #tpu.pipeline_mode<synchronous>, transform_indices = @transform_6, window_bounds = array<i64: 1, 192>}, {pipeline_mode = #tpu.pipeline_mode<synchronous>, transform_indices = @transform_7, window_bounds = array<i64: 8, 11>}, {pipeline_mode = #tpu.pipeline_mode<synchronous>, transform_indices = @transform_8, window_bounds = array<i64: 2, 192, 128>}, {pipeline_mode = #tpu.pipeline_mode<synchronous>, transform_indices = @transform_9, window_bounds = array<i64: 3, 128, 192>}, {pipeline_mode = #tpu.pipeline_mode<synchronous>, transform_indices = @transform_10, window_bounds = array<i64: 1, 192>}, {pipeline_mode = #tpu.pipeline_mode<synchronous>, transform_indices = @transform_11, window_bounds = array<i64: 3, 5>}, {pipeline_mode = #tpu.pipeline_mode<synchronous>, transform_indices = @transform_12, window_bounds = array<i64: 2, 192, 96>}, {pipeline_mode = #tpu.pipeline_mode<synchronous>, transform_indices = @transform_13, window_bounds = array<i64: 3, 96, 128>}, {pipeline_mode = #tpu.pipeline_mode<synchronous>, transform_indices = @transform_14, window_bounds = array<i64: 1, 128>}, {pipeline_mode = #tpu.pipeline_mode<synchronous>, transform_indices = @transform_15, window_bounds = array<i64: 128, 10>}, {pipeline_mode = #tpu.pipeline_mode<synchronous>, transform_indices = @transform_16, window_bounds = array<i64: 1, 10>}, {transform_indices = @transform_17, window_bounds = array<i64: 1, 1, 10>}]} {
    %c0 = arith.constant 0 : index
    %c0_0 = arith.constant 0 : index
    %c0_1 = arith.constant 0 : index
    %0 = vector.load %arg1[%c0, %c0_0, %c0_1] : memref<1x26x104xf32, #tpu.memory_space<vmem>>, vector<1x24x104xf32>
    %1 = vector.shape_cast %0 : vector<1x24x104xf32> to vector<24x104xf32>
    %c0_2 = arith.constant 0 : index
    %c0_3 = arith.constant 0 : index
    %c0_4 = arith.constant 0 : index
    %2 = vector.load %arg2[%c0_2, %c0_3, %c0_4] : memref<3x104x192xf32, #tpu.memory_space<vmem>>, vector<1x104x192xf32>
    %3 = vector.shape_cast %2 : vector<1x104x192xf32> to vector<104x192xf32>
    %cst = arith.constant dense<0.000000e+00> : vector<24x192xf32>
    %4 = tpu.matmul %1, %3, %cst {dimension_numbers = #tpu.dot_dimension_numbers<[1], [0], [0], [1], [0, 0, 1, 1], [], []>, precision = #tpu.contract_precision<fp32>} : vector<24x104xf32>, vector<104x192xf32>, vector<24x192xf32> -> vector<24x192xf32>
    %c0_5 = arith.constant 0 : index
    %c1 = arith.constant 1 : index
    %c0_6 = arith.constant 0 : index
    %5 = vector.load %arg1[%c0_5, %c1, %c0_6] : memref<1x26x104xf32, #tpu.memory_space<vmem>>, vector<1x24x104xf32>
    %6 = vector.shape_cast %5 : vector<1x24x104xf32> to vector<24x104xf32>
    %c1_7 = arith.constant 1 : index
    %c0_8 = arith.constant 0 : index
    %c0_9 = arith.constant 0 : index
    %7 = vector.load %arg2[%c1_7, %c0_8, %c0_9] : memref<3x104x192xf32, #tpu.memory_space<vmem>>, vector<1x104x192xf32>
    %8 = vector.shape_cast %7 : vector<1x104x192xf32> to vector<104x192xf32>
    %cst_10 = arith.constant dense<0.000000e+00> : vector<24x192xf32>
    %9 = tpu.matmul %6, %8, %cst_10 {dimension_numbers = #tpu.dot_dimension_numbers<[1], [0], [0], [1], [0, 0, 1, 1], [], []>, precision = #tpu.contract_precision<fp32>} : vector<24x104xf32>, vector<104x192xf32>, vector<24x192xf32> -> vector<24x192xf32>
    %10 = arith.addf %4, %9 : vector<24x192xf32>
    %c0_11 = arith.constant 0 : index
    %c2 = arith.constant 2 : index
    %c0_12 = arith.constant 0 : index
    %11 = vector.load %arg1[%c0_11, %c2, %c0_12] : memref<1x26x104xf32, #tpu.memory_space<vmem>>, vector<1x24x104xf32>
    %12 = vector.shape_cast %11 : vector<1x24x104xf32> to vector<24x104xf32>
    %c2_13 = arith.constant 2 : index
    %c0_14 = arith.constant 0 : index
    %c0_15 = arith.constant 0 : index
    %13 = vector.load %arg2[%c2_13, %c0_14, %c0_15] : memref<3x104x192xf32, #tpu.memory_space<vmem>>, vector<1x104x192xf32>
    %14 = vector.shape_cast %13 : vector<1x104x192xf32> to vector<104x192xf32>
    %cst_16 = arith.constant dense<0.000000e+00> : vector<24x192xf32>
    %15 = tpu.matmul %12, %14, %cst_16 {dimension_numbers = #tpu.dot_dimension_numbers<[1], [0], [0], [1], [0, 0, 1, 1], [], []>, precision = #tpu.contract_precision<fp32>} : vector<24x104xf32>, vector<104x192xf32>, vector<24x192xf32> -> vector<24x192xf32>
    %16 = arith.addf %10, %15 : vector<24x192xf32>
    %c0_17 = arith.constant 0 : index
    %c0_18 = arith.constant 0 : index
    %17 = vector.load %arg3[%c0_17, %c0_18] : memref<1x192xf32, #tpu.memory_space<vmem>>, vector<1x192xf32>
    %18 = vector.broadcast %17 : vector<1x192xf32> to vector<24x192xf32>
    %19 = arith.addf %16, %18 : vector<24x192xf32>
    %cst_19 = arith.constant 0.000000e+00 : f32
    %20 = vector.broadcast %cst_19 : f32 to vector<24x192xf32>
    %21 = arith.maximumf %19, %20 : vector<24x192xf32>
    %c0_20 = arith.constant 0 : index
    %c0_21 = arith.constant 0 : index
    %22 = vector.load %arg19[%c0_20, %c0_21] : memref<24x192xf32, #tpu.memory_space<vmem>>, vector<24x192xf32>
    tpu.vector_store %arg19[%c0_20, %c0_21], %21 {strides = array<i32>} : memref<24x192xf32, #tpu.memory_space<vmem>>, vector<24x192xf32>,
    %c0_22 = arith.constant 0 : index
    %c0_23 = arith.constant 0 : index
    %23 = vector.load %arg19[%c0_22, %c0_23] : memref<24x192xf32, #tpu.memory_space<vmem>>, vector<23x192xf32>
    %c1_24 = arith.constant 1 : index
    %c0_25 = arith.constant 0 : index
    %24 = vector.load %arg19[%c1_24, %c0_25] : memref<24x192xf32, #tpu.memory_space<vmem>>, vector<23x192xf32>
    %25 = arith.maximumf %23, %24 : vector<23x192xf32>
    %c0_26 = arith.constant 0 : index
    %c0_27 = arith.constant 0 : index
    %26 = vector.load %arg4[%c0_26, %c0_27] : memref<14x23xf32, #tpu.memory_space<vmem>>, vector<14x23xf32>
    %cst_28 = arith.constant dense<0.000000e+00> : vector<14x192xf32>
    %27 = tpu.matmul %26, %25, %cst_28 {dimension_numbers = #tpu.dot_dimension_numbers<[1], [0], [0], [1], [0, 0, 1, 1], [], []>, precision = #tpu.contract_precision<fp32>} : vector<14x23xf32>, vector<23x192xf32>, vector<14x192xf32> -> vector<14x192xf32>
    %c0_29 = arith.constant 0 : index
    %c0_30 = arith.constant 0 : index
    %c0_31 = arith.constant 0 : index
    %28 = vector.load %arg5[%c0_29, %c0_30, %c0_31] : memref<2x192x112xf32, #tpu.memory_space<vmem>>, vector<1x192x112xf32>
    %29 = vector.shape_cast %28 : vector<1x192x112xf32> to vector<192x112xf32>
    %cst_32 = arith.constant dense<0.000000e+00> : vector<14x112xf32>
    %30 = tpu.matmul %27, %29, %cst_32 {dimension_numbers = #tpu.dot_dimension_numbers<[1], [0], [0], [1], [0, 0, 1, 1], [], []>, precision = #tpu.contract_precision<fp32>} : vector<14x192xf32>, vector<192x112xf32>, vector<14x112xf32> -> vector<14x112xf32>
    %c1_33 = arith.constant 1 : index
    %c0_34 = arith.constant 0 : index
    %c0_35 = arith.constant 0 : index
    %31 = vector.load %arg5[%c1_33, %c0_34, %c0_35] : memref<2x192x112xf32, #tpu.memory_space<vmem>>, vector<1x192x112xf32>
    %32 = vector.shape_cast %31 : vector<1x192x112xf32> to vector<192x112xf32>
    %cst_36 = arith.constant dense<0.000000e+00> : vector<14x112xf32>
    %33 = tpu.matmul %27, %32, %cst_36 {dimension_numbers = #tpu.dot_dimension_numbers<[1], [0], [0], [1], [0, 0, 1, 1], [], []>, precision = #tpu.contract_precision<fp32>} : vector<14x192xf32>, vector<192x112xf32>, vector<14x112xf32> -> vector<14x112xf32>
    %34 = arith.maximumf %30, %33 : vector<14x112xf32>
    %c0_37 = arith.constant 0 : index
    %c0_38 = arith.constant 0 : index
    %35 = vector.load %arg20[%c0_37, %c0_38] : memref<14x112xf32, #tpu.memory_space<vmem>>, vector<14x112xf32>
    tpu.vector_store %arg20[%c0_37, %c0_38], %34 {strides = array<i32>} : memref<14x112xf32, #tpu.memory_space<vmem>>, vector<14x112xf32>,
    %c0_39 = arith.constant 0 : index
    %c0_40 = arith.constant 0 : index
    %36 = vector.load %arg20[%c0_39, %c0_40] : memref<14x112xf32, #tpu.memory_space<vmem>>, vector<12x112xf32>
    %c0_41 = arith.constant 0 : index
    %c0_42 = arith.constant 0 : index
    %c0_43 = arith.constant 0 : index
    %37 = vector.load %arg6[%c0_41, %c0_42, %c0_43] : memref<3x112x192xf32, #tpu.memory_space<vmem>>, vector<1x112x192xf32>
    %38 = vector.shape_cast %37 : vector<1x112x192xf32> to vector<112x192xf32>
    %cst_44 = arith.constant dense<0.000000e+00> : vector<12x192xf32>
    %39 = tpu.matmul %36, %38, %cst_44 {dimension_numbers = #tpu.dot_dimension_numbers<[1], [0], [0], [1], [0, 0, 1, 1], [], []>, precision = #tpu.contract_precision<fp32>} : vector<12x112xf32>, vector<112x192xf32>, vector<12x192xf32> -> vector<12x192xf32>
    %c1_45 = arith.constant 1 : index
    %c0_46 = arith.constant 0 : index
    %40 = vector.load %arg20[%c1_45, %c0_46] : memref<14x112xf32, #tpu.memory_space<vmem>>, vector<12x112xf32>
    %c1_47 = arith.constant 1 : index
    %c0_48 = arith.constant 0 : index
    %c0_49 = arith.constant 0 : index
    %41 = vector.load %arg6[%c1_47, %c0_48, %c0_49] : memref<3x112x192xf32, #tpu.memory_space<vmem>>, vector<1x112x192xf32>
    %42 = vector.shape_cast %41 : vector<1x112x192xf32> to vector<112x192xf32>
    %cst_50 = arith.constant dense<0.000000e+00> : vector<12x192xf32>
    %43 = tpu.matmul %40, %42, %cst_50 {dimension_numbers = #tpu.dot_dimension_numbers<[1], [0], [0], [1], [0, 0, 1, 1], [], []>, precision = #tpu.contract_precision<fp32>} : vector<12x112xf32>, vector<112x192xf32>, vector<12x192xf32> -> vector<12x192xf32>
    %44 = arith.addf %39, %43 : vector<12x192xf32>
    %c2_51 = arith.constant 2 : index
    %c0_52 = arith.constant 0 : index
    %45 = vector.load %arg20[%c2_51, %c0_52] : memref<14x112xf32, #tpu.memory_space<vmem>>, vector<12x112xf32>
    %c2_53 = arith.constant 2 : index
    %c0_54 = arith.constant 0 : index
    %c0_55 = arith.constant 0 : index
    %46 = vector.load %arg6[%c2_53, %c0_54, %c0_55] : memref<3x112x192xf32, #tpu.memory_space<vmem>>, vector<1x112x192xf32>
    %47 = vector.shape_cast %46 : vector<1x112x192xf32> to vector<112x192xf32>
    %cst_56 = arith.constant dense<0.000000e+00> : vector<12x192xf32>
    %48 = tpu.matmul %45, %47, %cst_56 {dimension_numbers = #tpu.dot_dimension_numbers<[1], [0], [0], [1], [0, 0, 1, 1], [], []>, precision = #tpu.contract_precision<fp32>} : vector<12x112xf32>, vector<112x192xf32>, vector<12x192xf32> -> vector<12x192xf32>
    %49 = arith.addf %44, %48 : vector<12x192xf32>
    %c0_57 = arith.constant 0 : index
    %c0_58 = arith.constant 0 : index
    %50 = vector.load %arg7[%c0_57, %c0_58] : memref<1x192xf32, #tpu.memory_space<vmem>>, vector<1x192xf32>
    %51 = vector.broadcast %50 : vector<1x192xf32> to vector<12x192xf32>
    %52 = arith.addf %49, %51 : vector<12x192xf32>
    %cst_59 = arith.constant 0.000000e+00 : f32
    %53 = vector.broadcast %cst_59 : f32 to vector<12x192xf32>
    %54 = arith.maximumf %52, %53 : vector<12x192xf32>
    %c0_60 = arith.constant 0 : index
    %c0_61 = arith.constant 0 : index
    %55 = vector.load %arg19[%c0_60, %c0_61] : memref<24x192xf32, #tpu.memory_space<vmem>>, vector<12x192xf32>
    tpu.vector_store %arg19[%c0_60, %c0_61], %54 {strides = array<i32>} : memref<24x192xf32, #tpu.memory_space<vmem>>, vector<12x192xf32>,
    %c0_62 = arith.constant 0 : index
    %c0_63 = arith.constant 0 : index
    %56 = vector.load %arg19[%c0_62, %c0_63] : memref<24x192xf32, #tpu.memory_space<vmem>>, vector<11x192xf32>
    %c1_64 = arith.constant 1 : index
    %c0_65 = arith.constant 0 : index
    %57 = vector.load %arg19[%c1_64, %c0_65] : memref<24x192xf32, #tpu.memory_space<vmem>>, vector<11x192xf32>
    %58 = arith.maximumf %56, %57 : vector<11x192xf32>
    %c0_66 = arith.constant 0 : index
    %c0_67 = arith.constant 0 : index
    %59 = vector.load %arg8[%c0_66, %c0_67] : memref<8x11xf32, #tpu.memory_space<vmem>>, vector<8x11xf32>
    %cst_68 = arith.constant dense<0.000000e+00> : vector<8x192xf32>
    %60 = tpu.matmul %59, %58, %cst_68 {dimension_numbers = #tpu.dot_dimension_numbers<[1], [0], [0], [1], [0, 0, 1, 1], [], []>, precision = #tpu.contract_precision<fp32>} : vector<8x11xf32>, vector<11x192xf32>, vector<8x192xf32> -> vector<8x192xf32>
    %c0_69 = arith.constant 0 : index
    %c0_70 = arith.constant 0 : index
    %c0_71 = arith.constant 0 : index
    %61 = vector.load %arg9[%c0_69, %c0_70, %c0_71] : memref<2x192x128xf32, #tpu.memory_space<vmem>>, vector<1x192x128xf32>
    %62 = vector.shape_cast %61 : vector<1x192x128xf32> to vector<192x128xf32>
    %cst_72 = arith.constant dense<0.000000e+00> : vector<8x128xf32>
    %63 = tpu.matmul %60, %62, %cst_72 {dimension_numbers = #tpu.dot_dimension_numbers<[1], [0], [0], [1], [0, 0, 1, 1], [], []>, precision = #tpu.contract_precision<fp32>} : vector<8x192xf32>, vector<192x128xf32>, vector<8x128xf32> -> vector<8x128xf32>
    %c1_73 = arith.constant 1 : index
    %c0_74 = arith.constant 0 : index
    %c0_75 = arith.constant 0 : index
    %64 = vector.load %arg9[%c1_73, %c0_74, %c0_75] : memref<2x192x128xf32, #tpu.memory_space<vmem>>, vector<1x192x128xf32>
    %65 = vector.shape_cast %64 : vector<1x192x128xf32> to vector<192x128xf32>
    %cst_76 = arith.constant dense<0.000000e+00> : vector<8x128xf32>
    %66 = tpu.matmul %60, %65, %cst_76 {dimension_numbers = #tpu.dot_dimension_numbers<[1], [0], [0], [1], [0, 0, 1, 1], [], []>, precision = #tpu.contract_precision<fp32>} : vector<8x192xf32>, vector<192x128xf32>, vector<8x128xf32> -> vector<8x128xf32>
    %67 = arith.maximumf %63, %66 : vector<8x128xf32>
    %c0_77 = arith.constant 0 : index
    %c0_78 = arith.constant 0 : index
    %68 = vector.load %arg21[%c0_77, %c0_78] : memref<8x128xf32, #tpu.memory_space<vmem>>, vector<8x128xf32>
    tpu.vector_store %arg21[%c0_77, %c0_78], %67 {strides = array<i32>} : memref<8x128xf32, #tpu.memory_space<vmem>>, vector<8x128xf32>,
    %c0_79 = arith.constant 0 : index
    %c0_80 = arith.constant 0 : index
    %69 = vector.load %arg21[%c0_79, %c0_80] : memref<8x128xf32, #tpu.memory_space<vmem>>, vector<6x128xf32>
    %c0_81 = arith.constant 0 : index
    %c0_82 = arith.constant 0 : index
    %c0_83 = arith.constant 0 : index
    %70 = vector.load %arg10[%c0_81, %c0_82, %c0_83] : memref<3x128x192xf32, #tpu.memory_space<vmem>>, vector<1x128x192xf32>
    %71 = vector.shape_cast %70 : vector<1x128x192xf32> to vector<128x192xf32>
    %cst_84 = arith.constant dense<0.000000e+00> : vector<6x192xf32>
    %72 = tpu.matmul %69, %71, %cst_84 {dimension_numbers = #tpu.dot_dimension_numbers<[1], [0], [0], [1], [0, 0, 1, 1], [], []>, precision = #tpu.contract_precision<fp32>} : vector<6x128xf32>, vector<128x192xf32>, vector<6x192xf32> -> vector<6x192xf32>
    %c1_85 = arith.constant 1 : index
    %c0_86 = arith.constant 0 : index
    %73 = vector.load %arg21[%c1_85, %c0_86] : memref<8x128xf32, #tpu.memory_space<vmem>>, vector<6x128xf32>
    %c1_87 = arith.constant 1 : index
    %c0_88 = arith.constant 0 : index
    %c0_89 = arith.constant 0 : index
    %74 = vector.load %arg10[%c1_87, %c0_88, %c0_89] : memref<3x128x192xf32, #tpu.memory_space<vmem>>, vector<1x128x192xf32>
    %75 = vector.shape_cast %74 : vector<1x128x192xf32> to vector<128x192xf32>
    %cst_90 = arith.constant dense<0.000000e+00> : vector<6x192xf32>
    %76 = tpu.matmul %73, %75, %cst_90 {dimension_numbers = #tpu.dot_dimension_numbers<[1], [0], [0], [1], [0, 0, 1, 1], [], []>, precision = #tpu.contract_precision<fp32>} : vector<6x128xf32>, vector<128x192xf32>, vector<6x192xf32> -> vector<6x192xf32>
    %77 = arith.addf %72, %76 : vector<6x192xf32>
    %c2_91 = arith.constant 2 : index
    %c0_92 = arith.constant 0 : index
    %78 = vector.load %arg21[%c2_91, %c0_92] : memref<8x128xf32, #tpu.memory_space<vmem>>, vector<6x128xf32>
    %c2_93 = arith.constant 2 : index
    %c0_94 = arith.constant 0 : index
    %c0_95 = arith.constant 0 : index
    %79 = vector.load %arg10[%c2_93, %c0_94, %c0_95] : memref<3x128x192xf32, #tpu.memory_space<vmem>>, vector<1x128x192xf32>
    %80 = vector.shape_cast %79 : vector<1x128x192xf32> to vector<128x192xf32>
    %cst_96 = arith.constant dense<0.000000e+00> : vector<6x192xf32>
    %81 = tpu.matmul %78, %80, %cst_96 {dimension_numbers = #tpu.dot_dimension_numbers<[1], [0], [0], [1], [0, 0, 1, 1], [], []>, precision = #tpu.contract_precision<fp32>} : vector<6x128xf32>, vector<128x192xf32>, vector<6x192xf32> -> vector<6x192xf32>
    %82 = arith.addf %77, %81 : vector<6x192xf32>
    %c0_97 = arith.constant 0 : index
    %c0_98 = arith.constant 0 : index
    %83 = vector.load %arg11[%c0_97, %c0_98] : memref<1x192xf32, #tpu.memory_space<vmem>>, vector<1x192xf32>
    %84 = vector.broadcast %83 : vector<1x192xf32> to vector<6x192xf32>
    %85 = arith.addf %82, %84 : vector<6x192xf32>
    %cst_99 = arith.constant 0.000000e+00 : f32
    %86 = vector.broadcast %cst_99 : f32 to vector<6x192xf32>
    %87 = arith.maximumf %85, %86 : vector<6x192xf32>
    %c0_100 = arith.constant 0 : index
    %c0_101 = arith.constant 0 : index
    %88 = vector.load %arg19[%c0_100, %c0_101] : memref<24x192xf32, #tpu.memory_space<vmem>>, vector<6x192xf32>
    tpu.vector_store %arg19[%c0_100, %c0_101], %87 {strides = array<i32>} : memref<24x192xf32, #tpu.memory_space<vmem>>, vector<6x192xf32>,
    %c0_102 = arith.constant 0 : index
    %c0_103 = arith.constant 0 : index
    %89 = vector.load %arg19[%c0_102, %c0_103] : memref<24x192xf32, #tpu.memory_space<vmem>>, vector<5x192xf32>
    %c1_104 = arith.constant 1 : index
    %c0_105 = arith.constant 0 : index
    %90 = vector.load %arg19[%c1_104, %c0_105] : memref<24x192xf32, #tpu.memory_space<vmem>>, vector<5x192xf32>
    %91 = arith.maximumf %89, %90 : vector<5x192xf32>
    %c0_106 = arith.constant 0 : index
    %c0_107 = arith.constant 0 : index
    %92 = vector.load %arg12[%c0_106, %c0_107] : memref<3x5xf32, #tpu.memory_space<vmem>>, vector<3x5xf32>
    %cst_108 = arith.constant dense<0.000000e+00> : vector<3x192xf32>
    %93 = tpu.matmul %92, %91, %cst_108 {dimension_numbers = #tpu.dot_dimension_numbers<[1], [0], [0], [1], [0, 0, 1, 1], [], []>, precision = #tpu.contract_precision<fp32>} : vector<3x5xf32>, vector<5x192xf32>, vector<3x192xf32> -> vector<3x192xf32>
    %c0_109 = arith.constant 0 : index
    %c0_110 = arith.constant 0 : index
    %c0_111 = arith.constant 0 : index
    %94 = vector.load %arg13[%c0_109, %c0_110, %c0_111] : memref<2x192x96xf32, #tpu.memory_space<vmem>>, vector<1x192x96xf32>
    %95 = vector.shape_cast %94 : vector<1x192x96xf32> to vector<192x96xf32>
    %cst_112 = arith.constant dense<0.000000e+00> : vector<3x96xf32>
    %96 = tpu.matmul %93, %95, %cst_112 {dimension_numbers = #tpu.dot_dimension_numbers<[1], [0], [0], [1], [0, 0, 1, 1], [], []>, precision = #tpu.contract_precision<fp32>} : vector<3x192xf32>, vector<192x96xf32>, vector<3x96xf32> -> vector<3x96xf32>
    %c1_113 = arith.constant 1 : index
    %c0_114 = arith.constant 0 : index
    %c0_115 = arith.constant 0 : index
    %97 = vector.load %arg13[%c1_113, %c0_114, %c0_115] : memref<2x192x96xf32, #tpu.memory_space<vmem>>, vector<1x192x96xf32>
    %98 = vector.shape_cast %97 : vector<1x192x96xf32> to vector<192x96xf32>
    %cst_116 = arith.constant dense<0.000000e+00> : vector<3x96xf32>
    %99 = tpu.matmul %93, %98, %cst_116 {dimension_numbers = #tpu.dot_dimension_numbers<[1], [0], [0], [1], [0, 0, 1, 1], [], []>, precision = #tpu.contract_precision<fp32>} : vector<3x192xf32>, vector<192x96xf32>, vector<3x96xf32> -> vector<3x96xf32>
    %100 = arith.maximumf %96, %99 : vector<3x96xf32>
    %c0_117 = arith.constant 0 : index
    %c0_118 = arith.constant 0 : index
    %101 = vector.load %arg22[%c0_117, %c0_118] : memref<3x96xf32, #tpu.memory_space<vmem>>, vector<3x96xf32>
    tpu.vector_store %arg22[%c0_117, %c0_118], %100 {strides = array<i32>} : memref<3x96xf32, #tpu.memory_space<vmem>>, vector<3x96xf32>,
    %c0_119 = arith.constant 0 : index
    %c0_120 = arith.constant 0 : index
    %102 = vector.load %arg15[%c0_119, %c0_120] : memref<1x128xf32, #tpu.memory_space<vmem>>, vector<1x128xf32>
    %c0_121 = arith.constant 0 : index
    %c0_122 = arith.constant 0 : index
    %103 = vector.load %arg22[%c0_121, %c0_122] : memref<3x96xf32, #tpu.memory_space<vmem>>, vector<1x96xf32>
    %c0_123 = arith.constant 0 : index
    %c0_124 = arith.constant 0 : index
    %c0_125 = arith.constant 0 : index
    %104 = vector.load %arg14[%c0_123, %c0_124, %c0_125] : memref<3x96x128xf32, #tpu.memory_space<vmem>>, vector<1x96x128xf32>
    %105 = vector.shape_cast %104 : vector<1x96x128xf32> to vector<96x128xf32>
    %cst_126 = arith.constant dense<0.000000e+00> : vector<1x128xf32>
    %106 = tpu.matmul %103, %105, %cst_126 {dimension_numbers = #tpu.dot_dimension_numbers<[1], [0], [0], [1], [0, 0, 1, 1], [], []>, precision = #tpu.contract_precision<fp32>} : vector<1x96xf32>, vector<96x128xf32>, vector<1x128xf32> -> vector<1x128xf32>
    %107 = arith.addf %102, %106 : vector<1x128xf32>
    %c1_127 = arith.constant 1 : index
    %c0_128 = arith.constant 0 : index
    %108 = vector.load %arg22[%c1_127, %c0_128] : memref<3x96xf32, #tpu.memory_space<vmem>>, vector<1x96xf32>
    %c1_129 = arith.constant 1 : index
    %c0_130 = arith.constant 0 : index
    %c0_131 = arith.constant 0 : index
    %109 = vector.load %arg14[%c1_129, %c0_130, %c0_131] : memref<3x96x128xf32, #tpu.memory_space<vmem>>, vector<1x96x128xf32>
    %110 = vector.shape_cast %109 : vector<1x96x128xf32> to vector<96x128xf32>
    %cst_132 = arith.constant dense<0.000000e+00> : vector<1x128xf32>
    %111 = tpu.matmul %108, %110, %cst_132 {dimension_numbers = #tpu.dot_dimension_numbers<[1], [0], [0], [1], [0, 0, 1, 1], [], []>, precision = #tpu.contract_precision<fp32>} : vector<1x96xf32>, vector<96x128xf32>, vector<1x128xf32> -> vector<1x128xf32>
    %112 = arith.addf %107, %111 : vector<1x128xf32>
    %c2_133 = arith.constant 2 : index
    %c0_134 = arith.constant 0 : index
    %113 = vector.load %arg22[%c2_133, %c0_134] : memref<3x96xf32, #tpu.memory_space<vmem>>, vector<1x96xf32>
    %c2_135 = arith.constant 2 : index
    %c0_136 = arith.constant 0 : index
    %c0_137 = arith.constant 0 : index
    %114 = vector.load %arg14[%c2_135, %c0_136, %c0_137] : memref<3x96x128xf32, #tpu.memory_space<vmem>>, vector<1x96x128xf32>
    %115 = vector.shape_cast %114 : vector<1x96x128xf32> to vector<96x128xf32>
    %cst_138 = arith.constant dense<0.000000e+00> : vector<1x128xf32>
    %116 = tpu.matmul %113, %115, %cst_138 {dimension_numbers = #tpu.dot_dimension_numbers<[1], [0], [0], [1], [0, 0, 1, 1], [], []>, precision = #tpu.contract_precision<fp32>} : vector<1x96xf32>, vector<96x128xf32>, vector<1x128xf32> -> vector<1x128xf32>
    %117 = arith.addf %112, %116 : vector<1x128xf32>
    %cst_139 = arith.constant 0.000000e+00 : f32
    %118 = vector.broadcast %cst_139 : f32 to vector<1x128xf32>
    %119 = arith.maximumf %117, %118 : vector<1x128xf32>
    %c0_140 = arith.constant 0 : index
    %c0_141 = arith.constant 0 : index
    %120 = vector.load %arg16[%c0_140, %c0_141] : memref<128x10xf32, #tpu.memory_space<vmem>>, vector<128x10xf32>
    %cst_142 = arith.constant dense<0.000000e+00> : vector<1x10xf32>
    %121 = tpu.matmul %119, %120, %cst_142 {dimension_numbers = #tpu.dot_dimension_numbers<[1], [0], [0], [1], [0, 0, 1, 1], [], []>, precision = #tpu.contract_precision<fp32>} : vector<1x128xf32>, vector<128x10xf32>, vector<1x10xf32> -> vector<1x10xf32>
    %c0_143 = arith.constant 0 : index
    %c0_144 = arith.constant 0 : index
    %122 = vector.load %arg17[%c0_143, %c0_144] : memref<1x10xf32, #tpu.memory_space<vmem>>, vector<1x10xf32>
    %123 = arith.addf %121, %122 : vector<1x10xf32>
    %c0_145 = arith.constant 0 : index
    %c0_146 = arith.constant 0 : index
    %c0_147 = arith.constant 0 : index
    %124 = vector.load %arg18[%c0_145, %c0_146, %c0_147] : memref<1x1x10xf32, #tpu.memory_space<vmem>>, vector<1x1x10xf32>
    %125 = vector.shape_cast %124 : vector<1x1x10xf32> to vector<1x10xf32>
    %126 = vector.shape_cast %123 : vector<1x10xf32> to vector<1x1x10xf32>
    tpu.vector_store %arg18[%c0_145, %c0_146, %c0_147], %126 {strides = array<i32>} : memref<1x1x10xf32, #tpu.memory_space<vmem>>, vector<1x1x10xf32>,
    return
  }
  func.func @transform_0(%arg0: i32) -> (i32, i32, i32) {
    %c0_i32 = arith.constant 0 : i32
    %c0_i32_0 = arith.constant 0 : i32
    %c0_i32_1 = arith.constant 0 : i32
    return %arg0, %c0_i32, %c0_i32_0 : i32, i32, i32
  }
  func.func @transform_1(%arg0: i32) -> (i32, i32, i32) {
    %c0_i32 = arith.constant 0 : i32
    %c0_i32_0 = arith.constant 0 : i32
    %c0_i32_1 = arith.constant 0 : i32
    %c0_i32_2 = arith.constant 0 : i32
    return %c0_i32, %c0_i32_0, %c0_i32_1 : i32, i32, i32
  }
  func.func @transform_2(%arg0: i32) -> (i32, i32) {
    %c0_i32 = arith.constant 0 : i32
    %c0_i32_0 = arith.constant 0 : i32
    %c0_i32_1 = arith.constant 0 : i32
    return %c0_i32, %c0_i32_0 : i32, i32
  }
  func.func @transform_3(%arg0: i32) -> (i32, i32) {
    %c0_i32 = arith.constant 0 : i32
    %c0_i32_0 = arith.constant 0 : i32
    %c0_i32_1 = arith.constant 0 : i32
    return %c0_i32, %c0_i32_0 : i32, i32
  }
  func.func @transform_4(%arg0: i32) -> (i32, i32, i32) {
    %c0_i32 = arith.constant 0 : i32
    %c0_i32_0 = arith.constant 0 : i32
    %c0_i32_1 = arith.constant 0 : i32
    %c0_i32_2 = arith.constant 0 : i32
    return %c0_i32, %c0_i32_0, %c0_i32_1 : i32, i32, i32
  }
  func.func @transform_5(%arg0: i32) -> (i32, i32, i32) {
    %c0_i32 = arith.constant 0 : i32
    %c0_i32_0 = arith.constant 0 : i32
    %c0_i32_1 = arith.constant 0 : i32
    %c0_i32_2 = arith.constant 0 : i32
    return %c0_i32, %c0_i32_0, %c0_i32_1 : i32, i32, i32
  }
  func.func @transform_6(%arg0: i32) -> (i32, i32) {
    %c0_i32 = arith.constant 0 : i32
    %c0_i32_0 = arith.constant 0 : i32
    %c0_i32_1 = arith.constant 0 : i32
    return %c0_i32, %c0_i32_0 : i32, i32
  }
  func.func @transform_7(%arg0: i32) -> (i32, i32) {
    %c0_i32 = arith.constant 0 : i32
    %c0_i32_0 = arith.constant 0 : i32
    %c0_i32_1 = arith.constant 0 : i32
    return %c0_i32, %c0_i32_0 : i32, i32
  }
  func.func @transform_8(%arg0: i32) -> (i32, i32, i32) {
    %c0_i32 = arith.constant 0 : i32
    %c0_i32_0 = arith.constant 0 : i32
    %c0_i32_1 = arith.constant 0 : i32
    %c0_i32_2 = arith.constant 0 : i32
    return %c0_i32, %c0_i32_0, %c0_i32_1 : i32, i32, i32
  }
  func.func @transform_9(%arg0: i32) -> (i32, i32, i32) {
    %c0_i32 = arith.constant 0 : i32
    %c0_i32_0 = arith.constant 0 : i32
    %c0_i32_1 = arith.constant 0 : i32
    %c0_i32_2 = arith.constant 0 : i32
    return %c0_i32, %c0_i32_0, %c0_i32_1 : i32, i32, i32
  }
  func.func @transform_10(%arg0: i32) -> (i32, i32) {
    %c0_i32 = arith.constant 0 : i32
    %c0_i32_0 = arith.constant 0 : i32
    %c0_i32_1 = arith.constant 0 : i32
    return %c0_i32, %c0_i32_0 : i32, i32
  }
  func.func @transform_11(%arg0: i32) -> (i32, i32) {
    %c0_i32 = arith.constant 0 : i32
    %c0_i32_0 = arith.constant 0 : i32
    %c0_i32_1 = arith.constant 0 : i32
    return %c0_i32, %c0_i32_0 : i32, i32
  }
  func.func @transform_12(%arg0: i32) -> (i32, i32, i32) {
    %c0_i32 = arith.constant 0 : i32
    %c0_i32_0 = arith.constant 0 : i32
    %c0_i32_1 = arith.constant 0 : i32
    %c0_i32_2 = arith.constant 0 : i32
    return %c0_i32, %c0_i32_0, %c0_i32_1 : i32, i32, i32
  }
  func.func @transform_13(%arg0: i32) -> (i32, i32, i32) {
    %c0_i32 = arith.constant 0 : i32
    %c0_i32_0 = arith.constant 0 : i32
    %c0_i32_1 = arith.constant 0 : i32
    %c0_i32_2 = arith.constant 0 : i32
    return %c0_i32, %c0_i32_0, %c0_i32_1 : i32, i32, i32
  }
  func.func @transform_14(%arg0: i32) -> (i32, i32) {
    %c0_i32 = arith.constant 0 : i32
    %c0_i32_0 = arith.constant 0 : i32
    %c0_i32_1 = arith.constant 0 : i32
    return %c0_i32, %c0_i32_0 : i32, i32
  }
  func.func @transform_15(%arg0: i32) -> (i32, i32) {
    %c0_i32 = arith.constant 0 : i32
    %c0_i32_0 = arith.constant 0 : i32
    %c0_i32_1 = arith.constant 0 : i32
    return %c0_i32, %c0_i32_0 : i32, i32
  }
  func.func @transform_16(%arg0: i32) -> (i32, i32) {
    %c0_i32 = arith.constant 0 : i32
    %c0_i32_0 = arith.constant 0 : i32
    %c0_i32_1 = arith.constant 0 : i32
    return %c0_i32, %c0_i32_0 : i32, i32
  }
  func.func @transform_17(%arg0: i32) -> (i32, i32, i32) {
    %c0_i32 = arith.constant 0 : i32
    %c0_i32_0 = arith.constant 0 : i32
    %c0_i32_1 = arith.constant 0 : i32
    return %arg0, %c0_i32, %c0_i32_0 : i32, i32, i32
  }
}

</mosaic_0001>

<bundles_post_ra>
// kernel: tile.18
= control target key start
LH: loop header
LB: loop body
LE: loop exit
PB: predicated region body
PF: predicated region fallthrough
CT: control target
= control target key end

     0   :  { %s34_s0 = inlined_call_operand.vmem [shape: f32[8], index: 0, kind: input, shape index: {}]   ;;  %s35_s1 = inlined_call_operand.vmem [shape: f32[24,8], index: 1, kind: output, shape index: {}]  }
   0x1   :  { %v4_v0 = vld [vmem:[%s34_s0] ss:$0 sm:$0xff] }
   0x2   :  { %5 = vst [vmem:[%s35_s1] sm:$0xff] %v4_v0 }
   0x3   :  { %10 = vst [vmem:[%s35_s1 + $0x8] sm:$0xff] %v4_v0 }
   0x4   :  { %11 = vst [vmem:[%s35_s1 + $0x10] sm:$0xff] %v4_v0 }

// kernel: tile.19
= control target key start
LH: loop header
LB: loop body
LE: loop exit
PB: predicated region body
PF: predicated region fallthrough
CT: control target
= control target key end

     0   :  { %s146_s10 = smov 120   ;;  %s147_s11 = smov 104   ;;  %vm4_vm0 = vcmask 64512   ;;  %vm10_vm1 = vcmask 1048512   ;;  %vm16_vm2 = vcmask 982912   ;;  %vm22_vm3 = vcmask 917312   ;;  %s225_s0 = inlined_call_operand.vmem [shape: f32[24,8], index: 0, kind: input, shape index: {}]   ;;  %s226_s1 = inlined_call_operand.vmem [shape: f32[1,192], index: 1, kind: output, shape index: {}]  }
   0x1   :  { %v115_v0 = vld [vmem:[%s225_s0 + $0xf] sm:$0x1]   ;;  %v117_v1 = vld [vmem:[%s225_s0 + $0xd] sm:$0x1]   ;;  %v119_v2 = vld [vmem:[%s225_s0 + $0xb] sm:$0x1]  }
   0x2   :  { %8 = vrot.lane.b32.xlu0 %v115_v0, %s146_s10  ;;  %20 = vrot.lane.b32.xlu1 %v117_v1, %s147_s11  ;;  %v116_v3 = vld [vmem:[%s225_s0 + $0xe] sm:$0x1]   ;;  %v118_v4 = vld [vmem:[%s225_s0 + $0xc] sm:$0x1]   ;;  %s148_s18 = smov 88   ;;  %s149_s19 = smov 112  }
   0x3   :  { %32 = vrot.lane.b32.xlu2 %v119_v2, %s148_s18  ;;  %s150_s20 = smov 96   ;;  %v120_v5 = vld [vmem:[%s225_s0 + $0xa] sm:$0x1]   ;;  %v121_v6 = vld [vmem:[%s225_s0 + $0x9] sm:$0x1]   ;;  %s151_s27 = smov 80  }
   0x4   :  { %v122_v7 = vld [vmem:[%s225_s0 + $0x8] sm:$0x1]   ;;  %s55_s28 = smov 3  ;;  %s152_s29 = smov 72   ;;  %vm28_vm4 = vcmask 851712   ;;  %vm34_vm5 = vcmask 786112  }
   0x5   :  { %s153_s30 = smov 64   ;;  %s62_s2 = smov 3  ;;  %v123_v8 = vld [vmem:[%s225_s0 + $0x7] ss:$16 sm:%s55_s28]   ;;  %vm40_vm6 = vcmask 720512   ;;  %vm46_vm7 = vcmask 654912  }
   0x6   :  { %s69_s3 = smov 3  ;;  %v124_v9 = vld [vmem:[%s225_s0 + $0x6] ss:$16 sm:%s62_s2]   ;;  %s154_s10 = smov 56   ;;  %vm52_vm8 = vcmask 589312   ;;  %vm59_vm9 = vcmask 523712  }
   0x7   :  { %v125_v10 = vld [vmem:[%s225_s0 + $0x5] ss:$16 sm:%s69_s3]   ;;  %s76_s11 = smov 3  ;;  %s155_s12 = smov 48   ;;  %vm66_vm10 = vcmask 458112   ;;  %vm73_vm11 = vcmask 392512  }
   0x8   :  { %s156_s13 = smov 40   ;;  %s83_s14 = smov 3  ;;  %v126_v11 = vld [vmem:[%s225_s0 + $0x4] ss:$16 sm:%s76_s11]   ;;  %vm80_vm12 = vcmask 326912   ;;  %vm87_vm13 = vcmask 261312  }
   0x9   :  { %s90_s15 = smov 3  ;;  %v127_v12 = vld [vmem:[%s225_s0 + $0x3] ss:$16 sm:%s83_s14]   ;;  %s157_s22 = smov 32   ;;  %vm94_vm14 = vcmask 195712   ;;  %vm101_vm15 = vcmask 130112  }
   0xa   :  { %14 = vrot.lane.b32.xlu0 %v116_v3, %s149_s19  ;;  %26 = vrot.lane.b32.xlu1 %v118_v4, %s150_s20  ;;  %v128_v13 = vld [vmem:[%s225_s0 + $0x2] ss:$16 sm:%s90_s15]   ;;  %s97_s23 = smov 3  ;;  %s158_s24 = smov 24  }
   0xb   :  { %38 = vrot.lane.b32.xlu2 %v120_v5, %s151_s27  ;;  %s159_s25 = smov 16   ;;  %v129_v14 = vld [vmem:[%s225_s0 + $0x1] ss:$16 sm:%s97_s23]   ;;  %s160_s28 = smov 8  }
  0x12   :  { %44 = vrot.lane.b32.xlu0 %v121_v6, %s152_s29  ;;  %50 = vrot.lane.b32.xlu1 %v122_v7, %s153_s30  ;;  %s2_s29 = smov 3 }
  0x13   :  { %57 = vrot.lane.b32.xlu2 %v123_v8, %s154_s10  ;;  %v3_v15 = vld [vmem:[%s225_s0] ss:$16 sm:%s2_s29]  }
  0x14   :  { %5 = vst.msk [vmem:[#allocation0] ss:$8 sm:$0x3] %vm4_vm0, %v3_v15  }
  0x1a   :  { %64 = vrot.lane.b32.xlu0 %v124_v9, %s155_s12  ;;  %71 = vrot.lane.b32.xlu1 %v125_v10, %s156_s13 }
  0x1b   :  { %78 = vrot.lane.b32.xlu2 %v126_v11, %s157_s22 }
  0x22   :  { %85 = vrot.lane.b32.xlu0 %v127_v12, %s158_s24  ;;  %92 = vrot.lane.b32.xlu1 %v128_v13, %s159_s25 }
  0x23   :  { %99 = vrot.lane.b32.xlu2 %v129_v14, %s160_s28 }
  0x5d   :  { %v33_v16 = vpop.permute.xlu2 %32  }
  0x65   :  { %v39_v17 = vpop.permute.xlu2 %38  }
  0x6d   :  { %v58_v18 = vpop.permute.xlu2 %57  }
  0x74   :  { %v9_v19 = vpop.permute.xlu0 %8   ;;  %v21_v20 = vpop.permute.xlu1 %20  }
  0x75   :  { %11 = vst.msk [vmem:[#allocation0] sm:$0x1] %vm10_vm1, %v9_v19   ;;  %v79_v21 = vpop.permute.xlu2 %78  }
  0x7c   :  { %v15_v22 = vpop.permute.xlu0 %14   ;;  %v27_v23 = vpop.permute.xlu1 %26  }
  0x7d   :  { %17 = vst.msk [vmem:[#allocation0] sm:$0x1] %vm16_vm2, %v15_v22   ;;  %v100_v24 = vpop.permute.xlu2 %99  }
  0x7e   :  { %23 = vst.msk [vmem:[#allocation0] sm:$0x1] %vm22_vm3, %v21_v20  }
  0x7f   :  { %29 = vst.msk [vmem:[#allocation0] sm:$0x1] %vm28_vm4, %v27_v23  }
  0x80   :  { %35 = vst.msk [vmem:[#allocation0] sm:$0x1] %vm34_vm5, %v33_v16  }
  0x81   :  { %41 = vst.msk [vmem:[#allocation0] sm:$0x1] %vm40_vm6, %v39_v17  }
  0x84   :  { %v45_v25 = vpop.permute.xlu0 %44   ;;  %v51_v26 = vpop.permute.xlu1 %50  }
  0x85   :  { %47 = vst.msk [vmem:[#allocation0] sm:$0x1] %vm46_vm7, %v45_v25  }
  0x86   :  { %53 = vst.msk [vmem:[#allocation0] sm:$0x1] %vm52_vm8, %v51_v26  }
  0x87   :  { %60 = vst.msk [vmem:[#allocation0] ss:$8 sm:$0x3] %vm59_vm9, %v58_v18  }
  0x8c   :  { %v65_v27 = vpop.permute.xlu0 %64   ;;  %v72_v28 = vpop.permute.xlu1 %71  }
  0x8d   :  { %67 = vst.msk [vmem:[#allocation0] ss:$8 sm:$0x3] %vm66_vm10, %v65_v27  }
  0x8e   :  { %74 = vst.msk [vmem:[#allocation0] ss:$8 sm:$0x3] %vm73_vm11, %v72_v28  }
  0x8f   :  { %81 = vst.msk [vmem:[#allocation0] ss:$8 sm:$0x3] %vm80_vm12, %v79_v21  }
  0x94   :  { %v86_v29 = vpop.permute.xlu0 %85   ;;  %v93_v30 = vpop.permute.xlu1 %92  }
  0x95   :  { %88 = vst.msk [vmem:[#allocation0] ss:$8 sm:$0x3] %vm87_vm13, %v86_v29  }
  0x96   :  { %95 = vst.msk [vmem:[#allocation0] ss:$8 sm:$0x3] %vm94_vm14, %v93_v30  }
  0x97   :  { %102 = vst.msk [vmem:[#allocation0] ss:$8 sm:$0x3] %vm101_vm15, %v100_v24  }
  0x9e   :  { %v105_v31 = vld [vmem:[#allocation0] sm:$0x1]  ;;  %v110_v32 = vld [vmem:[#allocation0 + $0x8] sm:$0x1] }
  0x9f   :  { %108 = vst [vmem:[%s226_s1] sm:$0x1] %v105_v31 }
  0xa0   :  { %130 = vst [vmem:[%s226_s1 + $0x1] sm:$0x1] %v110_v32 }

// kernel: tile.23
= control target key start
LH: loop header
LB: loop body
LE: loop exit
PB: predicated region body
PF: predicated region fallthrough
CT: control target
= control target key end

     0   :  { %s28_s0 = inlined_call_operand.vmem [shape: f32[16], index: 0, kind: input, shape index: {}]   ;;  %s29_s1 = inlined_call_operand.vmem [shape: f32[12,16], index: 1, kind: output, shape index: {}]  }
   0x1   :  { %v4_v0 = vld [vmem:[%s28_s0] ss:$0 sm:$0xff] }
   0x2   :  { %5 = vst [vmem:[%s29_s1] sm:$0xff] %v4_v0 }
   0x3   :  { %8 = vst [vmem:[%s29_s1 + $0x8] sm:$0xff] %v4_v0 }

// kernel: tile.24
= control target key start
LH: loop header
LB: loop body
LE: loop exit
PB: predicated region body
PF: predicated region fallthrough
CT: control target
= control target key end

     0   :  { %s78_s10 = smov 112   ;;  %s79_s11 = smov 80   ;;  %vm4_vm0 = vcmask 130048   ;;  %vm10_vm1 = vcmask 1048448   ;;  %vm16_vm2 = vcmask 917248   ;;  %vm22_vm3 = vcmask 786048   ;;  %s125_s0 = inlined_call_operand.vmem [shape: f32[12,16], index: 0, kind: input, shape index: {}]   ;;  %s126_s1 = inlined_call_operand.vmem [shape: f32[1,192], index: 1, kind: output, shape index: {}]  }
   0x1   :  { %v63_v0 = vld [vmem:[%s125_s0 + $0x7] sm:$0x1]   ;;  %v65_v1 = vld [vmem:[%s125_s0 + $0x5] sm:$0x1]   ;;  %s31_s12 = smov 3  ;;  %s80_s15 = smov 48  }
   0x2   :  { %8 = vrot.lane.b32.xlu0 %v63_v0, %s78_s10  ;;  %20 = vrot.lane.b32.xlu1 %v65_v1, %s79_s11  ;;  %v67_v2 = vld [vmem:[%s125_s0 + $0x3] ss:$8 sm:%s31_s12]   ;;  %s38_s20 = smov 3  ;;  %s81_s21 = smov 96   ;;  %vm28_vm4 = vcmask 654848   ;;  %vm35_vm5 = vcmask 523648  }
   0x3   :  { %33 = vrot.lane.b32.xlu2 %v67_v2, %s80_s15  ;;  %v64_v3 = vld [vmem:[%s125_s0 + $0x6] sm:$0x1]   ;;  %v66_v4 = vld [vmem:[%s125_s0 + $0x4] sm:$0x1]   ;;  %s82_s22 = smov 64   ;;  %s45_s25 = smov 3 }
   0x4   :  { %v68_v5 = vld [vmem:[%s125_s0 + $0x2] ss:$8 sm:%s38_s20]   ;;  %s83_s26 = smov 32   ;;  %v69_v6 = vld [vmem:[%s125_s0 + $0x1] ss:$8 sm:%s45_s25]   ;;  %s84_s29 = smov 16  }
   0x5   :  { %s2_s30 = smov 3  ;;  %vm42_vm6 = vcmask 392448   ;;  %vm49_vm7 = vcmask 261248  }
   0x6   :  { %v3_v7 = vld [vmem:[%s125_s0] ss:$8 sm:%s2_s30]  }
   0x7   :  { %5 = vst.msk [vmem:[#allocation0] ss:$8 sm:$0x3] %vm4_vm0, %v3_v7  }
   0xa   :  { %14 = vrot.lane.b32.xlu0 %v64_v3, %s81_s21  ;;  %26 = vrot.lane.b32.xlu1 %v66_v4, %s82_s22 }
   0xb   :  { %40 = vrot.lane.b32.xlu2 %v68_v5, %s83_s26 }
  0x12   :  { %47 = vrot.lane.b32.xlu0 %v69_v6, %s84_s29 }
  0x5d   :  { %v34_v8 = vpop.permute.xlu2 %33  }
  0x65   :  { %v41_v9 = vpop.permute.xlu2 %40  }
  0x74   :  { %v9_v10 = vpop.permute.xlu0 %8   ;;  %v21_v11 = vpop.permute.xlu1 %20  }
  0x75   :  { %11 = vst.msk [vmem:[#allocation0] sm:$0x1] %vm10_vm1, %v9_v10  }
  0x7c   :  { %v15_v12 = vpop.permute.xlu0 %14   ;;  %v27_v13 = vpop.permute.xlu1 %26  }
  0x7d   :  { %17 = vst.msk [vmem:[#allocation0] sm:$0x1] %vm16_vm2, %v15_v12  }
  0x7e   :  { %23 = vst.msk [vmem:[#allocation0] sm:$0x1] %vm22_vm3, %v21_v11  }
  0x7f   :  { %29 = vst.msk [vmem:[#allocation0] sm:$0x1] %vm28_vm4, %v27_v13  }
  0x80   :  { %36 = vst.msk [vmem:[#allocation0] ss:$8 sm:$0x3] %vm35_vm5, %v34_v8  }
  0x81   :  { %43 = vst.msk [vmem:[#allocation0] ss:$8 sm:$0x3] %vm42_vm6, %v41_v9  }
  0x84   :  { %v48_v14 = vpop.permute.xlu0 %47  }
  0x85   :  { %50 = vst.msk [vmem:[#allocation0] ss:$8 sm:$0x3] %vm49_vm7, %v48_v14  }
  0x8c   :  { %v53_v15 = vld [vmem:[#allocation0] sm:$0x1]  ;;  %v58_v16 = vld [vmem:[#allocation0 + $0x8] sm:$0x1] }
  0x8d   :  { %56 = vst [vmem:[%s126_s1] sm:$0x1] %v53_v15 }
  0x8e   :  { %70 = vst [vmem:[%s126_s1 + $0x1] sm:$0x1] %v58_v16 }

// kernel: tile.28
= control target key start
LH: loop header
LB: loop body
LE: loop exit
PB: predicated region body
PF: predicated region fallthrough
CT: control target
= control target key end

     0   :  { %s22_s0 = inlined_call_operand.vmem [shape: f32[32], index: 0, kind: input, shape index: {}]   ;;  %s23_s1 = inlined_call_operand.vmem [shape: f32[6,32], index: 1, kind: output, shape index: {}]  }
   0x1   :  { %v4_v0 = vld [vmem:[%s22_s0] ss:$0 sm:$0xff] }
   0x2   :  { %5 = vst [vmem:[%s23_s1] sm:$0xff] %v4_v0 }

// kernel: tile.29
= control target key start
LH: loop header
LB: loop body
LE: loop exit
PB: predicated region body
PF: predicated region fallthrough
CT: control target
= control target key end

     0   :  { %s44_s8 = smov 96   ;;  %s19_s9 = smov 3  ;;  %vm4_vm0 = vcmask 261120   ;;  %vm10_vm1 = vcmask 1048320   ;;  %vm16_vm2 = vcmask 785920   ;;  %vm23_vm3 = vcmask 523520   ;;  %s75_s0 = inlined_call_operand.vmem [shape: f32[6,32], index: 0, kind: input, shape index: {}]   ;;  %s76_s1 = inlined_call_operand.vmem [shape: f32[1,192], index: 1, kind: output, shape index: {}]  }
   0x1   :  { %v37_v0 = vld [vmem:[%s75_s0 + $0x3] sm:$0x1]   ;;  %v39_v1 = vld [vmem:[%s75_s0 + $0x1] ss:$4 sm:%s19_s9]   ;;  %s45_s12 = smov 32   ;;  %s46_s15 = smov 64  }
   0x2   :  { %8 = vrot.lane.b32.xlu0 %v37_v0, %s44_s8  ;;  %21 = vrot.lane.b32.xlu1 %v39_v1, %s45_s12  ;;  %v38_v2 = vld [vmem:[%s75_s0 + $0x2] sm:$0x1]   ;;  %s2_s16 = smov 3 }
   0x3   :  { %v3_v3 = vld [vmem:[%s75_s0] ss:$4 sm:%s2_s16]  }
   0x4   :  { %5 = vst.msk [vmem:[#allocation0] ss:$8 sm:$0x3] %vm4_vm0, %v3_v3  }
   0xa   :  { %14 = vrot.lane.b32.xlu0 %v38_v2, %s46_s15 }
  0x74   :  { %v9_v4 = vpop.permute.xlu0 %8   ;;  %v22_v5 = vpop.permute.xlu1 %21  }
  0x75   :  { %11 = vst.msk [vmem:[#allocation0] sm:$0x1] %vm10_vm1, %v9_v4  }
  0x7c   :  { %v15_v6 = vpop.permute.xlu0 %14  }
  0x7d   :  { %17 = vst.msk [vmem:[#allocation0] sm:$0x1] %vm16_vm2, %v15_v6  }
  0x7e   :  { %24 = vst.msk [vmem:[#allocation0] ss:$8 sm:$0x3] %vm23_vm3, %v22_v5  }
  0x85   :  { %v27_v7 = vld [vmem:[#allocation0] sm:$0x1]  ;;  %v32_v8 = vld [vmem:[#allocation0 + $0x8] sm:$0x1] }
  0x86   :  { %30 = vst [vmem:[%s76_s1] sm:$0x1] %v27_v7 }
  0x87   :  { %40 = vst [vmem:[%s76_s1 + $0x1] sm:$0x1] %v32_v8 }

// kernel: forward.1
= control target key start
LH: loop header
LB: loop body
LE: loop exit
PB: predicated region body
PF: predicated region fallthrough
CT: control target
= control target key end

     0   :  { %s23625_s0 = inlined_call_operand.vmem [shape: f32[2,26,104], index: 0, kind: input, shape index: {}]   ;;  %s23626_s1 = inlined_call_operand.vmem [shape: f32[3,104,192], index: 1, kind: input, shape index: {}]   ;;  %s23627_s2 = inlined_call_operand.vmem [shape: f32[1,192], index: 2, kind: input, shape index: {}]   ;;  %s23628_s3 = inlined_call_operand.vmem [shape: f32[14,23], index: 3, kind: input, shape index: {}]   ;;  %s23629_s4 = inlined_call_operand.vmem [shape: f32[2,192,112], index: 4, kind: input, shape index: {}]   ;;  %s23630_s5 = inlined_call_operand.vmem [shape: f32[3,112,192], index: 5, kind: input, shape index: {}]   ;;  %s23631_s6 = inlined_call_operand.vmem [shape: f32[1,192], index: 6, kind: input, shape index: {}]   ;;  %s23632_s7 = inlined_call_operand.vmem [shape: f32[8,11], index: 7, kind: input, shape index: {}]   ;;  %s23633_s8 = inlined_call_operand.vmem [shape: f32[2,192,128], index: 8, kind: input, shape index: {}]   ;;  %s23634_s9 = inlined_call_operand.vmem [shape: f32[3,128,192], index: 9, kind: input, shape index: {}]   ;;  %s23635_s10 = inlined_call_operand.vmem [shape: f32[1,192], index: 10, kind: input, shape index: {}]   ;;  %s23636_s11 = inlined_call_operand.vmem [shape: f32[3,5], index: 11, kind: input, shape index: {}]   ;;  %s23637_s12 = inlined_call_operand.vmem [shape: f32[2,192,96], index: 12, kind: input, shape index: {}]   ;;  %s23638_s13 = inlined_call_operand.vmem [shape: f32[3,96,128], index: 13, kind: input, shape index: {}]   ;;  %s23639_s14 = inlined_call_operand.vmem [shape: f32[1,128], index: 14, kind: input, shape index: {}]   ;;  %s23640_s15 = inlined_call_operand.vmem [shape: f32[128,10], index: 15, kind: input, shape index: {}]   ;;  %s23641_s16 = inlined_call_operand.vmem [shape: f32[1,10], index: 16, kind: input, shape index: {}]   ;;  %s23642_s17 = inlined_call_operand.hbm [shape: f32[2,1,10], index: 17, kind: output, shape index: {}]  }
   0x1   :  { %23888 = sst [smem:[#allocation49_spill]] %s23625_s0 }
   0x2   :  { %23889 = sst [smem:[#allocation50_spill]] %s23626_s1 }
   0x3   :  { %23890 = sst [smem:[#allocation51_spill]] %s23627_s2 }
   0x4   :  { %23891 = sst [smem:[#allocation52_spill]] %s23628_s3 }
   0x5   :  { %23892 = sst [smem:[#allocation53_spill]] %s23629_s4 }
   0x6   :  { %22 = vsyncpa [#allocation7], 0 }
   0x7   :  { %24 = vsyncpa [#allocation7 + $0x1], 0  ;;  %s13964_s24 = smov 0   ;;  %s13966_s25 = smov 0  }
   0x8   :  { %s13968_s26 = smov 0   ;;  %s13970_s27 = smov 0  }
   0x9 LB: > { %23893 = sst [smem:[#allocation9_spill]] %s13868_s26  ;;  %s13985_s28 = sadd.s32 4294967295, %s13872_s27   ;;  %s13872_s27 = sphi %s13970_s27, %s24369_s27   ;;  %s13868_s26 = sphi %s13968_s26, %s24371_s26   ;;  %s13864_s25 = sphi %s13966_s25, %s24373_s25   ;;  %s13860_s24 = sphi %s13964_s24, %s24372_s24  }
   0xa   : > { %s13494_s29 = sadd.s32 4294967294, %s13872_s27   ;;  %s13989_s0 = sadd.s32 1, %s13872_s27  }
   0xb   : > { %23894 = sst [smem:[#allocation10_spill]] %s13989_s0  ;;  %s399_s30 = sadd.s32 1, %s13868_s26 }
   0xc   : > { %s396_s18 = ssub.s32 %s13872_s27, %s13989_s0  ;;  %p409_p0 = scmp.ne.s32.totalorder %s13868_s26, %s13864_s25 }
   0xd   : > { %p397_p1 = scmp.eq.s32.totalorder %s396_s18, 0  ;;  %p410_p2 = scmp.eq.s32.totalorder %s13985_s28, 1 }
   0xe   : > { %p415_p3 = scmp.ne.s32.totalorder %s13864_s25, %s13860_s24  ;;  %p416_p4 = scmp.eq.s32.totalorder %s13494_s29, 1 }
   0xf   : > { %s14000_s19 = scalar_select %p397_p1, %s13868_s26, %s399_s30  }
  0x10   : > { %p14002_p5 = por %p410_p2, %p409_p0  ;;  %p14006_p6 = por %p416_p4, %p415_p3 }
  0x11   : > { %23895 = sst [smem:[#allocation11_spill]] %s14000_s19  ;;  %p13497_p7 = scmp.ge.s32.totalorder %s13872_s27, 1 }
  0x12   : > { %p490_p8 = scmp.lt.s32.totalorder %s13872_s27, 3 }
  0x14   : > { %p491_p9 = pnand %p13497_p7, %p490_p8 }
  0x16   : > { %494 = sbr.rel (%p491_p9) target bundleno = 2883 (0xb43), region = 88 }
  0x1b   : > { %s23898_s23 = sld [smem:[#allocation50_spill]]  ;;  %p541_p10 = scmp.lt.s32.totalorder %s13985_s28, 1  ;;  %vm605_vm0 = vcmask 850944   ;;  %vm2919_vm1 = vcmask 187392   ;;  %vm2894_vm2 = vcmask 1046528   ;;  %vm2872_vm3 = vcmask 523264  }
  0x1c   : > { %s24026_s2 = sld [smem:[#allocation51_spill]]  ;;  %vm4675_vm4 = vcmask 916480   ;;  %vm4677_vm5 = vcmask 914432   ;;  %vm6915_vm6 = vcmask 89088   ;;  %vm6919_vm7 = vcmask 1042432   ;;  %s13435_s22 = scalar_lea.hbm %s23642_s17, %s13985_s28 }
  0x1d   : > { %s542_s26 = scalar_select %p541_p10, %s13985_s28, 1  ;;  %vm6886_vm8 = vcmask 519168   ;;  %vm10629_vm9 = vcmask 39936   ;;  %vm10633_vm10 = vcmask 1044480   ;;  %vm10614_vm11 = vcmask 521216  }
  0x1e   : > { %s24036_s3 = sld [smem:[#allocation52_spill]]  ;;  %vm12141_vm12 = vcmask 780288   ;;  %vm12157_vm13 = vcmask 785408   ;;  %vm13424_vm14 = vcmask 73728   ;;  %s13830_s21 = scalar_lea.hbm %s23642_s17, 2 }
  0x1f   : > { %s13770_s18 = sshll.u32 %s542_s26, 5  ;;  %s23899_s26 = sld [smem:[#allocation49_spill]] }
  0x20   : > { %s24050_s4 = sld [smem:[#allocation53_spill]] }
  0x21   : > { %v13524_v0 = vld [vmem:[%s23898_s23 + $0x190] sm:$0xff]  ;;  %v13522_v1 = vld [vmem:[%s23898_s23 + $0x180] sm:$0xff]  ;;  %v13525_v49 = vld [vmem:[%s23898_s23 + $0x198] sm:$0xff] }
  0x22   : > { %v13520_v2 = vld [vmem:[%s23898_s23 + $0x170] sm:$0xff]  ;;  %v14022_v3 = vand.u32 4294901760, %v13524_v0  ;;  %v14024_v4 = vand.u32 4294901760, %v13522_v1  ;;  %v13518_v6 = vld [vmem:[%s23898_s23 + $0x160] sm:$0xff]  ;;  %v13523_v55 = vld [vmem:[%s23898_s23 + $0x188] sm:$0xff]  ;;  %v14175_v62 = vand.u32 4294901760, %v13525_v49 }
  0x23   : > { %v14026_v5 = vand.u32 4294901760, %v13520_v2  ;;  %v13516_v7 = vld [vmem:[%s23898_s23 + $0x150] sm:$0xff]  ;;  %v13514_v8 = vld [vmem:[%s23898_s23 + $0x140] sm:$0xff]  ;;  %v14037_v9 = vand.u32 4294901760, %v13518_v6 }
  0x24   : > { %v14039_v10 = vand.u32 4294901760, %v13516_v7  ;;  %v14041_v11 = vand.u32 4294901760, %v13514_v8  ;;  %v13512_v12 = vld [vmem:[%s23898_s23 + $0x130] sm:$0xff]  ;;  %v13510_v13 = vld [vmem:[%s23898_s23 + $0x120] sm:$0xff]  ;;  %619 = vmatpush.msra.mxu0 %v14022_v3  ;;  %v14051_v14 = vsub.f32 %v13524_v0, %v14022_v3  ;;  %v14054_v15 = vsub.f32 %v13522_v1, %v14024_v4  ;;  %825 = vmatpush.msra.mxu3 %v14022_v3 }
  0x25   : > { %v14058_v16 = vsub.f32 %v13520_v2, %v14026_v5  ;;  %v14060_v17 = vand.u32 4294901760, %v13512_v12  ;;  %v14066_v18 = vsub.f32 %v13518_v6, %v14037_v9  ;;  %v14071_v20 = vand.u32 4294901760, %v13510_v13  ;;  %v13508_v21 = vld [vmem:[%s23898_s23 + $0x110] sm:$0xff]  ;;  %v13506_v26 = vld [vmem:[%s23898_s23 + $0x100] sm:$0xff]  ;;  %s14109_s0 = scalar_lea.vmem %s23899_s26, %s13770_s18  ;;  %v13521_v6 = vld [vmem:[%s23898_s23 + $0x178] sm:$0xff] }
  0x26   : > { %v14069_v19 = vsub.f32 %v13516_v7, %v14039_v10  ;;  %621 = vmatpush.msra.mxu0 %v14024_v4  ;;  %768 = vmatpush.msra.mxu2 %v14051_v14  ;;  %v674_v22 = vand.u32 4294901760, %v14051_v14  ;;  %v680_v23 = vand.u32 4294901760, %v14054_v15  ;;  %v14082_v25 = vsub.f32 %v13514_v8, %v14041_v11  ;;  %v13504_v36 = vld [vmem:[%s23898_s23 + $0xf0] sm:$0xff]  ;;  %v575_v42 = vld [vmem:[%s14109_s0 + $0x1] sm:$0xff] }
  0x27   : > { %v686_v24 = vand.u32 4294901760, %v14058_v16  ;;  %827 = vmatpush.msra.mxu3 %v14024_v4  ;;  %v692_v27 = vand.u32 4294901760, %v14066_v18  ;;  %v14090_v28 = vsub.f32 %v13512_v12, %v14060_v17  ;;  %v14104_v33 = vand.u32 4294901760, %v13508_v21  ;;  %v13502_v47 = vld [vmem:[%s23898_s23 + $0xe0] sm:$0xff]  ;;  %v13500_v53 = vld [vmem:[%s23898_s23 + $0xd0] sm:$0xff] }
  0x28   : > { %v23658_v29 = vand.u32 4294901760, %v14069_v19  ;;  %623 = vmatpush.msra.mxu0 %v14026_v5  ;;  %771 = vmatpush.msra.mxu2 %v14054_v15  ;;  %v675_v30 = vsub.f32 %v14051_v14, %v674_v22  ;;  %v681_v31 = vsub.f32 %v14054_v15, %v680_v23  ;;  %v14113_v34 = vsub.f32 %v13510_v13, %v14071_v20  ;;  %v13511_v14 = vld [vmem:[%s23898_s23 + $0x128] sm:$0xff]  ;;  %v13509_v15 = vld [vmem:[%s23898_s23 + $0x118] sm:$0xff] }
  0x29   : > { %v687_v32 = vsub.f32 %v14058_v16, %v686_v24  ;;  %829 = vmatpush.msra.mxu3 %v14026_v5  ;;  %v14115_v35 = vand.u32 4294901760, %v13506_v26  ;;  %v693_v39 = vsub.f32 %v14066_v18, %v692_v27  ;;  %v23653_v40 = vand.u32 4294901760, %v14082_v25 }
  0x2a   : > { %625 = vmatpush.msra.mxu0 %v14037_v9  ;;  %774 = vmatpush.msra.mxu2 %v14058_v16  ;;  %v676_v37 = vand.u32 4294901760, %v675_v30  ;;  %v682_v38 = vand.u32 4294901760, %v681_v31  ;;  %v699_v41 = vsub.f32 %v14069_v19, %v23658_v29  ;;  %v14133_v44 = vsub.f32 %v13508_v21, %v14104_v33  ;;  %v13507_v16 = vld [vmem:[%s23898_s23 + $0x108] sm:$0xff] }
  0x2b   : > { %831 = vmatpush.msra.mxu3 %v14037_v9  ;;  %v688_v43 = vand.u32 4294901760, %v687_v32  ;;  %v14135_v45 = vand.u32 4294901760, %v13504_v36  ;;  %v23651_v46 = vand.u32 4294901760, %v14090_v28  ;;  %v23650_v48 = vand.u32 4294901760, %v14113_v34 }
  0x2c   : > { %627 = vmatpush.msra.mxu0 %v14039_v10  ;;  %677 = vmatpush.msra.mxu1 %v676_v37  ;;  %v694_v50 = vand.u32 4294901760, %v693_v39  ;;  %v705_v51 = vsub.f32 %v14082_v25, %v23653_v40  ;;  %v14152_v52 = vsub.f32 %v13506_v26, %v14115_v35  ;;  %v607_v54 = vsel %vm605_vm0, %v575_v42, 0  ;;  %v576_v26 = vld [vmem:[%s14109_s0 + $0x9] sm:$0xff] }
  0x2d   : > { %777 = vmatpush.msra.mxu2 %v14066_v18  ;;  %833 = vmatpush.msra.mxu3 %v14039_v10  ;;  %v700_v56 = vand.u32 4294901760, %v699_v41  ;;  %v14163_v57 = vand.u32 4294901760, %v13502_v47  ;;  %v14165_v58 = vand.u32 4294901760, %v607_v54  ;;  %v711_v59 = vsub.f32 %v14090_v28, %v23651_v46  ;;  %v13519_v37 = vld [vmem:[%s23898_s23 + $0x168] sm:$0xff]  ;;  %v13505_v18 = vld [vmem:[%s23898_s23 + $0xf8] sm:$0xff] }
  0x2e   : > { %629 = vmatpush.msra.mxu0 %v14041_v11  ;;  %683 = vmatpush.msra.mxu1 %v682_v38  ;;  %v14172_v60 = vsub.f32 %v13504_v36, %v14135_v45  ;;  %v23649_v61 = vand.u32 4294901760, %v14133_v44  ;;  %v717_v63 = vsub.f32 %v14113_v34, %v23650_v48  ;;  %v14182_v0 = vand.u32 4294901760, %v13500_v53 }
  0x2f   : > { %780 = vmatpush.msra.mxu2 %v14069_v19  ;;  %835 = vmatpush.msra.mxu3 %v14041_v11  ;;  %v14185_v1 = vsub.f32 %v607_v54, %v14165_v58  ;;  %v14187_v2 = vand.u32 4294901760, %v13523_v55  ;;  %v706_v7 = vand.u32 4294901760, %v705_v51  ;;  %v23648_v8 = vand.u32 4294901760, %v14152_v52 }
  0x30   : > { %631 = vmatpush.msra.mxu0 %v14060_v17  ;;  %689 = vmatpush.msra.mxu1 %v688_v43  ;;  %v14195_v12 = vsub.f32 %v13525_v49, %v14175_v62  ;;  %v14200_v13 = vsub.f32 %v13502_v47, %v14163_v57  ;;  %v712_v30 = vand.u32 4294901760, %v711_v59  ;;  %v723_v31 = vsub.f32 %v14133_v44, %v23649_v61 }
  0x31   : > { %783 = vmatpush.msra.mxu2 %v14082_v25  ;;  %837 = vmatpush.msra.mxu3 %v14060_v17  ;;  %v14203_v21 = vand.u32 4294901760, %v14185_v1  ;;  %v23647_v32 = vand.u32 4294901760, %v14172_v60  ;;  %v14211_v36 = vand.u32 4294901760, %v13521_v6  ;;  %v718_v38 = vand.u32 4294901760, %v717_v63  ;;  %v13515_v63 = vld [vmem:[%s23898_s23 + $0x148] sm:$0xff] }
  0x32   : > { %633 = vmatpush.msra.mxu0 %v14071_v20  ;;  %695 = vmatpush.msra.mxu1 %v694_v50  ;;  %v14219_v39 = vsub.f32 %v13500_v53, %v14182_v0  ;;  %v14222_v41 = vsub.f32 %v13523_v55, %v14187_v2  ;;  %v729_v43 = vsub.f32 %v14152_v52, %v23648_v8  ;;  %v23652_v47 = vand.u32 4294901760, %v14195_v12  ;;  %v13517_v50 = vld [vmem:[%s23898_s23 + $0x158] sm:$0xff] }
  0x33   : > { %786 = vmatpush.msra.mxu2 %v14090_v28  ;;  %839 = vmatpush.msra.mxu3 %v14071_v20  ;;  %v647_v42 = vsub.f32 %v14185_v1, %v14203_v21  ;;  %v610_v49 = vsel %vm605_vm0, %v576_v26, 0  ;;  %v23654_v51 = vand.u32 4294901760, %v14200_v13  ;;  %v14238_v53 = vand.u32 4294901760, %v13519_v37 }
  0x34   : > { %635 = vmatpush.msra.mxu0 %v14104_v33  ;;  %701 = vmatpush.msra.mxu1 %v700_v56  ;;  %v14240_v54 = vand.u32 4294901760, %v610_v49  ;;  %v724_v55 = vand.u32 4294901760, %v723_v31  ;;  %v735_v56 = vsub.f32 %v14172_v60, %v23647_v32  ;;  %v14247_v59 = vsub.f32 %v13521_v6, %v14211_v36 }
  0x35   : > { %789 = vmatpush.msra.mxu2 %v14113_v34  ;;  %841 = vmatpush.msra.mxu3 %v14104_v33  ;;  %v23655_v26 = vand.u32 4294901760, %v14222_v41  ;;  %v14260_v32 = vand.u32 4294901760, %v13517_v50  ;;  %v14263_v6 = vand.u32 4294901760, %v647_v42  ;;  %v730_v8 = vand.u32 4294901760, %v729_v43 }
  0x36   : > { %637 = vmatpush.msra.mxu0 %v14115_v35  ;;  %707 = vmatpush.msra.mxu1 %v706_v7  ;;  %v577_v7 = vld [vmem:[%s14109_s0 + $0x11] sm:$0xff]  ;;  %v14258_v31 = vsub.f32 %v610_v49, %v14240_v54  ;;  %v1039_v61 = vsub.f32 %v14195_v12, %v23652_v47  ;;  %v741_v49 = vsub.f32 %v14200_v13, %v23654_v51  ;;  %v14276_v46 = vand.u32 4294901760, %v13515_v63 }
  0x37   : > { %792 = vmatpush.msra.mxu2 %v14133_v44  ;;  %843 = vmatpush.msra.mxu3 %v14115_v35  ;;  %v14274_v48 = vsub.f32 %v13519_v37, %v14238_v53  ;;  %v613_v42 = vsel %vm605_vm0, %v577_v7, 0  ;;  %v736_v43 = vand.u32 4294901760, %v735_v56  ;;  %v23657_v47 = vand.u32 4294901760, %v14247_v59 }
  0x38   : > { %639 = vmatpush.msra.mxu0 %v14135_v45  ;;  %713 = vmatpush.msra.mxu1 %v712_v30  ;;  %v23656_v30 = vand.u32 4294901760, %v14219_v39  ;;  %v14285_v40 = vand.u32 4294901760, %v14258_v31  ;;  %v1045_v37 = vsub.f32 %v14222_v41, %v23655_v26  ;;  %v1040_v56 = vand.u32 4294901760, %v1039_v61 }
  0x39   : > { %795 = vmatpush.msra.mxu2 %v14152_v52  ;;  %845 = vmatpush.msra.mxu3 %v14135_v45  ;;  %v742_v26 = vand.u32 4294901760, %v741_v49  ;;  %v1051_v61 = vsub.f32 %v14247_v59, %v23657_v47 }
  0x3a   : > { %641 = vmatpush.msra.mxu0 %v14163_v57  ;;  %719 = vmatpush.msra.mxu1 %v718_v38  ;;  %v13513_v38 = vld [vmem:[%s23898_s23 + $0x138] sm:$0xff]  ;;  %v747_v7 = vsub.f32 %v14219_v39, %v23656_v30  ;;  %v14312_v30 = vsub.f32 %v13515_v63, %v14276_v46 }
  0x3b   : > { %798 = vmatpush.msra.mxu2 %v14172_v60  ;;  %847 = vmatpush.msra.mxu3 %v14163_v57  ;;  %v14300_v51 = vand.u32 4294901760, %v13513_v38 }
  0x3c   : > { %643 = vmatpush.msra.mxu0 %v14182_v0  ;;  %725 = vmatpush.msra.mxu1 %v724_v55  ;;  %v14297_v55 = vsub.f32 %v13517_v50, %v14260_v32  ;;  %v23659_v50 = vand.u32 4294901760, %v14274_v48  ;;  %v748_v63 = vand.u32 4294901760, %v747_v7  ;;  %v14344_v7 = vand.u32 4294901760, %v13509_v15 }
  0x3d   : > { %801 = vmatpush.msra.mxu2 %v14200_v13  ;;  %649 = vmatmul.f32.vlgmr.msra.gmra.mxu0 %v14263_v6  ;;  %v14331_v47 = vsub.f32 %v13513_v38, %v14300_v51  ;;  %v1052_v38 = vand.u32 4294901760, %v1051_v61 }
  0x3e   : > { %875 = vmatpush.msrb.mxu0 %v674_v22  ;;  %731 = vmatpush.msra.mxu1 %v730_v8  ;;  %v14305_v22 = vand.u32 4294901760, %v613_v42  ;;  %v655_v8 = vsub.f32 %v14258_v31, %v14285_v40  ;;  %v23661_v49 = vand.u32 4294901760, %v14297_v55 }
  0x3f   : > { %804 = vmatpush.msra.mxu2 %v14219_v39  ;;  %849 = vmatpush.msra.mxu3 %v14182_v0  ;;  %v23662_v61 = vand.u32 4294901760, %v14331_v47 }
  0x40   : > { %879 = vmatpush.msrb.mxu0 %v680_v23  ;;  %737 = vmatpush.msra.mxu1 %v736_v43  ;;  %v1046_v23 = vand.u32 4294901760, %v1045_v37  ;;  %v14327_v43 = vand.u32 4294901760, %v13511_v14  ;;  %v14334_v29 = vsub.f32 %v613_v42, %v14305_v22  ;;  %v23660_v37 = vand.u32 4294901760, %v14312_v30 }
  0x41   : > { %983 = vmatpush.msrb.mxu2 %v14175_v62  ;;  %1041 = vmatpush.msrb.mxu3 %v1040_v56  ;;  %v14349_v42 = vand.u32 4294901760, %v655_v8 }
  0x42   : > { %883 = vmatpush.msrb.mxu0 %v686_v24  ;;  %743 = vmatpush.msra.mxu1 %v742_v26  ;;  %v1057_v24 = vsub.f32 %v14274_v48, %v23659_v50  ;;  %v1063_v26 = vsub.f32 %v14297_v55, %v23661_v49  ;;  %v14355_v56 = vsub.f32 %v13511_v14, %v14327_v43  ;;  %v14357_v50 = vand.u32 4294901760, %v13507_v16 }
  0x43   : > { %985 = vmatpush.msrb.mxu2 %v14187_v2  ;;  %1047 = vmatpush.msrb.mxu3 %v1046_v23  ;;  %v14367_v8 = vand.u32 4294901760, %v14334_v29  ;;  %v1069_v23 = vsub.f32 %v14312_v30, %v23660_v37 }
  0x44   : > { %807 = vmatmul.f32.vlgmr.msra.gmra.mxu2 %v14185_v1  ;;  %887 = vmatpush.msrb.mxu0 %v692_v27  ;;  %v23900_v27 = vand.u32 4294901760, %v14069_v19  ;;  %v1058_v14 = vand.u32 4294901760, %v1057_v24  ;;  %v14378_v19 = vand.u32 4294901760, %v13505_v18  ;;  %v1064_v24 = vand.u32 4294901760, %v1063_v26 }
  0x45   : > { %987 = vmatpush.msrb.mxu2 %v14211_v36  ;;  %749 = vmatpush.msra.mxu1 %v748_v63  ;;  %v14375_v63 = vsub.f32 %v13509_v15, %v14344_v7  ;;  %v23663_v37 = vand.u32 4294901760, %v14355_v56  ;;  %v14388_v15 = vsub.f32 %v13507_v16, %v14357_v50  ;;  %v663_v49 = vsub.f32 %v14334_v29, %v14367_v8 }
  0x46   : > { %853 = vmatmul.f32.vlgmr.msra.gmra.mxu3 %v14203_v21  ;;  %891 = vmatpush.msrb.mxu0 %v23900_v27  ;;  %v13503_v27 = vld [vmem:[%s23898_s23 + $0xe8] sm:$0xff]  ;;  %v23902_v26 = vand.u32 4294901760, %v14090_v28  ;;  %v1070_v16 = vand.u32 4294901760, %v1069_v23 }
  0x47   : > { %941 = vmatpush.msrb.mxu1 %v14022_v3  ;;  %989 = vmatpush.msrb.mxu2 %v14238_v53  ;;  %v23901_v3 = vand.u32 4294901760, %v14082_v25  ;;  %v13501_v25 = vld [vmem:[%s23898_s23 + $0xd8] sm:$0xff]  ;;  %v1081_v28 = vsub.f32 %v14355_v56, %v23663_v37 }
  0x48   : > { %1053 = vmatpush.msrb.mxu3 %v1052_v38  ;;  %657 = vmatmul.f32.gmra.mxu0 %v14349_v42  ;;  %v1075_v38 = vsub.f32 %v14331_v47, %v23662_v61  ;;  %v14408_v61 = vsub.f32 %v13505_v18, %v14378_v19  ;;  %v14415_v23 = vand.u32 4294901760, %v13501_v25  ;;  %v23904_v18 = vand.u32 4294901760, %v14375_v63 }
  0x49   : > { %751 = vmatmul.f32.vlgmr.msra.gmra.mxu1 %v14165_v58  ;;  %895 = vmatpush.msrb.mxu0 %v23901_v3  ;;  %v14403_v3 = vand.u32 4294901760, %v13503_v27 }
  0x4a   : > { %943 = vmatpush.msrb.mxu1 %v14024_v4  ;;  %991 = vmatpush.msrb.mxu2 %v14260_v32  ;;  %v14420_v4 = vand.u32 4294901760, %v663_v49  ;;  %v1082_v49 = vand.u32 4294901760, %v1081_v28  ;;  %v23907_v28 = vand.u32 4294901760, %v14172_v60 }
  0x4b   : > { %1059 = vmatpush.msrb.mxu3 %v1058_v14  ;;  %899 = vmatpush.msrb.mxu0 %v23902_v26  ;;  %v1092_v14 = vand.u32 4294901760, %v14388_v15  ;;  %v23903_v26 = vand.u32 4294901760, %v14113_v34  ;;  %v14427_v37 = vsub.f32 %v13503_v27, %v14403_v3  ;;  %v23905_v34 = vand.u32 4294901760, %v14133_v44 }
  0x4c   : > { %945 = vmatpush.msrb.mxu1 %v14026_v5  ;;  %993 = vmatpush.msrb.mxu2 %v14276_v46  ;;  %v1076_v5 = vand.u32 4294901760, %v1075_v38  ;;  %v23906_v44 = vand.u32 4294901760, %v14152_v52  ;;  %v23908_v52 = vand.u32 4294901760, %v14200_v13 }
  0x4d   : > { %1065 = vmatpush.msrb.mxu3 %v1064_v24  ;;  %812 = vmatmul.f32.gmra.mxu2 %v14258_v31  ;;  %v1087_v24 = vsub.f32 %v14375_v63, %v23904_v18  ;;  %v1093_v38 = vsub.f32 %v14388_v15, %v1092_v14  ;;  %v23909_v18 = vand.u32 4294901760, %v14219_v39  ;;  %v23910_v39 = vand.u32 4294901760, %v14195_v12 }
  0x4e   : > { %903 = vmatpush.msrb.mxu0 %v23903_v26  ;;  %947 = vmatpush.msrb.mxu1 %v14037_v9  ;;  %v1098_v9 = vand.u32 4294901760, %v14408_v61 }
  0x4f   : > { %995 = vmatpush.msrb.mxu2 %v14300_v51  ;;  %1071 = vmatpush.msrb.mxu3 %v1070_v16  ;;  %v14439_v16 = vsub.f32 %v13501_v25, %v14415_v23  ;;  %v1088_v27 = vand.u32 4294901760, %v1087_v24  ;;  %v1094_v26 = vand.u32 4294901760, %v1093_v38  ;;  %v546_v24 = vld [vmem:[%s14109_s0] sm:$0xff] }
  0x50   : > { %859 = vmatmul.f32.gmra.mxu3 %v14285_v40  ;;  %907 = vmatpush.msrb.mxu0 %v23905_v34  ;;  %v1099_v25 = vsub.f32 %v14408_v61, %v1098_v9 }
  0x51   : > { %949 = vmatpush.msrb.mxu1 %v14039_v10  ;;  %997 = vmatpush.msrb.mxu2 %v14327_v43  ;;  %v1104_v10 = vand.u32 4294901760, %v14427_v37 }
  0x52   : > { %1077 = vmatpush.msrb.mxu3 %v1076_v5  ;;  %665 = vmatmul.f32.gmra.mxu0 %v14420_v4  ;;  %v1110_v5 = vand.u32 4294901760, %v14439_v16  ;;  %v1100_v60 = vand.u32 4294901760, %v1099_v25 }
  0x53   : > { %755 = vmatmul.f32.gmra.mxu1 %v14240_v54  ;;  %911 = vmatpush.msrb.mxu0 %v23906_v44  ;;  %v1344_v44 = vsel %vm605_vm0, %v546_v24, 0 }
  0x54   : > { %951 = vmatpush.msrb.mxu1 %v14041_v11  ;;  %999 = vmatpush.msrb.mxu2 %v14344_v7  ;;  %v1105_v11 = vsub.f32 %v14427_v37, %v1104_v10 }
  0x55   : > { %1083 = vmatpush.msrb.mxu3 %v1082_v49  ;;  %915 = vmatpush.msrb.mxu0 %v23907_v28 }
  0x56   : > { %953 = vmatpush.msrb.mxu1 %v14060_v17  ;;  %1001 = vmatpush.msrb.mxu2 %v14357_v50  ;;  %v1111_v17 = vsub.f32 %v14439_v16, %v1110_v5  ;;  %v1106_v13 = vand.u32 4294901760, %v1105_v11  ;;  %v14662_v11 = vand.u32 4294901760, %v1344_v44 }
  0x57   : > { %1089 = vmatpush.msrb.mxu3 %v1088_v27  ;;  %817 = vmatmul.f32.gmra.mxu2 %v14334_v29 }
  0x58   : > { %919 = vmatpush.msrb.mxu0 %v23908_v52  ;;  %955 = vmatpush.msrb.mxu1 %v14071_v20  ;;  %v1112_v20 = vand.u32 4294901760, %v1111_v17  ;;  %v553_v52 = vld [vmem:[%s23898_s23 + $0x20] sm:$0xff] }
  0x59   : > { %1003 = vmatpush.msrb.mxu2 %v14378_v19  ;;  %1095 = vmatpush.msrb.mxu3 %v1094_v26 }
  0x5a   : > { %865 = vmatmul.f32.gmra.mxu3 %v14367_v8  ;;  %923 = vmatpush.msrb.mxu0 %v23909_v18 }
  0x5b   : > { %957 = vmatpush.msrb.mxu1 %v14104_v33  ;;  %1005 = vmatpush.msrb.mxu2 %v14403_v3  ;;  %v23911_v33 = vand.u32 4294901760, %v14222_v41 }
  0x5c   : > { %1101 = vmatpush.msrb.mxu3 %v1100_v60  ;;  %759 = vmatmul.f32.gmra.mxu1 %v14305_v22 }
  0x5d   : > { %925 = vmatmul.f32.vlgmr.msrb.gmra.mxu0 %v14165_v58  ;;  %959 = vmatpush.msrb.mxu1 %v14115_v35  ;;  %v23912_v35 = vand.u32 4294901760, %v14247_v59 }
  0x5e   : > { %1132 = vmatpush.msra.mxu0 %v14195_v12  ;;  %1007 = vmatpush.msrb.mxu2 %v14415_v23  ;;  %v571_v12 = vld [vmem:[%s23898_s23 + $0xb0] sm:$0xff] }
  0x5f   : > { %1107 = vmatpush.msrb.mxu3 %v1106_v13  ;;  %961 = vmatpush.msrb.mxu1 %v14135_v45  ;;  %v23913_v45 = vand.u32 4294901760, %v14274_v48 }
  0x60   : > { %1239 = vmatpush.msra.mxu2 %v23910_v39  ;;  %1135 = vmatpush.msra.mxu0 %v14222_v41  ;;  %v14686_v39 = vand.u32 4294901760, %v553_v52 }
  0x61   : > { %1113 = vmatpush.msrb.mxu3 %v1112_v20  ;;  %963 = vmatpush.msrb.mxu1 %v14163_v57  ;;  %v23914_v57 = vand.u32 4294901760, %v14297_v55 }
  0x62   : > { %1243 = vmatpush.msra.mxu2 %v23911_v33  ;;  %1138 = vmatpush.msra.mxu0 %v14247_v59 }
  0x63   : > { %1305 = vmatpush.msra.mxu3 %v14175_v62  ;;  %1013 = vmatmul.f32.vlgmr.msrb.gmra.mxu2 %v14263_v6  ;;  %v565_v6 = vld [vmem:[%s23898_s23 + $0x80] sm:$0xff] }
  0x64   : > { %1141 = vmatpush.msra.mxu0 %v14274_v48  ;;  %1247 = vmatpush.msra.mxu2 %v23912_v35  ;;  %v23916_v48 = vand.u32 4294901760, %v14331_v47  ;;  %v551_v35 = vld [vmem:[%s23898_s23 + $0x10] sm:$0xff] }
  0x65   : > { %1307 = vmatpush.msra.mxu3 %v14187_v2  ;;  %965 = vmatpush.msrb.mxu1 %v14182_v0  ;;  %v573_v0 = vld [vmem:[%s23898_s23 + $0xc0] sm:$0xff] }
  0x66   : > { %1115 = vmatmul.f32.vlgmr.msrb.gmra.mxu3 %v14165_v58  ;;  %929 = vmatmul.f32.gmra.mxu0 %v14240_v54  ;;  %v14534_v41 = vand.u32 4294901760, %v573_v0 }
  0x67   : > { %967 = vmatmul.f32.vlgmr.msrb.gmra.mxu1 %v14165_v58  ;;  %1144 = vmatpush.msra.mxu0 %v14297_v55 }
  0x68   : > { %1189 = vmatpush.msra.mxu1 %v14175_v62  ;;  %1251 = vmatpush.msra.mxu2 %v23913_v45  ;;  %v23915_v62 = vand.u32 4294901760, %v14312_v30  ;;  %v14695_v45 = vsub.f32 %v1344_v44, %v14662_v11 }
  0x69   : > { %1309 = vmatpush.msra.mxu3 %v14211_v36  ;;  %1147 = vmatpush.msra.mxu0 %v14312_v30 }
  0x6a   : > { %1191 = vmatpush.msra.mxu1 %v14187_v2  ;;  %1255 = vmatpush.msra.mxu2 %v23914_v57  ;;  %v23917_v2 = vand.u32 4294901760, %v14355_v56  ;;  %v574_v57 = vld [vmem:[%s23898_s23 + $0xc8] sm:$0xff] }
  0x6b   : > { %1311 = vmatpush.msra.mxu3 %v14238_v53  ;;  %1150 = vmatpush.msra.mxu0 %v14331_v47  ;;  %v14544_v47 = vand.u32 4294901760, %v571_v12 }
  0x6c   : > { %1193 = vmatpush.msra.mxu1 %v14211_v36  ;;  %1259 = vmatpush.msra.mxu2 %v23915_v62  ;;  %v23918_v36 = vand.u32 4294901760, %v14375_v63  ;;  %v547_v62 = vld [vmem:[%s14109_s0 + $0x8] sm:$0xff] }
  0x6d   : > { %1313 = vmatpush.msra.mxu3 %v14260_v32  ;;  %1021 = vmatmul.f32.gmra.mxu2 %v14349_v42  ;;  %v14564_v59 = vsub.f32 %v571_v12, %v14544_v47  ;;  %v572_v12 = vld [vmem:[%s23898_s23 + $0xb8] sm:$0xff] }
  0x6e   : > { %1153 = vmatpush.msra.mxu0 %v14355_v56  ;;  %1195 = vmatpush.msra.mxu1 %v14238_v53  ;;  %v14736_v24 = vand.u32 4294901760, %v572_v12 }
  0x6f   : > { %1263 = vmatpush.msra.mxu2 %v23916_v48  ;;  %1315 = vmatpush.msra.mxu3 %v14276_v46  ;;  %v1417_v42 = vand.u32 4294901760, %v14564_v59 }
  0x70   : > { %1119 = vmatmul.f32.gmra.mxu3 %v14240_v54  ;;  %933 = vmatmul.f32.gmra.mxu0 %v14305_v22 }
  0x71   : > { %971 = vmatmul.f32.gmra.mxu1 %v14240_v54  ;;  %1156 = vmatpush.msra.mxu0 %v14375_v63 }
  0x72   : > { %1197 = vmatpush.msra.mxu1 %v14260_v32  ;;  %1267 = vmatpush.msra.mxu2 %v23917_v2  ;;  %v569_v32 = vld [vmem:[%s23898_s23 + $0xa0] sm:$0xff] }
  0x73   : > { %1317 = vmatpush.msra.mxu3 %v14300_v51  ;;  %1159 = vmatpush.msra.mxu0 %v14388_v15  ;;  %v14553_v53 = vand.u32 4294901760, %v569_v32 }
  0x74   : > { %1199 = vmatpush.msra.mxu1 %v14276_v46  ;;  %1271 = vmatpush.msra.mxu2 %v23918_v36  ;;  %v14551_v46 = vsub.f32 %v573_v0, %v14534_v41  ;;  %v14713_v36 = vand.u32 4294901760, %v551_v35 }
  0x75   : > { %1319 = vmatpush.msra.mxu3 %v14327_v43  ;;  %1162 = vmatpush.msra.mxu0 %v14408_v61  ;;  %v14577_v55 = vsub.f32 %v569_v32, %v14553_v53 }
  0x76   : > { %1201 = vmatpush.msra.mxu1 %v14300_v51  ;;  %1275 = vmatpush.msra.mxu2 %v1092_v14  ;;  %v567_v51 = vld [vmem:[%s23898_s23 + $0x90] sm:$0xff] }
  0x77   : > { %1321 = vmatpush.msra.mxu3 %v14344_v7  ;;  %1029 = vmatmul.f32.gmra.mxu2 %v14420_v4  ;;  %v14568_v30 = vand.u32 4294901760, %v567_v51  ;;  %v1423_v63 = vand.u32 4294901760, %v14577_v55  ;;  %v559_v14 = vld [vmem:[%s23898_s23 + $0x50] sm:$0xff] }
  0x78   : > { %1165 = vmatpush.msra.mxu0 %v14427_v37  ;;  %1203 = vmatpush.msra.mxu1 %v14327_v43  ;;  %v1411_v43 = vand.u32 4294901760, %v14551_v46  ;;  %v14588_v37 = vand.u32 4294901760, %v565_v6 }
  0x79   : > { %1279 = vmatpush.msra.mxu2 %v1098_v9  ;;  %1323 = vmatpush.msra.mxu3 %v14357_v50  ;;  %v1424_v49 = vsub.f32 %v14577_v55, %v1423_v63 }
  0x7a   : > { %1123 = vmatmul.f32.gmra.mxu3 %v14305_v22  ;;  %975 = vmatmul.f32.gmra.mxu1 %v14305_v22  ;;  %v1412_v56 = vsub.f32 %v14551_v46, %v1411_v43  ;;  %v14615_v15 = vsub.f32 %v565_v6, %v14588_v37  ;;  %v1347_v6 = vsel %vm605_vm0, %v547_v62, 0  ;;  %v566_v62 = vld [vmem:[%s23898_s23 + $0x88] sm:$0xff] }
  0x7b   : > { %1168 = vmatpush.msra.mxu0 %v14439_v16  ;;  %1205 = vmatpush.msra.mxu1 %v14344_v7  ;;  %v563_v7 = vld [vmem:[%s23898_s23 + $0x70] sm:$0xff]  ;;  %v557_v16 = vld [vmem:[%s23898_s23 + $0x40] sm:$0xff] }
  0x7c   : > { %1283 = vmatpush.msra.mxu2 %v1104_v10  ;;  %1325 = vmatpush.msra.mxu3 %v14378_v19  ;;  %v14604_v61 = vand.u32 4294901760, %v563_v7  ;;  %v1413_v9 = vand.u32 4294901760, %v1412_v56  ;;  %v23674_v25 = vand.u32 4294901760, %v14615_v15  ;;  %v14656_v26 = vand.u32 4294901760, %v557_v16 }
  0x7d   : > { %1171 = vmatmul.f32.vlgmr.msra.gmra.mxu0 %v14185_v1  ;;  %1207 = vmatpush.msra.mxu1 %v14357_v50  ;;  %v14594_v1 = vsub.f32 %v567_v51, %v14568_v30  ;;  %v561_v50 = vld [vmem:[%s23898_s23 + $0x60] sm:$0xff]  ;;  %v14719_v51 = vand.u32 4294901760, %v574_v57  ;;  %v14728_v56 = vand.u32 4294901760, %v14695_v45 }
  0x7e   : > { %1356 = vmatpush.msrb.mxu0 %v14534_v41  ;;  %1287 = vmatpush.msra.mxu2 %v1110_v5  ;;  %v14617_v4 = vand.u32 4294901760, %v561_v50  ;;  %v14632_v38 = vsub.f32 %v563_v7, %v14604_v61  ;;  %v1436_v60 = vsub.f32 %v14615_v15, %v23674_v25  ;;  %v14680_v13 = vsub.f32 %v557_v16, %v14656_v26 }
  0x7f   : > { %1327 = vmatpush.msra.mxu3 %v14403_v3  ;;  %1209 = vmatpush.msra.mxu1 %v14378_v19  ;;  %v1418_v19 = vsub.f32 %v14564_v59, %v1417_v42  ;;  %v23675_v34 = vand.u32 4294901760, %v14594_v1  ;;  %23919 = vst [vmem:[#allocation12_spill] sm:$0xff] %v14728_v56  ;;  %v14744_v16 = vand.u32 4294901760, %v1347_v6  ;;  %v14755_v44 = vsub.f32 %v574_v57, %v14719_v51 }
  0x80   : > { %1505 = vmatpush.msrb.mxu2 %v14551_v46  ;;  %1358 = vmatpush.msrb.mxu0 %v14544_v47  ;;  %v14648_v10 = vsub.f32 %v561_v50, %v14617_v4  ;;  %v23672_v5 = vand.u32 4294901760, %v14632_v38  ;;  %v1437_v0 = vand.u32 4294901760, %v1436_v60  ;;  %v23665_v32 = vand.u32 4294901760, %v14680_v13 }
  0x81   : > { %1329 = vmatpush.msra.mxu3 %v14415_v23  ;;  %1289 = vmatmul.f32.vlgmr.msra.gmra.mxu2 %v14165_v58  ;;  %v1419_v27 = vand.u32 4294901760, %v1418_v19  ;;  %v1430_v28 = vsub.f32 %v14594_v1, %v23675_v34  ;;  %v14725_v50 = vsub.f32 %v553_v52, %v14686_v39  ;;  %v568_v52 = vld [vmem:[%s23898_s23 + $0x98] sm:$0xff]  ;;  %v14779_v57 = vsub.f32 %v1347_v6, %v14744_v16  ;;  %v558_v34 = vld [vmem:[%s23898_s23 + $0x48] sm:$0xff] }
  0x82   : > { %1360 = vmatpush.msrb.mxu0 %v14553_v53  ;;  %1508 = vmatpush.msrb.mxu2 %v14564_v59  ;;  %v23668_v17 = vand.u32 4294901760, %v14648_v10  ;;  %v1442_v20 = vsub.f32 %v14632_v38, %v23672_v5 }
  0x83   : > { %1562 = vmatpush.msrb.mxu3 %v14534_v41  ;;  %1211 = vmatpush.msra.mxu1 %v14403_v3  ;;  %v14639_v3 = vand.u32 4294901760, %v559_v14  ;;  %v1431_v18 = vand.u32 4294901760, %v1430_v28 }
  0x84   : > { %1331 = vmatmul.f32.vlgmr.msra.gmra.mxu3 %v14165_v58  ;;  %1362 = vmatpush.msrb.mxu0 %v14568_v30  ;;  %v555_v58 = vld [vmem:[%s23898_s23 + $0x30] sm:$0xff]  ;;  %v1448_v2 = vsub.f32 %v14648_v10, %v23668_v17  ;;  %v1443_v7 = vand.u32 4294901760, %v1442_v20  ;;  %v14772_v20 = vsub.f32 %v572_v12, %v14736_v24  ;;  %v23669_v12 = vand.u32 4294901760, %v14755_v44 }
  0x85   : > { %1511 = vmatpush.msrb.mxu2 %v14577_v55  ;;  %1564 = vmatpush.msrb.mxu3 %v14544_v47  ;;  %v556_v55 = vld [vmem:[%s23898_s23 + $0x38] sm:$0xff] }
  0x86   : > { %1213 = vmatpush.msra.mxu1 %v14415_v23  ;;  %1176 = vmatmul.f32.gmra.mxu0 %v14258_v31  ;;  %v1425_v31 = vand.u32 4294901760, %v1424_v49  ;;  %v14659_v23 = vand.u32 4294901760, %v555_v58  ;;  %v570_v49 = vld [vmem:[%s23898_s23 + $0xa8] sm:$0xff] }
  0x87   : > { %1217 = vmatmul.f32.vlgmr.msra.gmra.mxu1 %v14203_v21  ;;  %1364 = vmatpush.msrb.mxu0 %v14588_v37  ;;  %v14667_v21 = vsub.f32 %v559_v14, %v14639_v3 }
  0x88   : > { %1414 = vmatpush.msrb.mxu1 %v1413_v9  ;;  %1514 = vmatpush.msrb.mxu2 %v14594_v1  ;;  %v14689_v33 = vsub.f32 %v555_v58, %v14659_v23  ;;  %v14752_v58 = vsub.f32 %v551_v35, %v14713_v36 }
  0x89   : > { %1566 = vmatpush.msrb.mxu3 %v14553_v53  ;;  %1366 = vmatpush.msrb.mxu0 %v14604_v61  ;;  %v23667_v48 = vand.u32 4294901760, %v14667_v21 }
  0x8a   : > { %1420 = vmatpush.msrb.mxu1 %v1419_v27  ;;  %1517 = vmatpush.msrb.mxu2 %v14615_v15  ;;  %v23664_v19 = vand.u32 4294901760, %v14689_v33  ;;  %v1384_v27 = vsub.f32 %v14695_v45, %v14728_v56 }
  0x8b   : > { %1568 = vmatpush.msrb.mxu3 %v14568_v30  ;;  %1293 = vmatmul.f32.gmra.mxu2 %v14240_v54  ;;  %v1454_v14 = vsub.f32 %v14667_v21, %v23667_v48 }
  0x8c   : > { %1368 = vmatpush.msrb.mxu0 %v14617_v4  ;;  %1426 = vmatpush.msrb.mxu1 %v1425_v31  ;;  %v1466_v28 = vsub.f32 %v14689_v33, %v23664_v19  ;;  %v23666_v31 = vand.u32 4294901760, %v14725_v50 }
  0x8d   : > { %1520 = vmatpush.msrb.mxu2 %v14632_v38  ;;  %1570 = vmatpush.msrb.mxu3 %v14588_v37  ;;  %v1455_v60 = vand.u32 4294901760, %v1454_v14  ;;  %v14789_v14 = vand.u32 4294901760, %v568_v52 }
  0x8e   : > { %1335 = vmatmul.f32.gmra.mxu3 %v14240_v54  ;;  %1370 = vmatpush.msrb.mxu0 %v14639_v3  ;;  %v549_v54 = vld [vmem:[%s23898_s23] sm:$0xff]  ;;  %v1467_v6 = vand.u32 4294901760, %v1466_v28 }
  0x8f   : > { %1432 = vmatpush.msrb.mxu1 %v1431_v18  ;;  %1523 = vmatpush.msrb.mxu2 %v14648_v10  ;;  %v14739_v9 = vand.u32 4294901760, %v549_v54  ;;  %v14769_v18 = vand.u32 4294901760, %v570_v49 }
  0x90   : > { %1572 = vmatpush.msrb.mxu3 %v14604_v61  ;;  %1181 = vmatmul.f32.gmra.mxu0 %v14334_v29  ;;  %v1449_v29 = vand.u32 4294901760, %v1448_v2 }
  0x91   : > { %1223 = vmatmul.f32.gmra.mxu1 %v14285_v40  ;;  %1372 = vmatpush.msrb.mxu0 %v14656_v26  ;;  %v1460_v40 = vsub.f32 %v14680_v13, %v23665_v32  ;;  %v14776_v35 = vsub.f32 %v549_v54, %v14739_v9  ;;  %v14793_v54 = vand.u32 4294901760, %v1384_v27  ;;  %v14801_v19 = vsub.f32 %v570_v49, %v14769_v18 }
  0x92   : > { %1438 = vmatpush.msrb.mxu1 %v1437_v0  ;;  %1526 = vmatpush.msrb.mxu2 %v14667_v21  ;;  %v548_v0 = vld [vmem:[%s14109_s0 + $0x10] sm:$0xff]  ;;  %v14803_v32 = vand.u32 4294901760, %v566_v62  ;;  %v1776_v49 = vsub.f32 %v14755_v44, %v23669_v12 }
  0x93   : > { %1574 = vmatpush.msrb.mxu3 %v14617_v4  ;;  %1374 = vmatpush.msrb.mxu0 %v14659_v23  ;;  %v1461_v2 = vand.u32 4294901760, %v1460_v40  ;;  %v23671_v40 = vand.u32 4294901760, %v14772_v20  ;;  %v1350_v27 = vsel %vm605_vm0, %v548_v0, 0  ;;  %v23673_v28 = vand.u32 4294901760, %v14776_v35 }
  0x94   : > { %1444 = vmatpush.msrb.mxu1 %v1443_v7  ;;  %1529 = vmatpush.msrb.mxu2 %v14680_v13  ;;  %v23670_v7 = vand.u32 4294901760, %v14752_v58  ;;  %v14832_v17 = vand.u32 4294901760, %v1350_v27  ;;  %v23676_v12 = vand.u32 4294901760, %v14801_v19 }
  0x95   : > { %1576 = vmatpush.msrb.mxu3 %v14639_v3  ;;  %1297 = vmatmul.f32.gmra.mxu2 %v14305_v22 }
  0x96   : > { %1376 = vmatpush.msrb.mxu0 %v14686_v39  ;;  %1450 = vmatpush.msrb.mxu1 %v1449_v29  ;;  %v1472_v29 = vsub.f32 %v14725_v50, %v23666_v31  ;;  %v1478_v0 = vsub.f32 %v14752_v58, %v23670_v7  ;;  %v14823_v31 = vsub.f32 %v568_v52, %v14789_v14 }
  0x97   : > { %1532 = vmatpush.msrb.mxu2 %v14689_v33  ;;  %1578 = vmatpush.msrb.mxu3 %v14656_v26  ;;  %v1782_v52 = vsub.f32 %v14772_v20, %v23671_v40  ;;  %v14840_v7 = vsub.f32 %v566_v62, %v14803_v32  ;;  %v560_v40 = vld [vmem:[%s23898_s23 + $0x58] sm:$0xff]  ;;  %v1777_v62 = vand.u32 4294901760, %v1776_v49  ;;  %v14864_v25 = vsub.f32 %v1350_v27, %v14832_v17 }
  0x98   : > { %1339 = vmatmul.f32.gmra.mxu3 %v14305_v22  ;;  %1378 = vmatpush.msrb.mxu0 %v14713_v36  ;;  %v564_v22 = vld [vmem:[%s23898_s23 + $0x78] sm:$0xff]  ;;  %v1479_v46 = vand.u32 4294901760, %v1478_v0  ;;  %v1788_v59 = vsub.f32 %v14801_v19, %v23676_v12  ;;  %v14888_v12 = vand.u32 4294901760, %v558_v34 }
  0x99   : > { %1456 = vmatpush.msrb.mxu1 %v1455_v60  ;;  %1535 = vmatpush.msrb.mxu2 %v14725_v50  ;;  %v14813_v60 = vand.u32 4294901760, %v14779_v57  ;;  %v14827_v48 = vand.u32 4294901760, %v564_v22  ;;  %v1783_v49 = vand.u32 4294901760, %v1782_v52 }
  0x9a   : > { %1580 = vmatpush.msrb.mxu3 %v14659_v23  ;;  %1229 = vmatmul.f32.gmra.mxu1 %v14367_v8  ;;  %v1473_v8 = vand.u32 4294901760, %v1472_v29  ;;  %v1484_v29 = vsub.f32 %v14776_v35, %v23673_v28 }
  0x9b   : > { %1380 = vmatpush.msrb.mxu0 %v14739_v9  ;;  %1462 = vmatpush.msrb.mxu1 %v1461_v2  ;;  %v562_v2 = vld [vmem:[%s23898_s23 + $0x68] sm:$0xff]  ;;  %v14861_v28 = vsub.f32 %v564_v22, %v14827_v48  ;;  %v14875_v22 = vand.u32 4294901760, %v560_v40 }
  0x9c   : > { %1538 = vmatpush.msrb.mxu2 %v14752_v58  ;;  %1582 = vmatpush.msrb.mxu3 %v14686_v39  ;;  %v14856_v5 = vand.u32 4294901760, %v562_v2  ;;  %v1485_v27 = vand.u32 4294901760, %v1484_v29 }
  0x9d   : > { %1386 = vmatmul.f32.vlgmr.msrb.gmra.mxu0 %v14793_v54  ;;  %1468 = vmatpush.msrb.mxu1 %v1467_v6  ;;  %v1392_v6 = vsub.f32 %v14779_v57, %v14813_v60  ;;  %v23680_v29 = vand.u32 4294901760, %v14861_v28 }
  0x9e   : > { %1612 = vmatpush.msra.mxu0 %v1411_v43  ;;  %1541 = vmatpush.msrb.mxu2 %v14776_v35  ;;  %v23678_v43 = vand.u32 4294901760, %v14823_v31  ;;  %v14886_v52 = vsub.f32 %v562_v2, %v14856_v5  ;;  %v1789_v2 = vand.u32 4294901760, %v1788_v59 }
  0x9f   : > { %1584 = vmatpush.msrb.mxu3 %v14713_v36  ;;  %1474 = vmatpush.msrb.mxu1 %v1473_v8  ;;  %v14880_v0 = vand.u32 4294901760, %v1392_v6  ;;  %v14898_v6 = vand.u32 4294901760, %v14864_v25 }
  0xa0   : > { %1720 = vmatpush.msra.mxu2 %v14719_v51  ;;  %1616 = vmatpush.msra.mxu0 %v1417_v42  ;;  %v23677_v42 = vand.u32 4294901760, %v14840_v7  ;;  %v1794_v8 = vsub.f32 %v14823_v31, %v23678_v43 }
  0xa1   : > { %1544 = vmatmul.f32.vlgmr.msrb.gmra.mxu2 %v14695_v45  ;;  %1586 = vmatpush.msrb.mxu3 %v14739_v9  ;;  %v1400_v43 = vsub.f32 %v14864_v25, %v14898_v6 }
  0xa2   : > { %1620 = vmatpush.msra.mxu0 %v1423_v63  ;;  %1722 = vmatpush.msra.mxu2 %v14736_v24  ;;  %v23920_v63 = vand.u32 4294901760, %v14594_v1  ;;  %v554_v1 = vld [vmem:[%s23898_s23 + $0x28] sm:$0xff]  ;;  %v1795_v59 = vand.u32 4294901760, %v1794_v8 }
  0xa3   : > { %1778 = vmatpush.msra.mxu3 %v1777_v62  ;;  %1480 = vmatpush.msrb.mxu1 %v1479_v46  ;;  %v1800_v62 = vsub.f32 %v14840_v7, %v23677_v42  ;;  %v14905_v46 = vsub.f32 %v560_v40, %v14875_v22  ;;  %v23681_v42 = vand.u32 4294901760, %v14886_v52  ;;  %v14918_v40 = vsub.f32 %v558_v34, %v14888_v12 }
  0xa4   : > { %1590 = vmatmul.f32.vlgmr.msrb.gmra.mxu3 %v14728_v56  ;;  %1624 = vmatpush.msra.mxu0 %v23920_v63  ;;  %v14911_v63 = vand.u32 4294901760, %v556_v55  ;;  %v14927_v56 = vand.u32 4294901760, %v554_v1  ;;  %v23922_v34 = vand.u32 4294901760, %v14632_v38 }
  0xa5   : > { %1724 = vmatpush.msra.mxu2 %v14769_v18  ;;  %1784 = vmatpush.msra.mxu3 %v1783_v49  ;;  %v23921_v49 = vand.u32 4294901760, %v14615_v15  ;;  %v552_v15 = vld [vmem:[%s23898_s23 + $0x18] sm:$0xff]  ;;  %v1817_v8 = vand.u32 4294901760, %v14905_v46  ;;  %v1812_v38 = vsub.f32 %v14886_v52, %v23681_v42 }
  0xa6   : > { %1486 = vmatpush.msrb.mxu1 %v1485_v27  ;;  %1394 = vmatmul.f32.gmra.mxu0 %v14880_v0  ;;  %v1806_v27 = vsub.f32 %v14861_v28, %v23680_v29  ;;  %v550_v29 = vld [vmem:[%s23898_s23 + $0x8] sm:$0xff] }
  0xa7   : > { %1488 = vmatmul.f32.vlgmr.msrb.gmra.mxu1 %v14662_v11  ;;  %1628 = vmatpush.msra.mxu0 %v23921_v49  ;;  %v14938_v49 = vsub.f32 %v556_v55, %v14911_v63  ;;  %v1818_v42 = vsub.f32 %v14905_v46, %v1817_v8 }
  0xa8   : > { %1678 = vmatpush.msra.mxu1 %v14534_v41  ;;  %1726 = vmatpush.msra.mxu2 %v14789_v14  ;;  %v1801_v41 = vand.u32 4294901760, %v1800_v62  ;;  %v14948_v62 = vand.u32 4294901760, %v552_v15  ;;  %v1807_v55 = vand.u32 4294901760, %v1806_v27 }
  0xa9   : > { %1790 = vmatpush.msra.mxu3 %v1789_v2  ;;  %1632 = vmatpush.msra.mxu0 %v23922_v34  ;;  %v14953_v34 = vand.u32 4294901760, %v1400_v43  ;;  %v14962_v2 = vand.u32 4294901760, %v550_v29  ;;  %v1813_v43 = vand.u32 4294901760, %v1812_v38 }
  0xaa   : > { %1680 = vmatpush.msra.mxu1 %v14544_v47  ;;  %1728 = vmatpush.msra.mxu2 %v14803_v32  ;;  %v23923_v47 = vand.u32 4294901760, %v14648_v10  ;;  %v23924_v10 = vand.u32 4294901760, %v14667_v21 }
  0xab   : > { %1796 = vmatpush.msra.mxu3 %v1795_v59  ;;  %1549 = vmatmul.f32.gmra.mxu2 %v14779_v57  ;;  %v14956_v59 = vsub.f32 %v554_v1, %v14927_v56  ;;  %v23925_v1 = vand.u32 4294901760, %v14918_v40  ;;  %v14982_v38 = vsub.f32 %v550_v29, %v14962_v2  ;;  %v23928_v29 = vand.u32 4294901760, %v14725_v50 }
  0xac   : > { %1636 = vmatpush.msra.mxu0 %v23923_v47  ;;  %1682 = vmatpush.msra.mxu1 %v14553_v53  ;;  %v1829_v53 = vand.u32 4294901760, %v14938_v49  ;;  %v23926_v47 = vand.u32 4294901760, %v14680_v13  ;;  %v23930_v50 = vand.u32 4294901760, %v14776_v35 }
  0xad   : > { %1730 = vmatpush.msra.mxu2 %v14827_v48  ;;  %1802 = vmatpush.msra.mxu3 %v1801_v41  ;;  %v1824_v27 = vsub.f32 %v14918_v40, %v23925_v1  ;;  %v14974_v41 = vsub.f32 %v552_v15, %v14948_v62  ;;  %v1835_v21 = vand.u32 4294901760, %v14956_v59 }
  0xae   : > { %1596 = vmatmul.f32.gmra.mxu3 %v14813_v60  ;;  %1640 = vmatpush.msra.mxu0 %v23924_v10  ;;  %v1830_v15 = vsub.f32 %v14938_v49, %v1829_v53 }
  0xaf   : > { %1684 = vmatpush.msra.mxu1 %v14568_v30  ;;  %1732 = vmatpush.msra.mxu2 %v14856_v5  ;;  %v1819_v30 = vand.u32 4294901760, %v1818_v42  ;;  %v1825_v10 = vand.u32 4294901760, %v1824_v27  ;;  %v1841_v13 = vand.u32 4294901760, %v14974_v41  ;;  %v1847_v42 = vand.u32 4294901760, %v14982_v38 }
  0xb0   : > { %1808 = vmatpush.msra.mxu3 %v1807_v55  ;;  %1402 = vmatmul.f32.gmra.mxu0 %v14953_v34  ;;  %v23927_v55 = vand.u32 4294901760, %v14689_v33  ;;  %v1831_v33 = vand.u32 4294901760, %v1830_v15 }
  0xb1   : > { %1492 = vmatmul.f32.gmra.mxu1 %v14744_v16  ;;  %1644 = vmatpush.msra.mxu0 %v23926_v47 }
  0xb2   : > { %1686 = vmatpush.msra.mxu1 %v14588_v37  ;;  %1734 = vmatpush.msra.mxu2 %v14875_v22  ;;  %v1836_v37 = vsub.f32 %v14956_v59, %v1835_v21 }
  0xb3   : > { %1814 = vmatpush.msra.mxu3 %v1813_v43  ;;  %1648 = vmatpush.msra.mxu0 %v23927_v55  ;;  %v23929_v43 = vand.u32 4294901760, %v14752_v58 }
  0xb4   : > { %1688 = vmatpush.msra.mxu1 %v14604_v61  ;;  %1736 = vmatpush.msra.mxu2 %v14888_v12  ;;  %v1842_v61 = vsub.f32 %v14974_v41, %v1841_v13  ;;  %v1837_v1 = vand.u32 4294901760, %v1836_v37 }
  0xb5   : > { %1820 = vmatpush.msra.mxu3 %v1819_v30  ;;  %1554 = vmatmul.f32.gmra.mxu2 %v14864_v25  ;;  %v13536_v30 = vld [vmem:[%s23898_s23 + $0x1f0] sm:$0xff] }
  0xb6   : > { %1652 = vmatpush.msra.mxu0 %v23928_v29  ;;  %1690 = vmatpush.msra.mxu1 %v14617_v4  ;;  %v1848_v4 = vsub.f32 %v14982_v38, %v1847_v42  ;;  %v1843_v27 = vand.u32 4294901760, %v1842_v61  ;;  %v15198_v29 = vand.u32 4294901760, %v13536_v30 }
  0xb7   : > { %1738 = vmatpush.msra.mxu2 %v14911_v63  ;;  %1826 = vmatpush.msra.mxu3 %v1825_v10 }
  0xb8   : > { %1602 = vmatmul.f32.gmra.mxu3 %v14898_v6  ;;  %1656 = vmatpush.msra.mxu0 %v23929_v43 }
  0xb9   : > { %1692 = vmatpush.msra.mxu1 %v14639_v3  ;;  %1740 = vmatpush.msra.mxu2 %v14927_v56  ;;  %v1849_v3 = vand.u32 4294901760, %v1848_v4  ;;  %v23949_v4 = vld [vmem:[#allocation12_spill] sm:$0xff] }
  0xba   : > { %1832 = vmatpush.msra.mxu3 %v1831_v33  ;;  %1496 = vmatmul.f32.gmra.mxu1 %v14832_v17  ;;  %v13534_v33 = vld [vmem:[%s23898_s23 + $0x1e0] sm:$0xff] }
  0xbb   : > { %1660 = vmatpush.msra.mxu0 %v23930_v50  ;;  %1694 = vmatpush.msra.mxu1 %v14656_v26  ;;  %v23931_v26 = vand.u32 4294901760, %v14755_v44 }
  0xbc   : > { %1742 = vmatpush.msra.mxu2 %v14948_v62  ;;  %1838 = vmatpush.msra.mxu3 %v1837_v1 }
  0xbd   : > { %1662 = vmatmul.f32.vlgmr.msra.gmra.mxu0 %v14662_v11  ;;  %1696 = vmatpush.msra.mxu1 %v14659_v23  ;;  %v23932_v23 = vand.u32 4294901760, %v14772_v20 }
  0xbe   : > { %1869 = vmatpush.msrb.mxu0 %v14755_v44  ;;  %1744 = vmatpush.msra.mxu2 %v14962_v2  ;;  %v23939_v44 = vand.u32 4294901760, %v14886_v52 }
  0xbf   : > { %1844 = vmatpush.msra.mxu3 %v1843_v27  ;;  %1750 = vmatmul.f32.vlgmr.msra.gmra.mxu2 %v14793_v54 }
  0xc0   : > { %1872 = vmatpush.msrb.mxu0 %v14772_v20  ;;  %1698 = vmatpush.msra.mxu1 %v14686_v39  ;;  %v23933_v39 = vand.u32 4294901760, %v14801_v19  ;;  %v13546_v20 = vld [vmem:[%s23898_s23 + $0x240] sm:$0xff] }
  0xc1   : > { %1850 = vmatpush.msra.mxu3 %v1849_v3  ;;  %1976 = vmatpush.msrb.mxu2 %v23931_v26  ;;  %v15221_v3 = vand.u32 4294901760, %v13534_v33 }
  0xc2   : > { %1852 = vmatmul.f32.vlgmr.msra.gmra.mxu3 %v14662_v11  ;;  %1875 = vmatpush.msrb.mxu0 %v14801_v19  ;;  %v23937_v19 = vand.u32 4294901760, %v14861_v28 }
  0xc3   : > { %1700 = vmatpush.msra.mxu1 %v14713_v36  ;;  %2042 = vmatpush.msrb.mxu3 %v14719_v51  ;;  %v23934_v36 = vand.u32 4294901760, %v14823_v31 }
  0xc4   : > { %1878 = vmatpush.msrb.mxu0 %v14823_v31  ;;  %1980 = vmatpush.msrb.mxu2 %v23932_v23  ;;  %v13548_v31 = vld [vmem:[%s23898_s23 + $0x250] sm:$0xff] }
  0xc5   : > { %1702 = vmatpush.msra.mxu1 %v14739_v9  ;;  %2044 = vmatpush.msrb.mxu3 %v14736_v24  ;;  %v15051_v9 = vpop.f32.mrf.mxu0 }
  0xc6   : > { %1666 = vmatmul.f32.gmra.mxu0 %v14744_v16  ;;  %1704 = vmatmul.f32.vlgmr.msra.gmra.mxu1 %v14662_v11  ;;  %23935 = vst [vmem:[#allocation13_spill] sm:$0xff] %v15051_v9  ;;  %v15070_v58 = vpop.f32.mrf.mxu1 }
  0xc7   : > { %1881 = vmatpush.msrb.mxu0 %v14840_v7  ;;  %1926 = vmatpush.msrb.mxu1 %v14719_v51  ;;  %v23936_v51 = vand.u32 4294901760, %v14840_v7  ;;  %23938 = vst [vmem:[#allocation14_spill] sm:$0xff] %v15070_v58  ;;  %v15105_v54 = vpop.f32.mrf.mxu2 }
  0xc8   : > { %1984 = vmatpush.msrb.mxu2 %v23933_v39  ;;  %2046 = vmatpush.msrb.mxu3 %v14769_v18  ;;  %23942 = vst [vmem:[#allocation16_spill] sm:$0xff] %v15105_v54  ;;  %v15229_v39 = vsub.f32 %v13536_v30, %v15198_v29 }
  0xc9   : > { %1758 = vmatmul.f32.gmra.mxu2 %v14880_v0  ;;  %1884 = vmatpush.msrb.mxu0 %v14861_v28  ;;  %v15109_v28 = vand.u32 4294901760, %v13546_v20  ;;  %v15117_v0 = vpop.f32.mrf.mxu3 }
  0xca   : > { %1928 = vmatpush.msrb.mxu1 %v14736_v24  ;;  %1988 = vmatpush.msrb.mxu2 %v23934_v36  ;;  %v13550_v24 = vld [vmem:[%s23898_s23 + $0x260] sm:$0xff]  ;;  %23943 = vst [vmem:[#allocation17_spill] sm:$0xff] %v15117_v0 }
  0xcb   : > { %2048 = vmatpush.msrb.mxu3 %v14789_v14  ;;  %1887 = vmatpush.msrb.mxu0 %v14886_v52  ;;  %v13530_v36 = vld [vmem:[%s23898_s23 + $0x1c0] sm:$0xff] }
  0xcc   : > { %1856 = vmatmul.f32.gmra.mxu3 %v14744_v16  ;;  %1930 = vmatpush.msrb.mxu1 %v14769_v18  ;;  %v15080_v18 = vand.u32 4294901760, %v13550_v24 }
  0xcd   : > { %1992 = vmatpush.msrb.mxu2 %v23936_v51  ;;  %2050 = vmatpush.msrb.mxu3 %v14803_v32  ;;  %v15092_v35 = vpop.f32.mrf.mxu0 }
  0xce   : > { %1890 = vmatpush.msrb.mxu0 %v14905_v46  ;;  %1932 = vmatpush.msrb.mxu1 %v14789_v14  ;;  %23940 = vst [vmem:[#allocation15_spill] sm:$0xff] %v15092_v35  ;;  %v15100_v7 = vsub.f32 %v13550_v24, %v15080_v18  ;;  %v13544_v14 = vld [vmem:[%s23898_s23 + $0x230] sm:$0xff] }
  0xcf   : > { %1996 = vmatpush.msrb.mxu2 %v23937_v19  ;;  %2052 = vmatpush.msrb.mxu3 %v14827_v48  ;;  %v15121_v52 = vand.u32 4294901760, %v13544_v14 }
  0xd0   : > { %1670 = vmatmul.f32.gmra.mxu0 %v14832_v17  ;;  %1708 = vmatmul.f32.gmra.mxu1 %v14744_v16  ;;  %v23690_v46 = vand.u32 4294901760, %v15100_v7 }
  0xd1   : > { %1893 = vmatpush.msrb.mxu0 %v14918_v40  ;;  %1934 = vmatpush.msrb.mxu1 %v14803_v32  ;;  %v15087_v32 = vand.u32 4294901760, %v13548_v31 }
  0xd2   : > { %2000 = vmatpush.msrb.mxu2 %v23939_v44  ;;  %2054 = vmatpush.msrb.mxu3 %v14856_v5 }
  0xd3   : > { %1766 = vmatmul.f32.gmra.mxu2 %v14953_v34  ;;  %1896 = vmatpush.msrb.mxu0 %v14938_v49  ;;  %v13540_v49 = vld [vmem:[%s23898_s23 + $0x210] sm:$0xff]  ;;  %v15190_v37 = vpop.f32.mrf.mxu3 }
  0xd4   : > { %1936 = vmatpush.msrb.mxu1 %v14827_v48  ;;  %2004 = vmatpush.msrb.mxu2 %v1817_v8  ;;  %v23941_v48 = vand.u32 4294901760, %v14918_v40  ;;  %v15130_v40 = vpop.f32.mrf.mxu1  ;;  %v15135_v8 = vsub.f32 %v13546_v20, %v15109_v28  ;;  %23947 = vst [vmem:[#allocation21_spill] sm:$0xff] %v15190_v37  ;;  %v2082_v37 = vld [vmem:[%s14109_s0 + $0x12] sm:$0xff] }
  0xd5   : > { %2056 = vmatpush.msrb.mxu3 %v14875_v22  ;;  %1899 = vmatpush.msrb.mxu0 %v14956_v59  ;;  %23944 = vst [vmem:[#allocation18_spill] sm:$0xff] %v15130_v40  ;;  %v15156_v59 = vand.u32 4294901760, %v13540_v49 }
  0xd6   : > { %1860 = vmatmul.f32.gmra.mxu3 %v14832_v17  ;;  %1938 = vmatpush.msrb.mxu1 %v14856_v5  ;;  %v15115_v5 = vsub.f32 %v13548_v31, %v15087_v32 }
  0xd7   : > { %2008 = vmatpush.msrb.mxu2 %v23941_v48  ;;  %2058 = vmatpush.msrb.mxu3 %v14888_v12  ;;  %v15250_v48 = vand.u32 4294901760, %v13530_v36 }
  0xd8   : > { %1902 = vmatpush.msrb.mxu0 %v14974_v41  ;;  %1940 = vmatpush.msrb.mxu1 %v14875_v22  ;;  %v13542_v22 = vld [vmem:[%s23898_s23 + $0x220] sm:$0xff]  ;;  %v23689_v34 = vand.u32 4294901760, %v15115_v5  ;;  %v15161_v41 = vpop.f32.mrf.mxu0 }
  0xd9   : > { %2012 = vmatpush.msrb.mxu2 %v1829_v53  ;;  %2060 = vmatpush.msrb.mxu3 %v14911_v63  ;;  %v13538_v53 = vld [vmem:[%s23898_s23 + $0x200] sm:$0xff]  ;;  %23945 = vst [vmem:[#allocation19_spill] sm:$0xff] %v15161_v41 }
  0xda   : > { %1712 = vmatmul.f32.gmra.mxu1 %v14832_v17  ;;  %1905 = vmatpush.msrb.mxu0 %v14982_v38  ;;  %v15178_v38 = vpop.f32.mrf.mxu2  ;;  %v15182_v15 = vand.u32 4294901760, %v13538_v53 }
  0xdb   : > { %1942 = vmatpush.msrb.mxu1 %v14888_v12  ;;  %2016 = vmatpush.msrb.mxu2 %v1835_v21  ;;  %v15142_v12 = vand.u32 4294901760, %v13542_v22  ;;  %v23687_v21 = vand.u32 4294901760, %v15135_v8  ;;  %23946 = vst [vmem:[#allocation20_spill] sm:$0xff] %v15178_v38  ;;  %v2117_v38 = vsel %vm605_vm0, %v2082_v37, 0 }
  0xdc   : > { %1908 = vmatmul.f32.vlgmr.msrb.gmra.mxu0 %v14695_v45  ;;  %2062 = vmatpush.msrb.mxu3 %v14927_v56  ;;  %v15149_v45 = vsub.f32 %v13544_v14, %v15121_v52  ;;  %v15209_v1 = vpop.f32.mrf.mxu1  ;;  %v15253_v14 = vsub.f32 %v13534_v33, %v15221_v3  ;;  %v15436_v40 = vand.u32 4294901760, %v2117_v38 }
  0xdd   : > { %2123 = vmatpush.msra.mxu0 %v15080_v18  ;;  %1944 = vmatpush.msrb.mxu1 %v14911_v63  ;;  %v2179_v63 = vsub.f32 %v15100_v7, %v23690_v46  ;;  %v15173_v47 = vsub.f32 %v13542_v22, %v15142_v12  ;;  %23948 = vst [vmem:[#allocation22_spill] sm:$0xff] %v15209_v1  ;;  %v13528_v22 = vld [vmem:[%s23898_s23 + $0x1b0] sm:$0xff] }
  0xde   : > { %2020 = vmatpush.msrb.mxu2 %v1841_v13  ;;  %2064 = vmatpush.msrb.mxu3 %v14948_v62  ;;  %v23686_v55 = vand.u32 4294901760, %v15149_v45  ;;  %v15188_v13 = vsub.f32 %v13540_v49, %v15156_v59  ;;  %v15279_v33 = vand.u32 4294901760, %v13528_v22  ;;  %v15468_v9 = vsub.f32 %v2117_v38, %v15436_v40 }
  0xdf   : > { %2125 = vmatpush.msra.mxu0 %v15087_v32  ;;  %1946 = vmatpush.msrb.mxu1 %v14927_v56  ;;  %v2185_v56 = vsub.f32 %v15115_v5, %v23689_v34  ;;  %v2180_v10 = vand.u32 4294901760, %v2179_v63  ;;  %v23685_v43 = vand.u32 4294901760, %v15173_v47  ;;  %v23684_v63 = vand.u32 4294901760, %v15229_v39 }
  0xe0   : > { %2024 = vmatpush.msrb.mxu2 %v1847_v42  ;;  %2066 = vmatpush.msrb.mxu3 %v14962_v2  ;;  %v2080_v42 = vld [vmem:[%s14109_s0 + $0x2] sm:$0xff]  ;;  %v2197_v50 = vsub.f32 %v15149_v45, %v23686_v55  ;;  %v23683_v26 = vand.u32 4294901760, %v15188_v13  ;;  %v15238_v19 = vpop.f32.mrf.mxu0 }
  0xe1   : > { %2026 = vmatmul.f32.vlgmr.msrb.gmra.mxu2 %v14662_v11  ;;  %2127 = vmatpush.msra.mxu0 %v15109_v28  ;;  %v2186_v61 = vand.u32 4294901760, %v2185_v56  ;;  %v2111_v27 = vsel %vm605_vm0, %v2080_v42, 0  ;;  %v2203_v51 = vsub.f32 %v15173_v47, %v23685_v43  ;;  %23950 = vst [vmem:[#allocation12_spill] sm:$0xff] %v15238_v19  ;;  %v13551_v56 = vld [vmem:[%s23898_s23 + $0x268] sm:$0xff]  ;;  %v15273_v42 = vpop.f32.mrf.mxu3 }
  0xe2   : > { %2272 = vmatpush.msra.mxu2 %v15100_v7  ;;  %1948 = vmatpush.msrb.mxu1 %v14948_v62  ;;  %v2191_v62 = vsub.f32 %v15135_v8, %v23687_v21  ;;  %v15240_v24 = vand.u32 4294901760, %v2111_v27  ;;  %v2198_v44 = vand.u32 4294901760, %v2197_v50  ;;  %v2209_v20 = vsub.f32 %v15188_v13, %v23683_v26  ;;  %v15258_v49 = vpop.f32.mrf.mxu2  ;;  %23953 = vst [vmem:[#allocation25_spill] sm:$0xff] %v15273_v42 }
  0xe3   : > { %2329 = vmatpush.msra.mxu3 %v15080_v18  ;;  %2129 = vmatpush.msra.mxu0 %v15121_v52  ;;  %23951 = vst [vmem:[#allocation23_spill] sm:$0xff] %v15258_v49  ;;  %v2204_v30 = vand.u32 4294901760, %v2203_v51  ;;  %v23688_v50 = vand.u32 4294901760, %v15253_v14  ;;  %v13543_v49 = vld [vmem:[%s23898_s23 + $0x228] sm:$0xff] }
  0xe4   : > { %2068 = vmatmul.f32.vlgmr.msrb.gmra.mxu3 %v14662_v11  ;;  %2275 = vmatpush.msra.mxu2 %v15115_v5  ;;  %v13532_v11 = vld [vmem:[%s23898_s23 + $0x1d0] sm:$0xff]  ;;  %v15296_v51 = vpop.f32.mrf.mxu1 }
  0xe5   : > { %1950 = vmatpush.msrb.mxu1 %v14962_v2  ;;  %2331 = vmatpush.msra.mxu3 %v15087_v32  ;;  %v15217_v2 = vsub.f32 %v13538_v53, %v15182_v15  ;;  %v15226_v23 = vand.u32 4294901760, %v13532_v11  ;;  %23954 = vst [vmem:[#allocation26_spill] sm:$0xff] %v15296_v51  ;;  %v2227_v43 = vsub.f32 %v15253_v14, %v23688_v50 }
  0xe6   : > { %1913 = vmatmul.f32.gmra.mxu0 %v14779_v57  ;;  %1954 = vmatmul.f32.vlgmr.msrb.gmra.mxu1 %v23949_v4  ;;  %v2192_v57 = vand.u32 4294901760, %v2191_v62  ;;  %v2081_v4 = vld [vmem:[%s14109_s0 + $0xa] sm:$0xff]  ;;  %s539_s0 = sand.u32 1, %s13864_s25  }
  0xe7   : > { %2131 = vmatpush.msra.mxu0 %v15142_v12  ;;  %2181 = vmatpush.msra.mxu1 %v2180_v10  ;;  %v23682_v31 = vand.u32 4294901760, %v15217_v2  ;;  %v15263_v53 = vsub.f32 %v13532_v11, %v15226_v23  ;;  %v15271_v10 = vsub.f32 %v2111_v27, %v15240_v24  ;;  %v13549_v11 = vld [vmem:[%s23898_s23 + $0x258] sm:$0xff]  ;;  %v15292_v27 = vsub.f32 %v13530_v36, %v15250_v48  ;;  %s540_s26 = scalar_lea.vmem [#allocation6], %s539_s0  ;;  %s13427_s30 = scalar_lea.sflag [#allocation7], %s539_s0 }
  0xe8   : > { %2278 = vmatpush.msra.mxu2 %v15135_v8  ;;  %2333 = vmatpush.msra.mxu3 %v15109_v28  ;;  %v15310_v26 = vand.u32 4294901760, %v13549_v11  ;;  %s13437_s29 = sshll.u32 %s540_s26, 4  ;;  %s13438_s29 = int_to_ptr.vmem [resolvable:$true] %s13437_s29 }
  0xe9   : > { %2133 = vmatpush.msra.mxu0 %v15156_v59  ;;  %2187 = vmatpush.msra.mxu1 %v2186_v61  ;;  %23952 = vst [vmem:[#allocation24_spill] sm:$0xff] %v15271_v10  ;;  %v2215_v62 = vsub.f32 %v15217_v2, %v23682_v31  ;;  %v13526_v61 = vld [vmem:[%s23898_s23 + $0x1a0] sm:$0xff]  ;;  %v23691_v31 = vand.u32 4294901760, %v15263_v53  ;;  %v15308_v36 = vand.u32 4294901760, %v15271_v10 }
  0xea   : > { %2281 = vmatpush.msra.mxu2 %v15149_v45  ;;  %2335 = vmatpush.msra.mxu3 %v15121_v52  ;;  %v15353_v55 = vpop.f32.mrf.mxu2 }
  0xeb   : > { %2030 = vmatmul.f32.gmra.mxu2 %v14744_v16  ;;  %2135 = vmatpush.msra.mxu0 %v15182_v15  ;;  %23956 = vst [vmem:[#allocation28_spill] sm:$0xff] %v15353_v55 }
  0xec   : > { %2193 = vmatpush.msra.mxu1 %v2192_v57  ;;  %2284 = vmatpush.msra.mxu2 %v15173_v47  ;;  %v15294_v57 = vand.u32 4294901760, %v13551_v56 }
  0xed   : > { %2337 = vmatpush.msra.mxu3 %v15142_v12  ;;  %2137 = vmatpush.msra.mxu0 %v15198_v29 }
  0xee   : > { %2072 = vmatmul.f32.gmra.mxu3 %v14744_v16  ;;  %2199 = vmatpush.msra.mxu1 %v2198_v44  ;;  %v2210_v16 = vand.u32 4294901760, %v2209_v20  ;;  %v2221_v44 = vsub.f32 %v15229_v39, %v23684_v63  ;;  %v15305_v20 = vand.u32 4294901760, %v13526_v61  ;;  %v2216_v63 = vand.u32 4294901760, %v2215_v62  ;;  %v13545_v62 = vld [vmem:[%s23898_s23 + $0x238] sm:$0xff] }
  0xef   : > { %2287 = vmatpush.msra.mxu2 %v15188_v13  ;;  %2339 = vmatpush.msra.mxu3 %v15156_v59  ;;  %v15327_v21 = vsub.f32 %v13551_v56, %v15294_v57  ;;  %v2151_v56 = vsub.f32 %v15271_v10, %v15308_v36  ;;  %v15357_v42 = vand.u32 4294901760, %v13545_v62 }
  0xf0   : > { %1918 = vmatmul.f32.gmra.mxu0 %v14864_v25  ;;  %1960 = vmatmul.f32.gmra.mxu1 %v14813_v60  ;;  %v13547_v25 = vld [vmem:[%s23898_s23 + $0x248] sm:$0xff]  ;;  %v2114_v60 = vsel %vm605_vm0, %v2081_v4, 0  ;;  %v15329_v4 = vpop.f32.mrf.mxu0  ;;  %v15348_v46 = vsub.f32 %v13526_v61, %v15305_v20  ;;  %v2228_v61 = vand.u32 4294901760, %v2227_v43  ;;  %v13541_v43 = vld [vmem:[%s23898_s23 + $0x218] sm:$0xff] }
  0xf1   : > { %2139 = vmatpush.msra.mxu0 %v15221_v3  ;;  %2205 = vmatpush.msra.mxu1 %v2204_v30  ;;  %v15319_v30 = vsub.f32 %v13528_v22, %v15279_v33  ;;  %23955 = vst [vmem:[#allocation27_spill] sm:$0xff] %v15329_v4  ;;  %v2222_v22 = vand.u32 4294901760, %v2221_v44  ;;  %v15339_v50 = vand.u32 4294901760, %v13547_v25  ;;  %v15341_v34 = vand.u32 4294901760, %v2114_v60  ;;  %v15368_v4 = vpop.f32.mrf.mxu3 }
  0xf2   : > { %2290 = vmatpush.msra.mxu2 %v15217_v2  ;;  %2341 = vmatpush.msra.mxu3 %v15182_v15  ;;  %v15351_v44 = vsub.f32 %v13549_v11, %v15310_v26  ;;  %v23957_v11 = vand.u32 4294901760, %v15292_v27  ;;  %23958 = vst [vmem:[#allocation29_spill] sm:$0xff] %v15368_v4  ;;  %v15397_v4 = vsub.f32 %v13545_v62, %v15357_v42  ;;  %v23963_v62 = vand.u32 4294901760, %v15100_v7  ;;  %v15443_v35 = vpop.f32.mrf.mxu2 }
  0xf3   : > { %2141 = vmatpush.msra.mxu0 %v15226_v23  ;;  %2211 = vmatpush.msra.mxu1 %v2210_v16  ;;  %v2233_v16 = vsub.f32 %v15263_v53, %v23691_v31  ;;  %v15372_v1 = vsub.f32 %v2114_v60, %v15341_v34  ;;  %v15375_v41 = vsub.f32 %v13547_v25, %v15339_v50  ;;  %v15387_v60 = vand.u32 4294901760, %v13543_v49 }
  0xf4   : > { %2293 = vmatpush.msra.mxu2 %v15229_v39  ;;  %2343 = vmatpush.msra.mxu3 %v15198_v29  ;;  %v23961_v25 = vand.u32 4294901760, %v15319_v30  ;;  %v23965_v51 = vand.u32 4294901760, %v15351_v44  ;;  %23968 = vst [vmem:[#allocation33_spill] sm:$0xff] %v15443_v35 }
  0xf5   : > { %2034 = vmatmul.f32.gmra.mxu2 %v14832_v17  ;;  %2143 = vmatpush.msra.mxu0 %v15250_v48  ;;  %v2234_v31 = vand.u32 4294901760, %v2233_v16  ;;  %23959 = vst [vmem:[#allocation30_spill] sm:$0xff] %v15372_v1  ;;  %v15389_v16 = vpop.f32.mrf.mxu1  ;;  %v15424_v19 = vsub.f32 %v13543_v49, %v15387_v60  ;;  %v23967_v49 = vand.u32 4294901760, %v15115_v5 }
  0xf6   : > { %2217 = vmatpush.msra.mxu1 %v2216_v63  ;;  %2296 = vmatpush.msra.mxu2 %v15253_v14  ;;  %v2239_v63 = vsub.f32 %v15292_v27, %v23957_v11  ;;  %v15383_v11 = vand.u32 4294901760, %v2151_v56  ;;  %23960 = vst [vmem:[#allocation31_spill] sm:$0xff] %v15389_v16  ;;  %v2245_v55 = vsub.f32 %v15319_v30, %v23961_v25  ;;  %v15403_v16 = vand.u32 4294901760, %v13541_v43 }
  0xf7   : > { %2345 = vmatpush.msra.mxu3 %v15221_v3  ;;  %2145 = vmatpush.msra.mxu0 %v15279_v33  ;;  %v2549_v37 = vsub.f32 %v15351_v44, %v23965_v51  ;;  %v23693_v35 = vand.u32 4294901760, %v15424_v19 }
  0xf8   : > { %2076 = vmatmul.f32.gmra.mxu3 %v14832_v17  ;;  %2223 = vmatpush.msra.mxu1 %v2222_v22  ;;  %v2240_v56 = vand.u32 4294901760, %v2239_v63  ;;  %v23962_v22 = vand.u32 4294901760, %v15327_v21  ;;  %v15426_v7 = vpop.f32.mrf.mxu0 }
  0xf9   : > { %2299 = vmatpush.msra.mxu2 %v15263_v53  ;;  %2347 = vmatpush.msra.mxu3 %v15226_v23  ;;  %23966 = vst [vmem:[#allocation32_spill] sm:$0xff] %v15426_v7  ;;  %v15441_v7 = vsub.f32 %v13541_v43, %v15403_v16  ;;  %v13535_v43 = vld [vmem:[%s23898_s23 + $0x1e8] sm:$0xff]  ;;  %v15461_v54 = vpop.f32.mrf.mxu3 }
  0xfa   : > { %1966 = vmatmul.f32.gmra.mxu1 %v14898_v6  ;;  %2147 = vmatpush.msra.mxu0 %v15305_v20  ;;  %v2543_v17 = vsub.f32 %v15327_v21, %v23962_v22  ;;  %v13539_v6 = vld [vmem:[%s23898_s23 + $0x208] sm:$0xff]  ;;  %v23964_v22 = vand.u32 4294901760, %v15348_v46  ;;  %23971 = vst [vmem:[#allocation34_spill] sm:$0xff] %v15461_v54 }
  0xfb   : > { %2229 = vmatpush.msra.mxu1 %v2228_v61  ;;  %2302 = vmatpush.msra.mxu2 %v15292_v27  ;;  %v15413_v61 = vand.u32 4294901760, %v15372_v1  ;;  %v15434_v63 = vand.u32 4294901760, %v13539_v6 }
  0xfc   : > { %2349 = vmatpush.msra.mxu3 %v15250_v48  ;;  %2379 = vmatpush.msrb.mxu0 %v23963_v62  ;;  %v2251_v25 = vsub.f32 %v15348_v46, %v23964_v22  ;;  %v13537_v62 = vld [vmem:[%s23898_s23 + $0x1f8] sm:$0xff]  ;;  %v2544_v51 = vand.u32 4294901760, %v2543_v17  ;;  %v23969_v22 = vand.u32 4294901760, %v15375_v41  ;;  %v23970_v17 = vand.u32 4294901760, %v15135_v8 }
  0xfd   : > { %2153 = vmatmul.f32.vlgmr.msra.gmra.mxu0 %v15383_v11  ;;  %2235 = vmatpush.msra.mxu1 %v2234_v31  ;;  %v2246_v31 = vand.u32 4294901760, %v2245_v55  ;;  %v2159_v55 = vsub.f32 %v15372_v1, %v15413_v61  ;;  %v15452_v5 = vand.u32 4294901760, %v13537_v62  ;;  %v13533_v8 = vld [vmem:[%s23898_s23 + $0x1d8] sm:$0xff] }
  0xfe   : > { %2305 = vmatpush.msra.mxu2 %v15319_v30  ;;  %2351 = vmatpush.msra.mxu3 %v15279_v33  ;;  %v2555_v0 = vsub.f32 %v15375_v41, %v23969_v22  ;;  %v23972_v22 = vand.u32 4294901760, %v15397_v4 }
  0xff   : > { %2383 = vmatpush.msrb.mxu0 %v23967_v49  ;;  %2241 = vmatpush.msra.mxu1 %v2240_v56  ;;  %v2252_v56 = vand.u32 4294901760, %v2251_v25  ;;  %v2550_v49 = vand.u32 4294901760, %v2549_v37  ;;  %v23973_v25 = vand.u32 4294901760, %v15149_v45  ;;  %v23694_v37 = vand.u32 4294901760, %v15441_v7 }
 0x100   : > { %2308 = vmatpush.msra.mxu2 %v15348_v46  ;;  %2353 = vmatpush.msra.mxu3 %v15305_v20  ;;  %v2561_v58 = vsub.f32 %v15397_v4, %v23972_v22  ;;  %v15485_v38 = vand.u32 4294901760, %v2159_v55  ;;  %v15488_v22 = vsub.f32 %v13537_v62, %v15452_v5  ;;  %v2567_v45 = vsub.f32 %v15424_v19, %v23693_v35  ;;  %v15513_v54 = vpop.f32.mrf.mxu0 }
 0x101   : > { %2311 = vmatmul.f32.vlgmr.msra.gmra.mxu2 %v15271_v10  ;;  %2387 = vmatpush.msrb.mxu0 %v23970_v17  ;;  %v15471_v10 = vsub.f32 %v13539_v6, %v15434_v63  ;;  %v15481_v17 = vpop.f32.mrf.mxu1  ;;  %v2556_v6 = vand.u32 4294901760, %v2555_v0  ;;  %v23975_v55 = vand.u32 4294901760, %v15173_v47  ;;  %v15502_v62 = vand.u32 4294901760, %v15468_v9  ;;  %23976 = vst [vmem:[#allocation36_spill] sm:$0xff] %v15513_v54  ;;  %v13527_v54 = vld [vmem:[%s23898_s23 + $0x1a8] sm:$0xff] }
 0x102   : > { %2487 = vmatpush.msrb.mxu2 %v15294_v57  ;;  %2247 = vmatpush.msra.mxu1 %v2246_v31  ;;  %v15479_v31 = vand.u32 4294901760, %v13535_v43  ;;  %23974 = vst [vmem:[#allocation35_spill] sm:$0xff] %v15481_v17  ;;  %v2562_v0 = vand.u32 4294901760, %v2561_v58  ;;  %v13529_v58 = vld [vmem:[%s23898_s23 + $0x1b8] sm:$0xff] }
 0x103   : > { %2545 = vmatpush.msrb.mxu3 %v2544_v51  ;;  %2391 = vmatpush.msrb.mxu0 %v23973_v25  ;;  %v15493_v51 = vand.u32 4294901760, %v13533_v8  ;;  %v13531_v25 = vld [vmem:[%s23898_s23 + $0x1c8] sm:$0xff] }
 0x104   : > { %2357 = vmatmul.f32.vlgmr.msra.gmra.mxu3 %v15308_v36  ;;  %2489 = vmatpush.msrb.mxu2 %v15310_v26  ;;  %v15511_v35 = vsub.f32 %v13535_v43, %v15479_v31  ;;  %v15520_v47 = vand.u32 4294901760, %v13531_v25  ;;  %v2568_v43 = vand.u32 4294901760, %v2567_v45  ;;  %v15539_v45 = vand.u32 4294901760, %v13529_v58 }
 0x105   : > { %2253 = vmatpush.msra.mxu1 %v2252_v56  ;;  %2551 = vmatpush.msrb.mxu3 %v2550_v49  ;;  %v2573_v49 = vsub.f32 %v15441_v7, %v23694_v37  ;;  %v15526_v37 = vsub.f32 %v13533_v8, %v15493_v51  ;;  %v15528_v56 = vpop.f32.mrf.mxu2  ;;  %v23980_v8 = vand.u32 4294901760, %v15217_v2  ;;  %v23982_v2 = vand.u32 4294901760, %v15229_v39 }
 0x106   : > { %2255 = vmatmul.f32.vlgmr.msra.gmra.mxu1 %v15240_v24  ;;  %2395 = vmatpush.msrb.mxu0 %v23975_v55  ;;  %v23977_v55 = vand.u32 4294901760, %v15188_v13  ;;  %23978 = vst [vmem:[#allocation37_spill] sm:$0xff] %v15528_v56  ;;  %v23979_v13 = vand.u32 4294901760, %v15471_v10  ;;  %v15545_v56 = vpop.f32.mrf.mxu3  ;;  %v15553_v17 = vsub.f32 %v13531_v25, %v15520_v47  ;;  %v15567_v25 = vsub.f32 %v13529_v58, %v15539_v45 }
 0x107   : > { %2445 = vmatpush.msrb.mxu1 %v15080_v18  ;;  %2491 = vmatpush.msrb.mxu2 %v15339_v50  ;;  %v2590_v18 = vand.u32 4294901760, %v15511_v35 }
 0x108   : > { %2161 = vmatmul.f32.gmra.mxu0 %v15485_v38  ;;  %2557 = vmatpush.msrb.mxu3 %v2556_v6  ;;  %v2167_v6 = vsub.f32 %v15468_v9, %v15502_v62 }
 0x109   : > { %2399 = vmatpush.msrb.mxu0 %v23977_v55  ;;  %2447 = vmatpush.msrb.mxu1 %v15087_v32  ;;  %v2579_v32 = vsub.f32 %v15471_v10, %v23979_v13  ;;  %v2574_v55 = vand.u32 4294901760, %v2573_v49  ;;  %v2596_v49 = vand.u32 4294901760, %v15526_v37  ;;  %v2591_v39 = vsub.f32 %v15511_v35, %v2590_v18 }
 0x10a   : > { %2493 = vmatpush.msrb.mxu2 %v15357_v42  ;;  %2563 = vmatpush.msrb.mxu3 %v2562_v0  ;;  %v23981_v0 = vand.u32 4294901760, %v15488_v22 }
 0x10b   : > { %2316 = vmatmul.f32.gmra.mxu2 %v15372_v1  ;;  %2403 = vmatpush.msrb.mxu0 %v23980_v8  ;;  %v15555_v1 = vand.u32 4294901760, %v13527_v54  ;;  %v15560_v8 = vpop.f32.mrf.mxu1  ;;  %v2597_v58 = vsub.f32 %v15526_v37, %v2596_v49 }
 0x10c   : > { %2449 = vmatpush.msrb.mxu1 %v15109_v28  ;;  %2495 = vmatpush.msrb.mxu2 %v15387_v60  ;;  %v2585_v13 = vsub.f32 %v15488_v22, %v23981_v0  ;;  %v15564_v28 = vand.u32 4294901760, %v2167_v6  ;;  %v2580_v0 = vand.u32 4294901760, %v2579_v32  ;;  %v15585_v32 = vpop.f32.mrf.mxu0 }
 0x10d   : > { %2569 = vmatpush.msrb.mxu3 %v2568_v43  ;;  %2407 = vmatpush.msrb.mxu0 %v23982_v2  ;;  %v23983_v43 = vand.u32 4294901760, %v15253_v14  ;;  %v15578_v6 = vsub.f32 %v13527_v54, %v15555_v1  ;;  %v2608_v14 = vand.u32 4294901760, %v15567_v25  ;;  %v2592_v54 = vand.u32 4294901760, %v2591_v39 }
 0x10e   : > { %2363 = vmatmul.f32.gmra.mxu3 %v15413_v61  ;;  %2451 = vmatpush.msrb.mxu1 %v15121_v52  ;;  %v2586_v2 = vand.u32 4294901760, %v2585_v13  ;;  %v2602_v52 = vand.u32 4294901760, %v15553_v17  ;;  %v23986_v39 = vand.u32 4294901760, %v15319_v30 }
 0x10f   : > { %2497 = vmatpush.msrb.mxu2 %v15403_v16  ;;  %2575 = vmatpush.msrb.mxu3 %v2574_v55  ;;  %v23984_v55 = vand.u32 4294901760, %v15263_v53  ;;  %v2598_v53 = vand.u32 4294901760, %v2597_v58  ;;  %v23987_v58 = vand.u32 4294901760, %v15348_v46 }
 0x110   : > { %2259 = vmatmul.f32.gmra.mxu1 %v15341_v34  ;;  %2411 = vmatpush.msrb.mxu0 %v23983_v43  ;;  %v2603_v13 = vsub.f32 %v15553_v17, %v2602_v52  ;;  %v2614_v43 = vand.u32 4294901760, %v15578_v6 }
 0x111   : > { %2453 = vmatpush.msrb.mxu1 %v15142_v12  ;;  %2499 = vmatpush.msrb.mxu2 %v15434_v63  ;;  %v15592_v12 = vpop.f32.mrf.mxu2 }
 0x112   : > { %2169 = vmatmul.f32.gmra.mxu0 %v15564_v28  ;;  %2581 = vmatpush.msrb.mxu3 %v2580_v0  ;;  %v23985_v0 = vand.u32 4294901760, %v15292_v27  ;;  %v2604_v27 = vand.u32 4294901760, %v2603_v13 }
 0x113   : > { %2415 = vmatpush.msrb.mxu0 %v23984_v55  ;;  %2455 = vmatpush.msrb.mxu1 %v15156_v59  ;;  %v15602_v55 = vpop.f32.mrf.mxu3  ;;  %v2609_v59 = vsub.f32 %v15567_v25, %v2608_v14 }
 0x114   : > { %2501 = vmatpush.msrb.mxu2 %v15452_v5  ;;  %2587 = vmatpush.msrb.mxu3 %v2586_v2  ;;  %v15611_v2 = vpop.f32.mrf.mxu1 }
 0x115   : > { %2321 = vmatmul.f32.gmra.mxu2 %v15468_v9  ;;  %2419 = vmatpush.msrb.mxu0 %v23985_v0  ;;  %v2610_v30 = vand.u32 4294901760, %v2609_v59 }
 0x116   : > { %2457 = vmatpush.msrb.mxu1 %v15182_v15  ;;  %2503 = vmatpush.msrb.mxu2 %v15479_v31  ;;  %v2615_v15 = vsub.f32 %v15578_v6, %v2614_v43 }
 0x117   : > { %2593 = vmatpush.msrb.mxu3 %v2592_v54  ;;  %2423 = vmatpush.msrb.mxu0 %v23986_v39  ;;  %v15624_v54 = vpop.f32.mrf.mxu0 }
 0x118   : > { %2369 = vmatmul.f32.gmra.mxu3 %v15502_v62  ;;  %2459 = vmatpush.msrb.mxu1 %v15198_v29  ;;  %v2616_v29 = vand.u32 4294901760, %v2615_v15 }
 0x119   : > { %2505 = vmatpush.msrb.mxu2 %v15493_v51  ;;  %2599 = vmatpush.msrb.mxu3 %v2598_v53  ;;  %v15629_v13 = vpop.f32.mrf.mxu2 }
 0x11a   : > { %2263 = vmatmul.f32.gmra.mxu1 %v15436_v40  ;;  %2427 = vmatpush.msrb.mxu0 %v23987_v58  ;;  %v24011_v58 = vld [vmem:[#allocation13_spill] sm:$0xff] }
 0x11b   : > { %2461 = vmatpush.msrb.mxu1 %v15221_v3  ;;  %2507 = vmatpush.msrb.mxu2 %v15520_v47  ;;  %v15634_v46 = vpop.f32.mrf.mxu3  ;;  %v23988_v3 = vand.u32 4294901760, %v15327_v21 }
 0x11c   : > { %2429 = vmatmul.f32.vlgmr.msrb.gmra.mxu0 %v15240_v24  ;;  %2605 = vmatpush.msrb.mxu3 %v2604_v27 }
 0x11d   : > { %2636 = vmatpush.msra.mxu0 %v15327_v21  ;;  %2463 = vmatpush.msrb.mxu1 %v15226_v23  ;;  %v15640_v23 = vpop.f32.mrf.mxu1 }
 0x11e   : > { %2509 = vmatpush.msrb.mxu2 %v15539_v45  ;;  %2611 = vmatpush.msrb.mxu3 %v2610_v30  ;;  %v24012_v30 = vld [vmem:[#allocation14_spill] sm:$0xff] }
 0x11f   : > { %2639 = vmatpush.msra.mxu0 %v15351_v44  ;;  %2465 = vmatpush.msrb.mxu1 %v15250_v48  ;;  %v23989_v48 = vand.u32 4294901760, %v15351_v44  ;;  %v15651_v21 = vpop.f32.mrf.mxu0 }
 0x120   : > { %2511 = vmatpush.msrb.mxu2 %v15555_v1  ;;  %2617 = vmatpush.msrb.mxu3 %v2616_v29  ;;  %v753_v29 = vadd.f32 %v24012_v30, %v24011_v58 }
 0x121   : > { %2642 = vmatpush.msra.mxu0 %v15375_v41  ;;  %2467 = vmatpush.msrb.mxu1 %v15279_v33  ;;  %v23990_v33 = vand.u32 4294901760, %v15375_v41  ;;  %v23993_v41 = vand.u32 4294901760, %v15424_v19 }
 0x122   : > { %2743 = vmatpush.msra.mxu2 %v23988_v3  ;;  %2619 = vmatmul.f32.vlgmr.msrb.gmra.mxu3 %v15240_v24 }
 0x123   : > { %2517 = vmatmul.f32.vlgmr.msrb.gmra.mxu2 %v15383_v11  ;;  %2645 = vmatpush.msra.mxu0 %v15397_v4  ;;  %v15658_v11 = vpop.f32.mrf.mxu2  ;;  %v15665_v44 = vpop.f32.mrf.mxu3 }
 0x124   : > { %2747 = vmatpush.msra.mxu2 %v23989_v48  ;;  %2809 = vmatpush.msra.mxu3 %v15294_v57  ;;  %23992 = vst [vmem:[#allocation38_spill] sm:$0xff] %v15665_v44 }
 0x125   : > { %2469 = vmatpush.msrb.mxu1 %v15305_v20  ;;  %2433 = vmatmul.f32.gmra.mxu0 %v15341_v34  ;;  %v23991_v20 = vand.u32 4294901760, %v15397_v4 }
 0x126   : > { %2471 = vmatmul.f32.vlgmr.msrb.gmra.mxu1 %v15240_v24  ;;  %2648 = vmatpush.msra.mxu0 %v15424_v19 }
 0x127   : > { %2693 = vmatpush.msra.mxu1 %v15294_v57  ;;  %2751 = vmatpush.msra.mxu2 %v23990_v33  ;;  %v15672_v57 = vpop.f32.mrf.mxu1  ;;  %v15683_v19 = vpop.f32.mrf.mxu0  ;;  %v24013_v33 = vld [vmem:[#allocation16_spill] sm:$0xff] }
 0x128   : > { %2811 = vmatpush.msra.mxu3 %v15310_v26  ;;  %2651 = vmatpush.msra.mxu0 %v15441_v7 }
 0x129   : > { %2695 = vmatpush.msra.mxu1 %v15310_v26  ;;  %2755 = vmatpush.msra.mxu2 %v23991_v20  ;;  %v23994_v26 = vand.u32 4294901760, %v15441_v7  ;;  %v809_v20 = vadd.f32 %v24013_v33, %v753_v29 }
 0x12a   : > { %2813 = vmatpush.msra.mxu3 %v15339_v50  ;;  %2654 = vmatpush.msra.mxu0 %v15471_v10 }
 0x12b   : > { %2697 = vmatpush.msra.mxu1 %v15339_v50  ;;  %2759 = vmatpush.msra.mxu2 %v23993_v41  ;;  %v23995_v50 = vand.u32 4294901760, %v15471_v10  ;;  %v15690_v4 = vpop.f32.mrf.mxu2  ;;  %v15697_v7 = vpop.f32.mrf.mxu3 }
 0x12c   : > { %2815 = vmatpush.msra.mxu3 %v15357_v42  ;;  %2525 = vmatmul.f32.gmra.mxu2 %v15485_v38 }
 0x12d   : > { %2623 = vmatmul.f32.gmra.mxu3 %v15341_v34  ;;  %2657 = vmatpush.msra.mxu0 %v15488_v22 }
 0x12e   : > { %2699 = vmatpush.msra.mxu1 %v15357_v42  ;;  %2763 = vmatpush.msra.mxu2 %v23994_v26  ;;  %v23996_v42 = vand.u32 4294901760, %v15488_v22  ;;  %v24014_v26 = vld [vmem:[#allocation17_spill] sm:$0xff] }
 0x12f   : > { %2817 = vmatpush.msra.mxu3 %v15387_v60  ;;  %2437 = vmatmul.f32.gmra.mxu0 %v15436_v40  ;;  %v15704_v10 = vpop.f32.mrf.mxu1 }
 0x130   : > { %2475 = vmatmul.f32.gmra.mxu1 %v15341_v34  ;;  %2660 = vmatpush.msra.mxu0 %v15511_v35  ;;  %v15715_v35 = vpop.f32.mrf.mxu0 }
 0x131   : > { %2701 = vmatpush.msra.mxu1 %v15387_v60  ;;  %2767 = vmatpush.msra.mxu2 %v23995_v50  ;;  %v855_v50 = vadd.f32 %v24014_v26, %v809_v20  ;;  %v24021_v26 = vld [vmem:[#allocation19_spill] sm:$0xff] }
 0x132   : > { %2819 = vmatpush.msra.mxu3 %v15403_v16  ;;  %2663 = vmatpush.msra.mxu0 %v15526_v37 }
 0x133   : > { %2703 = vmatpush.msra.mxu1 %v15403_v16  ;;  %2771 = vmatpush.msra.mxu2 %v23996_v42  ;;  %v15722_v60 = vpop.f32.mrf.mxu2  ;;  %v23997_v16 = vld [vmem:[#allocation24_spill] sm:$0xff] }
 0x134   : > { %2821 = vmatpush.msra.mxu3 %v15434_v63  ;;  %2666 = vmatpush.msra.mxu0 %v15553_v17 }
 0x135   : > { %2705 = vmatpush.msra.mxu1 %v15434_v63  ;;  %2775 = vmatpush.msra.mxu2 %v2590_v18  ;;  %v15729_v63 = vpop.f32.mrf.mxu3 }
 0x136   : > { %2823 = vmatpush.msra.mxu3 %v15452_v5  ;;  %2533 = vmatmul.f32.gmra.mxu2 %v15564_v28 }
 0x137   : > { %2627 = vmatmul.f32.gmra.mxu3 %v15436_v40  ;;  %2669 = vmatpush.msra.mxu0 %v15567_v25 }
 0x138   : > { %2707 = vmatpush.msra.mxu1 %v15452_v5  ;;  %2779 = vmatpush.msra.mxu2 %v2596_v49  ;;  %v15735_v5 = vpop.f32.mrf.mxu1 }
 0x139   : > { %2825 = vmatpush.msra.mxu3 %v15479_v31  ;;  %2479 = vmatmul.f32.gmra.mxu1 %v15436_v40 }
 0x13a   : > { %2672 = vmatpush.msra.mxu0 %v15578_v6  ;;  %2709 = vmatpush.msra.mxu1 %v15479_v31  ;;  %v15743_v37 = vpop.f32.mrf.mxu0  ;;  %v23998_v31 = vld [vmem:[#allocation30_spill] sm:$0xff] }
 0x13b   : > { %2783 = vmatpush.msra.mxu2 %v2602_v52  ;;  %2827 = vmatpush.msra.mxu3 %v15493_v51  ;;  %v15746_v17 = vpop.f32.mrf.mxu2 }
 0x13c   : > { %2675 = vmatmul.f32.vlgmr.msra.gmra.mxu0 %v23997_v16  ;;  %2711 = vmatpush.msra.mxu1 %v15493_v51  ;;  %v24015_v16 = vld [vmem:[#allocation15_spill] sm:$0xff] }
 0x13d   : > { %2787 = vmatpush.msra.mxu2 %v2608_v14  ;;  %2829 = vmatpush.msra.mxu3 %v15520_v47  ;;  %v15748_v38 = vpop.f32.mrf.mxu3 }
 0x13e   : > { %2713 = vmatpush.msra.mxu1 %v15520_v47 }
 0x13f   : > { %2791 = vmatpush.msra.mxu2 %v2614_v43  ;;  %2831 = vmatpush.msra.mxu3 %v15539_v45 }
 0x140   : > { %2793 = vmatmul.f32.vlgmr.msra.gmra.mxu2 %v15240_v24  ;;  %2715 = vmatpush.msra.mxu1 %v15539_v45 }
 0x141   : > { %2833 = vmatpush.msra.mxu3 %v15555_v1 }
 0x142   : > { %2835 = vmatmul.f32.vlgmr.msra.gmra.mxu3 %v15240_v24  ;;  %2717 = vmatpush.msra.mxu1 %v15555_v1 }
 0x143   : > { %2721 = vmatmul.f32.vlgmr.msra.gmra.mxu1 %v15308_v36  ;;  %v15751_v22 = vpop.f32.mrf.mxu1  ;;  %v15756_v1 = vpop.f32.mrf.mxu0 }
 0x144   : > { %2680 = vmatmul.f32.gmra.mxu0 %v23998_v31  ;;  %v15758_v24 = vpop.f32.mrf.mxu2  ;;  %v24016_v31 = vld [vmem:[#allocation18_spill] sm:$0xff] }
 0x145   : > { %v15761_v36 = vpop.f32.mrf.mxu3 }
 0x148   : > { %2797 = vmatmul.f32.gmra.mxu2 %v15341_v34 }
 0x14a   : > { %2839 = vmatmul.f32.gmra.mxu3 %v15341_v34 }
 0x14b   : > { %2727 = vmatmul.f32.gmra.mxu1 %v15413_v61 }
 0x14c   : > { %2685 = vmatmul.f32.gmra.mxu0 %v15468_v9  ;;  %v15769_v34 = vpop.f32.mrf.mxu2 }
 0x14d   : > { %v15765_v51 = vpop.f32.mrf.mxu1  ;;  %v15767_v18 = vpop.f32.mrf.mxu0 }
 0x14f   : > { %v15771_v61 = vpop.f32.mrf.mxu3 }
 0x150   : > { %2801 = vmatmul.f32.gmra.mxu2 %v15436_v40 }
 0x152   : > { %2843 = vmatmul.f32.gmra.mxu3 %v15436_v40 }
 0x153   : > { %2733 = vmatmul.f32.gmra.mxu1 %v15502_v62 }
 0x156   : > { %v15777_v45 = vpop.f32.mrf.mxu2 }
 0x157   : > { %v15773_v9 = vpop.f32.mrf.mxu1  ;;  %23999 = vst [vmem:[#allocation24_spill] sm:$0xff] %v15777_v45  ;;  %v24020_v45 = vld [vmem:[#allocation21_spill] sm:$0xff] }
 0x159   : > { %v15775_v47 = vpop.f32.mrf.mxu0  ;;  %v15779_v49 = vpop.f32.mrf.mxu3 }
 0x15a   : > { %24000 = vst [vmem:[#allocation30_spill] sm:$0xff] %v15779_v49 }
 0x163   : > { %v15781_v28 = vpop.f32.mrf.mxu1  ;;  %v15783_v40 = vpop.f32.mrf.mxu0 }
 0x164   : > { %24001 = vst [vmem:[#allocation39_spill] sm:$0xff] %v15783_v40  ;;  %v15785_v62 = vpop.f32.mrf.mxu2  ;;  %v24022_v40 = vld [vmem:[#allocation22_spill] sm:$0xff] }
 0x165   : > { %24002 = vst [vmem:[#allocation40_spill] sm:$0xff] %v15785_v62  ;;  %v761_v44 = vadd.f32 %v24022_v40, %v24021_v26  ;;  %v24024_v62 = vld [vmem:[#allocation31_spill] sm:$0xff]  ;;  %v15826_v40 = vld [vmem:[%s24026_s2] sm:$0x3]  ;;  %s13439_s2 = sshll.u32 %s13435_s22, 4  ;;  %s13440_s2 = int_to_ptr.hbm [resolvable:$true] %s13439_s2 }
 0x166   : > { %s13824_s19 = sshra.s32 %s13440_s2, 4  ;;  %s13825_s19 = int_to_ptr.hbm [resolvable:$true] %s13824_s19 }
 0x167   : > { %v15787_v25 = vpop.f32.mrf.mxu3  ;;  %p13831_p0 = scmp.lt.s32.totalorder %s13825_s19, %s23642_s17 }
 0x168   : > { %24003 = vst [vmem:[#allocation41_spill] sm:$0xff] %v15787_v25 }
 0x16d   : > { %v15789_v52 = vpop.f32.mrf.mxu1  ;;  %v15791_v6 = vpop.f32.mrf.mxu0 }
 0x16e   : > { %24004 = vst [vmem:[#allocation42_spill] sm:$0xff] %v15789_v52  ;;  %v15793_v14 = vpop.f32.mrf.mxu2  ;;  %v24019_v52 = vld [vmem:[#allocation20_spill] sm:$0xff] }
 0x16f   : > { %24005 = vst [vmem:[#allocation43_spill] sm:$0xff] %v15791_v6 }
 0x170   : > { %24006 = vst [vmem:[#allocation44_spill] sm:$0xff] %v15793_v14 }
 0x171   : > { %v15795_v43 = vpop.f32.mrf.mxu3 }
 0x172   : > { %24007 = vst [vmem:[#allocation45_spill] sm:$0xff] %v15795_v43  ;;  %v24017_v43 = vld [vmem:[#allocation12_spill] sm:$0xff] }
 0x177   : > { %v15797_v0 = vpop.f32.mrf.mxu1 }
 0x178   : > { %24008 = vst [vmem:[#allocation46_spill] sm:$0xff] %v15797_v0  ;;  %v15799_v59 = vpop.f32.mrf.mxu2  ;;  %v757_v0 = vadd.f32 %v24016_v31, %v24015_v16  ;;  %v24023_v31 = vld [vmem:[#allocation27_spill] sm:$0xff] }
 0x179   : > { %24009 = vst [vmem:[#allocation47_spill] sm:$0xff] %v15799_v59  ;;  %v927_v59 = vadd.f32 %v24017_v43, %v855_v50 }
 0x17a   : > { %v2154_v53 = vpop.f32.mrf.mxu0  ;;  %v814_v25 = vadd.f32 %v24019_v52, %v757_v0  ;;  %v24025_v0 = vld [vmem:[#allocation23_spill] sm:$0xff] }
 0x17b   : > { %v15801_v39 = vpop.f32.mrf.mxu3 }
 0x17c   : > { %24010 = vst [vmem:[#allocation48_spill] sm:$0xff] %v15801_v39  ;;  %v24018_v39 = vld [vmem:[#allocation26_spill] sm:$0xff]  ;;  %v861_v20 = vadd.f32 %v24020_v45, %v814_v25 }
 0x17d   : > { %v969_v14 = vadd.f32 %v24018_v39, %v927_v59 }
 0x17e   : > { %v931_v43 = vadd.f32 %v24023_v31, %v861_v20 }
 0x17f   : > { %v1388_v58 = vadd.f32 %v15651_v21, %v969_v14  ;;  %v819_v21 = vadd.f32 %v24025_v0, %v761_v44 }
 0x180   : > { %v973_v52 = vadd.f32 %v24024_v62, %v931_v43  ;;  %v24027_v62 = vld [vmem:[#allocation25_spill] sm:$0xff] }
 0x181   : > { %v1490_v30 = vadd.f32 %v15672_v57, %v1388_v58  ;;  %v867_v58 = vadd.f32 %v24027_v62, %v819_v21  ;;  %v24033_v62 = vld [vmem:[#allocation33_spill] sm:$0xff] }
 0x182   : > { %v1396_v57 = vadd.f32 %v15683_v19, %v973_v52 }
 0x183   : > { %v2256_v27 = vpop.f32.mrf.mxu1  ;;  %v1546_v50 = vadd.f32 %v15690_v4, %v1490_v30 }
 0x184   : > { %v2312_v3 = vpop.f32.mrf.mxu2  ;;  %v2257_v29 = vadd.f32 %v2256_v27, %v2154_v53  ;;  %v1494_v25 = vadd.f32 %v15704_v10, %v1396_v57 }
 0x185   : > { %v2162_v15 = vpop.f32.mrf.mxu0  ;;  %v1592_v53 = vadd.f32 %v15697_v7, %v1546_v50  ;;  %v2855_v7 = vperm.slane %v15826_v40, 0 }
 0x186   : > { %v2313_v59 = vadd.f32 %v2312_v3, %v2257_v29  ;;  %v1551_v31 = vadd.f32 %v15722_v60, %v1494_v25 }
 0x187   : > { %v2358_v48 = vpop.f32.mrf.mxu3  ;;  %v1664_v4 = vadd.f32 %v15743_v37, %v1592_v53  ;;  %v24029_v37 = vld [vmem:[#allocation28_spill] sm:$0xff] }
 0x188   : > { %v2359_v45 = vadd.f32 %v2358_v48, %v2313_v59  ;;  %v24028_v48 = vld [vmem:[#allocation32_spill] sm:$0xff]  ;;  %v1598_v57 = vadd.f32 %v15729_v63, %v1551_v31 }
 0x189   : > { %v1706_v30 = vadd.f32 %v15751_v22, %v1664_v4  ;;  %v935_v29 = vadd.f32 %v24028_v48, %v867_v58  ;;  %v24032_v22 = vld [vmem:[#allocation36_spill] sm:$0xff] }
 0x18a   : > { %v1668_v4 = vadd.f32 %v15756_v1, %v1598_v57 }
 0x18c   : > { %v1710_v63 = vadd.f32 %v15765_v51, %v1668_v4 }
 0x18d   : > { %v2260_v41 = vpop.f32.mrf.mxu1 }
 0x18e   : > { %v2317_v6 = vpop.f32.mrf.mxu2  ;;  %v2261_v27 = vadd.f32 %v2260_v41, %v2162_v15  ;;  %v24030_v15 = vld [vmem:[#allocation29_spill] sm:$0xff] }
 0x18f   : > { %v2170_v42 = vpop.f32.mrf.mxu0  ;;  %v1117_v41 = vadd.f32 %v24030_v15, %v24029_v37 }
 0x190   : > { %v2318_v10 = vadd.f32 %v2317_v6, %v2261_v27 }
 0x191   : > { %v2364_v49 = vpop.f32.mrf.mxu3  ;;  %v1173_v52 = vadd.f32 %v24032_v22, %v1117_v41 }
 0x192   : > { %v2365_v53 = vadd.f32 %v2364_v49, %v2318_v10 }
 0x193   : > { %v1219_v60 = vadd.f32 %v15560_v8, %v1173_v52 }
 0x197   : > { %v2264_v33 = vpop.f32.mrf.mxu1 }
 0x198   : > { %v2322_v39 = vpop.f32.mrf.mxu2  ;;  %v2265_v25 = vadd.f32 %v2264_v33, %v2170_v42 }
 0x199   : > { %v2430_v16 = vpop.f32.mrf.mxu0 }
 0x19a   : > { %v2431_v3 = vadd.f32 %v2430_v16, %v2359_v45  ;;  %v24031_v16 = vld [vmem:[#allocation35_spill] sm:$0xff] }
 0x19b   : > { %v2370_v14 = vpop.f32.mrf.mxu3  ;;  %v977_v50 = vadd.f32 %v24031_v16, %v935_v29 }
 0x19d   : > { %v1404_v0 = vadd.f32 %v15715_v35, %v977_v50  ;;  %v24034_v35 = vld [vmem:[#allocation34_spill] sm:$0xff] }
 0x19e   : > { %v1121_v58 = vadd.f32 %v24034_v35, %v24033_v62 }
 0x19f   : > { %v1498_v6 = vadd.f32 %v15735_v5, %v1404_v0 }
 0x1a0   : > { %v1178_v1 = vadd.f32 %v15585_v32, %v1121_v58 }
 0x1a1   : > { %v1556_v8 = vadd.f32 %v15746_v17, %v1498_v6 }
 0x1a2   : > { %v2434_v20 = vpop.f32.mrf.mxu0 }
 0x1a3   : > { %v2472_v44 = vpop.f32.mrf.mxu1  ;;  %v2435_v27 = vadd.f32 %v2434_v20, %v2365_v53  ;;  %v1604_v20 = vadd.f32 %v15748_v38, %v1556_v8  ;;  %v2917_v38 = vld [vmem:[%s24036_s3] sm:$0xff] }
 0x1a4   : > { %v2473_v19 = vadd.f32 %v2472_v44, %v2431_v3  ;;  %v1291_v44 = vadd.f32 %v15592_v12, %v1219_v60 }
 0x1a5   : > { %v2620_v21 = vpop.f32.mrf.mxu3  ;;  %v1672_v17 = vadd.f32 %v15767_v18, %v1604_v20  ;;  %v24042_v20 = vld [vmem:[#allocation42_spill] sm:$0xff] }
 0x1a6   : > { %v15834_v26 = vpop.f32.mrf.mxu2  ;;  %v2847_v43 = vadd.f32 %v2473_v19, %v1706_v30  ;;  %v2323_v30 = vadd.f32 %v2322_v39, %v2265_v25  ;;  %v1225_v19 = vadd.f32 %v15611_v2, %v1178_v1  ;;  %v1333_v29 = vadd.f32 %v15602_v55, %v1291_v44 }
 0x1a7   : > { %v1714_v15 = vadd.f32 %v15773_v9, %v1672_v17  ;;  %v2921_v9 = vsel %vm2919_vm1, %v2917_v38, 0  ;;  %v2621_v53 = vadd.f32 %v2620_v21, %v15834_v26  ;;  %v15910_v17 = vperm.slane %v15826_v40, 1 }
 0x1a8   : > { %v15840_v59 = vadd.f32 %v2855_v7, %v2847_v43  ;;  %v2371_v51 = vadd.f32 %v2370_v14, %v2323_v30  ;;  %v1752_v12 = vadd.f32 %v15758_v24, %v1333_v29  ;;  %v24035_v43 = vld [vmem:[#allocation37_spill] sm:$0xff]  ;;  %v1295_v32 = vadd.f32 %v15629_v13, %v1225_v19 }
 0x1a9   : > { %v1125_v37 = vadd.f32 %v15545_v56, %v24035_v43  ;;  %v15882_v25 = vand.u32 4294901760, %v2921_v9 }
 0x1aa   : > { %v2865_v45 = vmax.f32 %v15840_v59, 0.0  ;;  %v1854_v18 = vadd.f32 %v15761_v36, %v1752_v12  ;;  %v1337_v13 = vadd.f32 %v15634_v46, %v1295_v32 }
 0x1ab   : > { %v1183_v24 = vadd.f32 %v15624_v54, %v1125_v37  ;;  %v15893_v62 = vsub.f32 %v2921_v9, %v15882_v25 }
 0x1ac   : > { %2871 = vst [vmem:[#allocation2] sm:$0xff] %v2865_v45  ;;  %v2438_v5 = vpop.f32.mrf.mxu0  ;;  %v1910_v22 = vadd.f32 %v15775_v47, %v1854_v18  ;;  %v1760_v54 = vadd.f32 %v15769_v34, %v1337_v13  ;;  %v2918_v34 = vld [vmem:[%s24036_s3 + $0x8] sm:$0x3f]  ;;  %s13826_s3 = scalar_lea.hbm %s13825_s19, 1 }
 0x1ad   : > { %v2476_v3 = vpop.f32.mrf.mxu1  ;;  %v2439_v39 = vadd.f32 %v2438_v5, %v2371_v51  ;;  %v1231_v50 = vadd.f32 %v15640_v23, %v1183_v24  ;;  %v2924_v30 = vsel %vm2919_vm1, %v2918_v34, 0  ;;  %v24040_v5 = vld [vmem:[#allocation24_spill] sm:$0xff]  ;;  %v15907_v59 = vand.u32 4294901760, %v15893_v62  ;;  %p13827_p11 = scmp.ne.s32.totalorder %s13825_s19, %s13826_s3  ;;  %p13832_p1 = scmp.lt.s32.totalorder %s13830_s21, %s13826_s3 }
 0x1ae   : > { %v2477_v49 = vadd.f32 %v2476_v3, %v2435_v27  ;;  %v1956_v36 = vadd.f32 %v15781_v28, %v1910_v22  ;;  %v24037_v28 = vld [vmem:[#allocation40_spill] sm:$0xff]  ;;  %v15914_v37 = vand.u32 4294901760, %v2924_v30  ;;  %v24045_v22 = vld [vmem:[#allocation43_spill] sm:$0xff] }
 0x1af   : > { %v15856_v42 = vpop.f32.mrf.mxu2  ;;  %v1299_v46 = vadd.f32 %v15658_v11, %v1231_v50  ;;  %v24038_v11 = vld [vmem:[#allocation38_spill] sm:$0xff]  ;;  %v2954_v40 = vsub.f32 %v15893_v62, %v15907_v59  ;;  %p13828_p12 = pnand %p13827_p11, %p14002_p5  ;;  %p13833_p2 = por %p13832_p1, %p13831_p0 }
 0x1b0   : > { %v2849_v33 = vadd.f32 %v2477_v49, %v1710_v63  ;;  %v2624_v31 = vpop.f32.mrf.mxu3  ;;  %v2028_v26 = vadd.f32 %v24037_v28, %v1956_v36  ;;  %v24039_v49 = vld [vmem:[#allocation39_spill] sm:$0xff]  ;;  %v15927_v9 = vsub.f32 %v2924_v30, %v15914_v37 }
 0x1b1   : > { %v1341_v35 = vadd.f32 %v24038_v11, %v1299_v46  ;;  %v2625_v12 = vadd.f32 %v2624_v31, %v15856_v42  ;;  %v24044_v31 = vld [vmem:[#allocation44_spill] sm:$0xff]  ;;  %v24046_v46 = vld [vmem:[#allocation45_spill] sm:$0xff]  ;;  %v15936_v34 = vand.u32 4294901760, %v2954_v40  ;;  %p13829_p13 = pneg %p13828_p12 }
 0x1b2   : > { %v2861_v48 = vadd.f32 %v2855_v7, %v2849_v33 }
 0x1b3   : > { %v2884_v14 = vld [vmem:[#allocation2] sm:$0xfe]  ;;  %v1768_v1 = vadd.f32 %v24040_v5, %v1341_v35  ;;  %p13834_p3 = pnand %p13833_p2, %p13829_p13 }
 0x1b4   : > { %v2867_v10 = vmax.f32 %v2861_v48, 0.0  ;;  %v2895_v57 = vrot.slane %v2884_v14, 1  ;;  %v24041_v48 = vld [vmem:[#allocation41_spill] sm:$0xff] }
 0x1b5   : > { %v2070_v29 = vadd.f32 %v24041_v48, %v2028_v26 }
 0x1b6   : > { %2874 = vst [vmem:[#allocation2 + $0x10] sm:$0xff] %v2867_v10  ;;  %v2480_v2 = vpop.f32.mrf.mxu1  ;;  %v2896_v0 = vrot.slane %v2867_v10, 1 }
 0x1b7   : > { %v2481_v55 = vadd.f32 %v2480_v2, %v2439_v39 }
 0x1b8   : > { %v2897_v47 = vsel %vm2894_vm2, %v2895_v57, %v2896_v0 }
 0x1b9   : > { %v2851_v41 = vadd.f32 %v2481_v55, %v1714_v15  ;;  %v2676_v16 = vpop.f32.mrf.mxu0  ;;  %v15873_v56 = vpop.f32.mrf.mxu2  ;;  %v24043_v15 = vld [vmem:[#allocation30_spill] sm:$0xff] }
 0x1ba   : > { %v2628_v6 = vpop.f32.mrf.mxu3  ;;  %v2677_v23 = vadd.f32 %v2676_v16, %v2621_v53  ;;  %v1862_v55 = vadd.f32 %v24043_v15, %v1768_v1 }
 0x1bb   : > { %v2863_v52 = vadd.f32 %v2855_v7, %v2851_v41  ;;  %v1858_v7 = vadd.f32 %v15771_v61, %v1760_v54  ;;  %v2911_v61 = vmax.f32 %v2865_v45, %v2897_v47 }
 0x1bd   : > { %v2869_v60 = vmax.f32 %v2863_v52, 0.0  ;;  %v1915_v44 = vadd.f32 %v24039_v49, %v1858_v7  ;;  %v15912_v43 = vand.u32 4294901760, %v2911_v61  ;;  %v1920_v52 = vadd.f32 %v24045_v22, %v1862_v55 }
 0x1be   : > { %v2629_v7 = vadd.f32 %v2628_v6, %v15873_v56 }
 0x1bf   : > { %2876 = vst [vmem:[#allocation2 + $0x20] sm:$0xff] %v2869_v60  ;;  %v2901_v4 = vrot.slane %v2869_v60, 1  ;;  %v1962_v51 = vadd.f32 %v24042_v20, %v1915_v44  ;;  %v2994_v50 = vsub.f32 %v2911_v61, %v15912_v43 }
 0x1c0   : > { %v2722_v27 = vpop.f32.mrf.mxu1 }
 0x1c1   : > { %v2723_v21 = vadd.f32 %v2722_v27, %v2677_v23  ;;  %v2902_v3 = vsel %vm2894_vm2, %v2896_v0, %v2901_v4  ;;  %v2681_v58 = vpop.f32.mrf.mxu0  ;;  %v2032_v14 = vadd.f32 %v24044_v31, %v1962_v51  ;;  %v24049_v51 = vld [vmem:[#allocation48_spill] sm:$0xff] }
 0x1c2   : > { %v2913_v63 = vmax.f32 %v2867_v10, %v2902_v3  ;;  %v2682_v32 = vadd.f32 %v2681_v58, %v2625_v12  ;;  %v15941_v3 = vand.u32 4294901760, %v15927_v9 }
 0x1c3   : > { %v2794_v8 = vpop.f32.mrf.mxu2  ;;  %v2074_v23 = vadd.f32 %v24046_v46, %v2032_v14 }
 0x1c4   : > { %v2795_v33 = vadd.f32 %v2794_v8, %v2723_v21  ;;  %v15901_v19 = vand.u32 4294901760, %v2913_v63  ;;  %v2995_v21 = vand.u32 4294901760, %v2994_v50  ;;  %v2962_v5 = vsub.f32 %v15927_v9, %v15941_v3 }
 0x1c5   : > { %v2836_v10 = vpop.f32.mrf.mxu3 }
 0x1c6   : > { %v2837_v45 = vadd.f32 %v2836_v10, %v2795_v33  ;;  %v2882_v39 = vld [vmem:[#allocation2 + $0x20] sm:$0x7f]  ;;  %v2988_v42 = vsub.f32 %v2913_v63, %v15901_v19  ;;  %v2996_v30 = vsub.f32 %v2994_v50, %v2995_v21 }
 0x1c7   : > { %v2915_v2 = vmax.f32 %v2882_v39, %v2901_v4  ;;  %v24047_v4 = vld [vmem:[#allocation46_spill] sm:$0xff]  ;;  %v24048_v63 = vld [vmem:[#allocation47_spill] sm:$0xff]  ;;  %v15955_v39 = vand.u32 4294901760, %v2962_v5 }
 0x1c8   : > { %v2848_v38 = vadd.f32 %v2837_v45, %v2070_v29  ;;  %v2728_v24 = vpop.f32.mrf.mxu1  ;;  %v2989_v60 = vand.u32 4294901760, %v2988_v42  ;;  %v1968_v47 = vadd.f32 %v24047_v4, %v1920_v52  ;;  %v2997_v45 = vand.u32 4294901760, %v2996_v30 }
 0x1c9   : > { %v2729_v18 = vadd.f32 %v2728_v24, %v2682_v32  ;;  %v2927_v41 = vsel %vm2894_vm2, %v2915_v2, 0  ;;  %v2686_v54 = vpop.f32.mrf.mxu0 }
 0x1ca   : > { %v2860_v16 = vadd.f32 %v15910_v17, %v2848_v38  ;;  %v15923_v13 = vand.u32 4294901760, %v2927_v41  ;;  %v2687_v11 = vadd.f32 %v2686_v54, %v2629_v7  ;;  %v2990_v6 = vsub.f32 %v2988_v42, %v2989_v60  ;;  %v3352_v7 = vld [vmem:[%s24050_s4 + $0x70] sm:$0xff] }
 0x1cb   : > { %v2798_v0 = vpop.f32.mrf.mxu2  ;;  %v2036_v61 = vadd.f32 %v24048_v63, %v1968_v47  ;;  %v3353_v47 = vld [vmem:[%s24050_s4 + $0x78] sm:$0xff]  ;;  %v3348_v63 = vld [vmem:[%s24050_s4 + $0x50] sm:$0xff] }
 0x1cc   : > { %v2866_v57 = vmax.f32 %v2860_v16, 0.0  ;;  %v2799_v36 = vadd.f32 %v2798_v0, %v2729_v18  ;;  %2946 = vmatpush.msrb.mxu0 %v15923_v13  ;;  %3055 = vmatpush.msrb.mxu3 %v15923_v13  ;;  %v2982_v53 = vsub.f32 %v2927_v41, %v15923_v13  ;;  %v2991_v29 = vand.u32 4294901760, %v2990_v6 }
 0x1cd   : > { %v2840_v27 = vpop.f32.mrf.mxu3  ;;  %v2078_v12 = vadd.f32 %v24049_v51, %v2036_v61  ;;  %v3347_v61 = vld [vmem:[%s24050_s4 + $0x48] sm:$0xff] }
 0x1ce   : > { %2873 = vst.msk [vmem:[#allocation2 + $0x8] sm:$0xff] %vm2872_vm3, %v2866_v57  ;;  %v2841_v28 = vadd.f32 %v2840_v27, %v2799_v36  ;;  %2948 = vmatpush.msrb.mxu0 %v15901_v19  ;;  %3023 = vmatpush.msrb.mxu2 %v2982_v53  ;;  %v2983_v26 = vand.u32 4294901760, %v2982_v53  ;;  %v3351_v27 = vld [vmem:[%s24050_s4 + $0x68] sm:$0xff]  ;;  %v16033_v30 = vand.u32 4294901760, %v3347_v61 }
 0x1cf   : > { %3057 = vmatpush.msrb.mxu3 %v15901_v19 }
 0x1d0   : > { %v2850_v35 = vadd.f32 %v2841_v28, %v2074_v23  ;;  %v2734_v58 = vpop.f32.mrf.mxu1  ;;  %2950 = vmatpush.msrb.mxu0 %v15912_v43  ;;  %3026 = vmatpush.msrb.mxu2 %v2988_v42  ;;  %v2984_v56 = vsub.f32 %v2982_v53, %v2983_v26 }
 0x1d1   : > { %v2735_v49 = vadd.f32 %v2734_v58, %v2687_v11  ;;  %3059 = vmatpush.msrb.mxu3 %v15912_v43  ;;  %2956 = vmatmul.f32.vlgmr.msrb.gmra.mxu0 %v15936_v34  ;;  %v3350_v11 = vld [vmem:[%s24050_s4 + $0x60] sm:$0xff]  ;;  %v16010_v58 = vand.u32 4294901760, %v3351_v27 }
 0x1d2   : > { %3089 = vmatpush.msra.mxu0 %v2983_v26  ;;  %v2862_v44 = vadd.f32 %v15910_v17, %v2850_v35  ;;  %3029 = vmatpush.msrb.mxu2 %v2994_v50  ;;  %v2985_v8 = vand.u32 4294901760, %v2984_v56  ;;  %v3349_v35 = vld [vmem:[%s24050_s4 + $0x58] sm:$0xff]  ;;  %v16012_v56 = vand.u32 4294901760, %v3350_v11 }
 0x1d3   : > { %v2802_v1 = vpop.f32.mrf.mxu2  ;;  %3032 = vmatmul.f32.vlgmr.msrb.gmra.mxu2 %v15893_v62  ;;  %3063 = vmatmul.f32.vlgmr.msrb.gmra.mxu3 %v15907_v59  ;;  %v16014_v6 = vand.u32 4294901760, %v3349_v35  ;;  %v16037_v5 = vsub.f32 %v3351_v27, %v16010_v58  ;;  %v3339_v27 = vld [vmem:[%s24050_s4 + $0x8] sm:$0xff] }
 0x1d4   : > { %3093 = vmatpush.msra.mxu0 %v2989_v60  ;;  %v2868_v33 = vmax.f32 %v2862_v44, 0.0  ;;  %v2803_v48 = vadd.f32 %v2802_v1, %v2735_v49  ;;  %2986 = vmatpush.msrb.mxu1 %v2985_v8  ;;  %v3346_v49 = vld [vmem:[%s24050_s4 + $0x40] sm:$0xff]  ;;  %v16031_v8 = vand.u32 4294901760, %v3348_v63  ;;  %v16040_v1 = vsub.f32 %v3350_v11, %v16012_v56 }
 0x1d5   : > { %v2844_v20 = vpop.f32.mrf.mxu3  ;;  %v2885_v15 = vld [vmem:[#allocation2 + $0x8] sm:$0xfe] }
 0x1d6   : > { %3097 = vmatpush.msra.mxu0 %v2995_v21  ;;  %2875 = vst.msk [vmem:[#allocation2 + $0x18] sm:$0xff] %vm2872_vm3, %v2868_v33  ;;  %v2845_v10 = vadd.f32 %v2844_v20, %v2803_v48  ;;  %2992 = vmatpush.msrb.mxu1 %v2991_v29  ;;  %v2898_v42 = vrot.slane %v2885_v15, 1  ;;  %v2879_v31 = vld [vmem:[#allocation2 + $0x8] sm:$0xff]  ;;  %v15998_v21 = vand.u32 4294901760, %v3353_v47  ;;  %v16043_v33 = vsub.f32 %v3349_v35, %v16014_v6 }
 0x1d7   : > { %v16045_v48 = vand.u32 4294901760, %v3346_v49 }
 0x1d8   : > { %v2852_v32 = vadd.f32 %v2845_v10, %v2078_v12  ;;  %2998 = vmatpush.msrb.mxu1 %v2997_v45  ;;  %v16050_v12 = vsub.f32 %v3348_v63, %v16031_v8  ;;  %v3431_v10 = vand.u32 4294901760, %v16037_v5  ;;  %v3437_v45 = vand.u32 4294901760, %v16040_v1 }
 0x1d9   : > { %3000 = vmatmul.f32.vlgmr.msrb.gmra.mxu1 %v15882_v25  ;;  %2964 = vmatmul.f32.gmra.mxu0 %v15955_v39 }
 0x1da   : > { %v2864_v2 = vadd.f32 %v15910_v17, %v2852_v32  ;;  %3121 = vmatpush.msra.mxu1 %v15923_v13  ;;  %v16056_v32 = vsub.f32 %v3347_v61, %v16033_v30  ;;  %v3338_v61 = vld [vmem:[%s24050_s4] sm:$0xff] }
 0x1db   : > { %3037 = vmatmul.f32.gmra.mxu2 %v15927_v9  ;;  %3069 = vmatmul.f32.gmra.mxu3 %v15941_v3 }
 0x1dc   : > { %v2870_v55 = vmax.f32 %v2864_v2, 0.0  ;;  %3123 = vmatpush.msra.mxu1 %v15901_v19 }
 0x1dd   : > { %v2881_v38 = vld [vmem:[#allocation2 + $0x18] sm:$0xff] }
 0x1de   : > { %2877 = vst.msk [vmem:[#allocation2 + $0x28] sm:$0xff] %vm2872_vm3, %v2870_v55  ;;  %3125 = vmatpush.msra.mxu1 %v15912_v43  ;;  %v2899_v24 = vrot.slane %v2881_v38, 1  ;;  %v3443_v55 = vand.u32 4294901760, %v16043_v33 }
 0x1e0   : > { %v2900_v17 = vsel %vm2894_vm2, %v2898_v42, %v2899_v24  ;;  %v16073_v42 = vsub.f32 %v3346_v49, %v16045_v48 }
 0x1e1   : > { %3004 = vmatmul.f32.gmra.mxu1 %v15914_v37  ;;  %3099 = vmatmul.f32.vlgmr.msra.gmra.mxu0 %v15882_v25  ;;  %v2912_v14 = vmax.f32 %v2879_v31, %v2900_v17  ;;  %v3345_v17 = vld [vmem:[%s24050_s4 + $0x38] sm:$0xff]  ;;  %v3344_v31 = vld [vmem:[%s24050_s4 + $0x30] sm:$0xff] }
 0x1e3   : > { %v15969_v19 = vand.u32 4294901760, %v2912_v14 }
 0x1e5   : > { %v2887_v18 = vld [vmem:[#allocation2 + $0x28] sm:$0xff]  ;;  %v3197_v22 = vsub.f32 %v2912_v14, %v15969_v19 }
 0x1e6   : > { %v2903_v41 = vrot.slane %v2887_v18, 1  ;;  %v2883_v40 = vld [vmem:[#allocation2 + $0x28] sm:$0x7f]  ;;  %v3438_v18 = vsub.f32 %v16040_v1, %v3437_v45 }
 0x1e7   : > { %v3198_v36 = vand.u32 4294901760, %v3197_v22 }
 0x1e8   : > { %v2916_v16 = vmax.f32 %v2883_v40, %v2903_v41  ;;  %v2904_v13 = vsel %vm2894_vm2, %v2899_v24, %v2903_v41  ;;  %v3449_v24 = vand.u32 4294901760, %v16050_v12  ;;  %v3343_v41 = vld [vmem:[%s24050_s4 + $0x28] sm:$0xff]  ;;  %v3455_v40 = vand.u32 4294901760, %v16056_v32 }
 0x1e9   : > { %3127 = vmatmul.f32.vlgmr.msra.gmra.mxu1 %v15882_v25  ;;  %v2914_v43 = vmax.f32 %v2881_v38, %v2904_v13  ;;  %3103 = vmatmul.f32.gmra.mxu0 %v15914_v37  ;;  %v3199_v4 = vsub.f32 %v3197_v22, %v3198_v36  ;;  %v3432_v38 = vsub.f32 %v16037_v5, %v3431_v10 }
 0x1ea   : > { %v2930_v50 = vsel %vm2894_vm2, %v2916_v16, 0  ;;  %v3342_v16 = vld [vmem:[%s24050_s4 + $0x20] sm:$0xff] }
 0x1eb   : > { %v15976_v52 = vand.u32 4294901760, %v2930_v50  ;;  %v15978_v0 = vand.u32 4294901760, %v2914_v43  ;;  %v3200_v29 = vand.u32 4294901760, %v3199_v4  ;;  %v3433_v13 = vand.u32 4294901760, %v3432_v38 }
 0x1ed   : > { %3149 = vmatpush.msra.mxu2 %v15976_v52  ;;  %3258 = vmatpush.msrb.mxu1 %v15976_v52  ;;  %v3185_v57 = vsub.f32 %v2930_v50, %v15976_v52  ;;  %v3191_v54 = vsub.f32 %v2914_v43, %v15978_v0  ;;  %v3444_v43 = vsub.f32 %v16043_v33, %v3443_v55  ;;  %v16099_v50 = vand.u32 4294901760, %v3345_v17 }
 0x1ef   : > { %3151 = vmatpush.msra.mxu2 %v15978_v0  ;;  %3226 = vmatpush.msrb.mxu0 %v3185_v57  ;;  %v3186_v53 = vand.u32 4294901760, %v3185_v57  ;;  %v3192_v60 = vand.u32 4294901760, %v3191_v54 }
 0x1f0   : > { %3260 = vmatpush.msrb.mxu1 %v15978_v0 }
 0x1f1   : > { %3153 = vmatpush.msra.mxu2 %v15969_v19  ;;  %3229 = vmatpush.msrb.mxu0 %v3191_v54  ;;  %v3187_v46 = vsub.f32 %v3185_v57, %v3186_v53  ;;  %v3193_v23 = vsub.f32 %v3191_v54, %v3192_v60  ;;  %v3439_v57 = vand.u32 4294901760, %v3438_v18  ;;  %v16116_v54 = vsub.f32 %v3345_v17, %v16099_v50 }
 0x1f2   : > { %3262 = vmatpush.msrb.mxu1 %v15969_v19  ;;  %3159 = vmatmul.f32.vlgmr.msra.gmra.mxu2 %v15936_v34  ;;  %v16000_v34 = vand.u32 4294901760, %v3352_v7 }
 0x1f3   : > { %3292 = vmatpush.msrb.mxu2 %v3186_v53  ;;  %3232 = vmatpush.msrb.mxu0 %v3197_v22  ;;  %v3188_v28 = vand.u32 4294901760, %v3187_v46  ;;  %v3194_v26 = vand.u32 4294901760, %v3193_v23  ;;  %v16101_v22 = vand.u32 4294901760, %v3344_v31  ;;  %v16121_v53 = vand.u32 4294901760, %v3342_v16 }
 0x1f4   : > { %3131 = vmatmul.f32.gmra.mxu1 %v15914_v37  ;;  %3235 = vmatmul.f32.vlgmr.msrb.gmra.mxu0 %v15893_v62  ;;  %v16026_v62 = vsub.f32 %v3353_v47, %v15998_v21  ;;  %v16029_v44 = vsub.f32 %v3352_v7, %v16000_v34  ;;  %v3445_v46 = vand.u32 4294901760, %v3444_v43  ;;  %v3467_v23 = vand.u32 4294901760, %v16116_v54 }
 0x1f5   : > { %3296 = vmatpush.msrb.mxu2 %v3192_v60  ;;  %3189 = vmatpush.msra.mxu3 %v3188_v28  ;;  %v3456_v60 = vsub.f32 %v16056_v32, %v3455_v40  ;;  %v16149_v11 = vsub.f32 %v3342_v16, %v16121_v53 }
 0x1f6   : > { %3369 = vmatpush.msra.mxu0 %v15998_v21  ;;  %v3419_v20 = vand.u32 4294901760, %v16026_v62  ;;  %v3425_v51 = vand.u32 4294901760, %v16029_v44  ;;  %v3468_v49 = vsub.f32 %v16116_v54, %v3467_v23 }
 0x1f7   : > { %3300 = vmatpush.msrb.mxu2 %v3198_v36  ;;  %3195 = vmatpush.msra.mxu3 %v3194_v26  ;;  %v16119_v36 = vsub.f32 %v3344_v31, %v16101_v22  ;;  %v3457_v63 = vand.u32 4294901760, %v3456_v60  ;;  %v3485_v17 = vand.u32 4294901760, %v16149_v11 }
 0x1f8   : > { %3371 = vmatpush.msra.mxu0 %v16000_v34  ;;  %v3420_v2 = vsub.f32 %v16026_v62, %v3419_v20  ;;  %v3426_v15 = vsub.f32 %v16029_v44, %v3425_v51 }
 0x1f9   : > { %3524 = vmatpush.msra.mxu2 %v16026_v62  ;;  %3201 = vmatpush.msra.mxu3 %v3200_v29  ;;  %v3473_v26 = vand.u32 4294901760, %v16119_v36  ;;  %v3486_v43 = vsub.f32 %v16149_v11, %v3485_v17 }
 0x1fa   : > { %3167 = vmatmul.f32.gmra.mxu2 %v15955_v39  ;;  %3203 = vmatmul.f32.vlgmr.msra.gmra.mxu3 %v15882_v25  ;;  %v3421_v39 = vand.u32 4294901760, %v3420_v2  ;;  %v3427_v14 = vand.u32 4294901760, %v3426_v15 }
 0x1fb   : > { %3324 = vmatpush.msrb.mxu3 %v15976_v52  ;;  %3373 = vmatpush.msra.mxu0 %v16010_v58  ;;  %v16108_v52 = vand.u32 4294901760, %v3343_v41  ;;  %v3474_v38 = vsub.f32 %v16119_v36, %v3473_v26 }
 0x1fc   : > { %3266 = vmatmul.f32.vlgmr.msrb.gmra.mxu1 %v15907_v59  ;;  %3240 = vmatmul.f32.gmra.mxu0 %v15927_v9  ;;  %v3450_v59 = vsub.f32 %v16050_v12, %v3449_v24  ;;  %v3461_v9 = vand.u32 4294901760, %v16073_v42 }
 0x1fd   : > { %3326 = vmatpush.msrb.mxu3 %v15978_v0  ;;  %3422 = vmatpush.msra.mxu1 %v3421_v39  ;;  %v3341_v0 = vld [vmem:[%s24050_s4 + $0x18] sm:$0xff]  ;;  %v16133_v4 = vsub.f32 %v3343_v41, %v16108_v52  ;;  %v16178_v39 = vand.u32 4294901760, %v3338_v61 }
 0x1fe   : > { %3375 = vmatpush.msra.mxu0 %v16012_v56  ;;  %3527 = vmatpush.msra.mxu2 %v16029_v44  ;;  %v16135_v47 = vand.u32 4294901760, %v3341_v0  ;;  %v3462_v7 = vsub.f32 %v16073_v42, %v3461_v9  ;;  %v3451_v28 = vand.u32 4294901760, %v3450_v59  ;;  %v3359_v44 = vld [vmem:[%s24050_s4 + $0xa8] sm:$0xff] }
 0x1ff   : > { %3328 = vmatpush.msrb.mxu3 %v15969_v19  ;;  %3428 = vmatpush.msra.mxu1 %v3427_v14  ;;  %v3340_v19 = vld [vmem:[%s24050_s4 + $0x10] sm:$0xff]  ;;  %v3479_v29 = vand.u32 4294901760, %v16133_v4  ;;  %v3469_v14 = vand.u32 4294901760, %v3468_v49 }
 0x200   : > { %3377 = vmatpush.msra.mxu0 %v16014_v6  ;;  %3530 = vmatpush.msra.mxu2 %v16037_v5  ;;  %v16151_v35 = vand.u32 4294901760, %v3340_v19  ;;  %v16164_v2 = vsub.f32 %v3341_v0, %v16135_v47  ;;  %v3463_v15 = vand.u32 4294901760, %v3462_v7  ;;  %v16198_v0 = vsub.f32 %v3338_v61, %v16178_v39 }
 0x201   : > { %3582 = vmatpush.msra.mxu3 %v15998_v21  ;;  %3434 = vmatpush.msra.mxu1 %v3433_v13  ;;  %v3480_v18 = vsub.f32 %v16133_v4, %v3479_v29  ;;  %v3475_v13 = vand.u32 4294901760, %v3474_v38  ;;  %v16313_v5 = vand.u32 4294901760, %v3359_v44 }
 0x202   : > { %3207 = vmatmul.f32.gmra.mxu3 %v15914_v37  ;;  %3302 = vmatmul.f32.vlgmr.msrb.gmra.mxu2 %v15882_v25  ;;  %v16176_v31 = vsub.f32 %v3340_v19, %v16151_v35  ;;  %v3491_v41 = vand.u32 4294901760, %v16164_v2  ;;  %v3487_v19 = vand.u32 4294901760, %v3486_v43  ;;  %v3509_v7 = vand.u32 4294901760, %v16198_v0 }
 0x203   : > { %3440 = vmatpush.msra.mxu1 %v3439_v57  ;;  %3379 = vmatpush.msra.mxu0 %v16031_v8  ;;  %v3481_v57 = vand.u32 4294901760, %v3480_v18 }
 0x204   : > { %3272 = vmatmul.f32.gmra.mxu1 %v15941_v3  ;;  %3584 = vmatpush.msra.mxu3 %v16000_v34  ;;  %v16166_v3 = vand.u32 4294901760, %v3339_v27  ;;  %v3497_v59 = vand.u32 4294901760, %v16176_v31  ;;  %v3510_v61 = vsub.f32 %v16198_v0, %v3509_v7 }
 0x205   : > { %3446 = vmatpush.msra.mxu1 %v3445_v46  ;;  %3381 = vmatpush.msra.mxu0 %v16033_v30 }
 0x206   : > { %3533 = vmatpush.msra.mxu2 %v16040_v1  ;;  %3586 = vmatpush.msra.mxu3 %v16010_v58  ;;  %v16188_v16 = vsub.f32 %v3339_v27, %v16166_v3  ;;  %v3498_v46 = vsub.f32 %v16176_v31, %v3497_v59  ;;  %v3358_v1 = vld [vmem:[%s24050_s4 + $0xa0] sm:$0xff] }
 0x207   : > { %3452 = vmatpush.msra.mxu1 %v3451_v28  ;;  %3383 = vmatpush.msra.mxu0 %v16045_v48 }
 0x208   : > { %3536 = vmatpush.msra.mxu2 %v16043_v33  ;;  %3588 = vmatpush.msra.mxu3 %v16012_v56  ;;  %v3503_v60 = vand.u32 4294901760, %v16188_v16 }
 0x209   : > { %3458 = vmatpush.msra.mxu1 %v3457_v63  ;;  %3385 = vmatpush.msra.mxu0 %v16099_v50  ;;  %v3499_v63 = vand.u32 4294901760, %v3498_v46 }
 0x20a   : > { %3306 = vmatmul.f32.gmra.mxu2 %v15914_v37  ;;  %3330 = vmatmul.f32.vlgmr.msrb.gmra.mxu3 %v15882_v25  ;;  %v3492_v25 = vsub.f32 %v16164_v2, %v3491_v41  ;;  %v3504_v28 = vsub.f32 %v16188_v16, %v3503_v60 }
 0x20b   : > { %3464 = vmatpush.msra.mxu1 %v3463_v15  ;;  %3387 = vmatpush.msra.mxu0 %v16101_v22 }
 0x20c   : > { %3539 = vmatpush.msra.mxu2 %v16050_v12  ;;  %3590 = vmatpush.msra.mxu3 %v16014_v6  ;;  %v3493_v27 = vand.u32 4294901760, %v3492_v25  ;;  %v3505_v49 = vand.u32 4294901760, %v3504_v28  ;;  %v3357_v12 = vld [vmem:[%s24050_s4 + $0x98] sm:$0xff] }
 0x20d   : > { %3470 = vmatpush.msra.mxu1 %v3469_v14  ;;  %3389 = vmatpush.msra.mxu0 %v16108_v52 }
 0x20e   : > { %3542 = vmatpush.msra.mxu2 %v16056_v32  ;;  %3592 = vmatpush.msra.mxu3 %v16031_v8 }
 0x20f   : > { %3476 = vmatpush.msra.mxu1 %v3475_v13  ;;  %3391 = vmatpush.msra.mxu0 %v16121_v53 }
 0x210   : > { %3545 = vmatpush.msra.mxu2 %v16073_v42  ;;  %3594 = vmatpush.msra.mxu3 %v16033_v30  ;;  %v3356_v42 = vld [vmem:[%s24050_s4 + $0x90] sm:$0xff] }
 0x211   : > { %3482 = vmatpush.msra.mxu1 %v3481_v57  ;;  %3393 = vmatpush.msra.mxu0 %v16135_v47 }
 0x212   : > { %3334 = vmatmul.f32.gmra.mxu3 %v15914_v37  ;;  %3548 = vmatpush.msra.mxu2 %v16116_v54  ;;  %v3511_v37 = vand.u32 4294901760, %v3510_v61 }
 0x213   : > { %3488 = vmatpush.msra.mxu1 %v3487_v19  ;;  %3395 = vmatpush.msra.mxu0 %v16151_v35 }
 0x214   : > { %3596 = vmatpush.msra.mxu3 %v16045_v48  ;;  %3551 = vmatpush.msra.mxu2 %v16119_v36 }
 0x215   : > { %3494 = vmatpush.msra.mxu1 %v3493_v27  ;;  %3397 = vmatpush.msra.mxu0 %v16166_v3 }
 0x216   : > { %3598 = vmatpush.msra.mxu3 %v16099_v50  ;;  %3554 = vmatpush.msra.mxu2 %v16133_v4 }
 0x217   : > { %3500 = vmatpush.msra.mxu1 %v3499_v63  ;;  %3399 = vmatpush.msra.mxu0 %v16178_v39 }
 0x218   : > { %3600 = vmatpush.msra.mxu3 %v16101_v22  ;;  %3557 = vmatpush.msra.mxu2 %v16149_v11 }
 0x219   : > { %3629 = vmatpush.msrb.mxu0 %v3419_v20  ;;  %3506 = vmatpush.msra.mxu1 %v3505_v49  ;;  %v16324_v20 = vsub.f32 %v3359_v44, %v16313_v5 }
 0x21a   : > { %3602 = vmatpush.msra.mxu3 %v16108_v52  ;;  %3560 = vmatpush.msra.mxu2 %v16164_v2  ;;  %v3354_v2 = vld [vmem:[%s24050_s4 + $0x80] sm:$0xff] }
 0x21b   : > { %3633 = vmatpush.msrb.mxu0 %v3425_v51  ;;  %3512 = vmatpush.msra.mxu1 %v3511_v37  ;;  %v16326_v51 = vand.u32 4294901760, %v3358_v1  ;;  %v3803_v32 = vand.u32 4294901760, %v16324_v20 }
 0x21c   : > { %3604 = vmatpush.msra.mxu3 %v16121_v53  ;;  %3563 = vmatpush.msra.mxu2 %v16176_v31 }
 0x21d   : > { %3700 = vmatpush.msrb.mxu1 %v15998_v21  ;;  %3637 = vmatpush.msrb.mxu0 %v3431_v10  ;;  %v3361_v21 = vld [vmem:[%s24050_s4 + $0xb8] sm:$0xff] }
 0x21e   : > { %3606 = vmatpush.msra.mxu3 %v16135_v47  ;;  %3566 = vmatpush.msra.mxu2 %v16188_v16 }
 0x21f   : > { %3702 = vmatpush.msrb.mxu1 %v16000_v34  ;;  %3641 = vmatpush.msrb.mxu0 %v3437_v45  ;;  %v16295_v34 = vand.u32 4294901760, %v3361_v21 }
 0x220   : > { %3608 = vmatpush.msra.mxu3 %v16151_v35  ;;  %3569 = vmatpush.msra.mxu2 %v16198_v0 }
 0x221   : > { %3704 = vmatpush.msrb.mxu1 %v16010_v58  ;;  %3645 = vmatpush.msrb.mxu0 %v3443_v55  ;;  %v3360_v58 = vld [vmem:[%s24050_s4 + $0xb0] sm:$0xff]  ;;  %v16337_v55 = vsub.f32 %v3358_v1, %v16326_v51 }
 0x222   : > { %3610 = vmatpush.msra.mxu3 %v16166_v3  ;;  %3749 = vmatpush.msrb.mxu2 %v16295_v34 }
 0x223   : > { %3706 = vmatpush.msrb.mxu1 %v16012_v56  ;;  %3649 = vmatpush.msrb.mxu0 %v3449_v24  ;;  %v16301_v56 = vsub.f32 %v3361_v21, %v16295_v34  ;;  %v16340_v24 = vand.u32 4294901760, %v3357_v12 }
 0x224   : > { %3612 = vmatpush.msra.mxu3 %v16178_v39 }
 0x225   : > { %3708 = vmatpush.msrb.mxu1 %v16014_v6  ;;  %3653 = vmatpush.msrb.mxu0 %v3455_v40  ;;  %v16303_v6 = vand.u32 4294901760, %v3360_v58 }
 0x227   : > { %3710 = vmatpush.msrb.mxu1 %v16031_v8  ;;  %3657 = vmatpush.msrb.mxu0 %v3461_v9  ;;  %v3791_v8 = vand.u32 4294901760, %v16301_v56  ;;  %v3809_v9 = vand.u32 4294901760, %v16337_v55 }
 0x228   : > { %3751 = vmatpush.msrb.mxu2 %v16303_v6 }
 0x229   : > { %3712 = vmatpush.msrb.mxu1 %v16033_v30  ;;  %3661 = vmatpush.msrb.mxu0 %v3467_v23  ;;  %v16311_v30 = vsub.f32 %v3360_v58, %v16303_v6  ;;  %v3792_v33 = vsub.f32 %v16301_v56, %v3791_v8  ;;  %v3355_v23 = vld [vmem:[%s24050_s4 + $0x88] sm:$0xff] }
 0x22a   : > { %3753 = vmatpush.msrb.mxu2 %v16313_v5 }
 0x22b   : > { %3714 = vmatpush.msrb.mxu1 %v16045_v48  ;;  %3665 = vmatpush.msrb.mxu0 %v3473_v26  ;;  %v3797_v48 = vand.u32 4294901760, %v16311_v30  ;;  %v3793_v10 = vand.u32 4294901760, %v3792_v33  ;;  %v3810_v26 = vsub.f32 %v16337_v55, %v3809_v9 }
 0x22c   : > { %3755 = vmatpush.msrb.mxu2 %v16326_v51 }
 0x22d   : > { %3716 = vmatpush.msrb.mxu1 %v16099_v50  ;;  %3669 = vmatpush.msrb.mxu0 %v3479_v29  ;;  %v3798_v45 = vsub.f32 %v16311_v30, %v3797_v48 }
 0x22e   : > { %3794 = vmatpush.msrb.mxu3 %v3793_v10  ;;  %3757 = vmatpush.msrb.mxu2 %v16340_v24 }
 0x22f   : > { %3718 = vmatpush.msrb.mxu1 %v16101_v22  ;;  %3673 = vmatpush.msrb.mxu0 %v3485_v17  ;;  %v3799_v50 = vand.u32 4294901760, %v3798_v45  ;;  %v3804_v22 = vsub.f32 %v16324_v20, %v3803_v32  ;;  %v16375_v17 = vand.u32 4294901760, %v3354_v2 }
 0x231   : > { %3720 = vmatpush.msrb.mxu1 %v16108_v52  ;;  %3677 = vmatpush.msrb.mxu0 %v3491_v41  ;;  %v16349_v52 = vand.u32 4294901760, %v3356_v42  ;;  %v16386_v16 = vsub.f32 %v3354_v2, %v16375_v17 }
 0x232   : > { %3800 = vmatpush.msrb.mxu3 %v3799_v50 }
 0x233   : > { %3722 = vmatpush.msrb.mxu1 %v16121_v53  ;;  %3681 = vmatpush.msrb.mxu0 %v3497_v59  ;;  %v16352_v53 = vsub.f32 %v3357_v12, %v16340_v24  ;;  %v16362_v11 = vsub.f32 %v3356_v42, %v16349_v52  ;;  %v3833_v57 = vand.u32 4294901760, %v16386_v16 }
 0x234   : > { %3759 = vmatpush.msrb.mxu2 %v16349_v52 }
 0x235   : > { %3724 = vmatpush.msrb.mxu1 %v16135_v47  ;;  %3685 = vmatpush.msrb.mxu0 %v3503_v60  ;;  %v3805_v47 = vand.u32 4294901760, %v3804_v22  ;;  %v3815_v29 = vand.u32 4294901760, %v16352_v53  ;;  %v3821_v15 = vand.u32 4294901760, %v16362_v11  ;;  %v3834_v46 = vsub.f32 %v16386_v16, %v3833_v57 }
 0x237   : > { %3726 = vmatpush.msrb.mxu1 %v16151_v35  ;;  %3689 = vmatpush.msrb.mxu0 %v3509_v7  ;;  %v16364_v35 = vand.u32 4294901760, %v3355_v23  ;;  %v3822_v18 = vsub.f32 %v16362_v11, %v3821_v15  ;;  %v3835_v27 = vand.u32 4294901760, %v3834_v46 }
 0x238   : > { %3806 = vmatpush.msrb.mxu3 %v3805_v47 }
 0x239   : > { %3728 = vmatpush.msrb.mxu1 %v16166_v3  ;;  %v3811_v3 = vand.u32 4294901760, %v3810_v26  ;;  %v16373_v38 = vsub.f32 %v3355_v23, %v16364_v35  ;;  %3761 = vmatpush.msrb.mxu2 %v16364_v35  ;;  %v3823_v59 = vand.u32 4294901760, %v3822_v18  ;;  %v13562_v23 = vld [vmem:[%s24050_s4 + $0x110] sm:$0xff]  ;;  %v13561_v26 = vld [vmem:[%s24050_s4 + $0x108] sm:$0xff] }
 0x23a   : > { %v16510_v2 = vand.u32 4294901760, %v13562_v23 }
 0x23b   : > { %3730 = vmatpush.msrb.mxu1 %v16178_v39  ;;  %v3816_v39 = vsub.f32 %v16352_v53, %v3815_v29  ;;  %3812 = vmatpush.msrb.mxu3 %v3811_v3  ;;  %v3827_v41 = vand.u32 4294901760, %v16373_v38 }
 0x23c   : > { %3763 = vmatpush.msrb.mxu2 %v16375_v17 }
 0x23d   : > { %v3817_v13 = vand.u32 4294901760, %v3816_v39  ;;  %v3828_v0 = vsub.f32 %v16373_v38, %v3827_v41 }
 0x23f   : > { %3818 = vmatpush.msrb.mxu3 %v3817_v13  ;;  %v3829_v19 = vand.u32 4294901760, %v3828_v0 }
 0x241   : > { %3824 = vmatpush.msrb.mxu3 %v3823_v59  ;;  %v16539_v59 = vld [vmem:[%s24050_s4 + $0xf0] sm:$0xff] }
 0x243   : > { %3830 = vmatpush.msrb.mxu3 %v3829_v19 }
 0x245   : > { %3836 = vmatpush.msrb.mxu3 %v3835_v27  ;;  %v16554_v27 = vsub.f32 %v13562_v23, %v16510_v2  ;;  %v13555_v23 = vld [vmem:[%s24050_s4 + $0xd8] sm:$0xff] }
 0x247   : > { %24058 = vst [vmem:[#allocation26_spill] sm:$0xff] %v16554_v27 }
 0x24e   : > { %v2957_v62 = vpop.f32.mrf.mxu0 }
 0x256   : > { %v3001_v40 = vpop.f32.mrf.mxu1  ;;  %v2965_v36 = vpop.f32.mrf.mxu0 }
 0x257   : > { %v3002_v54 = vadd.f32 %v3001_v40, %v2957_v62  ;;  %v3033_v4 = vpop.f32.mrf.mxu2  ;;  %v3064_v14 = vpop.f32.mrf.mxu3 }
 0x259   : > { %v3034_v31 = vadd.f32 %v3033_v4, %v3002_v54 }
 0x25b   : > { %v3065_v25 = vadd.f32 %v3064_v14, %v3034_v31  ;;  %v16522_v31 = vand.u32 4294901760, %v13561_v26  ;;  %v13559_v14 = vld [vmem:[%s24050_s4 + $0xf8] sm:$0xff] }
 0x25e   : > { %v3005_v43 = vpop.f32.mrf.mxu1  ;;  %v3100_v60 = vpop.f32.mrf.mxu0 }
 0x25f   : > { %v3006_v7 = vadd.f32 %v3005_v43, %v2965_v36  ;;  %v3101_v28 = vadd.f32 %v3100_v60, %v3065_v25  ;;  %v3038_v63 = vpop.f32.mrf.mxu2  ;;  %v3070_v21 = vpop.f32.mrf.mxu3  ;;  %v16546_v25 = vand.u32 4294901760, %v13559_v14 }
 0x261   : > { %v3039_v49 = vadd.f32 %v3038_v63, %v3006_v7 }
 0x263   : > { %v3071_v62 = vadd.f32 %v3070_v21, %v3039_v49 }
 0x266   : > { %v3128_v61 = vpop.f32.mrf.mxu1  ;;  %v3104_v1 = vpop.f32.mrf.mxu0 }
 0x267   : > { %v3129_v37 = vadd.f32 %v3128_v61, %v3101_v28  ;;  %v3105_v12 = vadd.f32 %v3104_v1, %v3071_v62  ;;  %v16558_v28 = vand.u32 4294901760, %v16539_v59 }
 0x269   : > { %v16396_v58 = vand.u32 4294901760, %v3129_v37 }
 0x26b   : > { %v16399_v44 = vsub.f32 %v3129_v37, %v16396_v58  ;;  %3514 = vmatmul.f32.vlgmr.msra.gmra.mxu1 %v16396_v58  ;;  %v13557_v37 = vld [vmem:[%s24050_s4 + $0xe8] sm:$0xff] }
 0x26c   : > { %3984 = vmatpush.msra.mxu1 %v16295_v34 }
 0x26d   : > { %v16404_v33 = vand.u32 4294901760, %v16399_v44  ;;  %3572 = vmatmul.f32.vlgmr.msra.gmra.mxu2 %v16399_v44 }
 0x26e   : > { %3986 = vmatpush.msra.mxu1 %v16303_v6  ;;  %3856 = vmatpush.msra.mxu2 %v16301_v56 }
 0x26f   : > { %v3403_v10 = vsub.f32 %v16399_v44, %v16404_v33  ;;  %3616 = vmatmul.f32.vlgmr.msra.gmra.mxu3 %v16404_v33 }
 0x270   : > { %3988 = vmatpush.msra.mxu1 %v16313_v5  ;;  %3898 = vmatpush.msra.mxu3 %v16295_v34 }
 0x271   : > { %v3132_v45 = vpop.f32.mrf.mxu1  ;;  %v16414_v42 = vand.u32 4294901760, %v3403_v10  ;;  %3859 = vmatpush.msra.mxu2 %v16311_v30  ;;  %v13566_v30 = vld [vmem:[%s24050_s4 + $0x130] sm:$0xff]  ;;  %v3236_v54 = vpop.f32.mrf.mxu0  ;;  %v16572_v10 = vsub.f32 %v13561_v26, %v16522_v31 }
 0x272   : > { %v3133_v40 = vadd.f32 %v3132_v45, %v3105_v12  ;;  %3990 = vmatpush.msra.mxu1 %v16326_v51  ;;  %3900 = vmatpush.msra.mxu3 %v16303_v6  ;;  %v13567_v6 = vld [vmem:[%s24050_s4 + $0x138] sm:$0xff] }
 0x273   : > { %24051 = vst [vmem:[#allocation13_spill] sm:$0xff] %v16414_v42  ;;  %3405 = vmatmul.f32.vlgmr.msra.gmra.mxu0 %v16414_v42  ;;  %3862 = vmatpush.msra.mxu2 %v16324_v20  ;;  %v13565_v20 = vld [vmem:[%s24050_s4 + $0x128] sm:$0xff] }
 0x274   : > { %v16421_v50 = vand.u32 4294901760, %v3133_v40  ;;  %3937 = vmatpush.msra.mxu0 %v3791_v8  ;;  %3992 = vmatpush.msra.mxu1 %v16340_v24  ;;  %24059 = vst [vmem:[#allocation20_spill] sm:$0xff] %v16572_v10 }
 0x275   : > { %v3160_v34 = vpop.f32.mrf.mxu2  ;;  %3902 = vmatpush.msra.mxu3 %v16313_v5  ;;  %3865 = vmatpush.msra.mxu2 %v16337_v55  ;;  %v16456_v5 = vand.u32 4294901760, %v13567_v6  ;;  %v16467_v55 = vand.u32 4294901760, %v13566_v30 }
 0x276   : > { %24052 = vst [vmem:[#allocation14_spill] sm:$0xff] %v16421_v50  ;;  %v16429_v22 = vsub.f32 %v3133_v40, %v16421_v50  ;;  %3518 = vmatmul.f32.gmra.mxu1 %v16421_v50  ;;  %3941 = vmatpush.msra.mxu0 %v3797_v48  ;;  %v13556_v40 = vld [vmem:[%s24050_s4 + $0xe0] sm:$0xff] }
 0x277   : > { %3994 = vmatpush.msra.mxu1 %v16349_v52  ;;  %3904 = vmatpush.msra.mxu3 %v16326_v51  ;;  %v16497_v4 = vsub.f32 %v13567_v6, %v16456_v5 }
 0x278   : > { %3577 = vmatmul.f32.gmra.mxu2 %v16429_v22  ;;  %v16438_v56 = vand.u32 4294901760, %v16429_v22  ;;  %3945 = vmatpush.msra.mxu0 %v3803_v32 }
 0x279   : > { %3996 = vmatpush.msra.mxu1 %v16364_v35  ;;  %3906 = vmatpush.msra.mxu3 %v16340_v24  ;;  %v13564_v24 = vld [vmem:[%s24050_s4 + $0x120] sm:$0xff]  ;;  %v23703_v39 = vand.u32 4294901760, %v16497_v4  ;;  %v3241_v0 = vpop.f32.mrf.mxu0 }
 0x27a   : > { %3622 = vmatmul.f32.gmra.mxu3 %v16438_v56  ;;  %v3411_v8 = vsub.f32 %v16429_v22, %v16438_v56  ;;  %3949 = vmatpush.msra.mxu0 %v3809_v9  ;;  %v16478_v9 = vand.u32 4294901760, %v13565_v20  ;;  %v16488_v36 = vand.u32 4294901760, %v13564_v24 }
 0x27b   : > { %3998 = vmatpush.msra.mxu1 %v16375_v17  ;;  %3908 = vmatpush.msra.mxu3 %v16349_v52  ;;  %v13563_v52 = vld [vmem:[%s24050_s4 + $0x118] sm:$0xff]  ;;  %v4085_v19 = vsub.f32 %v16497_v4, %v23703_v39 }
 0x27c   : > { %v16459_v48 = vand.u32 4294901760, %v3411_v8  ;;  %3953 = vmatpush.msra.mxu0 %v3815_v29  ;;  %3868 = vmatpush.msra.mxu2 %v16352_v53  ;;  %v16500_v47 = vand.u32 4294901760, %v13563_v52  ;;  %v16507_v29 = vsub.f32 %v13566_v30, %v16467_v55  ;;  %v16530_v18 = vsub.f32 %v13564_v24, %v16488_v36 }
 0x27d   : > { %v3168_v51 = vpop.f32.mrf.mxu2  ;;  %v3204_v32 = vpop.f32.mrf.mxu3  ;;  %3910 = vmatpush.msra.mxu3 %v16364_v35  ;;  %v4086_v12 = vand.u32 4294901760, %v4085_v19 }
 0x27e   : > { %24053 = vst [vmem:[#allocation16_spill] sm:$0xff] %v16459_v48  ;;  %3413 = vmatmul.f32.gmra.mxu0 %v16459_v48  ;;  %3732 = vmatmul.f32.vlgmr.msrb.gmra.mxu1 %v16396_v58  ;;  %v3205_v53 = vadd.f32 %v3204_v32, %v3160_v34  ;;  %v23702_v43 = vand.u32 4294901760, %v16507_v29  ;;  %v23699_v21 = vand.u32 4294901760, %v16530_v18  ;;  %v13575_v34 = vld [vmem:[%s24050_s4 + $0x178] sm:$0xff]  ;;  %v13574_v32 = vld [vmem:[%s24050_s4 + $0x170] sm:$0xff]  ;;  %v13568_v48 = vld [vmem:[%s24050_s4 + $0x140] sm:$0xff] }
 0x27f   : > { %3957 = vmatpush.msra.mxu0 %v3821_v15  ;;  %4247 = vmatpush.msrb.mxu1 %v16456_v5  ;;  %24054 = vst [vmem:[#allocation17_spill] sm:$0xff] %v16507_v29  ;;  %v13560_v15 = vld [vmem:[%s24050_s4 + $0x100] sm:$0xff]  ;;  %v16781_v42 = vand.u32 4294901760, %v13568_v48 }
 0x280   : > { %3912 = vmatpush.msra.mxu3 %v16375_v17  ;;  %3871 = vmatpush.msra.mxu2 %v16362_v11  ;;  %v3267_v11 = vpop.f32.mrf.mxu1  ;;  %v3237_v3 = vadd.f32 %v3236_v54, %v3205_v53  ;;  %v16519_v17 = vsub.f32 %v13565_v20, %v16478_v9  ;;  %24056 = vst [vmem:[#allocation18_spill] sm:$0xff] %v16530_v18  ;;  %v16590_v20 = vand.u32 4294901760, %v13557_v37 }
 0x281   : > { %3961 = vmatpush.msra.mxu0 %v3827_v41  ;;  %4249 = vmatpush.msrb.mxu1 %v16467_v55  ;;  %v16533_v41 = vand.u32 4294901760, %v13560_v15  ;;  %v4091_v49 = vsub.f32 %v16507_v29, %v23702_v43  ;;  %v16597_v54 = vsub.f32 %v13559_v14, %v16546_v25  ;;  %v4103_v53 = vsub.f32 %v16530_v18, %v23699_v21 }
 0x282   : > { %3874 = vmatpush.msra.mxu2 %v16373_v38  ;;  %24055 = vst [vmem:[#allocation15_spill] sm:$0xff] %v16519_v17  ;;  %v23700_v46 = vand.u32 4294901760, %v16519_v17  ;;  %v23698_v14 = vand.u32 4294901760, %v16572_v10 }
 0x283   : > { %3965 = vmatpush.msra.mxu0 %v3833_v57  ;;  %4251 = vmatpush.msrb.mxu1 %v16478_v9  ;;  %v16543_v57 = vsub.f32 %v13563_v52, %v16500_v47  ;;  %v16587_v30 = vsub.f32 %v13560_v15, %v16533_v41  ;;  %v4092_v52 = vand.u32 4294901760, %v4091_v49  ;;  %24061 = vst [vmem:[#allocation19_spill] sm:$0xff] %v16597_v54 }
 0x284   : > { %3877 = vmatpush.msra.mxu2 %v16386_v16  ;;  %v3268_v16 = vadd.f32 %v3267_v11, %v3237_v3  ;;  %v4097_v45 = vsub.f32 %v16519_v17, %v23700_v46  ;;  %v16610_v11 = vand.u32 4294901760, %v13556_v40  ;;  %v16613_v3 = vand.u32 4294901760, %v13575_v34 }
 0x285   : > { %v3208_v35 = vpop.f32.mrf.mxu3  ;;  %4253 = vmatpush.msrb.mxu1 %v16488_v36  ;;  %v3303_v38 = vpop.f32.mrf.mxu2  ;;  %24057 = vst [vmem:[#allocation12_spill] sm:$0xff] %v16543_v57  ;;  %v16634_v49 = vsub.f32 %v16539_v59, %v16558_v28  ;;  %v13554_v59 = vld [vmem:[%s24050_s4 + $0xd0] sm:$0xff] }
 0x286   : > { %3691 = vmatmul.f32.vlgmr.msrb.gmra.mxu0 %v16396_v58  ;;  %3736 = vmatmul.f32.gmra.mxu1 %v16421_v50  ;;  %v3209_v13 = vadd.f32 %v3208_v35, %v3168_v51  ;;  %v3304_v60 = vadd.f32 %v3303_v38, %v3268_v16  ;;  %24060 = vst [vmem:[#allocation21_spill] sm:$0xff] %v16587_v30  ;;  %v23697_v51 = vand.u32 4294901760, %v16543_v57  ;;  %v23696_v35 = vand.u32 4294901760, %v16554_v27 }
 0x287   : > { %4189 = vmatpush.msrb.mxu0 %v16497_v4  ;;  %4255 = vmatpush.msrb.mxu1 %v16500_v47  ;;  %v4098_v38 = vand.u32 4294901760, %v4097_v45  ;;  %v16617_v16 = vand.u32 4294901760, %v13574_v32  ;;  %24063 = vst [vmem:[#allocation27_spill] sm:$0xff] %v16634_v49 }
 0x288   : > { %v3242_v63 = vadd.f32 %v3241_v0, %v3209_v13  ;;  %v3273_v62 = vpop.f32.mrf.mxu1  ;;  %v13573_v13 = vld [vmem:[%s24050_s4 + $0x168] sm:$0xff]  ;;  %v4109_v19 = vsub.f32 %v16543_v57, %v23697_v51  ;;  %v4115_v45 = vsub.f32 %v16554_v27, %v23696_v35 }
 0x289   : > { %4192 = vmatpush.msrb.mxu0 %v16507_v29  ;;  %4257 = vmatpush.msrb.mxu1 %v16510_v2 }
 0x28a   : > { %v3274_v24 = vadd.f32 %v3273_v62, %v3242_v63  ;;  %v23701_v62 = vand.u32 4294901760, %v16587_v30  ;;  %v4110_v51 = vand.u32 4294901760, %v4109_v19 }
 0x28b   : > { %4195 = vmatpush.msrb.mxu0 %v16519_v17  ;;  %4259 = vmatpush.msrb.mxu1 %v16522_v31 }
 0x28c   : > { %v4127_v19 = vsub.f32 %v16587_v30, %v23701_v62 }
 0x28d   : > { %v3331_v7 = vpop.f32.mrf.mxu3  ;;  %4198 = vmatpush.msrb.mxu0 %v16530_v18  ;;  %4261 = vmatpush.msrb.mxu1 %v16533_v41  ;;  %v3307_v6 = vpop.f32.mrf.mxu2 }
 0x28e   : > { %v3332_v61 = vadd.f32 %v3331_v7, %v3304_v60  ;;  %3695 = vmatmul.f32.gmra.mxu0 %v16421_v50  ;;  %v3308_v15 = vadd.f32 %v3307_v6, %v3274_v24  ;;  %v16629_v7 = vand.u32 4294901760, %v13555_v23  ;;  %v16651_v6 = vsub.f32 %v13575_v34, %v16613_v3 }
 0x28f   : > { %4201 = vmatpush.msrb.mxu0 %v16543_v57  ;;  %4263 = vmatpush.msrb.mxu1 %v16546_v25  ;;  %v16653_v24 = vand.u32 4294901760, %v13573_v13 }
 0x290   : > { %v3363_v1 = vsel %vm2872_vm3, %v3332_v61, 0  ;;  %v4104_v61 = vand.u32 4294901760, %v4103_v53  ;;  %v16658_v53 = vsub.f32 %v13557_v37, %v16590_v20  ;;  %v16675_v37 = vsub.f32 %v13556_v40, %v16610_v11 }
 0x291   : > { %v16583_v8 = vand.u32 4294901760, %v3363_v1  ;;  %4204 = vmatpush.msrb.mxu0 %v16554_v27  ;;  %4265 = vmatpush.msrb.mxu1 %v16558_v28  ;;  %v4116_v40 = vand.u32 4294901760, %v4115_v45  ;;  %v16696_v46 = vsub.f32 %v13573_v13, %v16653_v24  ;;  %v16701_v43 = vsub.f32 %v13555_v23, %v16629_v7  ;;  %v13570_v45 = vld [vmem:[%s24050_s4 + $0x150] sm:$0xff] }
 0x292   : > { %24064 = vst [vmem:[#allocation31_spill] sm:$0xff] %v16658_v53  ;;  %v16741_v57 = vand.u32 4294901760, %v13570_v45 }
 0x293   : > { %v16606_v26 = vsub.f32 %v3363_v1, %v16583_v8  ;;  %3838 = vmatmul.f32.vlgmr.msrb.gmra.mxu3 %v16583_v8  ;;  %4000 = vmatmul.f32.vlgmr.msra.gmra.mxu1 %v16583_v8  ;;  %v13572_v1 = vld [vmem:[%s24050_s4 + $0x160] sm:$0xff]  ;;  %24066 = vst [vmem:[#allocation25_spill] sm:$0xff] %v16675_v37 }
 0x294   : > { %4087 = vmatpush.msrb.mxu3 %v4086_v12  ;;  %4207 = vmatpush.msrb.mxu0 %v16572_v10  ;;  %v16779_v50 = vsub.f32 %v13570_v45, %v16741_v57  ;;  %v24072_v45 = vand.u32 4294901760, %v16675_v37 }
 0x295   : > { %v16623_v0 = vand.u32 4294901760, %v16606_v26  ;;  %v3335_v60 = vpop.f32.mrf.mxu3  ;;  %4267 = vmatpush.msrb.mxu1 %v16590_v20 }
 0x296   : > { %v3336_v63 = vadd.f32 %v3335_v60, %v3308_v15  ;;  %4093 = vmatpush.msrb.mxu3 %v4092_v52  ;;  %4210 = vmatpush.msrb.mxu0 %v16587_v30  ;;  %v4121_v15 = vsub.f32 %v16572_v10, %v23698_v14  ;;  %v16664_v60 = vsub.f32 %v13574_v32, %v16617_v16  ;;  %v13553_v32 = vld [vmem:[%s24050_s4 + $0xc8] sm:$0xff] }
 0x297   : > { %24062 = vst [vmem:[#allocation22_spill] sm:$0xff] %v16623_v0  ;;  %3967 = vmatmul.f32.vlgmr.msra.gmra.mxu0 %v16583_v8  ;;  %4269 = vmatpush.msrb.mxu1 %v16610_v11  ;;  %v3767_v12 = vsub.f32 %v16606_v26, %v16623_v0  ;;  %v16709_v13 = vand.u32 4294901760, %v13553_v32 }
 0x298   : > { %v3366_v52 = vsel %vm2872_vm3, %v3336_v63, 0  ;;  %4099 = vmatpush.msrb.mxu3 %v4098_v38  ;;  %4213 = vmatpush.msrb.mxu0 %v16597_v54  ;;  %v16671_v38 = vand.u32 4294901760, %v13572_v1  ;;  %v16677_v63 = vand.u32 4294901760, %v13554_v59  ;;  %v4122_v62 = vand.u32 4294901760, %v4121_v15  ;;  %v13552_v15 = vld [vmem:[%s24050_s4 + $0xc0] sm:$0xff] }
 0x299   : > { %v16666_v35 = vand.u32 4294901760, %v3366_v52  ;;  %v16668_v34 = vand.u32 4294901760, %v3767_v12  ;;  %4271 = vmatpush.msrb.mxu1 %v16629_v7  ;;  %v23709_v12 = vand.u32 4294901760, %v16597_v54 }
 0x29a   : > { %4105 = vmatpush.msrb.mxu3 %v4104_v61  ;;  %4216 = vmatpush.msrb.mxu0 %v16634_v49  ;;  %v13571_v61 = vld [vmem:[%s24050_s4 + $0x158] sm:$0xff]  ;;  %v16725_v21 = vsub.f32 %v13554_v59, %v16677_v63 }
 0x29b   : > { %24065 = vst [vmem:[#allocation23_spill] sm:$0xff] %v16666_v35  ;;  %v16690_v14 = vsub.f32 %v3366_v52, %v16666_v35  ;;  %3769 = vmatmul.f32.vlgmr.msrb.gmra.mxu2 %v16668_v34  ;;  %3842 = vmatmul.f32.gmra.mxu3 %v16666_v35  ;;  %v16718_v52 = vsub.f32 %v13572_v1, %v16671_v38  ;;  %v16720_v39 = vand.u32 4294901760, %v13571_v61  ;;  %v13569_v1 = vld [vmem:[%s24050_s4 + $0x148] sm:$0xff] }
 0x29c   : > { %4004 = vmatmul.f32.gmra.mxu1 %v16666_v35  ;;  %4034 = vmatpush.msrb.mxu2 %v16456_v5  ;;  %v4133_v30 = vsub.f32 %v16597_v54, %v23709_v12  ;;  %v16745_v12 = vand.u32 4294901760, %v13552_v15  ;;  %v24069_v54 = vand.u32 4294901760, %v16664_v60 }
 0x29d   : > { %4111 = vmatpush.msrb.mxu3 %v4110_v51  ;;  %4219 = vmatpush.msrb.mxu0 %v16658_v53  ;;  %v16715_v23 = vand.u32 4294901760, %v16690_v14  ;;  %v4128_v51 = vand.u32 4294901760, %v4127_v19  ;;  %v24067_v19 = vand.u32 4294901760, %v16651_v6 }
 0x29e   : > { %4036 = vmatpush.msrb.mxu2 %v16467_v55  ;;  %4273 = vmatpush.msrb.mxu1 %v16677_v63  ;;  %v4463_v18 = vsub.f32 %v16664_v60, %v24069_v54  ;;  %v4134_v54 = vand.u32 4294901760, %v4133_v30 }
 0x29f   : > { %4117 = vmatpush.msrb.mxu3 %v4116_v40  ;;  %4222 = vmatpush.msrb.mxu0 %v16675_v37  ;;  %v3775_v27 = vsub.f32 %v16690_v14, %v16715_v23  ;;  %v4457_v59 = vsub.f32 %v16651_v6, %v24067_v19  ;;  %v24068_v40 = vand.u32 4294901760, %v16634_v49  ;;  %v16769_v19 = vsub.f32 %v13553_v32, %v16709_v13 }
 0x2a0   : > { %3971 = vmatmul.f32.gmra.mxu0 %v16666_v35  ;;  %4038 = vmatpush.msrb.mxu2 %v16478_v9  ;;  %v16762_v35 = vsub.f32 %v13571_v61, %v16720_v39  ;;  %v24071_v61 = vand.u32 4294901760, %v16696_v46  ;;  %v16786_v32 = vsub.f32 %v13552_v15, %v16745_v12 }
 0x2a1   : > { %v4139_v10 = vsub.f32 %v16634_v49, %v24068_v40  ;;  %4123 = vmatpush.msrb.mxu3 %v4122_v62  ;;  %4225 = vmatpush.msrb.mxu0 %v16701_v43  ;;  %v16758_v17 = vand.u32 4294901760, %v3775_v27  ;;  %v16764_v40 = vand.u32 4294901760, %v13569_v1  ;;  %v24070_v62 = vand.u32 4294901760, %v16658_v53 }
 0x2a2   : > { %4275 = vmatpush.msrb.mxu1 %v16709_v13  ;;  %4040 = vmatpush.msrb.mxu2 %v16488_v36  ;;  %v4458_v29 = vand.u32 4294901760, %v4457_v59  ;;  %v4469_v49 = vsub.f32 %v16696_v46, %v24071_v61  ;;  %v24073_v61 = vand.u32 4294901760, %v16718_v52  ;;  %v4162_v59 = vand.u32 4294901760, %v16725_v21 }
 0x2a3   : > { %v4145_v27 = vsub.f32 %v16658_v53, %v24070_v62  ;;  %4129 = vmatpush.msrb.mxu3 %v4128_v51  ;;  %4228 = vmatpush.msrb.mxu0 %v16725_v21  ;;  %v4140_v30 = vand.u32 4294901760, %v4139_v10  ;;  %v4464_v51 = vand.u32 4294901760, %v4463_v18  ;;  %v4151_v62 = vsub.f32 %v16675_v37, %v24072_v45 }
 0x2a4   : > { %4277 = vmatpush.msrb.mxu1 %v16745_v12  ;;  %3777 = vmatmul.f32.gmra.mxu2 %v16758_v17  ;;  %v4475_v53 = vsub.f32 %v16718_v52, %v24073_v61  ;;  %v4480_v10 = vand.u32 4294901760, %v16762_v35  ;;  %v16799_v15 = vsub.f32 %v13569_v1, %v16764_v40  ;;  %v4486_v45 = vand.u32 4294901760, %v16779_v50 }
 0x2a5   : > { %3916 = vmatmul.f32.vlgmr.msra.gmra.mxu3 %v16623_v0  ;;  %4042 = vmatpush.msrb.mxu2 %v16500_v47  ;;  %v4146_v18 = vand.u32 4294901760, %v4145_v27  ;;  %v4470_v0 = vand.u32 4294901760, %v4469_v49  ;;  %v16806_v37 = vsub.f32 %v13568_v48, %v16781_v42  ;;  %v24074_v1 = vand.u32 4294901760, %v16701_v43 }
 0x2a6   : > { %4135 = vmatpush.msrb.mxu3 %v4134_v54  ;;  %4281 = vmatmul.f32.vlgmr.msrb.gmra.mxu1 %v16404_v33  ;;  %v4168_v33 = vand.u32 4294901760, %v16769_v19  ;;  %v4152_v27 = vand.u32 4294901760, %v4151_v62  ;;  %v4481_v49 = vsub.f32 %v16762_v35, %v4480_v10  ;;  %v23723_v48 = vand.u32 4294901760, %v16799_v15 }
 0x2a7   : > { %4231 = vmatpush.msrb.mxu0 %v16769_v19  ;;  %4459 = vmatpush.msra.mxu1 %v4458_v29  ;;  %v4157_v54 = vsub.f32 %v16701_v43, %v24074_v1  ;;  %v4476_v29 = vand.u32 4294901760, %v4475_v53  ;;  %v4487_v53 = vsub.f32 %v16779_v50, %v4486_v45  ;;  %v4498_v62 = vand.u32 4294901760, %v16806_v37 }
 0x2a8   : > { %4044 = vmatpush.msrb.mxu2 %v16510_v2  ;;  %4141 = vmatpush.msrb.mxu3 %v4140_v30  ;;  %v4163_v30 = vsub.f32 %v16725_v21, %v4162_v59  ;;  %v24105_v21 = vand.u32 4294901760, %v16664_v60 }
 0x2a9   : > { %4234 = vmatpush.msrb.mxu0 %v16786_v32  ;;  %4465 = vmatpush.msra.mxu1 %v4464_v51  ;;  %v4174_v51 = vand.u32 4294901760, %v16786_v32  ;;  %v4158_v61 = vand.u32 4294901760, %v4157_v54  ;;  %v4488_v54 = vand.u32 4294901760, %v4487_v53 }
 0x2aa   : > { %4046 = vmatpush.msrb.mxu2 %v16522_v31  ;;  %4147 = vmatpush.msrb.mxu3 %v4146_v18  ;;  %v4169_v18 = vsub.f32 %v16769_v19, %v4168_v33  ;;  %v4164_v1 = vand.u32 4294901760, %v4163_v30  ;;  %v13600_v19 = vld [vmem:[%s23630_s5 + $0x1a0] sm:$0xff] }
 0x2ab   : > { %4237 = vmatmul.f32.vlgmr.msrb.gmra.mxu0 %v16399_v44  ;;  %4471 = vmatpush.msra.mxu1 %v4470_v0  ;;  %v4482_v44 = vand.u32 4294901760, %v4481_v49  ;;  %v4493_v0 = vsub.f32 %v16799_v15, %v23723_v48 }
 0x2ac   : > { %4414 = vmatpush.msra.mxu0 %v16613_v3  ;;  %4048 = vmatpush.msrb.mxu2 %v16533_v41  ;;  %v4170_v49 = vand.u32 4294901760, %v4169_v18  ;;  %v24089_v18 = vld [vmem:[#allocation26_spill] sm:$0xff] }
 0x2ad   : > { %4153 = vmatpush.msrb.mxu3 %v4152_v27  ;;  %4477 = vmatpush.msra.mxu1 %v4476_v29  ;;  %v4175_v27 = vsub.f32 %v16786_v32, %v4174_v51  ;;  %v4499_v29 = vsub.f32 %v16806_v37, %v4498_v62  ;;  %v4494_v30 = vand.u32 4294901760, %v4493_v0  ;;  %v17013_v32 = vand.u32 4294901760, %v13600_v19 }
 0x2ae   : > { %4416 = vmatpush.msra.mxu0 %v16617_v16  ;;  %3880 = vmatmul.f32.vlgmr.msra.gmra.mxu2 %v16606_v26 }
 0x2af   : > { %3922 = vmatmul.f32.gmra.mxu3 %v16715_v23  ;;  %4050 = vmatpush.msrb.mxu2 %v16546_v25  ;;  %v4176_v53 = vand.u32 4294901760, %v4175_v27  ;;  %v4500_v48 = vand.u32 4294901760, %v4499_v29 }
 0x2b0   : > { %4159 = vmatpush.msrb.mxu3 %v4158_v61  ;;  %4287 = vmatmul.f32.gmra.mxu1 %v16438_v56  ;;  %v24076_v56 = vld [vmem:[#allocation13_spill] sm:$0xff] }
 0x2b1   : > { %4418 = vmatpush.msra.mxu0 %v16653_v24  ;;  %4483 = vmatpush.msra.mxu1 %v4482_v44  ;;  %v24090_v44 = vand.u32 4294901760, %v24089_v18 }
 0x2b2   : > { %4052 = vmatpush.msrb.mxu2 %v16558_v28  ;;  %4165 = vmatpush.msrb.mxu3 %v4164_v1 }
 0x2b3   : > { %4420 = vmatpush.msra.mxu0 %v16671_v38  ;;  %4489 = vmatpush.msra.mxu1 %v4488_v54  ;;  %v24095_v54 = vld [vmem:[#allocation19_spill] sm:$0xff] }
 0x2b4   : > { %4054 = vmatpush.msrb.mxu2 %v16590_v20  ;;  %4171 = vmatpush.msrb.mxu3 %v4170_v49  ;;  %v24096_v27 = vand.u32 4294901760, %v24095_v54 }
 0x2b5   : > { %4242 = vmatmul.f32.gmra.mxu0 %v16429_v22  ;;  %4495 = vmatpush.msra.mxu1 %v4494_v30  ;;  %v24075_v22 = vand.u32 4294901760, %v16497_v4  ;;  %v24081_v4 = vld [vmem:[#allocation15_spill] sm:$0xff] }
 0x2b6   : > { %4422 = vmatpush.msra.mxu0 %v16720_v39  ;;  %4056 = vmatpush.msrb.mxu2 %v16610_v11 }
 0x2b7   : > { %4177 = vmatpush.msrb.mxu3 %v4176_v53  ;;  %4501 = vmatpush.msra.mxu1 %v4500_v48 }
 0x2b8   : > { %4424 = vmatpush.msra.mxu0 %v16741_v57  ;;  %3885 = vmatmul.f32.gmra.mxu2 %v16690_v14 }
 0x2b9   : > { %4365 = vmatpush.msra.mxu3 %v16456_v5  ;;  %4058 = vmatpush.msrb.mxu2 %v16629_v7  ;;  %v24077_v5 = vld [vmem:[#allocation14_spill] sm:$0xff] }
 0x2ba   : > { %4179 = vmatmul.f32.vlgmr.msrb.gmra.mxu3 %v16396_v58  ;;  %4503 = vmatmul.f32.vlgmr.msra.gmra.mxu1 %v16583_v8 }
 0x2bb   : > { %4367 = vmatpush.msra.mxu3 %v16467_v55  ;;  %4426 = vmatpush.msra.mxu0 %v16764_v40  ;;  %v24078_v55 = vld [vmem:[#allocation23_spill] sm:$0xff] }
 0x2bc   : > { %4563 = vmatpush.msrb.mxu1 %v16613_v3  ;;  %4060 = vmatpush.msrb.mxu2 %v16677_v63 }
 0x2bd   : > { %4369 = vmatpush.msra.mxu3 %v16478_v9  ;;  %4428 = vmatpush.msra.mxu0 %v16781_v42  ;;  %v24079_v9 = vld [vmem:[#allocation17_spill] sm:$0xff] }
 0x2be   : > { %4565 = vmatpush.msrb.mxu1 %v16617_v16  ;;  %4062 = vmatpush.msrb.mxu2 %v16709_v13 }
 0x2bf   : > { %4434 = vmatmul.f32.vlgmr.msra.gmra.mxu0 %v16668_v34  ;;  %4371 = vmatpush.msra.mxu3 %v16488_v36  ;;  %v24080_v36 = vand.u32 4294901760, %v24079_v9  ;;  %v24083_v34 = vld [vmem:[#allocation18_spill] sm:$0xff] }
 0x2c0   : > { %4521 = vmatpush.msrb.mxu0 %v16651_v6  ;;  %4567 = vmatpush.msrb.mxu1 %v16653_v24  ;;  %v24084_v48 = vand.u32 4294901760, %v24083_v34 }
 0x2c1   : > { %4064 = vmatpush.msrb.mxu2 %v16745_v12  ;;  %4373 = vmatpush.msra.mxu3 %v16500_v47  ;;  %v24082_v47 = vand.u32 4294901760, %v24081_v4 }
 0x2c2   : > { %4524 = vmatpush.msrb.mxu0 %v16664_v60  ;;  %4569 = vmatpush.msrb.mxu1 %v16671_v38 }
 0x2c3   : > { %4294 = vmatpush.msra.mxu2 %v24075_v22  ;;  %4183 = vmatmul.f32.gmra.mxu3 %v24077_v5 }
 0x2c4   : > { %4070 = vmatmul.f32.vlgmr.msrb.gmra.mxu2 %v24076_v56  ;;  %4507 = vmatmul.f32.gmra.mxu1 %v24078_v55 }
 0x2c5   : > { %4298 = vmatpush.msra.mxu2 %v24080_v36  ;;  %4375 = vmatpush.msra.mxu3 %v16510_v2  ;;  %v24085_v2 = vld [vmem:[#allocation12_spill] sm:$0xff] }
 0x2c6   : > { %4527 = vmatpush.msrb.mxu0 %v16696_v46  ;;  %4571 = vmatpush.msrb.mxu1 %v16720_v39  ;;  %v24086_v61 = vand.u32 4294901760, %v24085_v2  ;;  %v13592_v2 = vld [vmem:[%s23630_s5 + $0x160] sm:$0xff] }
 0x2c7   : > { %4302 = vmatpush.msra.mxu2 %v24082_v47  ;;  %4377 = vmatpush.msra.mxu3 %v16522_v31  ;;  %v24087_v31 = vld [vmem:[#allocation16_spill] sm:$0xff] }
 0x2c8   : > { %4530 = vmatpush.msrb.mxu0 %v16718_v52  ;;  %4573 = vmatpush.msrb.mxu1 %v16741_v57 }
 0x2c9   : > { %4442 = vmatmul.f32.gmra.mxu0 %v16758_v17  ;;  %4306 = vmatpush.msra.mxu2 %v24084_v48  ;;  %v24088_v17 = vld [vmem:[#allocation22_spill] sm:$0xff] }
 0x2ca   : > { %4379 = vmatpush.msra.mxu3 %v16533_v41  ;;  %4533 = vmatpush.msrb.mxu0 %v16762_v35  ;;  %v24091_v41 = vld [vmem:[#allocation20_spill] sm:$0xff] }
 0x2cb   : > { %4575 = vmatpush.msrb.mxu1 %v16764_v40  ;;  %4310 = vmatpush.msra.mxu2 %v24086_v61  ;;  %v24092_v0 = vand.u32 4294901760, %v24091_v41  ;;  %v13590_v41 = vld [vmem:[%s23630_s5 + $0x150] sm:$0xff] }
 0x2cc   : > { %4381 = vmatpush.msra.mxu3 %v16546_v25  ;;  %4536 = vmatpush.msrb.mxu0 %v16779_v50  ;;  %v24093_v25 = vld [vmem:[#allocation21_spill] sm:$0xff] }
 0x2cd   : > { %4577 = vmatpush.msrb.mxu1 %v16781_v42  ;;  %4078 = vmatmul.f32.gmra.mxu2 %v24087_v31  ;;  %v24094_v1 = vand.u32 4294901760, %v24093_v25 }
 0x2ce   : > { %4581 = vmatmul.f32.vlgmr.msrb.gmra.mxu1 %v24088_v17  ;;  %4314 = vmatpush.msra.mxu2 %v24090_v44  ;;  %v17078_v44 = vand.u32 4294901760, %v13592_v2 }
 0x2cf   : > { %4383 = vmatpush.msra.mxu3 %v16558_v28  ;;  %4539 = vmatpush.msrb.mxu0 %v16799_v15  ;;  %v24097_v28 = vld [vmem:[#allocation27_spill] sm:$0xff] }
 0x2d0   : > { %4318 = vmatpush.msra.mxu2 %v24092_v0  ;;  %v24098_v29 = vand.u32 4294901760, %v24097_v28 }
 0x2d1   : > { %4385 = vmatpush.msra.mxu3 %v16590_v20  ;;  %4542 = vmatpush.msrb.mxu0 %v16806_v37  ;;  %v24099_v20 = vld [vmem:[#allocation31_spill] sm:$0xff] }
 0x2d2   : > { %4545 = vmatmul.f32.vlgmr.msrb.gmra.mxu0 %v16606_v26  ;;  %4322 = vmatpush.msra.mxu2 %v24094_v1  ;;  %v24100_v49 = vand.u32 4294901760, %v24099_v20  ;;  %v24101_v26 = vld [vmem:[#allocation25_spill] sm:$0xff]  ;;  %v17088_v1 = vand.u32 4294901760, %v13590_v41  ;;  %v13588_v20 = vld [vmem:[%s23630_s5 + $0x140] sm:$0xff] }
 0x2d3   : > { %4387 = vmatpush.msra.mxu3 %v16610_v11  ;;  %v24102_v11 = vand.u32 4294901760, %v24101_v26 }
 0x2d4   : > { %4326 = vmatpush.msra.mxu2 %v24096_v27  ;;  %v17104_v26 = vsub.f32 %v13590_v41, %v17088_v1 }
 0x2d5   : > { %4389 = vmatpush.msra.mxu3 %v16629_v7  ;;  %v24103_v7 = vand.u32 4294901760, %v16701_v43  ;;  %v24104_v43 = vand.u32 4294901760, %v16651_v6 }
 0x2d6   : > { %4587 = vmatmul.f32.gmra.mxu1 %v16715_v23  ;;  %4330 = vmatpush.msra.mxu2 %v24098_v29  ;;  %v17096_v29 = vsub.f32 %v13592_v2, %v17078_v44 }
 0x2d7   : > { %4391 = vmatpush.msra.mxu3 %v16677_v63 }
 0x2d8   : > { %4334 = vmatpush.msra.mxu2 %v24100_v49 }
 0x2d9   : > { %4393 = vmatpush.msra.mxu3 %v16709_v13  ;;  %v13602_v13 = vld [vmem:[%s23630_s5 + $0x1b0] sm:$0xff] }
 0x2da   : > { %4550 = vmatmul.f32.gmra.mxu0 %v16690_v14  ;;  %4338 = vmatpush.msra.mxu2 %v24102_v11  ;;  %v24107_v14 = vand.u32 4294901760, %v16718_v52  ;;  %v17005_v23 = vand.u32 4294901760, %v13602_v13  ;;  %v17106_v11 = vand.u32 4294901760, %v13588_v20 }
 0x2db   : > { %4395 = vmatpush.msra.mxu3 %v16745_v12 }
 0x2dc   : > { %4397 = vmatmul.f32.vlgmr.msra.gmra.mxu3 %v16396_v58  ;;  %4342 = vmatpush.msra.mxu2 %v24103_v7 }
 0x2dd   : > { %4649 = vmatpush.msrb.mxu3 %v16613_v3  ;;  %v24106_v3 = vand.u32 4294901760, %v16696_v46  ;;  %4749 = vmatpush.msra.mxu0 %v17005_v23 }
 0x2de   : > { %4346 = vmatpush.msra.mxu2 %v4162_v59 }
 0x2df   : > { %4651 = vmatpush.msrb.mxu3 %v16617_v16  ;;  %4751 = vmatpush.msra.mxu0 %v17013_v32 }
 0x2e0   : > { %4350 = vmatpush.msra.mxu2 %v4168_v33  ;;  %v17026_v33 = vsub.f32 %v13600_v19, %v17013_v32 }
 0x2e1   : > { %4653 = vmatpush.msrb.mxu3 %v16653_v24 }
 0x2e2   : > { %4354 = vmatpush.msra.mxu2 %v4174_v51  ;;  %v23732_v53 = vand.u32 4294901760, %v17026_v33 }
 0x2e3   : > { %4655 = vmatpush.msrb.mxu3 %v16671_v38  ;;  %4356 = vmatmul.f32.vlgmr.msra.gmra.mxu2 %v16396_v58  ;;  %v24108_v58 = vand.u32 4294901760, %v16799_v15  ;;  %v13598_v15 = vld [vmem:[%s23630_s5 + $0x190] sm:$0xff] }
 0x2e4   : > { %4401 = vmatmul.f32.gmra.mxu3 %v24077_v5  ;;  %4602 = vmatpush.msrb.mxu2 %v24104_v43  ;;  %v17029_v51 = vand.u32 4294901760, %v13598_v15  ;;  %v4804_v9 = vsub.f32 %v17026_v33, %v23732_v53  ;;  %v23727_v43 = vand.u32 4294901760, %v17096_v29 }
 0x2e5   : > { %4657 = vmatpush.msrb.mxu3 %v16720_v39 }
 0x2e6   : > { %4606 = vmatpush.msrb.mxu2 %v24105_v21  ;;  %v17041_v22 = vsub.f32 %v13598_v15, %v17029_v51  ;;  %4753 = vmatpush.msra.mxu0 %v17029_v51  ;;  %v4805_v61 = vand.u32 4294901760, %v4804_v9  ;;  %v13586_v21 = vld [vmem:[%s23630_s5 + $0x130] sm:$0xff]  ;;  %v4828_v19 = vsub.f32 %v17096_v29, %v23727_v43  ;;  %v13584_v15 = vld [vmem:[%s23630_s5 + $0x120] sm:$0xff] }
 0x2e7   : > { %4659 = vmatpush.msrb.mxu3 %v16741_v57 }
 0x2e8   : > { %4610 = vmatpush.msrb.mxu2 %v24106_v3  ;;  %v16972_v39 = vpop.f32.mrf.mxu1  ;;  %v23731_v36 = vand.u32 4294901760, %v17041_v22  ;;  %v23726_v3 = vand.u32 4294901760, %v17104_v26 }
 0x2e9   : > { %4661 = vmatpush.msrb.mxu3 %v16764_v40  ;;  %v17011_v40 = vsub.f32 %v13602_v13, %v17005_v23 }
 0x2ea   : > { %4614 = vmatpush.msrb.mxu2 %v24107_v14  ;;  %v4810_v31 = vsub.f32 %v17041_v22, %v23731_v36  ;;  %v17120_v14 = vsub.f32 %v13588_v20, %v17106_v11 }
 0x2eb   : > { %4663 = vmatpush.msrb.mxu3 %v16781_v42  ;;  %4360 = vmatmul.f32.gmra.mxu2 %v24077_v5  ;;  %v13594_v5 = vld [vmem:[%s23630_s5 + $0x170] sm:$0xff] }
 0x2ec   : > { %4665 = vmatmul.f32.vlgmr.msrb.gmra.mxu3 %v16583_v8  ;;  %4618 = vmatpush.msrb.mxu2 %v4480_v10  ;;  %v17064_v48 = vand.u32 4294901760, %v13594_v5  ;;  %v4811_v0 = vand.u32 4294901760, %v4810_v31  ;;  %v13582_v31 = vld [vmem:[%s23630_s5 + $0x110] sm:$0xff] }
 0x2ed   : > { %4946 = vmatpush.msra.mxu3 %v17005_v23 }
 0x2ee   : > { %4622 = vmatpush.msrb.mxu2 %v4486_v45  ;;  %v23734_v45 = vand.u32 4294901760, %v17011_v40  ;;  %v17076_v18 = vsub.f32 %v13594_v5, %v17064_v48 }
 0x2ef   : > { %4948 = vmatpush.msra.mxu3 %v17013_v32 }
 0x2f0   : > { %4626 = vmatpush.msrb.mxu2 %v24108_v58  ;;  %v16970_v42 = vpop.f32.mrf.mxu0  ;;  %v16980_v35 = vpop.f32.mrf.mxu2  ;;  %v4798_v30 = vsub.f32 %v17011_v40, %v23734_v45  ;;  %v23728_v28 = vand.u32 4294901760, %v17076_v18  ;;  %v17122_v58 = vand.u32 4294901760, %v13586_v21 }
 0x2f1   : > { %4950 = vmatpush.msra.mxu3 %v17029_v51 }
 0x2f2   : > { %4630 = vmatpush.msrb.mxu2 %v4498_v62  ;;  %v16976_v50 = vpop.f32.mrf.mxu3  ;;  %v13596_v62 = vld [vmem:[%s23630_s5 + $0x180] sm:$0xff]  ;;  %v4822_v7 = vsub.f32 %v17076_v18, %v23728_v28  ;;  %v17138_v5 = vsub.f32 %v13586_v21, %v17122_v58 }
 0x2f3   : > { %4632 = vmatmul.f32.vlgmr.msrb.gmra.mxu2 %v16583_v8  ;;  %v16978_v46 = vpop.f32.mrf.mxu1  ;;  %v17044_v56 = vand.u32 4294901760, %v13596_v62 }
 0x2f4   : > { %4669 = vmatmul.f32.gmra.mxu3 %v24078_v55  ;;  %4892 = vmatpush.msra.mxu2 %v17011_v40  ;;  %v4823_v13 = vand.u32 4294901760, %v4822_v7  ;;  %v13580_v7 = vld [vmem:[%s23630_s5 + $0x100] sm:$0xff] }
 0x2f5   : > { %v17056_v4 = vsub.f32 %v13596_v62, %v17044_v56  ;;  %4952 = vmatpush.msra.mxu3 %v17044_v56  ;;  %4755 = vmatpush.msra.mxu0 %v17044_v56  ;;  %v4834_v62 = vsub.f32 %v17104_v26, %v23726_v3 }
 0x2f6   : > { %4895 = vmatpush.msra.mxu2 %v17026_v33 }
 0x2f7   : > { %v23729_v17 = vand.u32 4294901760, %v17056_v4  ;;  %4954 = vmatpush.msra.mxu3 %v17064_v48  ;;  %4757 = vmatpush.msra.mxu0 %v17064_v48  ;;  %v4835_v41 = vand.u32 4294901760, %v4834_v62 }
 0x2f8   : > { %4898 = vmatpush.msra.mxu2 %v17041_v22 }
 0x2f9   : > { %v4816_v25 = vsub.f32 %v17056_v4, %v23729_v17  ;;  %4956 = vmatpush.msra.mxu3 %v17078_v44  ;;  %4759 = vmatpush.msra.mxu0 %v17078_v44 }
 0x2fa   : > { %4901 = vmatpush.msra.mxu2 %v17056_v4 }
 0x2fb   : > { %4636 = vmatmul.f32.gmra.mxu2 %v24078_v55  ;;  %v16974_v57 = vpop.f32.mrf.mxu0  ;;  %v16986_v8 = vpop.f32.mrf.mxu1  ;;  %v4799_v55 = vand.u32 4294901760, %v4798_v30  ;;  %v4817_v49 = vand.u32 4294901760, %v4816_v25  ;;  %4958 = vmatpush.msra.mxu3 %v17088_v1  ;;  %v23724_v30 = vand.u32 4294901760, %v17120_v14  ;;  %v23725_v25 = vand.u32 4294901760, %v17138_v5 }
 0x2fc   : > { %v16988_v24 = vpop.f32.mrf.mxu2  ;;  %4904 = vmatpush.msra.mxu2 %v17076_v18  ;;  %4761 = vmatpush.msra.mxu0 %v17088_v1 }
 0x2fd   : > { %v16984_v6 = vpop.f32.mrf.mxu3  ;;  %4800 = vmatpush.msra.mxu1 %v4799_v55  ;;  %4960 = vmatpush.msra.mxu3 %v17106_v11  ;;  %v17140_v55 = vand.u32 4294901760, %v13584_v15 }
 0x2fe   : > { %4907 = vmatpush.msra.mxu2 %v17096_v29  ;;  %4763 = vmatpush.msra.mxu0 %v17106_v11 }
 0x2ff   : > { %4806 = vmatpush.msra.mxu1 %v4805_v61  ;;  %v4829_v61 = vand.u32 4294901760, %v4828_v19  ;;  %4962 = vmatpush.msra.mxu3 %v17122_v58  ;;  %v17158_v20 = vsub.f32 %v13584_v15, %v17140_v55  ;;  %v17169_v19 = vand.u32 4294901760, %v13580_v7 }
 0x300   : > { %4910 = vmatpush.msra.mxu2 %v17104_v26  ;;  %4765 = vmatpush.msra.mxu0 %v17122_v58 }
 0x301   : > { %4812 = vmatpush.msra.mxu1 %v4811_v0  ;;  %v4840_v0 = vsub.f32 %v17120_v14, %v23724_v30  ;;  %4964 = vmatpush.msra.mxu3 %v17140_v55  ;;  %v17186_v3 = vsub.f32 %v13580_v7, %v17169_v19  ;;  %v13576_v7 = vld [vmem:[%s23630_s5 + $0xe0] sm:$0xff] }
 0x302   : > { %4913 = vmatpush.msra.mxu2 %v17120_v14  ;;  %4767 = vmatpush.msra.mxu0 %v17140_v55  ;;  %v17204_v17 = vand.u32 4294901760, %v13576_v7 }
 0x303   : > { %v16982_v16 = vpop.f32.mrf.mxu0  ;;  %v16996_v63 = vpop.f32.mrf.mxu1  ;;  %4818 = vmatpush.msra.mxu1 %v4817_v49  ;;  %v17161_v49 = vand.u32 4294901760, %v13582_v31  ;;  %v4841_v21 = vand.u32 4294901760, %v4840_v0  ;;  %v13578_v0 = vld [vmem:[%s23630_s5 + $0xf0] sm:$0xff] }
 0x304   : > { %4916 = vmatpush.msra.mxu2 %v17138_v5  ;;  %v17188_v43 = vand.u32 4294901760, %v13578_v0  ;;  %v17217_v53 = vsub.f32 %v13576_v7, %v17204_v17 }
 0x305   : > { %4824 = vmatpush.msra.mxu1 %v4823_v13  ;;  %v4846_v13 = vsub.f32 %v17138_v5, %v23725_v25  ;;  %v17179_v30 = vsub.f32 %v13582_v31, %v17161_v49  ;;  %4966 = vmatpush.msra.mxu3 %v17161_v49 }
 0x306   : > { %4919 = vmatpush.msra.mxu2 %v17158_v20  ;;  %4769 = vmatpush.msra.mxu0 %v17161_v49  ;;  %v17202_v28 = vsub.f32 %v13578_v0, %v17188_v43  ;;  %v23737_v7 = vand.u32 4294901760, %v17217_v53 }
 0x307   : > { %4830 = vmatpush.msra.mxu1 %v4829_v61  ;;  %v23730_v61 = vand.u32 4294901760, %v17158_v20  ;;  %v4847_v25 = vand.u32 4294901760, %v4846_v13  ;;  %v23735_v13 = vand.u32 4294901760, %v17186_v3  ;;  %4968 = vmatpush.msra.mxu3 %v17169_v19 }
 0x308   : > { %4922 = vmatpush.msra.mxu2 %v17179_v30  ;;  %4771 = vmatpush.msra.mxu0 %v17169_v19  ;;  %v23736_v0 = vand.u32 4294901760, %v17202_v28 }
 0x309   : > { %4836 = vmatpush.msra.mxu1 %v4835_v41  ;;  %v4852_v31 = vsub.f32 %v17158_v20, %v23730_v61  ;;  %v23733_v41 = vand.u32 4294901760, %v17179_v30  ;;  %v4864_v36 = vsub.f32 %v17186_v3, %v23735_v13  ;;  %4970 = vmatpush.msra.mxu3 %v17188_v43 }
 0x30a   : > { %4925 = vmatpush.msra.mxu2 %v17186_v3  ;;  %4773 = vmatpush.msra.mxu0 %v17188_v43  ;;  %v4870_v13 = vsub.f32 %v17202_v28, %v23736_v0  ;;  %v4876_v0 = vsub.f32 %v17217_v53, %v23737_v7  ;;  %v13599_v7 = vld [vmem:[%s23630_s5 + $0x198] sm:$0xff] }
 0x30b   : > { %v16990_v60 = vpop.f32.mrf.mxu0  ;;  %4842 = vmatpush.msra.mxu1 %v4841_v21  ;;  %v4853_v21 = vand.u32 4294901760, %v4852_v31  ;;  %v4858_v61 = vsub.f32 %v17179_v30, %v23733_v41  ;;  %v4865_v45 = vand.u32 4294901760, %v4864_v36  ;;  %4972 = vmatpush.msra.mxu3 %v17204_v17  ;;  %v3516_v36 = vadd.f32 %v16972_v39, %v16970_v42 }
 0x30c   : > { %4928 = vmatpush.msra.mxu2 %v17202_v28  ;;  %4775 = vmatpush.msra.mxu0 %v17204_v17 }
 0x30d   : > { %4848 = vmatpush.msra.mxu1 %v4847_v25  ;;  %v4859_v41 = vand.u32 4294901760, %v4858_v61 }
 0x30e   : > { %4931 = vmatpush.msra.mxu2 %v17217_v53 }
 0x30f   : > { %4854 = vmatpush.msra.mxu1 %v4853_v21  ;;  %v4871_v21 = vand.u32 4294901760, %v4870_v13  ;;  %v4877_v13 = vand.u32 4294901760, %v4876_v0  ;;  %v13597_v0 = vld [vmem:[%s23630_s5 + $0x188] sm:$0xff] }
 0x310   : > { %v17017_v59 = vpop.f32.mrf.mxu1 }
 0x311   : > { %24109 = vst [vmem:[#allocation32_spill] sm:$0xff] %v17017_v59  ;;  %4860 = vmatpush.msra.mxu1 %v4859_v41  ;;  %v24115_v59 = vand.u32 4294901760, %v17011_v40 }
 0x313   : > { %4991 = vmatpush.msrb.mxu0 %v24115_v59  ;;  %4866 = vmatpush.msra.mxu1 %v4865_v45  ;;  %v17263_v59 = vand.u32 4294901760, %v13599_v7 }
 0x314   : > { %v16998_v12 = vpop.f32.mrf.mxu0 }
 0x315   : > { %4872 = vmatpush.msra.mxu1 %v4871_v21  ;;  %24117 = vst [vmem:[#allocation34_spill] sm:$0xff] %v17263_v59 }
 0x316   : > { %v16992_v38 = vpop.f32.mrf.mxu3 }
 0x317   : > { %4878 = vmatpush.msra.mxu1 %v4877_v13 }
 0x319   : > { %v17090_v54 = vpop.f32.mrf.mxu1  ;;  %5056 = vmatpush.msrb.mxu1 %v17005_v23 }
 0x31a   : > { %24111 = vst [vmem:[#allocation29_spill] sm:$0xff] %v17090_v54  ;;  %v13603_v54 = vld [vmem:[%s23630_s5 + $0x1b8] sm:$0xff] }
 0x31b   : > { %v17236_v61 = vand.u32 4294901760, %v13603_v54  ;;  %5058 = vmatpush.msrb.mxu1 %v17013_v32 }
 0x31d   : > { %v17060_v47 = vpop.f32.mrf.mxu0  ;;  %24114 = vst [vmem:[#allocation33_spill] sm:$0xff] %v17236_v61  ;;  %5095 = vmatpush.msrb.mxu2 %v17236_v61  ;;  %v17252_v42 = vsub.f32 %v13603_v54, %v17236_v61  ;;  %v3574_v54 = vadd.f32 %v16980_v35, %v3516_v36  ;;  %v24119_v61 = vand.u32 4294901760, %v17041_v22  ;;  %v17282_v35 = vsub.f32 %v13599_v7, %v17263_v59  ;;  %v13595_v22 = vld [vmem:[%s23630_s5 + $0x178] sm:$0xff] }
 0x31e   : > { %v16994_v37 = vpop.f32.mrf.mxu2  ;;  %v17000_v52 = vpop.f32.mrf.mxu3  ;;  %24110 = vst [vmem:[#allocation28_spill] sm:$0xff] %v17060_v47  ;;  %v13601_v47 = vld [vmem:[%s23630_s5 + $0x1a8] sm:$0xff]  ;;  %v17299_v7 = vand.u32 4294901760, %v13595_v22  ;;  %5060 = vmatpush.msrb.mxu1 %v17029_v51 }
 0x31f   : > { %v17254_v39 = vand.u32 4294901760, %v13601_v47  ;;  %v23740_v40 = vand.u32 4294901760, %v17252_v42 }
 0x320   : > { %5062 = vmatpush.msrb.mxu1 %v17044_v56 }
 0x321   : > { %5097 = vmatpush.msrb.mxu2 %v17254_v39  ;;  %v17266_v45 = vsub.f32 %v13601_v47, %v17254_v39  ;;  %v17279_v47 = vand.u32 4294901760, %v13597_v0 }
 0x322   : > { %5064 = vmatpush.msrb.mxu1 %v17064_v48 }
 0x323   : > { %v17173_v15 = vpop.f32.mrf.mxu1  ;;  %24118 = vst [vmem:[#allocation37_spill] sm:$0xff] %v17266_v45  ;;  %5099 = vmatpush.msrb.mxu2 %v17263_v59  ;;  %v3618_v59 = vadd.f32 %v16976_v50, %v3574_v54 }
 0x324   : > { %5066 = vmatpush.msrb.mxu1 %v17078_v44  ;;  %v24126_v44 = vand.u32 4294901760, %v17138_v5  ;;  %v13581_v5 = vld [vmem:[%s23630_s5 + $0x108] sm:$0xff] }
 0x325   : > { %5101 = vmatpush.msrb.mxu2 %v17279_v47  ;;  %v3693_v32 = vadd.f32 %v16982_v16, %v3618_v59  ;;  %v13589_v59 = vld [vmem:[%s23630_s5 + $0x148] sm:$0xff] }
 0x326   : > { %v17355_v56 = vand.u32 4294901760, %v13589_v59  ;;  %5068 = vmatpush.msrb.mxu1 %v17088_v1 }
 0x327   : > { %v17019_v10 = vpop.f32.mrf.mxu2  ;;  %5103 = vmatpush.msrb.mxu2 %v17299_v7 }
 0x328   : > { %v17062_v34 = vpop.f32.mrf.mxu3  ;;  %v17143_v9 = vpop.f32.mrf.mxu0  ;;  %5070 = vmatpush.msrb.mxu1 %v17106_v11 }
 0x32a   : > { %5072 = vmatpush.msrb.mxu1 %v17122_v58 }
 0x32c   : > { %5074 = vmatpush.msrb.mxu1 %v17140_v55  ;;  %v24130_v55 = vand.u32 4294901760, %v17202_v28 }
 0x32d   : > { %v17248_v41 = vpop.f32.mrf.mxu1 }
 0x32e   : > { %5076 = vmatpush.msrb.mxu1 %v17161_v49 }
 0x330   : > { %5078 = vmatpush.msrb.mxu1 %v17169_v19 }
 0x331   : > { %v17092_v27 = vpop.f32.mrf.mxu2 }
 0x332   : > { %v17145_v2 = vpop.f32.mrf.mxu3  ;;  %v17221_v25 = vpop.f32.mrf.mxu0  ;;  %5080 = vmatpush.msrb.mxu1 %v17188_v43 }
 0x333   : > { %24112 = vst [vmem:[#allocation35_spill] sm:$0xff] %v17145_v2 }
 0x334   : > { %5082 = vmatpush.msrb.mxu1 %v17204_v17 }
 0x33b   : > { %v17175_v62 = vpop.f32.mrf.mxu2 }
 0x33c   : > { %24113 = vst [vmem:[#allocation36_spill] sm:$0xff] %v17175_v62  ;;  %v24116_v62 = vand.u32 4294901760, %v17026_v33  ;;  %v5144_v33 = vsub.f32 %v17252_v42, %v23740_v40  ;;  %v17290_v36 = vpop.f32.mrf.mxu0 }
 0x33d   : > { %v17223_v31 = vpop.f32.mrf.mxu3 }
 0x33e   : > { %4995 = vmatpush.msrb.mxu0 %v24116_v62  ;;  %v23743_v62 = vand.u32 4294901760, %v17266_v45  ;;  %v5145_v13 = vand.u32 4294901760, %v5144_v33  ;;  %v13593_v33 = vld [vmem:[%s23630_s5 + $0x168] sm:$0xff] }
 0x340   : > { %4999 = vmatpush.msrb.mxu0 %v24119_v61  ;;  %v24120_v61 = vand.u32 4294901760, %v17056_v4  ;;  %v5150_v40 = vsub.f32 %v17266_v45, %v23743_v62  ;;  %v3520_v4 = vadd.f32 %v16978_v46, %v16974_v57  ;;  %v24121_v62 = vand.u32 4294901760, %v17076_v18  ;;  %5146 = vmatpush.msrb.mxu3 %v5145_v13 }
 0x341   : > { %v24122_v45 = vand.u32 4294901760, %v17282_v35  ;;  %v17317_v57 = vand.u32 4294901760, %v13593_v33  ;;  %v17320_v46 = vsub.f32 %v13595_v22, %v17299_v7  ;;  %v24124_v13 = vand.u32 4294901760, %v17104_v26 }
 0x342   : > { %5003 = vmatpush.msrb.mxu0 %v24120_v61  ;;  %v17306_v61 = vsub.f32 %v13597_v0, %v17279_v47  ;;  %v5151_v23 = vand.u32 4294901760, %v5150_v40  ;;  %v13591_v40 = vld [vmem:[%s23630_s5 + $0x158] sm:$0xff]  ;;  %v17331_v0 = vpop.f32.mrf.mxu1 }
 0x343   : > { %v5156_v50 = vsub.f32 %v17282_v35, %v24122_v45  ;;  %v24123_v45 = vand.u32 4294901760, %v17096_v29  ;;  %5105 = vmatpush.msrb.mxu2 %v17317_v57  ;;  %v23746_v16 = vand.u32 4294901760, %v17320_v46  ;;  %v17338_v51 = vsub.f32 %v13593_v33, %v17317_v57 }
 0x344   : > { %5007 = vmatpush.msrb.mxu0 %v24121_v62  ;;  %v5161_v18 = vand.u32 4294901760, %v17306_v61  ;;  %5152 = vmatpush.msrb.mxu3 %v5151_v23  ;;  %v3734_v33 = vadd.f32 %v16986_v8, %v3693_v32 }
 0x345   : > { %v5157_v22 = vand.u32 4294901760, %v5156_v50  ;;  %v5168_v23 = vsub.f32 %v17320_v46, %v23746_v16 }
 0x346   : > { %v17292_v21 = vpop.f32.mrf.mxu3  ;;  %5011 = vmatpush.msrb.mxu0 %v24123_v45  ;;  %v5162_v29 = vsub.f32 %v17306_v61, %v5161_v18  ;;  %v13587_v45 = vld [vmem:[%s23630_s5 + $0x138] sm:$0xff]  ;;  %v3771_v32 = vadd.f32 %v16994_v37, %v3734_v33 }
 0x347   : > { %v4071_v2 = vpop.f32.mrf.mxu2  ;;  %5158 = vmatpush.msrb.mxu3 %v5157_v22  ;;  %v24125_v22 = vand.u32 4294901760, %v17120_v14  ;;  %v5169_v16 = vand.u32 4294901760, %v5168_v23  ;;  %v17379_v14 = vsub.f32 %v13589_v59, %v17355_v56 }
 0x348   : > { %v4181_v54 = vadd.f32 %v17223_v31, %v4071_v2  ;;  %v17335_v2 = vand.u32 4294901760, %v13591_v40  ;;  %v3579_v31 = vadd.f32 %v16988_v24, %v3520_v4  ;;  %5015 = vmatpush.msrb.mxu0 %v24124_v13  ;;  %v5173_v24 = vand.u32 4294901760, %v17338_v51 }
 0x349   : > { %v5163_v26 = vand.u32 4294901760, %v5162_v29  ;;  %v17384_v29 = vpop.f32.mrf.mxu0 }
 0x34a   : > { %5107 = vmatpush.msrb.mxu2 %v17335_v2  ;;  %v17358_v4 = vsub.f32 %v13591_v40, %v17335_v2  ;;  %v4239_v50 = vadd.f32 %v17143_v9, %v4181_v54  ;;  %5019 = vmatpush.msrb.mxu0 %v24125_v22  ;;  %v5174_v40 = vsub.f32 %v17338_v51, %v5173_v24  ;;  %v17373_v9 = vand.u32 4294901760, %v13587_v45  ;;  %v13585_v54 = vld [vmem:[%s23630_s5 + $0x128] sm:$0xff] }
 0x34b   : > { %v3624_v48 = vadd.f32 %v16984_v6, %v3579_v31  ;;  %5164 = vmatpush.msrb.mxu3 %v5163_v26  ;;  %v17390_v6 = vand.u32 4294901760, %v13585_v54  ;;  %v5185_v26 = vand.u32 4294901760, %v17379_v14 }
 0x34c   : > { %5109 = vmatpush.msrb.mxu2 %v17355_v56  ;;  %v23747_v8 = vand.u32 4294901760, %v17358_v4  ;;  %v5175_v23 = vand.u32 4294901760, %v5174_v40  ;;  %v17393_v37 = vsub.f32 %v13587_v45, %v17373_v9  ;;  %5023 = vmatpush.msrb.mxu0 %v24126_v44  ;;  %v4283_v33 = vadd.f32 %v17173_v15, %v4239_v50  ;;  %v13583_v40 = vld [vmem:[%s23630_s5 + $0x118] sm:$0xff] }
 0x34d   : > { %v3697_v31 = vadd.f32 %v16990_v60, %v3624_v48  ;;  %5170 = vmatpush.msrb.mxu3 %v5169_v16  ;;  %v13579_v60 = vld [vmem:[%s23630_s5 + $0xf8] sm:$0xff]  ;;  %v17413_v15 = vand.u32 4294901760, %v13583_v40  ;;  %v17416_v16 = vsub.f32 %v13585_v54, %v17390_v6  ;;  %v24127_v50 = vand.u32 4294901760, %v17158_v20 }
 0x34e   : > { %v5180_v22 = vsub.f32 %v17358_v4, %v23747_v8  ;;  %5111 = vmatpush.msrb.mxu2 %v17373_v9  ;;  %v23748_v1 = vand.u32 4294901760, %v17393_v37  ;;  %v3840_v45 = vadd.f32 %v16992_v38, %v3771_v32  ;;  %v17425_v44 = vand.u32 4294901760, %v13581_v5  ;;  %v17427_v8 = vpop.f32.mrf.mxu1 }
 0x34f   : > { %5027 = vmatpush.msrb.mxu0 %v24127_v50  ;;  %5176 = vmatpush.msrb.mxu3 %v5175_v23  ;;  %v5197_v38 = vand.u32 4294901760, %v17416_v16  ;;  %v17435_v20 = vsub.f32 %v13583_v40, %v17413_v15  ;;  %v17437_v11 = vand.u32 4294901760, %v13579_v60  ;;  %v24128_v32 = vand.u32 4294901760, %v17179_v30 }
 0x350   : > { %v4079_v62 = vpop.f32.mrf.mxu2  ;;  %5113 = vmatpush.msrb.mxu2 %v17390_v6  ;;  %v5192_v54 = vsub.f32 %v17393_v37, %v23748_v1  ;;  %v17444_v50 = vsub.f32 %v13581_v5, %v17425_v44  ;;  %v3882_v58 = vadd.f32 %v17092_v27, %v3840_v45  ;;  %v13577_v5 = vld [vmem:[%s23630_s5 + $0xe8] sm:$0xff] }
 0x351   : > { %v4185_v59 = vadd.f32 %v17292_v21, %v4079_v62  ;;  %v5181_v62 = vand.u32 4294901760, %v5180_v22  ;;  %v5186_v22 = vsub.f32 %v17379_v14, %v5185_v26  ;;  %5031 = vmatpush.msrb.mxu0 %v24128_v32  ;;  %v5198_v40 = vsub.f32 %v17416_v16, %v5197_v38 }
 0x352   : > { %5115 = vmatpush.msrb.mxu2 %v17413_v15  ;;  %v5193_v1 = vand.u32 4294901760, %v5192_v54  ;;  %v5203_v30 = vand.u32 4294901760, %v17435_v20  ;;  %v24129_v32 = vand.u32 4294901760, %v17186_v3  ;;  %v17468_v27 = vsub.f32 %v13579_v60, %v17437_v11 }
 0x353   : > { %v4244_v23 = vadd.f32 %v17221_v25, %v4185_v59  ;;  %5182 = vmatpush.msrb.mxu3 %v5181_v62  ;;  %v3738_v25 = vadd.f32 %v16996_v63, %v3697_v31  ;;  %v5209_v59 = vand.u32 4294901760, %v17444_v50  ;;  %v17465_v63 = vand.u32 4294901760, %v13577_v5 }
 0x354   : > { %5117 = vmatpush.msrb.mxu2 %v17425_v44  ;;  %5035 = vmatpush.msrb.mxu0 %v24129_v32  ;;  %v5204_v3 = vsub.f32 %v17435_v20, %v5203_v30  ;;  %v5215_v60 = vand.u32 4294901760, %v17468_v27 }
 0x355   : > { %v5210_v45 = vsub.f32 %v17444_v50, %v5209_v59  ;;  %v17481_v28 = vsub.f32 %v13577_v5, %v17465_v63  ;;  %v3779_v49 = vadd.f32 %v17019_v10, %v3738_v25 }
 0x356   : > { %5119 = vmatpush.msrb.mxu2 %v17437_v11  ;;  %5039 = vmatpush.msrb.mxu0 %v24130_v55 }
 0x357   : > { %v3844_v25 = vadd.f32 %v17000_v52, %v3779_v49  ;;  %v24133_v52 = vld [vmem:[#allocation35_spill] sm:$0xff]  ;;  %v24135_v49 = vld [vmem:[#allocation28_spill] sm:$0xff] }
 0x358   : > { %5121 = vmatpush.msrb.mxu2 %v17465_v63 }
 0x35f   : > { %v4398_v13 = vpop.f32.mrf.mxu3 }
 0x366   : > { %v4357_v21 = vpop.f32.mrf.mxu2 }
 0x367   : > { %v4358_v48 = vadd.f32 %v4357_v21, %v4283_v33  ;;  %v5187_v21 = vand.u32 4294901760, %v5186_v22  ;;  %v4402_v62 = vpop.f32.mrf.mxu3  ;;  %v4546_v22 = vpop.f32.mrf.mxu0 }
 0x369   : > { %v4399_v33 = vadd.f32 %v4398_v13, %v4358_v48  ;;  %5188 = vmatpush.msrb.mxu3 %v5187_v21  ;;  %v5199_v48 = vand.u32 4294901760, %v5198_v40  ;;  %v5221_v21 = vand.u32 4294901760, %v17481_v28  ;;  %v3918_v40 = vadd.f32 %v17062_v34, %v3882_v58  ;;  %v24132_v58 = vld [vmem:[#allocation36_spill] sm:$0xff] }
 0x36b   : > { %v4436_v13 = vadd.f32 %v17290_v36, %v4399_v33  ;;  %v4289_v36 = vadd.f32 %v17248_v41, %v4244_v23  ;;  %5194 = vmatpush.msrb.mxu3 %v5193_v1  ;;  %v5205_v33 = vand.u32 4294901760, %v5204_v3  ;;  %v24131_v41 = vand.u32 4294901760, %v17217_v53  ;;  %v4582_v53 = vpop.f32.mrf.mxu1 }
 0x36c   : > { %v5211_v1 = vand.u32 4294901760, %v5210_v45  ;;  %v5216_v23 = vsub.f32 %v17468_v27, %v5215_v60  ;;  %v5222_v19 = vsub.f32 %v17481_v28, %v5221_v21  ;;  %v3969_v34 = vadd.f32 %v16998_v12, %v3918_v40 }
 0x36d   : > { %v4505_v31 = vadd.f32 %v17331_v0, %v4436_v13  ;;  %5043 = vmatpush.msrb.mxu0 %v24131_v41  ;;  %5200 = vmatpush.msrb.mxu3 %v5199_v48 }
 0x36e   : > { %v4361_v54 = vpop.f32.mrf.mxu2  ;;  %v5217_v10 = vand.u32 4294901760, %v5216_v23  ;;  %v5223_v48 = vand.u32 4294901760, %v5222_v19 }
 0x36f   : > { %v4362_v0 = vadd.f32 %v4361_v54, %v4289_v36  ;;  %v4547_v13 = vadd.f32 %v4546_v22, %v4505_v31  ;;  %5206 = vmatpush.msrb.mxu3 %v5205_v33  ;;  %v4666_v55 = vpop.f32.mrf.mxu3  ;;  %v4551_v45 = vpop.f32.mrf.mxu0 }
 0x371   : > { %v4403_v32 = vadd.f32 %v4402_v62, %v4362_v0  ;;  %5212 = vmatpush.msrb.mxu3 %v5211_v1  ;;  %v3887_v62 = vadd.f32 %v24132_v58, %v3844_v25  ;;  %v4583_v43 = vadd.f32 %v4582_v53, %v4547_v13 }
 0x373   : > { %v4444_v5 = vadd.f32 %v17384_v29, %v4403_v32  ;;  %5218 = vmatpush.msrb.mxu3 %v5217_v10  ;;  %v3924_v22 = vadd.f32 %v24133_v52, %v3887_v62  ;;  %v24134_v29 = vld [vmem:[#allocation32_spill] sm:$0xff]  ;;  %v4588_v12 = vpop.f32.mrf.mxu1  ;;  %v24136_v32 = vld [vmem:[#allocation29_spill] sm:$0xff] }
 0x374   : > { %v4002_v54 = vadd.f32 %v24134_v29, %v3969_v34  ;;  %v24140_v52 = vld [vmem:[#allocation37_spill] sm:$0xff] }
 0x375   : > { %v4509_v3 = vadd.f32 %v17427_v8, %v4444_v5  ;;  %5224 = vmatpush.msrb.mxu3 %v5223_v48  ;;  %v3973_v0 = vadd.f32 %v24135_v49, %v3924_v22  ;;  %v24141_v22 = vand.u32 4294901760, %v24140_v52 }
 0x376   : > { %v4633_v36 = vpop.f32.mrf.mxu2 }
 0x377   : > { %v4634_v31 = vadd.f32 %v4633_v36, %v4583_v43  ;;  %v4552_v33 = vadd.f32 %v4551_v45, %v4509_v3  ;;  %v4670_v40 = vpop.f32.mrf.mxu3  ;;  %v4006_v13 = vadd.f32 %v24136_v32, %v3973_v0  ;;  %v24137_v43 = vld [vmem:[#allocation33_spill] sm:$0xff]  ;;  %v24139_v45 = vld [vmem:[#allocation34_spill] sm:$0xff] }
 0x378   : > { %v4695_v32 = vld [vmem:[%s23630_s5 + $0x70] sm:$0xff] }
 0x379   : > { %v4667_v17 = vadd.f32 %v4666_v55, %v4634_v31  ;;  %v4589_v8 = vadd.f32 %v4588_v12, %v4552_v33  ;;  %v24138_v55 = vand.u32 4294901760, %v17252_v42  ;;  %v24143_v33 = vand.u32 4294901760, %v17320_v46  ;;  %v4703_v12 = vld [vmem:[%s23630_s5 + $0xb0] sm:$0xff] }
 0x37a   : > { %v17583_v0 = vand.u32 4294901760, %v4703_v12 }
 0x37b   : > { %v4673_v41 = vmax.f32 %v4002_v54, %v4667_v17  ;;  %v24142_v54 = vand.u32 4294901760, %v17282_v35 }
 0x37d   : > { %4676 = vst.msk [vmem:[#allocation3] sm:$0xff] %vm4675_vm4, %v4673_v41 }
 0x37e   : > { %v4637_v1 = vpop.f32.mrf.mxu2 }
 0x37f   : > { %v4638_v23 = vadd.f32 %v4637_v1, %v4589_v8  ;;  %v4699_v8 = vld [vmem:[%s23630_s5 + $0x90] sm:$0xff]  ;;  %v24145_v1 = vand.u32 4294901760, %v17393_v37 }
 0x381   : > { %v4671_v53 = vadd.f32 %v4670_v40, %v4638_v23  ;;  %v17614_v23 = vand.u32 4294901760, %v4699_v8 }
 0x383   : > { %v4674_v10 = vmax.f32 %v4006_v13, %v4671_v53 }
 0x385   : > { %4678 = vst.msk [vmem:[#allocation3 + $0x8] sm:$0x3f] %vm4677_vm5, %v4674_v10 }
 0x38c   : > { %v4709_v19 = vld [vmem:[#allocation3 + $0x1] sm:$0xff]  ;;  %v4710_v25 = vld [vmem:[#allocation3 + $0x9] sm:$0xf] }
 0x38d   : > { %v4741_v5 = vsel %vm4675_vm4, %v4709_v19, 0  ;;  %v4744_v48 = vsel %vm4675_vm4, %v4710_v25, 0  ;;  %v4691_v19 = vld [vmem:[%s23630_s5 + $0x50] sm:$0xff] }
 0x38e   : > { %v17509_v34 = vand.u32 4294901760, %v4741_v5  ;;  %v17515_v62 = vand.u32 4294901760, %v4744_v48 }
 0x390   : > { %4880 = vmatmul.f32.vlgmr.msra.gmra.mxu1 %v17509_v34  ;;  %v17513_v58 = vsub.f32 %v4741_v5, %v17509_v34  ;;  %v17529_v31 = vsub.f32 %v4744_v48, %v17515_v62 }
 0x391   : > { %5292 = vmatpush.msra.mxu1 %v24137_v43 }
 0x392   : > { %4934 = vmatmul.f32.vlgmr.msra.gmra.mxu2 %v17513_v58  ;;  %v17520_v3 = vand.u32 4294901760, %v17513_v58  ;;  %v17540_v17 = vand.u32 4294901760, %v17529_v31 }
 0x393   : > { %5294 = vmatpush.msra.mxu1 %v17254_v39  ;;  %5337 = vmatpush.msra.mxu2 %v24138_v55  ;;  %v4689_v55 = vld [vmem:[%s23630_s5 + $0x40] sm:$0xff] }
 0x394   : > { %4976 = vmatmul.f32.vlgmr.msra.gmra.mxu3 %v17520_v3  ;;  %v4779_v36 = vsub.f32 %v17513_v58, %v17520_v3 }
 0x395   : > { %5296 = vmatpush.msra.mxu1 %v24139_v45  ;;  %5341 = vmatpush.msra.mxu2 %v24141_v22  ;;  %v4685_v22 = vld [vmem:[%s23630_s5 + $0x20] sm:$0xff] }
 0x396   : > { %5402 = vmatpush.msra.mxu3 %v24137_v43  ;;  %v4780_v29 = vand.u32 4294901760, %v4779_v36  ;;  %v17683_v43 = vand.u32 4294901760, %v4691_v19 }
 0x397   : > { %5298 = vmatpush.msra.mxu1 %v17279_v47  ;;  %5345 = vmatpush.msra.mxu2 %v24142_v54 }
 0x398   : > { %5404 = vmatpush.msra.mxu3 %v17254_v39  ;;  %4781 = vmatmul.f32.vlgmr.msra.gmra.mxu0 %v4780_v29  ;;  %v4707_v39 = vld [vmem:[%s23630_s5 + $0xd0] sm:$0xff] }
 0x399   : > { %4884 = vmatmul.f32.gmra.mxu1 %v17515_v62  ;;  %5238 = vmatpush.msra.mxu0 %v17252_v42  ;;  %v4787_v42 = vsub.f32 %v17529_v31, %v17540_v17  ;;  %v17564_v41 = vand.u32 4294901760, %v4707_v39 }
 0x39a   : > { %5300 = vmatpush.msra.mxu1 %v17299_v7  ;;  %5349 = vmatpush.msra.mxu2 %v5161_v18  ;;  %v4705_v18 = vld [vmem:[%s23630_s5 + $0xc0] sm:$0xff] }
 0x39b   : > { %5406 = vmatpush.msra.mxu3 %v24139_v45  ;;  %4939 = vmatmul.f32.gmra.mxu2 %v17529_v31  ;;  %v17574_v49 = vand.u32 4294901760, %v4705_v18  ;;  %v4687_v45 = vld [vmem:[%s23630_s5 + $0x30] sm:$0xff] }
 0x39c   : > { %5241 = vmatpush.msra.mxu0 %v24140_v52  ;;  %5302 = vmatpush.msra.mxu1 %v17317_v57  ;;  %v17709_v52 = vsub.f32 %v4691_v19, %v17683_v43 }
 0x39d   : > { %5353 = vmatpush.msra.mxu2 %v24143_v33  ;;  %5408 = vmatpush.msra.mxu3 %v17279_v47  ;;  %v4788_v47 = vand.u32 4294901760, %v4787_v42 }
 0x39e   : > { %4982 = vmatmul.f32.gmra.mxu3 %v17540_v17  ;;  %5244 = vmatpush.msra.mxu0 %v17282_v35  ;;  %v24144_v35 = vand.u32 4294901760, %v17358_v4 }
 0x39f   : > { %5304 = vmatpush.msra.mxu1 %v17335_v2  ;;  %5357 = vmatpush.msra.mxu2 %v5173_v24  ;;  %v17581_v24 = vsub.f32 %v4707_v39, %v17564_v41  ;;  %v4683_v39 = vld [vmem:[%s23630_s5 + $0x10] sm:$0xff] }
 0x3a0   : > { %5410 = vmatpush.msra.mxu3 %v17299_v7  ;;  %5247 = vmatpush.msra.mxu0 %v17306_v61  ;;  %v4701_v7 = vld [vmem:[%s23630_s5 + $0xa0] sm:$0xff]  ;;  %v17594_v61 = vsub.f32 %v4705_v18, %v17574_v49  ;;  %v17734_v18 = vand.u32 4294901760, %v4685_v22 }
 0x3a1   : > { %5306 = vmatpush.msra.mxu1 %v17355_v56  ;;  %5361 = vmatpush.msra.mxu2 %v24144_v35  ;;  %v17747_v35 = vand.u32 4294901760, %v4683_v39 }
 0x3a2   : > { %5412 = vmatpush.msra.mxu3 %v17317_v57  ;;  %4789 = vmatmul.f32.gmra.mxu0 %v4788_v47  ;;  %v17597_v57 = vand.u32 4294901760, %v4701_v7 }
 0x3a3   : > { %5084 = vmatmul.f32.vlgmr.msrb.gmra.mxu1 %v17509_v34  ;;  %5250 = vmatpush.msra.mxu0 %v17320_v46  ;;  %v5495_v46 = vand.u32 4294901760, %v17581_v24 }
 0x3a4   : > { %5308 = vmatpush.msra.mxu1 %v17373_v9  ;;  %5365 = vmatpush.msra.mxu2 %v5185_v26  ;;  %v17606_v26 = vsub.f32 %v4703_v12, %v17583_v0  ;;  %v17623_v40 = vsub.f32 %v4701_v7, %v17597_v57 }
 0x3a5   : > { %5414 = vmatpush.msra.mxu3 %v17335_v2  ;;  %5127 = vmatmul.f32.vlgmr.msrb.gmra.mxu2 %v4780_v29  ;;  %v23766_v2 = vand.u32 4294901760, %v17594_v61  ;;  %v17719_v29 = vand.u32 4294901760, %v4687_v45 }
 0x3a6   : > { %5253 = vmatpush.msra.mxu0 %v17338_v51  ;;  %5310 = vmatpush.msra.mxu1 %v17390_v6  ;;  %v4697_v51 = vld [vmem:[%s23630_s5 + $0x80] sm:$0xff]  ;;  %v23763_v13 = vand.u32 4294901760, %v17623_v40 }
 0x3a7   : > { %5369 = vmatpush.msra.mxu2 %v24145_v1  ;;  %5416 = vmatpush.msra.mxu3 %v17355_v56  ;;  %v5496_v56 = vsub.f32 %v17581_v24, %v5495_v46  ;;  %v17757_v1 = vsub.f32 %v4685_v22, %v17734_v18 }
 0x3a8   : > { %5226 = vmatmul.f32.vlgmr.msrb.gmra.mxu3 %v17509_v34  ;;  %5256 = vmatpush.msra.mxu0 %v17358_v4  ;;  %v23764_v4 = vand.u32 4294901760, %v17606_v26 }
 0x3a9   : > { %5312 = vmatpush.msra.mxu1 %v17413_v15  ;;  %5373 = vmatpush.msra.mxu2 %v5197_v38  ;;  %v17637_v38 = vand.u32 4294901760, %v4697_v51  ;;  %v5497_v53 = vand.u32 4294901760, %v5496_v56 }
 0x3aa   : > { %5418 = vmatpush.msra.mxu3 %v17373_v9  ;;  %5259 = vmatpush.msra.mxu0 %v17379_v14  ;;  %v5502_v9 = vsub.f32 %v17594_v61, %v23766_v2  ;;  %v17645_v14 = vsub.f32 %v4699_v8, %v17614_v23  ;;  %v5508_v10 = vsub.f32 %v17606_v26, %v23764_v4 }
 0x3ab   : > { %5314 = vmatpush.msra.mxu1 %v17425_v44  ;;  %5377 = vmatpush.msra.mxu2 %v5203_v30  ;;  %v17650_v30 = vand.u32 4294901760, %v4695_v32 }
 0x3ac   : > { %5420 = vmatpush.msra.mxu3 %v17390_v6  ;;  %5045 = vmatmul.f32.vlgmr.msrb.gmra.mxu0 %v17509_v34  ;;  %v4693_v6 = vld [vmem:[%s23630_s5 + $0x60] sm:$0xff]  ;;  %v23761_v25 = vand.u32 4294901760, %v17645_v14 }
 0x3ad   : > { %5088 = vmatmul.f32.gmra.mxu1 %v17515_v62  ;;  %5262 = vmatpush.msra.mxu0 %v17393_v37  ;;  %v17663_v37 = vsub.f32 %v4697_v51, %v17637_v38  ;;  %v17671_v5 = vand.u32 4294901760, %v4693_v6  ;;  %v17680_v48 = vsub.f32 %v4695_v32, %v17650_v30 }
 0x3ae   : > { %5316 = vmatpush.msra.mxu1 %v17437_v11  ;;  %5381 = vmatpush.msra.mxu2 %v5209_v59  ;;  %v5503_v59 = vand.u32 4294901760, %v5502_v9  ;;  %v17769_v9 = vsub.f32 %v4683_v39, %v17747_v35 }
 0x3af   : > { %5422 = vmatpush.msra.mxu3 %v17413_v15  ;;  %5135 = vmatmul.f32.gmra.mxu2 %v4788_v47  ;;  %v5514_v15 = vsub.f32 %v17623_v40, %v23763_v13  ;;  %v17697_v36 = vsub.f32 %v4693_v6, %v17671_v5  ;;  %v17745_v47 = vsub.f32 %v4687_v45, %v17719_v29  ;;  %v4679_v45 = vld [vmem:[#allocation3] sm:$0xff] }
 0x3b0   : > { %5265 = vmatpush.msra.mxu0 %v17416_v16  ;;  %5318 = vmatpush.msra.mxu1 %v17465_v63  ;;  %v5509_v16 = vand.u32 4294901760, %v5508_v10  ;;  %v5439_v39 = vsel %vm4675_vm4, %v4679_v45, 0 }
 0x3b1   : > { %5385 = vmatpush.msra.mxu2 %v5215_v60  ;;  %5424 = vmatpush.msra.mxu3 %v17425_v44  ;;  %v23759_v44 = vand.u32 4294901760, %v17663_v37  ;;  %v5520_v60 = vsub.f32 %v17645_v14, %v23761_v25  ;;  %v23757_v54 = vand.u32 4294901760, %v17697_v36  ;;  %v23754_v32 = vand.u32 4294901760, %v17745_v47 }
 0x3b2   : > { %5498 = vmatpush.msrb.mxu1 %v5497_v53  ;;  %5230 = vmatmul.f32.gmra.mxu3 %v17515_v62  ;;  %v23751_v53 = vand.u32 4294901760, %v17757_v1 }
 0x3b3   : > { %5268 = vmatpush.msra.mxu0 %v17435_v20  ;;  %5389 = vmatpush.msra.mxu2 %v5221_v21  ;;  %v5515_v20 = vand.u32 4294901760, %v5514_v15  ;;  %v23758_v21 = vand.u32 4294901760, %v17680_v48  ;;  %v5538_v7 = vsub.f32 %v17697_v36, %v23757_v54  ;;  %v5556_v15 = vsub.f32 %v17745_v47, %v23754_v32 }
 0x3b4   : > { %5426 = vmatpush.msra.mxu3 %v17437_v11  ;;  %5504 = vmatpush.msrb.mxu1 %v5503_v59  ;;  %v17705_v11 = vand.u32 4294901760, %v4689_v55  ;;  %v4708_v59 = vld [vmem:[%s23630_s5 + $0xd8] sm:$0xff] }
 0x3b5   : > { %5590 = vmatpush.msrb.mxu2 %v17581_v24  ;;  %5271 = vmatpush.msra.mxu0 %v17444_v50  ;;  %v5526_v50 = vsub.f32 %v17663_v37, %v23759_v44  ;;  %v5532_v42 = vsub.f32 %v17680_v48, %v23758_v21  ;;  %v5539_v6 = vand.u32 4294901760, %v5538_v7  ;;  %v5557_v22 = vand.u32 4294901760, %v5556_v15  ;;  %v4680_v15 = vld [vmem:[#allocation3 + $0x8] sm:$0xf] }
 0x3b6   : > { %5428 = vmatpush.msra.mxu3 %v17465_v63  ;;  %5510 = vmatpush.msrb.mxu1 %v5509_v16  ;;  %v5521_v63 = vand.u32 4294901760, %v5520_v60  ;;  %v17732_v33 = vsub.f32 %v4689_v55, %v17705_v11  ;;  %v23750_v16 = vand.u32 4294901760, %v17769_v9  ;;  %v5562_v55 = vsub.f32 %v17757_v1, %v23751_v53 }
 0x3b7   : > { %5593 = vmatpush.msrb.mxu2 %v17594_v61  ;;  %5049 = vmatmul.f32.gmra.mxu0 %v17515_v62  ;;  %v5527_v12 = vand.u32 4294901760, %v5526_v50 }
 0x3b8   : > { %5644 = vmatpush.msrb.mxu3 %v17564_v41  ;;  %5322 = vmatmul.f32.vlgmr.msra.gmra.mxu1 %v17520_v3  ;;  %v23756_v3 = vand.u32 4294901760, %v17709_v52  ;;  %v23755_v8 = vand.u32 4294901760, %v17732_v33  ;;  %v5568_v50 = vsub.f32 %v17769_v9, %v23750_v16  ;;  %v4694_v16 = vld [vmem:[%s23630_s5 + $0x68] sm:$0xff] }
 0x3b9   : > { %5274 = vmatpush.msra.mxu0 %v17468_v27  ;;  %5516 = vmatpush.msrb.mxu1 %v5515_v20  ;;  %v4681_v27 = vld [vmem:[%s23630_s5] sm:$0xff]  ;;  %v17802_v20 = vand.u32 4294901760, %v4708_v59 }
 0x3ba   : > { %5596 = vmatpush.msrb.mxu2 %v17606_v26  ;;  %5646 = vmatpush.msrb.mxu3 %v17574_v49  ;;  %v17759_v51 = vand.u32 4294901760, %v4681_v27  ;;  %v5544_v56 = vsub.f32 %v17709_v52, %v23756_v3 }
 0x3bb   : > { %5277 = vmatpush.msra.mxu0 %v17481_v28  ;;  %5391 = vmatmul.f32.vlgmr.msra.gmra.mxu2 %v17509_v34  ;;  %v5533_v28 = vand.u32 4294901760, %v5532_v42  ;;  %v4704_v42 = vld [vmem:[%s23630_s5 + $0xb8] sm:$0xff]  ;;  %v17823_v7 = vsub.f32 %v4708_v59, %v17802_v20 }
 0x3bc   : > { %5522 = vmatpush.msrb.mxu1 %v5521_v63  ;;  %5599 = vmatpush.msrb.mxu2 %v17623_v40  ;;  %v17779_v10 = vsub.f32 %v4681_v27, %v17759_v51  ;;  %v5545_v19 = vand.u32 4294901760, %v5544_v56  ;;  %v5563_v27 = vand.u32 4294901760, %v5562_v55  ;;  %v17831_v56 = vand.u32 4294901760, %v5439_v39  ;;  %v4700_v55 = vld [vmem:[%s23630_s5 + $0x98] sm:$0xff] }
 0x3bd   : > { %5447 = vmatpush.msrb.mxu0 %v17564_v41  ;;  %5648 = vmatpush.msrb.mxu3 %v17583_v0  ;;  %v23752_v59 = vand.u32 4294901760, %v17823_v7 }
 0x3be   : > { %5430 = vmatmul.f32.vlgmr.msra.gmra.mxu3 %v17509_v34  ;;  %5528 = vmatpush.msrb.mxu1 %v5527_v12  ;;  %v5550_v34 = vsub.f32 %v17732_v33, %v23755_v8  ;;  %v23749_v60 = vand.u32 4294901760, %v17779_v10  ;;  %v4692_v8 = vld [vmem:[%s23630_s5 + $0x58] sm:$0xff] }
 0x3bf   : > { %5449 = vmatpush.msrb.mxu0 %v17574_v49  ;;  %5602 = vmatpush.msrb.mxu2 %v17645_v14  ;;  %v17932_v44 = vand.u32 4294901760, %v4692_v8 }
 0x3c0   : > { %5650 = vmatpush.msrb.mxu3 %v17597_v57  ;;  %5534 = vmatpush.msrb.mxu1 %v5533_v28  ;;  %v5574_v12 = vsub.f32 %v17779_v10, %v23749_v60  ;;  %v5569_v28 = vand.u32 4294901760, %v5568_v50  ;;  %v5442_v50 = vsel %vm4675_vm4, %v4680_v15, 0 }
 0x3c1   : > { %5451 = vmatpush.msrb.mxu0 %v17583_v0  ;;  %5605 = vmatpush.msrb.mxu2 %v17663_v37  ;;  %v17887_v15 = vand.u32 4294901760, %v5442_v50 }
 0x3c2   : > { %5652 = vmatpush.msrb.mxu3 %v17614_v23  ;;  %5280 = vmatmul.f32.vlgmr.msra.gmra.mxu0 %v17513_v58  ;;  %v4706_v58 = vld [vmem:[%s23630_s5 + $0xc8] sm:$0xff] }
 0x3c3   : > { %5328 = vmatmul.f32.gmra.mxu1 %v17540_v17  ;;  %5453 = vmatpush.msrb.mxu0 %v17597_v57  ;;  %v5551_v17 = vand.u32 4294901760, %v5550_v34  ;;  %v17810_v63 = vand.u32 4294901760, %v4706_v58 }
 0x3c4   : > { %5540 = vmatpush.msrb.mxu1 %v5539_v6  ;;  %5608 = vmatpush.msrb.mxu2 %v17680_v48  ;;  %v17833_v6 = vand.u32 4294901760, %v4704_v42 }
 0x3c5   : > { %5654 = vmatpush.msrb.mxu3 %v17637_v38  ;;  %5395 = vmatmul.f32.gmra.mxu2 %v17515_v62  ;;  %v17836_v34 = vsub.f32 %v4706_v58, %v17810_v63 }
 0x3c6   : > { %5455 = vmatpush.msrb.mxu0 %v17614_v23  ;;  %5546 = vmatpush.msrb.mxu1 %v5545_v19  ;;  %v5575_v19 = vand.u32 4294901760, %v5574_v12  ;;  %v17855_v45 = vsub.f32 %v4704_v42, %v17833_v6  ;;  %v4696_v12 = vld [vmem:[%s23630_s5 + $0x78] sm:$0xff] }
 0x3c7   : > { %5611 = vmatpush.msrb.mxu2 %v17697_v36  ;;  %5656 = vmatpush.msrb.mxu3 %v17650_v30  ;;  %v23753_v58 = vand.u32 4294901760, %v17836_v34 }
 0x3c8   : > { %5434 = vmatmul.f32.gmra.mxu3 %v17515_v62  ;;  %5457 = vmatpush.msrb.mxu0 %v17637_v38  ;;  %v4702_v62 = vld [vmem:[%s23630_s5 + $0xa8] sm:$0xff]  ;;  %v23760_v60 = vand.u32 4294901760, %v17855_v45 }
 0x3c9   : > { %5552 = vmatpush.msrb.mxu1 %v5551_v17  ;;  %5614 = vmatpush.msrb.mxu2 %v17709_v52  ;;  %v17842_v17 = vand.u32 4294901760, %v4702_v62 }
 0x3ca   : > { %5658 = vmatpush.msrb.mxu3 %v17671_v5  ;;  %5459 = vmatpush.msrb.mxu0 %v17650_v30  ;;  %v5854_v54 = vsub.f32 %v17855_v45, %v23760_v60  ;;  %v4688_v60 = vld [vmem:[%s23630_s5 + $0x38] sm:$0xff] }
 0x3cb   : > { %5558 = vmatpush.msrb.mxu1 %v5557_v22  ;;  %5617 = vmatpush.msrb.mxu2 %v17732_v33  ;;  %v4698_v22 = vld [vmem:[%s23630_s5 + $0x88] sm:$0xff]  ;;  %v17870_v42 = vsub.f32 %v4702_v62, %v17842_v17  ;;  %v5848_v62 = vsub.f32 %v17836_v34, %v23753_v58 }
 0x3cc   : > { %5660 = vmatpush.msrb.mxu3 %v17683_v43  ;;  %5285 = vmatmul.f32.gmra.mxu0 %v17529_v31  ;;  %v17851_v31 = vsub.f32 %v5439_v39, %v17831_v56  ;;  %v5842_v39 = vsub.f32 %v17823_v7, %v23752_v59  ;;  %v17898_v59 = vand.u32 4294901760, %v4696_v12 }
 0x3cd   : > { %5461 = vmatpush.msrb.mxu0 %v17671_v5  ;;  %5564 = vmatpush.msrb.mxu1 %v5563_v27  ;;  %v17863_v27 = vand.u32 4294901760, %v4700_v55  ;;  %v23762_v32 = vand.u32 4294901760, %v17870_v42 }
 0x3ce   : > { %5620 = vmatpush.msrb.mxu2 %v17745_v47  ;;  %5662 = vmatpush.msrb.mxu3 %v17705_v11  ;;  %24146 = vst [vmem:[#allocation40_spill] sm:$0xff] %v17851_v31  ;;  %v5843_v58 = vand.u32 4294901760, %v5842_v39  ;;  %v5849_v39 = vand.u32 4294901760, %v5848_v62  ;;  %v17930_v21 = vsub.f32 %v4696_v12, %v17898_v59 }
 0x3cf   : > { %5463 = vmatpush.msrb.mxu0 %v17683_v43  ;;  %5570 = vmatpush.msrb.mxu1 %v5569_v28  ;;  %v17877_v28 = vand.u32 4294901760, %v4698_v22  ;;  %v17896_v53 = vsub.f32 %v4700_v55, %v17863_v27  ;;  %v17911_v55 = vand.u32 4294901760, %v4694_v16 }
 0x3d0   : > { %5623 = vmatpush.msrb.mxu2 %v17757_v1  ;;  %5664 = vmatpush.msrb.mxu3 %v17719_v29 }
 0x3d1   : > { %5465 = vmatpush.msrb.mxu0 %v17705_v11  ;;  %5576 = vmatpush.msrb.mxu1 %v5575_v19  ;;  %v17882_v19 = vand.u32 4294901760, %v17851_v31  ;;  %v23765_v62 = vand.u32 4294901760, %v17896_v53  ;;  %v17945_v12 = vsub.f32 %v4694_v16, %v17911_v55 }
 0x3d2   : > { %5626 = vmatpush.msrb.mxu2 %v17769_v9  ;;  %5666 = vmatpush.msrb.mxu3 %v17734_v18 }
 0x3d3   : > { %5578 = vmatmul.f32.vlgmr.msrb.gmra.mxu1 %v17831_v56  ;;  %5467 = vmatpush.msrb.mxu0 %v17719_v29  ;;  %v5477_v3 = vsub.f32 %v17851_v31, %v17882_v19  ;;  %v5866_v16 = vsub.f32 %v17896_v53, %v23765_v62 }
 0x3d4   : > { %5754 = vmatpush.msra.mxu1 %v17564_v41  ;;  %5629 = vmatpush.msrb.mxu2 %v17779_v10  ;;  %v17909_v41 = vsub.f32 %v4698_v22, %v17877_v28  ;;  %v4690_v22 = vld [vmem:[%s23630_s5 + $0x48] sm:$0xff] }
 0x3d5   : > { %5668 = vmatpush.msrb.mxu3 %v17747_v35  ;;  %5632 = vmatmul.f32.vlgmr.msrb.gmra.mxu2 %v17851_v31  ;;  %v17947_v25 = vand.u32 4294901760, %v4690_v22 }
 0x3d6   : > { %5756 = vmatpush.msra.mxu1 %v17574_v49  ;;  %5793 = vmatpush.msra.mxu2 %v17802_v20  ;;  %v17921_v49 = vsub.f32 %v5442_v50, %v17887_v15  ;;  %v5860_v50 = vsub.f32 %v17870_v42, %v23762_v32  ;;  %v5855_v32 = vand.u32 4294901760, %v5854_v54  ;;  %v17967_v54 = vand.u32 4294901760, %v4688_v60 }
 0x3d7   : > { %5469 = vmatpush.msrb.mxu0 %v17734_v18  ;;  %5670 = vmatpush.msrb.mxu3 %v17759_v51 }
 0x3d8   : > { %5674 = vmatmul.f32.vlgmr.msrb.gmra.mxu3 %v17882_v19  ;;  %5758 = vmatpush.msra.mxu1 %v17583_v0  ;;  %v23767_v0 = vand.u32 4294901760, %v17909_v41  ;;  %v17953_v13 = vand.u32 4294901760, %v17921_v49  ;;  %v5861_v4 = vand.u32 4294901760, %v5860_v50  ;;  %v5867_v50 = vand.u32 4294901760, %v5866_v16 }
 0x3d9   : > { %5795 = vmatpush.msra.mxu2 %v17810_v63  ;;  %5844 = vmatpush.msra.mxu3 %v5843_v58  ;;  %v17950_v58 = vand.u32 4294901760, %v5477_v3  ;;  %v17965_v3 = vsub.f32 %v4692_v8, %v17932_v44  ;;  %v17979_v8 = vsub.f32 %v4690_v22, %v17947_v25  ;;  %v24148_v22 = vand.u32 4294901760, %v17930_v21 }
 0x3da   : > { %5471 = vmatpush.msrb.mxu0 %v17747_v35  ;;  %5760 = vmatpush.msra.mxu1 %v17597_v57  ;;  %v4686_v57 = vld [vmem:[%s23630_s5 + $0x28] sm:$0xff]  ;;  %v5872_v62 = vsub.f32 %v17909_v41, %v23767_v0  ;;  %v5485_v24 = vsub.f32 %v17921_v49, %v17953_v13  ;;  %v17997_v31 = vsub.f32 %v4688_v60, %v17967_v54 }
 0x3db   : > { %5797 = vmatpush.msra.mxu2 %v17833_v6  ;;  %5850 = vmatpush.msra.mxu3 %v5849_v39  ;;  %v17981_v2 = vand.u32 4294901760, %v4686_v57  ;;  %v5878_v0 = vsub.f32 %v17930_v21, %v24148_v22 }
 0x3dc   : > { %5473 = vmatpush.msrb.mxu0 %v17759_v51  ;;  %5582 = vmatmul.f32.gmra.mxu1 %v17887_v15  ;;  %v5873_v16 = vand.u32 4294901760, %v5872_v62  ;;  %v18021_v62 = vand.u32 4294901760, %v5485_v24  ;;  %v24153_v24 = vand.u32 4294901760, %v17979_v8 }
 0x3dd   : > { %5479 = vmatmul.f32.vlgmr.msrb.gmra.mxu0 %v17950_v58  ;;  %5762 = vmatpush.msra.mxu1 %v17614_v23  ;;  %v4684_v23 = vld [vmem:[%s23630_s5 + $0x18] sm:$0xff]  ;;  %v18013_v39 = vsub.f32 %v4686_v57, %v17981_v2  ;;  %v5901_v57 = vand.u32 4294901760, %v17997_v31 }
 0x3de   : > { %5689 = vmatpush.msra.mxu0 %v5495_v46  ;;  %5799 = vmatpush.msra.mxu2 %v17842_v17  ;;  %v24147_v46 = vand.u32 4294901760, %v17594_v61  ;;  %v18003_v61 = vand.u32 4294901760, %v4684_v23 }
 0x3df   : > { %5856 = vmatpush.msra.mxu3 %v5855_v32  ;;  %5637 = vmatmul.f32.gmra.mxu2 %v17921_v49  ;;  %v4682_v32 = vld [vmem:[%s23630_s5 + $0x8] sm:$0xff] }
 0x3e0   : > { %5693 = vmatpush.msra.mxu0 %v24147_v46  ;;  %5764 = vmatpush.msra.mxu1 %v17637_v38  ;;  %v24149_v38 = vand.u32 4294901760, %v17606_v26  ;;  %v24150_v46 = vand.u32 4294901760, %v17945_v12  ;;  %v24151_v26 = vand.u32 4294901760, %v17623_v40 }
 0x3e1   : > { %5801 = vmatpush.msra.mxu2 %v17863_v27  ;;  %5862 = vmatpush.msra.mxu3 %v5861_v4  ;;  %v18017_v4 = vand.u32 4294901760, %v4682_v32 }
 0x3e2   : > { %5680 = vmatmul.f32.gmra.mxu3 %v17953_v13  ;;  %5697 = vmatpush.msra.mxu0 %v24149_v38  ;;  %v5884_v60 = vsub.f32 %v17945_v12, %v24150_v46  ;;  %v5879_v38 = vand.u32 4294901760, %v5878_v0  ;;  %v24152_v46 = vand.u32 4294901760, %v17965_v3  ;;  %v5896_v0 = vsub.f32 %v17979_v8, %v24153_v24 }
 0x3e3   : > { %5766 = vmatpush.msra.mxu1 %v17650_v30  ;;  %5803 = vmatpush.msra.mxu2 %v17877_v28  ;;  %v18030_v30 = vsub.f32 %v4684_v23, %v18003_v61  ;;  %v24165_v24 = vand.u32 4294901760, %v17855_v45 }
 0x3e4   : > { %5868 = vmatpush.msra.mxu3 %v5867_v50  ;;  %5701 = vmatpush.msra.mxu0 %v24151_v26  ;;  %v5890_v22 = vsub.f32 %v17965_v3, %v24152_v46  ;;  %v5885_v40 = vand.u32 4294901760, %v5884_v60  ;;  %v5907_v50 = vand.u32 4294901760, %v18013_v39  ;;  %v24154_v26 = vand.u32 4294901760, %v17645_v14 }
 0x3e5   : > { %5768 = vmatpush.msra.mxu1 %v17671_v5  ;;  %5805 = vmatpush.msra.mxu2 %v17898_v59  ;;  %v18041_v5 = vsub.f32 %v4682_v32, %v18017_v4  ;;  %v24155_v60 = vand.u32 4294901760, %v17663_v37  ;;  %v5913_v14 = vand.u32 4294901760, %v18030_v30 }
 0x3e6   : > { %5874 = vmatpush.msra.mxu3 %v5873_v16  ;;  %5487 = vmatmul.f32.gmra.mxu0 %v18021_v62  ;;  %v5891_v23 = vand.u32 4294901760, %v5890_v22  ;;  %v5902_v16 = vsub.f32 %v17997_v31, %v5901_v57  ;;  %v5908_v32 = vsub.f32 %v18013_v39, %v5907_v50  ;;  %v24156_v22 = vand.u32 4294901760, %v17680_v48 }
 0x3e7   : > { %5705 = vmatpush.msra.mxu0 %v24154_v26  ;;  %5770 = vmatpush.msra.mxu1 %v17683_v43  ;;  %v5897_v43 = vand.u32 4294901760, %v5896_v0  ;;  %v5919_v37 = vand.u32 4294901760, %v18041_v5  ;;  %v5914_v46 = vsub.f32 %v18030_v30, %v5913_v14  ;;  %v24168_v0 = vand.u32 4294901760, %v17896_v53 }
 0x3e8   : > { %5807 = vmatpush.msra.mxu2 %v17911_v55  ;;  %5880 = vmatpush.msra.mxu3 %v5879_v38  ;;  %v24157_v38 = vand.u32 4294901760, %v17697_v36  ;;  %v5909_v48 = vand.u32 4294901760, %v5908_v32  ;;  %v24172_v32 = vand.u32 4294901760, %v17965_v3 }
 0x3e9   : > { %5709 = vmatpush.msra.mxu0 %v24155_v60  ;;  %5772 = vmatpush.msra.mxu1 %v17705_v11  ;;  %v5903_v11 = vand.u32 4294901760, %v5902_v16  ;;  %v5920_v36 = vsub.f32 %v18041_v5, %v5919_v37  ;;  %v24171_v16 = vand.u32 4294901760, %v17945_v12 }
 0x3ea   : > { %5809 = vmatpush.msra.mxu2 %v17932_v44  ;;  %5886 = vmatpush.msra.mxu3 %v5885_v40  ;;  %v5915_v40 = vand.u32 4294901760, %v5914_v46  ;;  %v13618_v46 = vld [vmem:[%s23630_s5 + $0x230] sm:$0xff] }
 0x3eb   : > { %5713 = vmatpush.msra.mxu0 %v24156_v22  ;;  %5774 = vmatpush.msra.mxu1 %v17719_v29  ;;  %v24158_v29 = vand.u32 4294901760, %v17709_v52  ;;  %v24160_v52 = vand.u32 4294901760, %v17745_v47  ;;  %v24163_v47 = vand.u32 4294901760, %v17836_v34 }
 0x3ec   : > { %5811 = vmatpush.msra.mxu2 %v17947_v25  ;;  %5892 = vmatpush.msra.mxu3 %v5891_v23 }
 0x3ed   : > { %5717 = vmatpush.msra.mxu0 %v24157_v38  ;;  %5776 = vmatpush.msra.mxu1 %v17734_v18  ;;  %v24159_v18 = vand.u32 4294901760, %v17732_v33  ;;  %v24161_v33 = vand.u32 4294901760, %v17823_v7 }
 0x3ee   : > { %5813 = vmatpush.msra.mxu2 %v17967_v54  ;;  %5898 = vmatpush.msra.mxu3 %v5897_v43 }
 0x3ef   : > { %5721 = vmatpush.msra.mxu0 %v24158_v29  ;;  %5778 = vmatpush.msra.mxu1 %v17747_v35  ;;  %v5921_v35 = vand.u32 4294901760, %v5920_v36  ;;  %v18210_v29 = vand.u32 4294901760, %v13618_v46 }
 0x3f0   : > { %5815 = vmatpush.msra.mxu2 %v17981_v2  ;;  %5904 = vmatpush.msra.mxu3 %v5903_v11 }
 0x3f1   : > { %5725 = vmatpush.msra.mxu0 %v24159_v18  ;;  %5780 = vmatpush.msra.mxu1 %v17759_v51  ;;  %v24162_v51 = vand.u32 4294901760, %v17757_v1  ;;  %v24166_v1 = vand.u32 4294901760, %v17779_v10  ;;  %v13628_v10 = vld [vmem:[%s23630_s5 + $0x280] sm:$0xff] }
 0x3f2   : > { %5817 = vmatpush.msra.mxu2 %v18003_v61  ;;  %5910 = vmatpush.msra.mxu3 %v5909_v48 }
 0x3f3   : > { %5782 = vmatmul.f32.vlgmr.msra.gmra.mxu1 %v17831_v56  ;;  %5729 = vmatpush.msra.mxu0 %v24160_v52  ;;  %v18241_v52 = vsub.f32 %v13618_v46, %v18210_v29 }
 0x3f4   : > { %5990 = vmatpush.msrb.mxu1 %v17802_v20  ;;  %5819 = vmatpush.msra.mxu2 %v18017_v4 }
 0x3f5   : > { %5916 = vmatpush.msra.mxu3 %v5915_v40  ;;  %5825 = vmatmul.f32.vlgmr.msra.gmra.mxu2 %v17950_v58  ;;  %v24164_v58 = vand.u32 4294901760, %v17769_v9  ;;  %v13630_v9 = vld [vmem:[%s23630_s5 + $0x290] sm:$0xff] }
 0x3f6   : > { %5992 = vmatpush.msrb.mxu1 %v17810_v63  ;;  %6035 = vmatpush.msrb.mxu2 %v24161_v33  ;;  %v13610_v33 = vld [vmem:[%s23630_s5 + $0x1f0] sm:$0xff] }
 0x3f7   : > { %5733 = vmatpush.msra.mxu0 %v24162_v51  ;;  %5922 = vmatpush.msra.mxu3 %v5921_v35 }
 0x3f8   : > { %5924 = vmatmul.f32.vlgmr.msra.gmra.mxu3 %v17831_v56  ;;  %5994 = vmatpush.msrb.mxu1 %v17833_v6 }
 0x3f9   : > { %6039 = vmatpush.msrb.mxu2 %v24163_v47  ;;  %6100 = vmatpush.msrb.mxu3 %v17802_v20  ;;  %v24167_v20 = vand.u32 4294901760, %v17870_v42  ;;  %v13608_v47 = vld [vmem:[%s23630_s5 + $0x1e0] sm:$0xff] }
 0x3fa   : > { %5737 = vmatpush.msra.mxu0 %v24164_v58  ;;  %5996 = vmatpush.msrb.mxu1 %v17842_v17 }
 0x3fb   : > { %6043 = vmatpush.msrb.mxu2 %v24165_v24  ;;  %6102 = vmatpush.msrb.mxu3 %v17810_v63  ;;  %v18118_v63 = vand.u32 4294901760, %v13630_v9  ;;  %v18271_v24 = vand.u32 4294901760, %v13610_v33 }
 0x3fc   : > { %5741 = vmatpush.msra.mxu0 %v24166_v1  ;;  %5786 = vmatmul.f32.gmra.mxu1 %v17887_v15 }
 0x3fd   : > { %5743 = vmatmul.f32.vlgmr.msra.gmra.mxu0 %v17831_v56  ;;  %5998 = vmatpush.msrb.mxu1 %v17863_v27 }
 0x3fe   : > { %5936 = vmatpush.msrb.mxu0 %v17823_v7  ;;  %6047 = vmatpush.msrb.mxu2 %v24167_v20  ;;  %v13626_v7 = vld [vmem:[%s23630_s5 + $0x270] sm:$0xff] }
 0x3ff   : > { %6104 = vmatpush.msrb.mxu3 %v17833_v6  ;;  %5833 = vmatmul.f32.gmra.mxu2 %v18021_v62  ;;  %v18128_v6 = vand.u32 4294901760, %v13628_v10  ;;  %v13624_v62 = vld [vmem:[%s23630_s5 + $0x260] sm:$0xff]  ;;  %v18141_v26 = vand.u32 4294901760, %v13626_v7 }
 0x400   : > { %5939 = vmatpush.msrb.mxu0 %v17836_v34  ;;  %6000 = vmatpush.msrb.mxu1 %v17877_v28  ;;  %v24169_v34 = vand.u32 4294901760, %v17909_v41 }
 0x401   : > { %6051 = vmatpush.msrb.mxu2 %v24168_v0  ;;  %6106 = vmatpush.msrb.mxu3 %v17842_v17  ;;  %v18139_v17 = vsub.f32 %v13630_v9, %v18118_v63  ;;  %v18149_v23 = vsub.f32 %v13628_v10, %v18128_v6  ;;  %v18163_v60 = vsub.f32 %v13626_v7, %v18141_v26  ;;  %v13604_v10 = vld [vmem:[%s23630_s5 + $0x1c0] sm:$0xff] }
 0x402   : > { %5928 = vmatmul.f32.gmra.mxu3 %v17887_v15  ;;  %5942 = vmatpush.msrb.mxu0 %v17855_v45  ;;  %v24170_v45 = vand.u32 4294901760, %v17930_v21 }
 0x403   : > { %6002 = vmatpush.msrb.mxu1 %v17898_v59  ;;  %6055 = vmatpush.msrb.mxu2 %v24169_v34  ;;  %v18299_v34 = vsub.f32 %v13610_v33, %v18271_v24 }
 0x404   : > { %6108 = vmatpush.msrb.mxu3 %v17863_v27  ;;  %5945 = vmatpush.msrb.mxu0 %v17870_v42  ;;  %v18151_v27 = vand.u32 4294901760, %v13624_v62  ;;  %v13622_v42 = vld [vmem:[%s23630_s5 + $0x250] sm:$0xff] }
 0x405   : > { %6004 = vmatpush.msrb.mxu1 %v17911_v55  ;;  %6059 = vmatpush.msrb.mxu2 %v24170_v45  ;;  %v18167_v43 = vand.u32 4294901760, %v13622_v42  ;;  %v24174_v45 = vld [vmem:[#allocation40_spill] sm:$0xff] }
 0x406   : > { %6110 = vmatpush.msrb.mxu3 %v17877_v28  ;;  %5747 = vmatmul.f32.gmra.mxu0 %v17887_v15  ;;  %v6224_v28 = vand.u32 4294901760, %v18139_v17  ;;  %v18177_v22 = vsub.f32 %v13624_v62, %v18151_v27 }
 0x407   : > { %5948 = vmatpush.msrb.mxu0 %v17896_v53  ;;  %6006 = vmatpush.msrb.mxu1 %v17932_v44  ;;  %v13620_v53 = vld [vmem:[%s23630_s5 + $0x240] sm:$0xff] }
 0x408   : > { %6063 = vmatpush.msrb.mxu2 %v24171_v16  ;;  %6112 = vmatpush.msrb.mxu3 %v17898_v59  ;;  %v23786_v59 = vand.u32 4294901760, %v18149_v23  ;;  %v6225_v11 = vsub.f32 %v18139_v17, %v6224_v28  ;;  %v18188_v38 = vand.u32 4294901760, %v13620_v53  ;;  %v23783_v48 = vand.u32 4294901760, %v18177_v22 }
 0x409   : > { %5951 = vmatpush.msrb.mxu0 %v17909_v41  ;;  %6008 = vmatpush.msrb.mxu1 %v17947_v25  ;;  %v24173_v41 = vand.u32 4294901760, %v17979_v8 }
 0x40a   : > { %6067 = vmatpush.msrb.mxu2 %v24172_v32  ;;  %6114 = vmatpush.msrb.mxu3 %v17911_v55  ;;  %v23784_v55 = vand.u32 4294901760, %v18163_v60  ;;  %v18219_v36 = vsub.f32 %v13620_v53, %v18188_v38  ;;  %v6243_v40 = vsub.f32 %v18177_v22, %v23783_v48  ;;  %v18313_v32 = vand.u32 4294901760, %v13604_v10 }
 0x40b   : > { %5954 = vmatpush.msrb.mxu0 %v17930_v21  ;;  %6010 = vmatpush.msrb.mxu1 %v17967_v54  ;;  %v18196_v21 = vsub.f32 %v13622_v42, %v18167_v43 }
 0x40c   : > { %6071 = vmatpush.msrb.mxu2 %v24173_v41  ;;  %6116 = vmatpush.msrb.mxu3 %v17932_v44  ;;  %v6231_v44 = vsub.f32 %v18149_v23, %v23786_v59  ;;  %v23774_v41 = vand.u32 4294901760, %v18299_v34 }
 0x40d   : > { %5957 = vmatpush.msrb.mxu0 %v17945_v12  ;;  %6012 = vmatpush.msrb.mxu1 %v17981_v2  ;;  %v13616_v12 = vld [vmem:[%s23630_s5 + $0x220] sm:$0xff] }
 0x40e   : > { %6075 = vmatpush.msrb.mxu2 %v5901_v57  ;;  %6118 = vmatpush.msrb.mxu3 %v17947_v25  ;;  %v6226_v25 = vand.u32 4294901760, %v6225_v11  ;;  %v6237_v57 = vsub.f32 %v18163_v60, %v23784_v55  ;;  %v18227_v18 = vand.u32 4294901760, %v13616_v12 }
 0x40f   : > { %5960 = vmatpush.msrb.mxu0 %v17965_v3  ;;  %6014 = vmatpush.msrb.mxu1 %v18003_v61  ;;  %v13614_v3 = vld [vmem:[%s23630_s5 + $0x210] sm:$0xff] }
 0x410   : > { %6079 = vmatpush.msrb.mxu2 %v5907_v50  ;;  %6120 = vmatpush.msrb.mxu3 %v17967_v54  ;;  %v23781_v50 = vand.u32 4294901760, %v18196_v21  ;;  %v6232_v54 = vand.u32 4294901760, %v6231_v44  ;;  %v18243_v35 = vand.u32 4294901760, %v13614_v3 }
 0x411   : > { %5963 = vmatpush.msrb.mxu0 %v17979_v8  ;;  %6016 = vmatpush.msrb.mxu1 %v18017_v4  ;;  %v13612_v8 = vld [vmem:[%s23630_s5 + $0x200] sm:$0xff] }
 0x412   : > { %6083 = vmatpush.msrb.mxu2 %v5913_v14  ;;  %6122 = vmatpush.msrb.mxu3 %v17981_v2  ;;  %v6238_v2 = vand.u32 4294901760, %v6237_v57  ;;  %v23779_v14 = vand.u32 4294901760, %v18219_v36  ;;  %v18259_v51 = vand.u32 4294901760, %v13612_v8  ;;  %v18269_v58 = vsub.f32 %v13614_v3, %v18243_v35  ;;  %v13631_v57 = vld [vmem:[%s23630_s5 + $0x298] sm:$0xff] }
 0x413   : > { %6020 = vmatmul.f32.vlgmr.msrb.gmra.mxu1 %v17882_v19  ;;  %5966 = vmatpush.msrb.mxu0 %v17997_v31  ;;  %v6249_v31 = vsub.f32 %v18196_v21, %v23781_v50  ;;  %v18257_v19 = vsub.f32 %v13616_v12, %v18227_v18 }
 0x414   : > { %6227 = vmatpush.msra.mxu1 %v6226_v25  ;;  %6087 = vmatpush.msrb.mxu2 %v5919_v37  ;;  %v6244_v37 = vand.u32 4294901760, %v6243_v40  ;;  %v6255_v1 = vsub.f32 %v18219_v36, %v23779_v14  ;;  %v18284_v20 = vsub.f32 %v13612_v8, %v18259_v51  ;;  %v23776_v7 = vand.u32 4294901760, %v18269_v58 }
 0x415   : > { %6124 = vmatpush.msrb.mxu3 %v18003_v61  ;;  %6089 = vmatmul.f32.vlgmr.msrb.gmra.mxu2 %v17831_v56  ;;  %v23778_v61 = vand.u32 4294901760, %v18241_v52  ;;  %v23777_v9 = vand.u32 4294901760, %v18257_v19  ;;  %v18334_v25 = vsub.f32 %v13604_v10, %v18313_v32 }
 0x416   : > { %6233 = vmatpush.msra.mxu1 %v6232_v54  ;;  %6319 = vmatpush.msra.mxu2 %v18139_v17  ;;  %v23775_v16 = vand.u32 4294901760, %v18284_v20  ;;  %v6285_v54 = vsub.f32 %v18299_v34, %v23774_v41 }
 0x417   : > { %5969 = vmatpush.msrb.mxu0 %v18013_v39  ;;  %6126 = vmatpush.msrb.mxu3 %v18017_v4  ;;  %v13606_v39 = vld [vmem:[%s23630_s5 + $0x1d0] sm:$0xff]  ;;  %v6250_v4 = vand.u32 4294901760, %v6249_v31  ;;  %v6261_v0 = vsub.f32 %v18241_v52, %v23778_v61  ;;  %v6267_v42 = vsub.f32 %v18257_v19, %v23777_v9  ;;  %v23769_v33 = vand.u32 4294901760, %v18334_v25 }
 0x418   : > { %6128 = vmatmul.f32.vlgmr.msrb.gmra.mxu3 %v17831_v56  ;;  %6239 = vmatpush.msra.mxu1 %v6238_v2  ;;  %v18286_v56 = vand.u32 4294901760, %v13608_v47  ;;  %v18301_v62 = vand.u32 4294901760, %v13606_v39  ;;  %v6279_v44 = vsub.f32 %v18284_v20, %v23775_v16  ;;  %v6136_v31 = vld [vmem:[#allocation3 + $0x2] sm:$0xff] }
 0x419   : > { %6322 = vmatpush.msra.mxu2 %v18149_v23  ;;  %6373 = vmatpush.msra.mxu3 %v18118_v63  ;;  %v6268_v46 = vand.u32 4294901760, %v6267_v42  ;;  %v13615_v16 = vld [vmem:[%s23630_s5 + $0x218] sm:$0xff] }
 0x41a   : > { %5972 = vmatpush.msrb.mxu0 %v18030_v30  ;;  %6245 = vmatpush.msra.mxu1 %v6244_v37  ;;  %v6256_v30 = vand.u32 4294901760, %v6255_v1  ;;  %v18311_v53 = vsub.f32 %v13608_v47, %v18286_v56  ;;  %v18324_v11 = vsub.f32 %v13606_v39, %v18301_v62  ;;  %v6280_v8 = vand.u32 4294901760, %v6279_v44 }
 0x41b   : > { %6325 = vmatpush.msra.mxu2 %v18163_v60  ;;  %6375 = vmatpush.msra.mxu3 %v18128_v6  ;;  %v18356_v37 = vand.u32 4294901760, %v13631_v57  ;;  %v6286_v47 = vand.u32 4294901760, %v6285_v54  ;;  %v18486_v14 = vand.u32 4294901760, %v13615_v16 }
 0x41c   : > { %5975 = vmatpush.msrb.mxu0 %v18041_v5  ;;  %6026 = vmatmul.f32.gmra.mxu1 %v17953_v13  ;;  %v6262_v13 = vand.u32 4294901760, %v6261_v0  ;;  %v6273_v5 = vsub.f32 %v18269_v58, %v23776_v7  ;;  %v23771_v12 = vand.u32 4294901760, %v18311_v53  ;;  %v23770_v40 = vand.u32 4294901760, %v18324_v11 }
 0x41d   : > { %5978 = vmatmul.f32.vlgmr.msrb.gmra.mxu0 %v24174_v45  ;;  %6251 = vmatpush.msra.mxu1 %v6250_v4  ;;  %v6168_v4 = vsel %vm4675_vm4, %v6136_v31, 0  ;;  %v6303_v0 = vsub.f32 %v18334_v25, %v23769_v33  ;;  %v13625_v45 = vld [vmem:[%s23630_s5 + $0x268] sm:$0xff] }
 0x41e   : > { %6176 = vmatpush.msra.mxu0 %v18118_v63  ;;  %6328 = vmatpush.msra.mxu2 %v18177_v22  ;;  %v6274_v3 = vand.u32 4294901760, %v6273_v5  ;;  %v6291_v2 = vsub.f32 %v18311_v53, %v23771_v12  ;;  %v6297_v1 = vsub.f32 %v18324_v11, %v23770_v40  ;;  %v18396_v54 = vand.u32 4294901760, %v13625_v45  ;;  %v13617_v40 = vld [vmem:[%s23630_s5 + $0x228] sm:$0xff] }
 0x41f   : > { %6377 = vmatpush.msra.mxu3 %v18141_v26  ;;  %6093 = vmatmul.f32.gmra.mxu2 %v17887_v15  ;;  %v6304_v44 = vand.u32 4294901760, %v6303_v0  ;;  %v13619_v0 = vld [vmem:[%s23630_s5 + $0x238] sm:$0xff] }
 0x420   : > { %6178 = vmatpush.msra.mxu0 %v18128_v6  ;;  %6257 = vmatpush.msra.mxu1 %v6256_v30  ;;  %v6292_v10 = vand.u32 4294901760, %v6291_v2  ;;  %v18377_v30 = vsub.f32 %v13631_v57, %v18356_v37  ;;  %v6298_v42 = vand.u32 4294901760, %v6297_v1 }
 0x421   : > { %6331 = vmatpush.msra.mxu2 %v18196_v21  ;;  %6379 = vmatpush.msra.mxu3 %v18151_v27 }
 0x422   : > { %6132 = vmatmul.f32.gmra.mxu3 %v17887_v15  ;;  %6180 = vmatpush.msra.mxu0 %v18141_v26  ;;  %v13629_v15 = vld [vmem:[%s23630_s5 + $0x288] sm:$0xff]  ;;  %v23772_v57 = vand.u32 4294901760, %v18377_v30 }
 0x423   : > { %6263 = vmatpush.msra.mxu1 %v6262_v13  ;;  %6334 = vmatpush.msra.mxu2 %v18219_v36  ;;  %v18364_v39 = vand.u32 4294901760, %v13629_v15  ;;  %v18385_v13 = vand.u32 4294901760, %v6168_v4 }
 0x424   : > { %6381 = vmatpush.msra.mxu3 %v18167_v43  ;;  %6182 = vmatpush.msra.mxu0 %v18151_v27 }
 0x425   : > { %6269 = vmatpush.msra.mxu1 %v6268_v46  ;;  %6337 = vmatpush.msra.mxu2 %v18241_v52  ;;  %v18390_v46 = vsub.f32 %v13629_v15, %v18364_v39  ;;  %v18405_v15 = vsub.f32 %v6168_v4, %v18385_v13  ;;  %v6571_v4 = vsub.f32 %v18377_v30, %v23772_v57  ;;  %v18452_v57 = vand.u32 4294901760, %v13619_v0 }
 0x426   : > { %6383 = vmatpush.msra.mxu3 %v18188_v38  ;;  %5983 = vmatmul.f32.gmra.mxu0 %v17921_v49  ;;  %v13627_v49 = vld [vmem:[%s23630_s5 + $0x278] sm:$0xff] }
 0x427   : > { %6184 = vmatpush.msra.mxu0 %v18167_v43  ;;  %6275 = vmatpush.msra.mxu1 %v6274_v3  ;;  %v18387_v5 = vand.u32 4294901760, %v13627_v49  ;;  %v6137_v3 = vld [vmem:[#allocation3 + $0xa] sm:$0xf]  ;;  %24175 = vst [vmem:[#allocation38_spill] sm:$0xff] %v18405_v15  ;;  %v23773_v2 = vand.u32 4294901760, %v18390_v46  ;;  %v18484_v61 = vsub.f32 %v13619_v0, %v18452_v57 }
 0x428   : > { %6340 = vmatpush.msra.mxu2 %v18257_v19  ;;  %6385 = vmatpush.msra.mxu3 %v18210_v29  ;;  %v6171_v1 = vsel %vm4675_vm4, %v6137_v3, 0 }
 0x429   : > { %6186 = vmatpush.msra.mxu0 %v18188_v38  ;;  %6281 = vmatpush.msra.mxu1 %v6280_v8  ;;  %v13623_v8 = vld [vmem:[%s23630_s5 + $0x258] sm:$0xff]  ;;  %v18409_v31 = vsub.f32 %v13627_v49, %v18387_v5  ;;  %v18424_v49 = vsub.f32 %v13625_v45, %v18396_v54  ;;  %v6577_v45 = vsub.f32 %v18390_v46, %v23773_v2  ;;  %v18441_v3 = vand.u32 4294901760, %v6171_v1 }
 0x42a   : > { %6343 = vmatpush.msra.mxu2 %v18269_v58  ;;  %6387 = vmatpush.msra.mxu3 %v18227_v18  ;;  %v6572_v2 = vand.u32 4294901760, %v6571_v4 }
 0x42b   : > { %6188 = vmatpush.msra.mxu0 %v18210_v29  ;;  %6287 = vmatpush.msra.mxu1 %v6286_v47  ;;  %v13621_v47 = vld [vmem:[%s23630_s5 + $0x248] sm:$0xff]  ;;  %v23780_v33 = vand.u32 4294901760, %v18409_v31  ;;  %v23782_v41 = vand.u32 4294901760, %v18424_v49  ;;  %v6578_v4 = vand.u32 4294901760, %v6577_v45 }
 0x42c   : > { %6346 = vmatpush.msra.mxu2 %v18284_v20  ;;  %6389 = vmatpush.msra.mxu3 %v18243_v35 }
 0x42d   : > { %6190 = vmatpush.msra.mxu0 %v18227_v18  ;;  %6293 = vmatpush.msra.mxu1 %v6292_v10  ;;  %v18417_v10 = vand.u32 4294901760, %v13623_v8  ;;  %v6583_v9 = vsub.f32 %v18409_v31, %v23780_v33  ;;  %v13611_v33 = vld [vmem:[%s23630_s5 + $0x1f8] sm:$0xff] }
 0x42e   : > { %6349 = vmatpush.msra.mxu2 %v18299_v34  ;;  %6391 = vmatpush.msra.mxu3 %v18259_v51 }
 0x42f   : > { %6192 = vmatpush.msra.mxu0 %v18243_v35  ;;  %6299 = vmatpush.msra.mxu1 %v6298_v42  ;;  %v18431_v42 = vand.u32 4294901760, %v13621_v47  ;;  %v18450_v12 = vsub.f32 %v13623_v8, %v18417_v10  ;;  %v18465_v8 = vand.u32 4294901760, %v13617_v40 }
 0x430   : > { %6352 = vmatpush.msra.mxu2 %v18311_v53  ;;  %6393 = vmatpush.msra.mxu3 %v18271_v24 }
 0x431   : > { %6194 = vmatpush.msra.mxu0 %v18259_v51  ;;  %6305 = vmatpush.msra.mxu1 %v6304_v44  ;;  %v18436_v44 = vand.u32 4294901760, %v18405_v15  ;;  %v23785_v45 = vand.u32 4294901760, %v18450_v12  ;;  %v18499_v0 = vsub.f32 %v13617_v40, %v18465_v8 }
 0x432   : > { %6355 = vmatpush.msra.mxu2 %v18324_v11  ;;  %6395 = vmatpush.msra.mxu3 %v18286_v56 }
 0x433   : > { %6307 = vmatmul.f32.vlgmr.msra.gmra.mxu1 %v18385_v13  ;;  %6196 = vmatpush.msra.mxu0 %v18271_v24  ;;  %v6206_v7 = vsub.f32 %v18405_v15, %v18436_v44  ;;  %v6595_v40 = vsub.f32 %v18450_v12, %v23785_v45 }
 0x434   : > { %6483 = vmatpush.msrb.mxu1 %v18118_v63  ;;  %6358 = vmatpush.msra.mxu2 %v18334_v25  ;;  %v18463_v63 = vsub.f32 %v13621_v47, %v18431_v42  ;;  %v13613_v47 = vld [vmem:[%s23630_s5 + $0x208] sm:$0xff] }
 0x435   : > { %6397 = vmatpush.msra.mxu3 %v18301_v62  ;;  %6361 = vmatmul.f32.vlgmr.msra.gmra.mxu2 %v18405_v15  ;;  %v18501_v50 = vand.u32 4294901760, %v13613_v47 }
 0x436   : > { %6485 = vmatpush.msrb.mxu1 %v18128_v6  ;;  %6522 = vmatpush.msrb.mxu2 %v18356_v37  ;;  %v18475_v6 = vsub.f32 %v6171_v1, %v18441_v3  ;;  %v6589_v1 = vsub.f32 %v18424_v49, %v23782_v41  ;;  %v6584_v41 = vand.u32 4294901760, %v6583_v9  ;;  %v18521_v9 = vand.u32 4294901760, %v13611_v33 }
 0x437   : > { %6198 = vmatpush.msra.mxu0 %v18286_v56  ;;  %6399 = vmatpush.msra.mxu3 %v18313_v32 }
 0x438   : > { %6403 = vmatmul.f32.vlgmr.msra.gmra.mxu3 %v18436_v44  ;;  %6487 = vmatpush.msrb.mxu1 %v18141_v26  ;;  %v23787_v26 = vand.u32 4294901760, %v18463_v63  ;;  %v18507_v48 = vand.u32 4294901760, %v18475_v6  ;;  %v6590_v55 = vand.u32 4294901760, %v6589_v1  ;;  %v6596_v1 = vand.u32 4294901760, %v6595_v40 }
 0x439   : > { %6524 = vmatpush.msrb.mxu2 %v18364_v39  ;;  %6573 = vmatpush.msrb.mxu3 %v6572_v2  ;;  %v18504_v2 = vand.u32 4294901760, %v6206_v7  ;;  %v18519_v7 = vsub.f32 %v13615_v16, %v18486_v14  ;;  %v18533_v16 = vsub.f32 %v13613_v47, %v18501_v50  ;;  %v24177_v47 = vand.u32 4294901760, %v18484_v61 }
 0x43a   : > { %6200 = vmatpush.msra.mxu0 %v18301_v62  ;;  %6489 = vmatpush.msrb.mxu1 %v18151_v27  ;;  %v13609_v27 = vld [vmem:[%s23630_s5 + $0x1e8] sm:$0xff]  ;;  %v6601_v45 = vsub.f32 %v18463_v63, %v23787_v26  ;;  %v6214_v17 = vsub.f32 %v18475_v6, %v18507_v48  ;;  %v18551_v15 = vsub.f32 %v13611_v33, %v18521_v9 }
 0x43b   : > { %6526 = vmatpush.msrb.mxu2 %v18387_v5  ;;  %6579 = vmatpush.msrb.mxu3 %v6578_v4  ;;  %v18535_v59 = vand.u32 4294901760, %v13609_v27  ;;  %v6607_v26 = vsub.f32 %v18484_v61, %v24177_v47 }
 0x43c   : > { %6202 = vmatpush.msra.mxu0 %v18313_v32  ;;  %6311 = vmatmul.f32.gmra.mxu1 %v18441_v3  ;;  %v6602_v40 = vand.u32 4294901760, %v6601_v45  ;;  %v18575_v45 = vand.u32 4294901760, %v6214_v17  ;;  %v24182_v17 = vand.u32 4294901760, %v18533_v16 }
 0x43d   : > { %6208 = vmatmul.f32.vlgmr.msra.gmra.mxu0 %v18504_v2  ;;  %6491 = vmatpush.msrb.mxu1 %v18167_v43  ;;  %v13607_v43 = vld [vmem:[%s23630_s5 + $0x1d8] sm:$0xff]  ;;  %v18567_v4 = vsub.f32 %v13609_v27, %v18535_v59  ;;  %v6630_v27 = vand.u32 4294901760, %v18551_v15 }
 0x43e   : > { %6418 = vmatpush.msrb.mxu0 %v6224_v28  ;;  %6528 = vmatpush.msrb.mxu2 %v18396_v54  ;;  %v24176_v28 = vand.u32 4294901760, %v18149_v23  ;;  %v18557_v23 = vand.u32 4294901760, %v13607_v43 }
 0x43f   : > { %6585 = vmatpush.msrb.mxu3 %v6584_v41  ;;  %6366 = vmatmul.f32.gmra.mxu2 %v18475_v6  ;;  %v13605_v41 = vld [vmem:[%s23630_s5 + $0x1c8] sm:$0xff] }
 0x440   : > { %6422 = vmatpush.msrb.mxu0 %v24176_v28  ;;  %6493 = vmatpush.msrb.mxu1 %v18188_v38  ;;  %v24178_v38 = vand.u32 4294901760, %v18163_v60  ;;  %v24179_v28 = vand.u32 4294901760, %v18499_v0  ;;  %v24180_v60 = vand.u32 4294901760, %v18177_v22 }
 0x441   : > { %6530 = vmatpush.msrb.mxu2 %v18417_v10  ;;  %6591 = vmatpush.msrb.mxu3 %v6590_v55  ;;  %v18571_v55 = vand.u32 4294901760, %v13605_v41 }
 0x442   : > { %6409 = vmatmul.f32.gmra.mxu3 %v18507_v48  ;;  %6426 = vmatpush.msrb.mxu0 %v24178_v38  ;;  %v6613_v33 = vsub.f32 %v18499_v0, %v24179_v28  ;;  %v6608_v38 = vand.u32 4294901760, %v6607_v26  ;;  %v24181_v28 = vand.u32 4294901760, %v18519_v7  ;;  %v6625_v26 = vsub.f32 %v18533_v16, %v24182_v17  ;;  %v18643_v17 = vpop.f32.mrf.mxu0 }
 0x443   : > { %6495 = vmatpush.msrb.mxu1 %v18210_v29  ;;  %6532 = vmatpush.msrb.mxu2 %v18431_v42  ;;  %v18584_v29 = vsub.f32 %v13607_v43, %v18557_v23 }
 0x444   : > { %6597 = vmatpush.msrb.mxu3 %v6596_v1  ;;  %6430 = vmatpush.msrb.mxu0 %v24180_v60  ;;  %v6619_v47 = vsub.f32 %v18519_v7, %v24181_v28  ;;  %v6614_v22 = vand.u32 4294901760, %v6613_v33  ;;  %v6636_v1 = vand.u32 4294901760, %v18567_v4  ;;  %v24183_v60 = vand.u32 4294901760, %v18196_v21 }
 0x445   : > { %6497 = vmatpush.msrb.mxu1 %v18227_v18  ;;  %6534 = vmatpush.msrb.mxu2 %v18452_v57  ;;  %v18595_v18 = vsub.f32 %v13605_v41, %v18571_v55  ;;  %v24184_v33 = vand.u32 4294901760, %v18219_v36  ;;  %v6642_v21 = vand.u32 4294901760, %v18584_v29 }
 0x446   : > { %6603 = vmatpush.msrb.mxu3 %v6602_v40  ;;  %6216 = vmatmul.f32.gmra.mxu0 %v18575_v45  ;;  %v6620_v43 = vand.u32 4294901760, %v6619_v47  ;;  %v6631_v40 = vsub.f32 %v18551_v15, %v6630_v27  ;;  %v6637_v41 = vsub.f32 %v18567_v4, %v6636_v1  ;;  %v24185_v47 = vand.u32 4294901760, %v18241_v52 }
 0x447   : > { %6434 = vmatpush.msrb.mxu0 %v24183_v60  ;;  %6499 = vmatpush.msrb.mxu1 %v18243_v35  ;;  %v6626_v35 = vand.u32 4294901760, %v6625_v26  ;;  %v6648_v36 = vand.u32 4294901760, %v18595_v18  ;;  %v6643_v28 = vsub.f32 %v18584_v29, %v6642_v21  ;;  %v24192_v26 = vand.u32 4294901760, %v18390_v46 }
 0x448   : > { %6536 = vmatpush.msrb.mxu2 %v18465_v8  ;;  %6609 = vmatpush.msrb.mxu3 %v6608_v38  ;;  %v24186_v38 = vand.u32 4294901760, %v18257_v19  ;;  %v6638_v52 = vand.u32 4294901760, %v6637_v41  ;;  %v24195_v60 = vand.u32 4294901760, %v18334_v25  ;;  %v24197_v25 = vand.u32 4294901760, %v18450_v12 }
 0x449   : > { %6438 = vmatpush.msrb.mxu0 %v24184_v33  ;;  %6501 = vmatpush.msrb.mxu1 %v18259_v51  ;;  %v6632_v51 = vand.u32 4294901760, %v6631_v40  ;;  %v6649_v19 = vsub.f32 %v18595_v18, %v6648_v36 }
 0x44a   : > { %6538 = vmatpush.msrb.mxu2 %v18486_v14  ;;  %6615 = vmatpush.msrb.mxu3 %v6614_v22  ;;  %v6644_v22 = vand.u32 4294901760, %v6643_v28 }
 0x44b   : > { %6442 = vmatpush.msrb.mxu0 %v24185_v47  ;;  %6503 = vmatpush.msrb.mxu1 %v18271_v24  ;;  %v24187_v24 = vand.u32 4294901760, %v18269_v58  ;;  %v24189_v58 = vand.u32 4294901760, %v18299_v34  ;;  %v18647_v34 = vpop.f32.mrf.mxu1 }
 0x44c   : > { %6540 = vmatpush.msrb.mxu2 %v18501_v50  ;;  %6621 = vmatpush.msrb.mxu3 %v6620_v43 }
 0x44d   : > { %6446 = vmatpush.msrb.mxu0 %v24186_v38  ;;  %6505 = vmatpush.msrb.mxu1 %v18286_v56  ;;  %v24188_v56 = vand.u32 4294901760, %v18284_v20  ;;  %v24190_v20 = vand.u32 4294901760, %v18377_v30  ;;  %v4882_v38 = vadd.f32 %v18647_v34, %v18643_v17 }
 0x44e   : > { %6542 = vmatpush.msrb.mxu2 %v18521_v9  ;;  %6627 = vmatpush.msrb.mxu3 %v6626_v35 }
 0x44f   : > { %6450 = vmatpush.msrb.mxu0 %v24187_v24  ;;  %6507 = vmatpush.msrb.mxu1 %v18301_v62  ;;  %v6650_v62 = vand.u32 4294901760, %v6649_v19 }
 0x450   : > { %6544 = vmatpush.msrb.mxu2 %v18535_v59  ;;  %6633 = vmatpush.msrb.mxu3 %v6632_v51 }
 0x451   : > { %6454 = vmatpush.msrb.mxu0 %v24188_v56  ;;  %6509 = vmatpush.msrb.mxu1 %v18313_v32  ;;  %v24191_v32 = vand.u32 4294901760, %v18311_v53  ;;  %v24194_v53 = vand.u32 4294901760, %v18409_v31 }
 0x452   : > { %6546 = vmatpush.msrb.mxu2 %v18557_v23  ;;  %6639 = vmatpush.msrb.mxu3 %v6638_v52 }
 0x453   : > { %6511 = vmatmul.f32.vlgmr.msrb.gmra.mxu1 %v18385_v13  ;;  %6458 = vmatpush.msrb.mxu0 %v24189_v58 }
 0x454   : > { %6719 = vmatpush.msra.mxu1 %v18356_v37  ;;  %6548 = vmatpush.msrb.mxu2 %v18571_v55 }
 0x455   : > { %6645 = vmatpush.msrb.mxu3 %v6644_v22  ;;  %6554 = vmatmul.f32.vlgmr.msrb.gmra.mxu2 %v18504_v2  ;;  %v24193_v2 = vand.u32 4294901760, %v18324_v11  ;;  %v24196_v11 = vand.u32 4294901760, %v18424_v49 }
 0x456   : > { %6721 = vmatpush.msra.mxu1 %v18364_v39  ;;  %6764 = vmatpush.msra.mxu2 %v24190_v20 }
 0x457   : > { %6462 = vmatpush.msrb.mxu0 %v24191_v32  ;;  %6651 = vmatpush.msrb.mxu3 %v6650_v62 }
 0x458   : > { %6653 = vmatmul.f32.vlgmr.msrb.gmra.mxu3 %v18385_v13  ;;  %6723 = vmatpush.msra.mxu1 %v18387_v5 }
 0x459   : > { %6768 = vmatpush.msra.mxu2 %v24192_v26  ;;  %6829 = vmatpush.msra.mxu3 %v18356_v37  ;;  %v18673_v37 = vpop.f32.mrf.mxu0 }
 0x45a   : > { %6466 = vmatpush.msrb.mxu0 %v24193_v2  ;;  %6725 = vmatpush.msra.mxu1 %v18396_v54 }
 0x45b   : > { %6772 = vmatpush.msra.mxu2 %v24194_v53  ;;  %6831 = vmatpush.msra.mxu3 %v18364_v39  ;;  %v18677_v39 = vpop.f32.mrf.mxu1 }
 0x45c   : > { %6470 = vmatpush.msrb.mxu0 %v24195_v60  ;;  %6515 = vmatmul.f32.gmra.mxu1 %v18441_v3  ;;  %v4886_v58 = vadd.f32 %v18677_v39, %v18673_v37 }
 0x45d   : > { %6472 = vmatmul.f32.vlgmr.msrb.gmra.mxu0 %v18385_v13  ;;  %6727 = vmatpush.msra.mxu1 %v18417_v10 }
 0x45e   : > { %6665 = vmatpush.msra.mxu0 %v18377_v30  ;;  %6776 = vmatpush.msra.mxu2 %v24196_v11  ;;  %v18679_v30 = vpop.f32.mrf.mxu2 }
 0x45f   : > { %6833 = vmatpush.msra.mxu3 %v18387_v5  ;;  %6562 = vmatmul.f32.gmra.mxu2 %v18575_v45  ;;  %v24198_v5 = vand.u32 4294901760, %v18463_v63  ;;  %v4936_v52 = vadd.f32 %v18679_v30, %v4882_v38 }
 0x460   : > { %6668 = vmatpush.msra.mxu0 %v18390_v46  ;;  %6729 = vmatpush.msra.mxu1 %v18431_v42  ;;  %v24199_v46 = vand.u32 4294901760, %v18484_v61 }
 0x461   : > { %6780 = vmatpush.msra.mxu2 %v24197_v25  ;;  %6835 = vmatpush.msra.mxu3 %v18396_v54  ;;  %v18691_v54 = vpop.f32.mrf.mxu3 }
 0x462   : > { %6657 = vmatmul.f32.gmra.mxu3 %v18441_v3  ;;  %6671 = vmatpush.msra.mxu0 %v18409_v31  ;;  %v24200_v31 = vand.u32 4294901760, %v18499_v0  ;;  %v4978_v22 = vadd.f32 %v18691_v54, %v4936_v52 }
 0x463   : > { %6731 = vmatpush.msra.mxu1 %v18452_v57  ;;  %6784 = vmatpush.msra.mxu2 %v24198_v5 }
 0x464   : > { %6837 = vmatpush.msra.mxu3 %v18417_v10  ;;  %6674 = vmatpush.msra.mxu0 %v18424_v49  ;;  %v24201_v10 = vand.u32 4294901760, %v18519_v7  ;;  %v24202_v49 = vand.u32 4294901760, %v18533_v16 }
 0x465   : > { %6733 = vmatpush.msra.mxu1 %v18465_v8  ;;  %6788 = vmatpush.msra.mxu2 %v24199_v46 }
 0x466   : > { %6839 = vmatpush.msra.mxu3 %v18431_v42  ;;  %6476 = vmatmul.f32.gmra.mxu0 %v18441_v3  ;;  %v18712_v42 = vpop.f32.mrf.mxu1 }
 0x467   : > { %6677 = vmatpush.msra.mxu0 %v18450_v12  ;;  %6735 = vmatpush.msra.mxu1 %v18486_v14  ;;  %v18705_v12 = vpop.f32.mrf.mxu0 }
 0x468   : > { %6792 = vmatpush.msra.mxu2 %v24200_v31  ;;  %6841 = vmatpush.msra.mxu3 %v18452_v57  ;;  %v18710_v57 = vpop.f32.mrf.mxu2  ;;  %v5047_v62 = vadd.f32 %v18705_v12, %v4978_v22 }
 0x469   : > { %6680 = vmatpush.msra.mxu0 %v18463_v63  ;;  %6737 = vmatpush.msra.mxu1 %v18501_v50  ;;  %v4941_v32 = vadd.f32 %v18710_v57, %v4886_v58 }
 0x46a   : > { %6796 = vmatpush.msra.mxu2 %v24201_v10  ;;  %6843 = vmatpush.msra.mxu3 %v18465_v8  ;;  %v5086_v34 = vadd.f32 %v18712_v42, %v5047_v62 }
 0x46b   : > { %6683 = vmatpush.msra.mxu0 %v18484_v61  ;;  %6739 = vmatpush.msra.mxu1 %v18521_v9 }
 0x46c   : > { %6800 = vmatpush.msra.mxu2 %v24202_v49  ;;  %6845 = vmatpush.msra.mxu3 %v18486_v14  ;;  %v18724_v14 = vpop.f32.mrf.mxu3 }
 0x46d   : > { %6686 = vmatpush.msra.mxu0 %v18499_v0  ;;  %6741 = vmatpush.msra.mxu1 %v18535_v59  ;;  %v4984_v60 = vadd.f32 %v18724_v14, %v4941_v32  ;;  %v18810_v14 = vld [vmem:[%s23631_s6] sm:$0x3] }
 0x46e   : > { %6804 = vmatpush.msra.mxu2 %v6630_v27  ;;  %6847 = vmatpush.msra.mxu3 %v18501_v50  ;;  %v5089_v61 = vpop.f32.mrf.mxu1 }
 0x46f   : > { %6689 = vmatpush.msra.mxu0 %v18519_v7  ;;  %6743 = vmatpush.msra.mxu1 %v18557_v23  ;;  %v5050_v50 = vpop.f32.mrf.mxu0 }
 0x470   : > { %6808 = vmatpush.msra.mxu2 %v6636_v1  ;;  %6849 = vmatpush.msra.mxu3 %v18521_v9  ;;  %v18739_v63 = vpop.f32.mrf.mxu2  ;;  %v5051_v11 = vadd.f32 %v5050_v50, %v4984_v60 }
 0x471   : > { %6692 = vmatpush.msra.mxu0 %v18533_v16  ;;  %6745 = vmatpush.msra.mxu1 %v18571_v55 }
 0x472   : > { %6812 = vmatpush.msra.mxu2 %v6642_v21  ;;  %6851 = vmatpush.msra.mxu3 %v18535_v59  ;;  %v24203_v59 = vld [vmem:[#allocation38_spill] sm:$0xff]  ;;  %v5090_v39 = vadd.f32 %v5089_v61, %v5051_v11 }
 0x473   : > { %6749 = vmatmul.f32.vlgmr.msra.gmra.mxu1 %v18436_v44  ;;  %6695 = vmatpush.msra.mxu0 %v18551_v15 }
 0x474   : > { %6816 = vmatpush.msra.mxu2 %v6648_v36  ;;  %6853 = vmatpush.msra.mxu3 %v18557_v23  ;;  %v18745_v15 = vpop.f32.mrf.mxu3 }
 0x475   : > { %6818 = vmatmul.f32.vlgmr.msra.gmra.mxu2 %v18385_v13  ;;  %6698 = vmatpush.msra.mxu0 %v18567_v4  ;;  %v5228_v50 = vadd.f32 %v18745_v15, %v18739_v63 }
 0x476   : > { %6855 = vmatpush.msra.mxu3 %v18571_v55  ;;  %v18754_v0 = vpop.f32.mrf.mxu1 }
 0x477   : > { %6857 = vmatmul.f32.vlgmr.msra.gmra.mxu3 %v18385_v13  ;;  %6701 = vmatpush.msra.mxu0 %v18584_v29  ;;  %v18750_v44 = vpop.f32.mrf.mxu0 }
 0x478   : > { %v18752_v8 = vpop.f32.mrf.mxu2 }
 0x479   : > { %6704 = vmatpush.msra.mxu0 %v18595_v18 }
 0x47a   : > { %6707 = vmatmul.f32.vlgmr.msra.gmra.mxu0 %v24203_v59 }
 0x47b   : > { %6755 = vmatmul.f32.gmra.mxu1 %v18507_v48 }
 0x47c   : > { %v18757_v13 = vpop.f32.mrf.mxu3 }
 0x47d   : > { %6822 = vmatmul.f32.gmra.mxu2 %v18441_v3  ;;  %v5232_v63 = vadd.f32 %v18757_v13, %v18752_v8 }
 0x47e   : > { %v18761_v7 = vpop.f32.mrf.mxu1 }
 0x47f   : > { %6861 = vmatmul.f32.gmra.mxu3 %v18441_v3  ;;  %v18759_v4 = vpop.f32.mrf.mxu0 }
 0x480   : > { %v18763_v9 = vpop.f32.mrf.mxu2  ;;  %v5287_v11 = vadd.f32 %v18759_v4, %v5232_v63 }
 0x482   : > { %6712 = vmatmul.f32.gmra.mxu0 %v18475_v6  ;;  %v5330_v13 = vadd.f32 %v18761_v7, %v5287_v11 }
 0x484   : > { %v18765_v48 = vpop.f32.mrf.mxu3 }
 0x486   : > { %v5579_v3 = vpop.f32.mrf.mxu1 }
 0x487   : > { %v5480_v16 = vpop.f32.mrf.mxu0 }
 0x488   : > { %v18767_v23 = vpop.f32.mrf.mxu2  ;;  %v5481_v2 = vadd.f32 %v5480_v16, %v5086_v34 }
 0x48a   : > { %v5580_v25 = vadd.f32 %v5579_v3, %v5481_v2 }
 0x48c   : > { %v18769_v55 = vpop.f32.mrf.mxu3 }
 0x48e   : > { %v5583_v27 = vpop.f32.mrf.mxu1 }
 0x48f   : > { %v5488_v45 = vpop.f32.mrf.mxu0 }
 0x490   : > { %v5633_v29 = vpop.f32.mrf.mxu2  ;;  %v5489_v10 = vadd.f32 %v5488_v45, %v5090_v39  ;;  %v5282_v45 = vadd.f32 %v18750_v44, %v5228_v50 }
 0x491   : > { %v5634_v46 = vadd.f32 %v5633_v29, %v5580_v25 }
 0x492   : > { %v5584_v42 = vadd.f32 %v5583_v27, %v5489_v10 }
 0x494   : > { %v5675_v6 = vpop.f32.mrf.mxu3 }
 0x495   : > { %v5676_v49 = vadd.f32 %v5675_v6, %v5634_v46 }
 0x496   : > { %v5783_v18 = vpop.f32.mrf.mxu1 }
 0x497   : > { %v5744_v1 = vpop.f32.mrf.mxu0 }
 0x498   : > { %v5638_v43 = vpop.f32.mrf.mxu2  ;;  %v5745_v59 = vadd.f32 %v5744_v1, %v5676_v49  ;;  %v6871_v1 = vperm.slane %v18810_v14, 0 }
 0x499   : > { %v5639_v29 = vadd.f32 %v5638_v43, %v5584_v42 }
 0x49a   : > { %v5784_v6 = vadd.f32 %v5783_v18, %v5745_v59 }
 0x49c   : > { %v5681_v40 = vpop.f32.mrf.mxu3 }
 0x49d   : > { %v5682_v32 = vadd.f32 %v5681_v40, %v5639_v29 }
 0x49e   : > { %v18771_v21 = vpop.f32.mrf.mxu1 }
 0x49f   : > { %v5748_v33 = vpop.f32.mrf.mxu0 }
 0x4a0   : > { %v18773_v35 = vpop.f32.mrf.mxu2  ;;  %v5749_v2 = vadd.f32 %v5748_v33, %v5682_v32 }
 0x4a2   : > { %v5788_v40 = vadd.f32 %v18771_v21, %v5749_v2  ;;  %v5397_v21 = vadd.f32 %v18767_v23, %v5330_v13 }
 0x4a4   : > { %v18775_v41 = vpop.f32.mrf.mxu3 }
 0x4a6   : > { %v18779_v36 = vpop.f32.mrf.mxu1 }
 0x4a7   : > { %v18777_v47 = vpop.f32.mrf.mxu0 }
 0x4a8   : > { %v18781_v51 = vpop.f32.mrf.mxu2 }
 0x4ac   : > { %v18785_v28 = vpop.f32.mrf.mxu3 }
 0x4ae   : > { %v18790_v19 = vpop.f32.mrf.mxu1 }
 0x4af   : > { %v18788_v24 = vpop.f32.mrf.mxu0 }
 0x4b0   : > { %v18792_v56 = vpop.f32.mrf.mxu2 }
 0x4b4   : > { %v18798_v20 = vpop.f32.mrf.mxu3 }
 0x4b6   : > { %v6308_v26 = vpop.f32.mrf.mxu1 }
 0x4b8   : > { %v18802_v53 = vpop.f32.mrf.mxu2 }
 0x4ba   : > { %v6209_v17 = vpop.f32.mrf.mxu0 }
 0x4bb   : > { %v6309_v37 = vadd.f32 %v6308_v26, %v6209_v17  ;;  %v5324_v17 = vadd.f32 %v18754_v0, %v5282_v45  ;;  %v6914_v0 = vld [vmem:[%s23632_s7] sm:$0xff] }
 0x4bc   : > { %v18805_v30 = vpop.f32.mrf.mxu3 }
 0x4bd   : > { %v5393_v18 = vadd.f32 %v18763_v9, %v5324_v17  ;;  %v6917_v9 = vsel %vm6915_vm6, %v6914_v0, 0 }
 0x4be   : > { %v6312_v54 = vpop.f32.mrf.mxu1 }
 0x4bf   : > { %v5432_v8 = vadd.f32 %v18765_v48, %v5393_v18  ;;  %v5436_v48 = vadd.f32 %v18769_v55, %v5397_v21 }
 0x4c0   : > { %v6362_v31 = vpop.f32.mrf.mxu2 }
 0x4c1   : > { %v6363_v12 = vadd.f32 %v6362_v31, %v6309_v37  ;;  %v5827_v4 = vadd.f32 %v18773_v35, %v5432_v8  ;;  %v18828_v31 = vand.u32 4294901760, %v6917_v9 }
 0x4c3   : > { %v6217_v5 = vpop.f32.mrf.mxu0  ;;  %v5926_v10 = vadd.f32 %v18775_v41, %v5827_v4 }
 0x4c4   : > { %v6404_v57 = vpop.f32.mrf.mxu3  ;;  %v6313_v38 = vadd.f32 %v6312_v54, %v6217_v5 }
 0x4c5   : > { %v6405_v16 = vadd.f32 %v6404_v57, %v6363_v12  ;;  %v18833_v12 = vsub.f32 %v6917_v9, %v18828_v31  ;;  %v5980_v7 = vadd.f32 %v18777_v47, %v5926_v10  ;;  %v5835_v57 = vadd.f32 %v18781_v51, %v5436_v48  ;;  %v7258_v10 = vld [vmem:[%s23633_s8 + $0x70] sm:$0xff]  ;;  %v7257_v48 = vld [vmem:[%s23633_s8 + $0x68] sm:$0xff] }
 0x4c7   : > { %v18839_v59 = vand.u32 4294901760, %v18833_v12  ;;  %v6022_v23 = vadd.f32 %v18779_v36, %v5980_v7  ;;  %v5930_v50 = vadd.f32 %v18785_v28, %v5835_v57  ;;  %v7256_v57 = vld [vmem:[%s23633_s8 + $0x60] sm:$0xff] }
 0x4c8   : > { %v6367_v22 = vpop.f32.mrf.mxu2 }
 0x4c9   : > { %v6368_v58 = vadd.f32 %v6367_v22, %v6313_v38  ;;  %v6947_v45 = vsub.f32 %v18833_v12, %v18839_v59 }
 0x4cc   : > { %v6410_v34 = vpop.f32.mrf.mxu3 }
 0x4cd   : > { %v6411_v60 = vadd.f32 %v6410_v34, %v6368_v58  ;;  %v18849_v34 = vand.u32 4294901760, %v6947_v45  ;;  %v7253_v45 = vld [vmem:[%s23633_s8 + $0x48] sm:$0xff] }
 0x4d0   : > { %v6512_v61 = vpop.f32.mrf.mxu1 }
 0x4d8   : > { %v6555_v33 = vpop.f32.mrf.mxu2 }
 0x4d9   : > { %v6516_v25 = vpop.f32.mrf.mxu1 }
 0x4da   : > { %v6473_v52 = vpop.f32.mrf.mxu0 }
 0x4db   : > { %v6474_v3 = vadd.f32 %v6473_v52, %v6405_v16  ;;  %v6654_v5 = vpop.f32.mrf.mxu3 }
 0x4dc   : > { %v6655_v38 = vadd.f32 %v6654_v5, %v6555_v33 }
 0x4dd   : > { %v6513_v27 = vadd.f32 %v6512_v61, %v6474_v3 }
 0x4df   : > { %v6865_v62 = vadd.f32 %v6513_v27, %v5784_v6  ;;  %v6091_v6 = vadd.f32 %v18792_v56, %v6022_v23  ;;  %v5985_v27 = vadd.f32 %v18788_v24, %v5930_v50  ;;  %v6872_v24 = vperm.slane %v18810_v14, 1  ;;  %v7254_v50 = vld [vmem:[%s23633_s8 + $0x50] sm:$0xff] }
 0x4e1   : > { %v6875_v26 = vadd.f32 %v6871_v1, %v6865_v62  ;;  %v6028_v56 = vadd.f32 %v18790_v19, %v5985_v27 }
 0x4e2   : > { %v6563_v49 = vpop.f32.mrf.mxu2 }
 0x4e3   : > { %v6879_v15 = vmax.f32 %v6875_v26, 0.0  ;;  %v6477_v43 = vpop.f32.mrf.mxu0  ;;  %v6130_v26 = vadd.f32 %v18798_v20, %v6091_v6  ;;  %v6095_v19 = vadd.f32 %v18802_v53, %v6028_v56 }
 0x4e4   : > { %v6478_v44 = vadd.f32 %v6477_v43, %v6411_v60 }
 0x4e5   : > { %6883 = vst [vmem:[#allocation2] sm:$0xff] %v6879_v15  ;;  %v6658_v42 = vpop.f32.mrf.mxu3 }
 0x4e6   : > { %v6517_v37 = vadd.f32 %v6516_v25, %v6478_v44  ;;  %v6659_v63 = vadd.f32 %v6658_v42, %v6563_v49  ;;  %v18874_v49 = vand.u32 4294901760, %v7258_v10  ;;  %v18879_v42 = vand.u32 4294901760, %v7257_v48 }
 0x4e8   : > { %v6867_v39 = vadd.f32 %v6517_v37, %v5788_v40 }
 0x4ea   : > { %v6877_v46 = vadd.f32 %v6871_v1, %v6867_v39 }
 0x4ec   : > { %v6881_v54 = vmax.f32 %v6877_v46, 0.0  ;;  %v6892_v35 = vld [vmem:[#allocation2] sm:$0xfe]  ;;  %v6134_v46 = vadd.f32 %v18805_v30, %v6095_v19  ;;  %v7259_v30 = vld [vmem:[%s23633_s8 + $0x78] sm:$0xff]  ;;  %v7250_v19 = vld [vmem:[%s23633_s8 + $0x30] sm:$0xff] }
 0x4ed   : > { %v6900_v52 = vrot.slane %v6892_v35, 1  ;;  %v18872_v7 = vand.u32 4294901760, %v7259_v30 }
 0x4ee   : > { %6885 = vst [vmem:[#allocation2 + $0x10] sm:$0xf] %v6881_v54 }
 0x4ef   : > { %v18882_v23 = vsub.f32 %v7259_v30, %v18872_v7  ;;  %v7248_v30 = vld [vmem:[%s23633_s8 + $0x20] sm:$0xff] }
 0x4f0   : > { %v6750_v61 = vpop.f32.mrf.mxu1 }
 0x4f5   : > { %v6894_v16 = vld [vmem:[#allocation2 + $0x10] sm:$0xf] }
 0x4f6   : > { %v6901_v41 = vrot.slane %v6894_v16, 1  ;;  %v6890_v3 = vld [vmem:[#allocation2 + $0x10] sm:$0x7]  ;;  %v7255_v16 = vld [vmem:[%s23633_s8 + $0x58] sm:$0xff] }
 0x4f7   : > { %v6708_v55 = vpop.f32.mrf.mxu0 }
 0x4f8   : > { %v6709_v47 = vadd.f32 %v6708_v55, %v6655_v38  ;;  %v6912_v29 = vmax.f32 %v6890_v3, %v6901_v41  ;;  %v6902_v51 = vsel %vm2894_vm2, %v6900_v52, %v6901_v41  ;;  %v6819_v36 = vpop.f32.mrf.mxu2  ;;  %v6756_v20 = vpop.f32.mrf.mxu1  ;;  %v18887_v38 = vand.u32 4294901760, %v7256_v57 }
 0x4f9   : > { %v6910_v22 = vmax.f32 %v6879_v15, %v6902_v51  ;;  %v18890_v52 = vsub.f32 %v7258_v10, %v18874_v49  ;;  %v18896_v3 = vsub.f32 %v7257_v48, %v18879_v42  ;;  %v7314_v51 = vand.u32 4294901760, %v18882_v23 }
 0x4fa   : > { %v6751_v1 = vadd.f32 %v6750_v61, %v6709_v47  ;;  %v6921_v28 = vsel %vm6919_vm7, %v6912_v29, 0  ;;  %v6858_v58 = vpop.f32.mrf.mxu3  ;;  %v18898_v47 = vand.u32 4294901760, %v7255_v16  ;;  %v18906_v27 = vsub.f32 %v7256_v57, %v18887_v38 }
 0x4fb   : > { %v6940_v62 = vand.u32 4294901760, %v6921_v28  ;;  %v6942_v32 = vand.u32 4294901760, %v6910_v22 }
 0x4fc   : > { %v6820_v17 = vadd.f32 %v6819_v36, %v6751_v1  ;;  %v18908_v1 = vand.u32 4294901760, %v7254_v50 }
 0x4fd   : > { %6941 = vmatpush.msrb.mxu0 %v6940_v62  ;;  %7025 = vmatpush.msrb.mxu3 %v6940_v62  ;;  %v6968_v2 = vsub.f32 %v6921_v28, %v6940_v62  ;;  %v6974_v60 = vsub.f32 %v6910_v22, %v6942_v32 }
 0x4fe   : > { %v6859_v15 = vadd.f32 %v6858_v58, %v6820_v17  ;;  %v7320_v58 = vand.u32 4294901760, %v18890_v52  ;;  %v7326_v17 = vand.u32 4294901760, %v18896_v3 }
 0x4ff   : > { %v6713_v43 = vpop.f32.mrf.mxu0  ;;  %6943 = vmatpush.msrb.mxu0 %v6942_v32  ;;  %7000 = vmatpush.msrb.mxu2 %v6968_v2  ;;  %v6969_v44 = vand.u32 4294901760, %v6968_v2  ;;  %v6975_v18 = vand.u32 4294901760, %v6974_v60 }
 0x500   : > { %v6866_v11 = vadd.f32 %v6859_v15, %v6130_v26  ;;  %v6714_v25 = vadd.f32 %v6713_v43, %v6659_v63  ;;  %7027 = vmatpush.msrb.mxu3 %v6942_v32  ;;  %6949 = vmatmul.f32.vlgmr.msrb.gmra.mxu0 %v18849_v34  ;;  %v6823_v14 = vpop.f32.mrf.mxu2  ;;  %v18917_v26 = vsub.f32 %v7255_v16, %v18898_v47  ;;  %v7332_v15 = vand.u32 4294901760, %v18906_v27  ;;  %v7247_v16 = vld [vmem:[%s23633_s8 + $0x18] sm:$0xff] }
 0x501   : > { %7003 = vmatpush.msrb.mxu2 %v6974_v60  ;;  %7052 = vmatpush.msra.mxu0 %v6969_v44  ;;  %v6970_v40 = vsub.f32 %v6968_v2, %v6969_v44  ;;  %v6976_v37 = vsub.f32 %v6974_v60, %v6975_v18  ;;  %v18919_v2 = vand.u32 4294901760, %v7253_v45  ;;  %v7315_v63 = vsub.f32 %v18882_v23, %v7314_v51  ;;  %v7251_v44 = vld [vmem:[%s23633_s8 + $0x38] sm:$0xff] }
 0x502   : > { %v6876_v0 = vadd.f32 %v6872_v24, %v6866_v11  ;;  %v6757_v33 = vadd.f32 %v6756_v20, %v6714_v25  ;;  %7006 = vmatmul.f32.vlgmr.msrb.gmra.mxu2 %v18833_v12  ;;  %7031 = vmatmul.f32.vlgmr.msrb.gmra.mxu3 %v18839_v59  ;;  %v6862_v5 = vpop.f32.mrf.mxu3  ;;  %v7321_v25 = vsub.f32 %v18890_v52, %v7320_v58 }
 0x503   : > { %7056 = vmatpush.msra.mxu0 %v6975_v18  ;;  %v6971_v39 = vand.u32 4294901760, %v6970_v40  ;;  %v6977_v9 = vand.u32 4294901760, %v6976_v37  ;;  %v7327_v20 = vsub.f32 %v18896_v3, %v7326_v17  ;;  %v7338_v40 = vand.u32 4294901760, %v18917_v26 }
 0x504   : > { %v6880_v8 = vmax.f32 %v6876_v0, 0.0  ;;  %v6824_v13 = vadd.f32 %v6823_v14, %v6757_v33  ;;  %v18949_v37 = vsub.f32 %v7253_v45, %v18919_v2  ;;  %v7316_v14 = vand.u32 4294901760, %v7315_v63  ;;  %v7246_v45 = vld [vmem:[%s23633_s8 + $0x10] sm:$0xff] }
 0x505   : > { %6972 = vmatpush.msrb.mxu1 %v6971_v39  ;;  %v18955_v39 = vand.u32 4294901760, %v7251_v44  ;;  %v7328_v48 = vand.u32 4294901760, %v7327_v20  ;;  %v7244_v20 = vld [vmem:[%s23633_s8] sm:$0xff] }
 0x506   : > { %6884 = vst.msk [vmem:[#allocation2 + $0x8] sm:$0xff] %vm2872_vm3, %v6880_v8  ;;  %v6863_v4 = vadd.f32 %v6862_v5, %v6824_v13  ;;  %v7333_v8 = vsub.f32 %v18906_v27, %v7332_v15 }
 0x507   : > { %6978 = vmatpush.msrb.mxu1 %v6977_v9  ;;  %v7249_v9 = vld [vmem:[%s23633_s8 + $0x28] sm:$0xff]  ;;  %v18981_v57 = vsub.f32 %v7251_v44, %v18955_v39 }
 0x508   : > { %v6868_v53 = vadd.f32 %v6863_v4, %v6134_v46  ;;  %6980 = vmatmul.f32.vlgmr.msrb.gmra.mxu1 %v18828_v31  ;;  %7058 = vmatmul.f32.vlgmr.msra.gmra.mxu0 %v18828_v31 }
 0x509   : > { %7077 = vmatpush.msra.mxu1 %v6940_v62  ;;  %v7252_v62 = vld [vmem:[%s23633_s8 + $0x40] sm:$0xff] }
 0x50a   : > { %v6878_v54 = vadd.f32 %v6872_v24, %v6868_v53  ;;  %v18930_v24 = vsub.f32 %v7254_v50, %v18908_v1  ;;  %v18932_v43 = vand.u32 4294901760, %v7252_v62  ;;  %v7322_v53 = vand.u32 4294901760, %v7321_v25 }
 0x50b   : > { %7079 = vmatpush.msra.mxu1 %v6942_v32 }
 0x50c   : > { %v6882_v21 = vmax.f32 %v6878_v54, 0.0  ;;  %v7344_v13 = vand.u32 4294901760, %v18930_v24  ;;  %v18964_v5 = vsub.f32 %v7252_v62, %v18932_v43  ;;  %v18969_v54 = vand.u32 4294901760, %v7250_v19 }
 0x50d   : > { %v6893_v35 = vld [vmem:[#allocation2 + $0x8] sm:$0xfe] }
 0x50e   : > { %6887 = vst.msk [vmem:[#allocation2 + $0x18] sm:$0xf] %vm6886_vm8, %v6882_v21  ;;  %v6903_v55 = vrot.slane %v6893_v35, 1  ;;  %v6889_v36 = vld [vmem:[#allocation2 + $0x8] sm:$0xff]  ;;  %v7350_v21 = vand.u32 4294901760, %v18949_v37  ;;  %v7356_v35 = vand.u32 4294901760, %v18964_v5  ;;  %v7345_v50 = vsub.f32 %v18930_v24, %v7344_v13 }
 0x510   : > { %7081 = vmatmul.f32.vlgmr.msra.gmra.mxu1 %v18828_v31  ;;  %v7357_v62 = vsub.f32 %v18964_v5, %v7356_v35  ;;  %v7346_v63 = vand.u32 4294901760, %v7345_v50 }
 0x515   : > { %v6895_v41 = vld [vmem:[#allocation2 + $0x18] sm:$0xf] }
 0x516   : > { %v6904_v61 = vrot.slane %v6895_v41, 1  ;;  %v6891_v29 = vld [vmem:[#allocation2 + $0x18] sm:$0x7] }
 0x518   : > { %v6913_v6 = vmax.f32 %v6891_v29, %v6904_v61  ;;  %v6905_v22 = vsel %vm2894_vm2, %v6903_v55, %v6904_v61  ;;  %v18995_v61 = vsub.f32 %v7250_v19, %v18969_v54  ;;  %v18997_v55 = vand.u32 4294901760, %v7248_v30 }
 0x519   : > { %v6911_v28 = vmax.f32 %v6889_v36, %v6905_v22  ;;  %v7351_v29 = vsub.f32 %v18949_v37, %v7350_v21  ;;  %v7362_v36 = vand.u32 4294901760, %v18981_v57 }
 0x51a   : > { %v6924_v32 = vsel %vm6919_vm7, %v6913_v6, 0  ;;  %v7368_v44 = vand.u32 4294901760, %v18995_v61 }
 0x51b   : > { %v18921_v60 = vand.u32 4294901760, %v6924_v32  ;;  %v18923_v56 = vand.u32 4294901760, %v6911_v28  ;;  %v7352_v25 = vand.u32 4294901760, %v7351_v29 }
 0x51d   : > { %7100 = vmatpush.msra.mxu2 %v18921_v60  ;;  %7184 = vmatpush.msrb.mxu1 %v18921_v60  ;;  %v7127_v18 = vsub.f32 %v6924_v32, %v18921_v60  ;;  %v7133_v11 = vsub.f32 %v6911_v28, %v18923_v56  ;;  %v19011_v28 = vand.u32 4294901760, %v7247_v16  ;;  %v7245_v32 = vld [vmem:[%s23633_s8 + $0x8] sm:$0xff] }
 0x51f   : > { %7102 = vmatpush.msra.mxu2 %v18923_v56  ;;  %7159 = vmatpush.msrb.mxu0 %v7127_v18  ;;  %v7128_v0 = vand.u32 4294901760, %v7127_v18  ;;  %v7134_v33 = vand.u32 4294901760, %v7133_v11 }
 0x520   : > { %7186 = vmatpush.msrb.mxu1 %v18923_v56  ;;  %7108 = vmatmul.f32.vlgmr.msra.gmra.mxu2 %v18849_v34  ;;  %v7339_v34 = vsub.f32 %v18917_v26, %v7338_v40 }
 0x521   : > { %7162 = vmatpush.msrb.mxu0 %v7133_v11  ;;  %7211 = vmatpush.msrb.mxu2 %v7128_v0  ;;  %v7129_v46 = vsub.f32 %v7127_v18, %v7128_v0  ;;  %v7135_v4 = vsub.f32 %v7133_v11, %v7134_v33  ;;  %v19024_v18 = vsub.f32 %v7248_v30, %v18997_v55  ;;  %v19026_v11 = vand.u32 4294901760, %v7246_v45 }
 0x522   : > { %7165 = vmatmul.f32.vlgmr.msrb.gmra.mxu0 %v18833_v12  ;;  %7190 = vmatmul.f32.vlgmr.msrb.gmra.mxu1 %v18839_v59  ;;  %v18983_v12 = vand.u32 4294901760, %v7249_v9  ;;  %v7334_v59 = vand.u32 4294901760, %v7333_v8  ;;  %v7340_v6 = vand.u32 4294901760, %v7339_v34  ;;  %v19039_v0 = vsub.f32 %v7247_v16, %v19011_v28 }
 0x523   : > { %7215 = vmatpush.msrb.mxu2 %v7134_v33  ;;  %v7130_v10 = vand.u32 4294901760, %v7129_v46  ;;  %7317 = vmatpush.msra.mxu1 %v7316_v14  ;;  %v7136_v41 = vand.u32 4294901760, %v7135_v4  ;;  %v19041_v33 = vand.u32 4294901760, %v7245_v32  ;;  %v7358_v14 = vand.u32 4294901760, %v7357_v62 }
 0x524   : > { %7272 = vmatpush.msra.mxu0 %v18872_v7  ;;  %v19009_v22 = vsub.f32 %v7249_v9, %v18983_v12  ;;  %v7380_v8 = vand.u32 4294901760, %v19024_v18  ;;  %v19050_v9 = vsub.f32 %v7246_v45, %v19026_v11  ;;  %v19052_v46 = vand.u32 4294901760, %v7244_v20 }
 0x525   : > { %7415 = vmatpush.msra.mxu2 %v18882_v23  ;;  %7131 = vmatpush.msra.mxu3 %v7130_v10  ;;  %v7386_v34 = vand.u32 4294901760, %v19039_v0  ;;  %v19062_v30 = vsub.f32 %v7245_v32, %v19041_v33 }
 0x526   : > { %7323 = vmatpush.msra.mxu1 %v7322_v53  ;;  %7274 = vmatpush.msra.mxu0 %v18874_v49  ;;  %v7374_v19 = vand.u32 4294901760, %v19009_v22  ;;  %v19072_v16 = vsub.f32 %v7244_v20, %v19052_v46 }
 0x527   : > { %7418 = vmatpush.msra.mxu2 %v18890_v52  ;;  %7137 = vmatpush.msra.mxu3 %v7136_v41  ;;  %v7387_v41 = vsub.f32 %v19039_v0, %v7386_v34  ;;  %v7398_v50 = vand.u32 4294901760, %v19062_v30  ;;  %v7265_v52 = vld [vmem:[%s23633_s8 + $0xa8] sm:$0xff] }
 0x528   : > { %7329 = vmatpush.msra.mxu1 %v7328_v48  ;;  %7139 = vmatmul.f32.vlgmr.msra.gmra.mxu3 %v18828_v31  ;;  %v7375_v53 = vsub.f32 %v19009_v22, %v7374_v19  ;;  %v7381_v48 = vsub.f32 %v19024_v18, %v7380_v8 }
 0x529   : > { %7217 = vmatmul.f32.vlgmr.msrb.gmra.mxu2 %v18828_v31  ;;  %7236 = vmatpush.msrb.mxu3 %v18921_v60  ;;  %v7363_v60 = vsub.f32 %v18981_v57, %v7362_v36  ;;  %v7388_v62 = vand.u32 4294901760, %v7387_v41  ;;  %v7399_v32 = vsub.f32 %v19062_v30, %v7398_v50 }
 0x52a   : > { %7335 = vmatpush.msra.mxu1 %v7334_v59  ;;  %7276 = vmatpush.msra.mxu0 %v18879_v42  ;;  %v7392_v59 = vand.u32 4294901760, %v19050_v9  ;;  %v7382_v29 = vand.u32 4294901760, %v7381_v48 }
 0x52b   : > { %7421 = vmatpush.msra.mxu2 %v18896_v3  ;;  %7238 = vmatpush.msrb.mxu3 %v18923_v56  ;;  %v7369_v56 = vsub.f32 %v18995_v61, %v7368_v44  ;;  %v7364_v4 = vand.u32 4294901760, %v7363_v60  ;;  %v7400_v20 = vand.u32 4294901760, %v7399_v32  ;;  %v19188_v3 = vand.u32 4294901760, %v7265_v52 }
 0x52c   : > { %7341 = vmatpush.msra.mxu1 %v7340_v6  ;;  %7278 = vmatpush.msra.mxu0 %v18887_v38  ;;  %v7393_v45 = vsub.f32 %v19050_v9, %v7392_v59  ;;  %v7404_v6 = vand.u32 4294901760, %v19072_v16 }
 0x52d   : > { %7468 = vmatpush.msra.mxu3 %v18872_v7  ;;  %7424 = vmatpush.msra.mxu2 %v18906_v27  ;;  %v7370_v10 = vand.u32 4294901760, %v7369_v56  ;;  %v7264_v27 = vld [vmem:[%s23633_s8 + $0xa0] sm:$0xff] }
 0x52e   : > { %7347 = vmatpush.msra.mxu1 %v7346_v63  ;;  %7280 = vmatpush.msra.mxu0 %v18898_v47  ;;  %v7394_v63 = vand.u32 4294901760, %v7393_v45 }
 0x52f   : > { %7470 = vmatpush.msra.mxu3 %v18874_v49  ;;  %7427 = vmatpush.msra.mxu2 %v18917_v26  ;;  %v19205_v26 = vsub.f32 %v7265_v52, %v19188_v3  ;;  %v13644_v52 = vld [vmem:[%s23633_s8 + $0x120] sm:$0xff] }
 0x530   : > { %7353 = vmatpush.msra.mxu1 %v7352_v25  ;;  %7240 = vmatmul.f32.vlgmr.msrb.gmra.mxu3 %v18828_v31  ;;  %v7376_v31 = vand.u32 4294901760, %v7375_v53  ;;  %v7405_v25 = vsub.f32 %v19072_v16, %v7404_v6 }
 0x531   : > { %7282 = vmatpush.msra.mxu0 %v18908_v1  ;;  %7472 = vmatpush.msra.mxu3 %v18879_v42 }
 0x532   : > { %7359 = vmatpush.msra.mxu1 %v7358_v14  ;;  %7430 = vmatpush.msra.mxu2 %v18930_v24  ;;  %v7406_v60 = vand.u32 4294901760, %v7405_v25 }
 0x533   : > { %7284 = vmatpush.msra.mxu0 %v18919_v2  ;;  %7474 = vmatpush.msra.mxu3 %v18887_v38 }
 0x534   : > { %7365 = vmatpush.msra.mxu1 %v7364_v4  ;;  %7433 = vmatpush.msra.mxu2 %v18949_v37  ;;  %v7262_v37 = vld [vmem:[%s23633_s8 + $0x90] sm:$0xff] }
 0x535   : > { %7286 = vmatpush.msra.mxu0 %v18932_v43  ;;  %7476 = vmatpush.msra.mxu3 %v18898_v47 }
 0x536   : > { %7371 = vmatpush.msra.mxu1 %v7370_v10  ;;  %7436 = vmatpush.msra.mxu2 %v18964_v5  ;;  %v19224_v5 = vand.u32 4294901760, %v7262_v37 }
 0x537   : > { %7288 = vmatpush.msra.mxu0 %v18955_v39  ;;  %7478 = vmatpush.msra.mxu3 %v18908_v1 }
 0x538   : > { %7377 = vmatpush.msra.mxu1 %v7376_v31  ;;  %7439 = vmatpush.msra.mxu2 %v18981_v57  ;;  %v7261_v57 = vld [vmem:[%s23633_s8 + $0x88] sm:$0xff] }
 0x539   : > { %7290 = vmatpush.msra.mxu0 %v18969_v54  ;;  %7480 = vmatpush.msra.mxu3 %v18919_v2 }
 0x53a   : > { %7383 = vmatpush.msra.mxu1 %v7382_v29  ;;  %7442 = vmatpush.msra.mxu2 %v18995_v61  ;;  %v19237_v61 = vand.u32 4294901760, %v7261_v57 }
 0x53b   : > { %7292 = vmatpush.msra.mxu0 %v18983_v12  ;;  %7482 = vmatpush.msra.mxu3 %v18932_v43 }
 0x53c   : > { %7389 = vmatpush.msra.mxu1 %v7388_v62  ;;  %7445 = vmatpush.msra.mxu2 %v19009_v22 }
 0x53d   : > { %7294 = vmatpush.msra.mxu0 %v18997_v55  ;;  %7484 = vmatpush.msra.mxu3 %v18955_v39 }
 0x53e   : > { %7395 = vmatpush.msra.mxu1 %v7394_v63  ;;  %7448 = vmatpush.msra.mxu2 %v19024_v18 }
 0x53f   : > { %7296 = vmatpush.msra.mxu0 %v19011_v28  ;;  %7486 = vmatpush.msra.mxu3 %v18969_v54 }
 0x540   : > { %7401 = vmatpush.msra.mxu1 %v7400_v20  ;;  %7451 = vmatpush.msra.mxu2 %v19039_v0  ;;  %v19257_v0 = vsub.f32 %v7261_v57, %v19237_v61 }
 0x541   : > { %7298 = vmatpush.msra.mxu0 %v19026_v11  ;;  %7488 = vmatpush.msra.mxu3 %v18983_v12 }
 0x542   : > { %7407 = vmatpush.msra.mxu1 %v7406_v60  ;;  %7454 = vmatpush.msra.mxu2 %v19050_v9 }
 0x543   : > { %7300 = vmatpush.msra.mxu0 %v19041_v33  ;;  %7490 = vmatpush.msra.mxu3 %v18997_v55 }
 0x544   : > { %7576 = vmatpush.msrb.mxu1 %v18872_v7  ;;  %7457 = vmatpush.msra.mxu2 %v19062_v30  ;;  %v7267_v7 = vld [vmem:[%s23633_s8 + $0xb8] sm:$0xff] }
 0x545   : > { %7302 = vmatpush.msra.mxu0 %v19052_v46  ;;  %7492 = vmatpush.msra.mxu3 %v19011_v28 }
 0x546   : > { %7578 = vmatpush.msrb.mxu1 %v18874_v49  ;;  %7460 = vmatpush.msra.mxu2 %v19072_v16  ;;  %v19174_v49 = vand.u32 4294901760, %v7267_v7 }
 0x547   : > { %7509 = vmatpush.msrb.mxu0 %v7314_v51  ;;  %7494 = vmatpush.msra.mxu3 %v19026_v11 }
 0x548   : > { %7580 = vmatpush.msrb.mxu1 %v18879_v42  ;;  %v7266_v42 = vld [vmem:[%s23633_s8 + $0xb0] sm:$0xff]  ;;  %v19180_v23 = vsub.f32 %v7267_v7, %v19174_v49  ;;  %7621 = vmatpush.msrb.mxu2 %v19174_v49  ;;  %v13647_v7 = vld [vmem:[%s23633_s8 + $0x138] sm:$0xff] }
 0x549   : > { %7513 = vmatpush.msrb.mxu0 %v7320_v58  ;;  %7496 = vmatpush.msra.mxu3 %v19041_v33 }
 0x54a   : > { %7582 = vmatpush.msrb.mxu1 %v18887_v38  ;;  %v19182_v38 = vand.u32 4294901760, %v7266_v42 }
 0x54b   : > { %7517 = vmatpush.msrb.mxu0 %v7326_v17  ;;  %7498 = vmatpush.msra.mxu3 %v19052_v46 }
 0x54c   : > { %7584 = vmatpush.msrb.mxu1 %v18898_v47  ;;  %v7655_v47 = vand.u32 4294901760, %v19180_v23  ;;  %v19192_v51 = vsub.f32 %v7266_v42, %v19182_v38  ;;  %7623 = vmatpush.msrb.mxu2 %v19182_v38  ;;  %v19314_v42 = vand.u32 4294901760, %v13647_v7 }
 0x54d   : > { %7521 = vmatpush.msrb.mxu0 %v7332_v15 }
 0x54e   : > { %7586 = vmatpush.msrb.mxu1 %v18908_v1  ;;  %v19198_v1 = vand.u32 4294901760, %v7264_v27  ;;  %v7656_v58 = vsub.f32 %v19180_v23, %v7655_v47  ;;  %v7661_v17 = vand.u32 4294901760, %v19192_v51  ;;  %7625 = vmatpush.msrb.mxu2 %v19188_v3 }
 0x54f   : > { %7525 = vmatpush.msrb.mxu0 %v7338_v40  ;;  %v7667_v40 = vand.u32 4294901760, %v19205_v26 }
 0x550   : > { %7588 = vmatpush.msrb.mxu1 %v18919_v2  ;;  %v7263_v2 = vld [vmem:[%s23633_s8 + $0x98] sm:$0xff]  ;;  %v7657_v15 = vand.u32 4294901760, %v7656_v58  ;;  %7627 = vmatpush.msrb.mxu2 %v19198_v1  ;;  %v19356_v58 = vsub.f32 %v13647_v7, %v19314_v42  ;;  %v19479_v7 = vld [vmem:[%s23633_s8 + $0xd0] sm:$0xff] }
 0x551   : > { %7529 = vmatpush.msrb.mxu0 %v7344_v13  ;;  %v19211_v24 = vand.u32 4294901760, %v7263_v2 }
 0x552   : > { %7590 = vmatpush.msrb.mxu1 %v18932_v43  ;;  %v7662_v43 = vsub.f32 %v19192_v51, %v7661_v17  ;;  %7658 = vmatpush.msrb.mxu3 %v7657_v15  ;;  %24204 = vst [vmem:[#allocation39_spill] sm:$0xff] %v19356_v58 }
 0x553   : > { %7533 = vmatpush.msrb.mxu0 %v7350_v21  ;;  %v19230_v21 = vsub.f32 %v7263_v2, %v19211_v24  ;;  %7629 = vmatpush.msrb.mxu2 %v19211_v24 }
 0x554   : > { %7592 = vmatpush.msrb.mxu1 %v18955_v39  ;;  %v19222_v39 = vsub.f32 %v7264_v27, %v19198_v1  ;;  %v7663_v13 = vand.u32 4294901760, %v7662_v43 }
 0x555   : > { %7537 = vmatpush.msrb.mxu0 %v7356_v35  ;;  %7631 = vmatpush.msrb.mxu2 %v19224_v5 }
 0x556   : > { %7594 = vmatpush.msrb.mxu1 %v18969_v54  ;;  %v7668_v54 = vsub.f32 %v19205_v26, %v7667_v40  ;;  %7664 = vmatpush.msrb.mxu3 %v7663_v13  ;;  %v13639_v13 = vld [vmem:[%s23633_s8 + $0xf8] sm:$0xff] }
 0x557   : > { %7541 = vmatpush.msrb.mxu0 %v7362_v36  ;;  %v19241_v36 = vsub.f32 %v7262_v37, %v19224_v5  ;;  %7633 = vmatpush.msrb.mxu2 %v19237_v61 }
 0x558   : > { %7596 = vmatpush.msrb.mxu1 %v18983_v12  ;;  %v7673_v12 = vand.u32 4294901760, %v19222_v39  ;;  %v7669_v35 = vand.u32 4294901760, %v7668_v54 }
 0x559   : > { %7545 = vmatpush.msrb.mxu0 %v7368_v44  ;;  %v7260_v44 = vld [vmem:[%s23633_s8 + $0x80] sm:$0xff] }
 0x55a   : > { %7598 = vmatpush.msrb.mxu1 %v18997_v55  ;;  %v7679_v55 = vand.u32 4294901760, %v19230_v21  ;;  %7670 = vmatpush.msrb.mxu3 %v7669_v35  ;;  %v19250_v18 = vand.u32 4294901760, %v7260_v44  ;;  %v23793_v35 = vand.u32 4294901760, %v19356_v58 }
 0x55b   : > { %7549 = vmatpush.msrb.mxu0 %v7374_v19  ;;  %v7685_v19 = vand.u32 4294901760, %v19241_v36 }
 0x55c   : > { %7600 = vmatpush.msrb.mxu1 %v19011_v28  ;;  %v7674_v28 = vsub.f32 %v19222_v39, %v7673_v12  ;;  %v19265_v9 = vsub.f32 %v7260_v44, %v19250_v18  ;;  %7635 = vmatpush.msrb.mxu2 %v19250_v18 }
 0x55d   : > { %7553 = vmatpush.msrb.mxu0 %v7380_v8  ;;  %v7686_v56 = vsub.f32 %v19241_v36, %v7685_v19  ;;  %v7691_v8 = vand.u32 4294901760, %v19257_v0 }
 0x55e   : > { %7602 = vmatpush.msrb.mxu1 %v19026_v11  ;;  %v7680_v11 = vsub.f32 %v19230_v21, %v7679_v55  ;;  %v7697_v53 = vand.u32 4294901760, %v19265_v9 }
 0x55f   : > { %7557 = vmatpush.msrb.mxu0 %v7386_v34  ;;  %v7692_v4 = vsub.f32 %v19257_v0, %v7691_v8 }
 0x560   : > { %7604 = vmatpush.msrb.mxu1 %v19041_v33  ;;  %v7675_v33 = vand.u32 4294901760, %v7674_v28  ;;  %v7681_v14 = vand.u32 4294901760, %v7680_v11 }
 0x561   : > { %7561 = vmatpush.msrb.mxu0 %v7392_v59  ;;  %v7693_v48 = vand.u32 4294901760, %v7692_v4  ;;  %v7698_v59 = vsub.f32 %v19265_v9, %v7697_v53 }
 0x562   : > { %7606 = vmatpush.msrb.mxu1 %v19052_v46  ;;  %7676 = vmatpush.msrb.mxu3 %v7675_v33  ;;  %v7687_v46 = vand.u32 4294901760, %v7686_v56  ;;  %v13654_v56 = vld [vmem:[%s23633_s8 + $0x170] sm:$0xff] }
 0x563   : > { %7565 = vmatpush.msrb.mxu0 %v7398_v50  ;;  %v7699_v41 = vand.u32 4294901760, %v7698_v59 }
 0x564   : > { %7682 = vmatpush.msrb.mxu3 %v7681_v14 }
 0x565   : > { %7569 = vmatpush.msrb.mxu0 %v7404_v6 }
 0x566   : > { %7688 = vmatpush.msrb.mxu3 %v7687_v46 }
 0x568   : > { %7694 = vmatpush.msrb.mxu3 %v7693_v48  ;;  %v19451_v48 = vld [vmem:[%s23633_s8 + $0xd8] sm:$0xff] }
 0x56a   : > { %7700 = vmatpush.msrb.mxu3 %v7699_v41  ;;  %v13652_v41 = vld [vmem:[%s23633_s8 + $0x160] sm:$0xff] }
 0x57d   : > { %v6950_v22 = vpop.f32.mrf.mxu0 }
 0x585   : > { %v6981_v34 = vpop.f32.mrf.mxu1  ;;  %v7007_v30 = vpop.f32.mrf.mxu2 }
 0x586   : > { %v6982_v10 = vadd.f32 %v6981_v34, %v6950_v22  ;;  %v7032_v16 = vpop.f32.mrf.mxu3  ;;  %v7059_v50 = vpop.f32.mrf.mxu0  ;;  %v19408_v22 = vand.u32 4294901760, %v13639_v13  ;;  %v13653_v34 = vld [vmem:[%s23633_s8 + $0x168] sm:$0xff] }
 0x588   : > { %v7008_v31 = vadd.f32 %v7007_v30, %v6982_v10 }
 0x58a   : > { %v7033_v29 = vadd.f32 %v7032_v16, %v7008_v31  ;;  %v19457_v31 = vand.u32 4294901760, %v13654_v56 }
 0x58c   : > { %v7060_v45 = vadd.f32 %v7059_v50, %v7033_v29 }
 0x58d   : > { %v7082_v6 = vpop.f32.mrf.mxu1 }
 0x58e   : > { %v7083_v62 = vadd.f32 %v7082_v6, %v7060_v45 }
 0x590   : > { %v19275_v32 = vand.u32 4294901760, %v7083_v62 }
 0x592   : > { %v19278_v63 = vsub.f32 %v7083_v62, %v19275_v32  ;;  %7409 = vmatmul.f32.vlgmr.msra.gmra.mxu1 %v19275_v32 }
 0x593   : > { %7829 = vmatpush.msra.mxu1 %v19174_v49 }
 0x594   : > { %v19283_v25 = vand.u32 4294901760, %v19278_v63  ;;  %7463 = vmatmul.f32.vlgmr.msra.gmra.mxu2 %v19278_v63 }
 0x595   : > { %7831 = vmatpush.msra.mxu1 %v19182_v38  ;;  %7716 = vmatpush.msra.mxu2 %v19180_v23  ;;  %v13645_v23 = vld [vmem:[%s23633_s8 + $0x128] sm:$0xff] }
 0x596   : > { %v7306_v20 = vsub.f32 %v19278_v63, %v19283_v25  ;;  %7502 = vmatmul.f32.vlgmr.msra.gmra.mxu3 %v19283_v25 }
 0x597   : > { %7833 = vmatpush.msra.mxu1 %v19188_v3  ;;  %7753 = vmatpush.msra.mxu3 %v19174_v49  ;;  %v13646_v49 = vld [vmem:[%s23633_s8 + $0x130] sm:$0xff] }
 0x598   : > { %v19293_v60 = vand.u32 4294901760, %v7306_v20  ;;  %7719 = vmatpush.msra.mxu2 %v19192_v51  ;;  %v19345_v51 = vand.u32 4294901760, %v13644_v52  ;;  %v19474_v20 = vsub.f32 %v13639_v13, %v19408_v22  ;;  %v19506_v13 = vsub.f32 %v13654_v56, %v19457_v31  ;;  %v19531_v56 = vld [vmem:[%s23633_s8 + $0xc0] sm:$0xff] }
 0x599   : > { %7835 = vmatpush.msra.mxu1 %v19198_v1  ;;  %7755 = vmatpush.msra.mxu3 %v19182_v38  ;;  %v19324_v38 = vand.u32 4294901760, %v13646_v49 }
 0x59a   : > { %7308 = vmatmul.f32.vlgmr.msra.gmra.mxu0 %v19293_v60  ;;  %7608 = vmatmul.f32.vlgmr.msrb.gmra.mxu1 %v19275_v32  ;;  %v19392_v54 = vsub.f32 %v13644_v52, %v19345_v51  ;;  %v19487_v52 = vand.u32 4294901760, %v19451_v48 }
 0x59b   : > { %7786 = vmatpush.msra.mxu0 %v7655_v47  ;;  %7837 = vmatpush.msra.mxu1 %v19211_v24  ;;  %v13643_v47 = vld [vmem:[%s23633_s8 + $0x118] sm:$0xff]  ;;  %v19369_v2 = vsub.f32 %v13646_v49, %v19324_v38  ;;  %v19481_v49 = vand.u32 4294901760, %v13653_v34 }
 0x59c   : > { %7757 = vmatpush.msra.mxu3 %v19188_v3  ;;  %7722 = vmatpush.msra.mxu2 %v19205_v26  ;;  %v19335_v3 = vand.u32 4294901760, %v13645_v23  ;;  %v13641_v26 = vld [vmem:[%s23633_s8 + $0x108] sm:$0xff]  ;;  %24207 = vst [vmem:[#allocation42_spill] sm:$0xff] %v19392_v54  ;;  %v23790_v16 = vand.u32 4294901760, %v19392_v54 }
 0x59d   : > { %7790 = vmatpush.msra.mxu0 %v7661_v17  ;;  %7839 = vmatpush.msra.mxu1 %v19224_v5  ;;  %v19358_v17 = vand.u32 4294901760, %v13643_v47  ;;  %24205 = vst [vmem:[#allocation24_spill] sm:$0xff] %v19369_v2  ;;  %v23792_v11 = vand.u32 4294901760, %v19369_v2 }
 0x59e   : > { %7759 = vmatpush.msra.mxu3 %v19198_v1  ;;  %7725 = vmatpush.msra.mxu2 %v19222_v39  ;;  %v13642_v1 = vld [vmem:[%s23633_s8 + $0x110] sm:$0xff]  ;;  %v19382_v43 = vsub.f32 %v13645_v23, %v19335_v3 }
 0x59f   : > { %7794 = vmatpush.msra.mxu0 %v7667_v40  ;;  %7841 = vmatpush.msra.mxu1 %v19237_v61  ;;  %v19371_v15 = vand.u32 4294901760, %v13642_v1  ;;  %v19384_v40 = vand.u32 4294901760, %v13641_v26  ;;  %v7166_v39 = vpop.f32.mrf.mxu0  ;;  %v7191_v57 = vpop.f32.mrf.mxu1  ;;  %v7924_v59 = vsub.f32 %v19369_v2, %v23792_v11 }
 0x5a0   : > { %7761 = vmatpush.msra.mxu3 %v19211_v24  ;;  %7728 = vmatpush.msra.mxu2 %v19230_v21  ;;  %v13640_v24 = vld [vmem:[%s23633_s8 + $0x100] sm:$0xff]  ;;  %24206 = vst [vmem:[#allocation41_spill] sm:$0xff] %v19382_v43  ;;  %v23791_v33 = vand.u32 4294901760, %v19382_v43 }
 0x5a1   : > { %7798 = vmatpush.msra.mxu0 %v7673_v12  ;;  %7843 = vmatpush.msra.mxu1 %v19250_v18  ;;  %v19394_v21 = vand.u32 4294901760, %v13640_v24  ;;  %v13638_v12 = vld [vmem:[%s23633_s8 + $0xf0] sm:$0xff]  ;;  %v19411_v44 = vsub.f32 %v13642_v1, %v19371_v15  ;;  %v19438_v4 = vsub.f32 %v13641_v26, %v19384_v40  ;;  %v13651_v1 = vld [vmem:[%s23633_s8 + $0x158] sm:$0xff] }
 0x5a2   : > { %7571 = vmatmul.f32.vlgmr.msrb.gmra.mxu0 %v19275_v32  ;;  %7763 = vmatpush.msra.mxu3 %v19224_v5  ;;  %v7930_v45 = vsub.f32 %v19382_v43, %v23791_v33 }
 0x5a3   : > { %8071 = vmatpush.msrb.mxu1 %v19314_v42  ;;  %7802 = vmatpush.msra.mxu0 %v7679_v55  ;;  %v7109_v27 = vpop.f32.mrf.mxu2  ;;  %24209 = vst [vmem:[#allocation44_spill] sm:$0xff] %v19411_v44  ;;  %v19446_v10 = vsub.f32 %v13640_v24, %v19394_v21  ;;  %v7925_v24 = vand.u32 4294901760, %v7924_v59  ;;  %v23798_v59 = vand.u32 4294901760, %v19411_v44 }
 0x5a4   : > { %7731 = vmatpush.msra.mxu2 %v19241_v36  ;;  %7765 = vmatpush.msra.mxu3 %v19237_v61  ;;  %v13655_v61 = vld [vmem:[%s23633_s8 + $0x178] sm:$0xff]  ;;  %v19406_v36 = vsub.f32 %v13643_v47, %v19358_v17  ;;  %24210 = vst [vmem:[#allocation43_spill] sm:$0xff] %v19438_v4 }
 0x5a5   : > { %8073 = vmatpush.msrb.mxu1 %v19324_v38  ;;  %7806 = vmatpush.msra.mxu0 %v7685_v19  ;;  %v19422_v14 = vand.u32 4294901760, %v13655_v61  ;;  %v7948_v11 = vsub.f32 %v19411_v44, %v23798_v59  ;;  %v19603_v59 = vsub.f32 %v19451_v48, %v19487_v52 }
 0x5a6   : > { %7734 = vmatpush.msra.mxu2 %v19257_v0  ;;  %7767 = vmatpush.msra.mxu3 %v19250_v18  ;;  %24208 = vst [vmem:[#allocation30_spill] sm:$0xff] %v19406_v36  ;;  %v13637_v18 = vld [vmem:[%s23633_s8 + $0xe8] sm:$0xff]  ;;  %v19419_v0 = vand.u32 4294901760, %v13638_v12  ;;  %v23789_v47 = vand.u32 4294901760, %v19406_v36 }
 0x5a7   : > { %8075 = vmatpush.msrb.mxu1 %v19335_v3  ;;  %7810 = vmatpush.msra.mxu0 %v7691_v8  ;;  %v19430_v8 = vld [vmem:[%s23633_s8 + $0xe0] sm:$0xff]  ;;  %v19471_v6 = vsub.f32 %v13655_v61, %v19422_v14  ;;  %v7931_v61 = vand.u32 4294901760, %v7930_v45 }
 0x5a8   : > { %7737 = vmatpush.msra.mxu2 %v19265_v9  ;;  %v7918_v9 = vsub.f32 %v19356_v58, %v23793_v35  ;;  %v19465_v29 = vand.u32 4294901760, %v19430_v8 }
 0x5a9   : > { %8077 = vmatpush.msrb.mxu1 %v19345_v51  ;;  %7814 = vmatpush.msra.mxu0 %v7697_v53  ;;  %v19440_v53 = vand.u32 4294901760, %v13637_v18 }
 0x5aa   : > { %v7919_v62 = vand.u32 4294901760, %v7918_v9  ;;  %v19534_v9 = vsub.f32 %v13653_v34, %v19481_v49  ;;  %v13649_v34 = vld [vmem:[%s23633_s8 + $0x148] sm:$0xff] }
 0x5ab   : > { %8018 = vmatpush.msrb.mxu0 %v19356_v58  ;;  %8079 = vmatpush.msrb.mxu1 %v19358_v17  ;;  %v7140_v37 = vpop.f32.mrf.mxu3 }
 0x5ac   : > { %v7141_v5 = vadd.f32 %v7140_v37, %v7109_v27  ;;  %v7218_v28 = vpop.f32.mrf.mxu2  ;;  %v19490_v27 = vand.u32 4294901760, %v13652_v41  ;;  %v19500_v37 = vld [vmem:[%s23633_s8 + $0xc8] sm:$0xff] }
 0x5ad   : > { %8021 = vmatpush.msrb.mxu0 %v19369_v2  ;;  %8081 = vmatpush.msrb.mxu1 %v19371_v15 }
 0x5ae   : > { %v7167_v55 = vadd.f32 %v7166_v39, %v7141_v5  ;;  %v7936_v39 = vsub.f32 %v19392_v54, %v23790_v16  ;;  %v19511_v5 = vsub.f32 %v13638_v12, %v19419_v0  ;;  %v19526_v12 = vsub.f32 %v13637_v18, %v19440_v53 }
 0x5af   : > { %8024 = vmatpush.msrb.mxu0 %v19382_v43  ;;  %8083 = vmatpush.msrb.mxu1 %v19384_v40  ;;  %v7942_v18 = vsub.f32 %v19406_v36, %v23789_v47  ;;  %v19565_v16 = vand.u32 4294901760, %v19531_v56 }
 0x5b0   : > { %v7192_v19 = vadd.f32 %v7191_v57, %v7167_v55  ;;  %v19514_v57 = vand.u32 4294901760, %v19479_v7  ;;  %v23794_v55 = vand.u32 4294901760, %v19471_v6 }
 0x5b1   : > { %8027 = vmatpush.msrb.mxu0 %v19392_v54  ;;  %8085 = vmatpush.msrb.mxu1 %v19394_v21  ;;  %v24212_v54 = vand.u32 4294901760, %v19438_v4 }
 0x5b2   : > { %v7219_v46 = vadd.f32 %v7218_v28, %v7192_v19  ;;  %v13650_v28 = vld [vmem:[%s23633_s8 + $0x150] sm:$0xff]  ;;  %v8259_v33 = vsub.f32 %v19471_v6, %v23794_v55  ;;  %v7943_v55 = vand.u32 4294901760, %v7942_v18 }
 0x5b3   : > { %8030 = vmatpush.msrb.mxu0 %v19406_v36  ;;  %8087 = vmatpush.msrb.mxu1 %v19408_v22  ;;  %v7241_v30 = vpop.f32.mrf.mxu3  ;;  %v19558_v47 = vand.u32 4294901760, %v13650_v28  ;;  %v7954_v36 = vsub.f32 %v19438_v4, %v24212_v54  ;;  %v7949_v54 = vand.u32 4294901760, %v7948_v11 }
 0x5b4   : > { %v7242_v50 = vadd.f32 %v7241_v30, %v7219_v46  ;;  %v19536_v46 = vand.u32 4294901760, %v13651_v1  ;;  %v19540_v30 = vand.u32 4294901760, %v19500_v37 }
 0x5b5   : > { %8033 = vmatpush.msrb.mxu0 %v19411_v44  ;;  %8089 = vmatpush.msrb.mxu1 %v19419_v0 }
 0x5b6   : > { %v7269_v23 = vsel %vm2872_vm3, %v7242_v50, 0  ;;  %v19547_v50 = vsub.f32 %v13652_v41, %v19490_v27  ;;  %v19562_v41 = vsub.f32 %v19430_v8, %v19465_v29  ;;  %v19580_v35 = vsub.f32 %v13651_v1, %v19536_v46 }
 0x5b7   : > { %8036 = vmatpush.msrb.mxu0 %v19438_v4  ;;  %8091 = vmatpush.msrb.mxu1 %v19440_v53  ;;  %v19495_v26 = vand.u32 4294901760, %v7269_v23  ;;  %v24211_v1 = vand.u32 4294901760, %v19506_v13 }
 0x5b9   : > { %8039 = vmatpush.msrb.mxu0 %v19446_v10  ;;  %8093 = vmatpush.msrb.mxu1 %v19465_v29  ;;  %v19521_v19 = vsub.f32 %v7269_v23, %v19495_v26  ;;  %v19582_v23 = vand.u32 4294901760, %v13649_v34  ;;  %v8265_v43 = vsub.f32 %v19506_v13, %v24211_v1  ;;  %v8260_v1 = vand.u32 4294901760, %v8259_v33 }
 0x5ba   : > { %7702 = vmatmul.f32.vlgmr.msrb.gmra.mxu3 %v19495_v26  ;;  %7816 = vmatmul.f32.vlgmr.msra.gmra.mxu0 %v19495_v26  ;;  %v24214_v33 = vand.u32 4294901760, %v19446_v10 }
 0x5bb   : > { %7845 = vmatmul.f32.vlgmr.msra.gmra.mxu1 %v19495_v26  ;;  %7920 = vmatpush.msrb.mxu3 %v7919_v62  ;;  %v19553_v45 = vand.u32 4294901760, %v19521_v19  ;;  %v7937_v62 = vand.u32 4294901760, %v7936_v39  ;;  %v13648_v39 = vld [vmem:[%s23633_s8 + $0x140] sm:$0xff]  ;;  %v19616_v48 = vsub.f32 %v13649_v34, %v19582_v23  ;;  %v8266_v34 = vand.u32 4294901760, %v8265_v43 }
 0x5bc   : > { %8042 = vmatpush.msrb.mxu0 %v19474_v20  ;;  %8095 = vmatpush.msrb.mxu1 %v19487_v52  ;;  %v19599_v18 = vand.u32 4294901760, %v13648_v39  ;;  %v7960_v4 = vsub.f32 %v19446_v10, %v24214_v33  ;;  %v19640_v33 = vsub.f32 %v19500_v37, %v19540_v30 }
 0x5bd   : > { %7926 = vmatpush.msrb.mxu3 %v7925_v24  ;;  %v7639_v8 = vsub.f32 %v19521_v19, %v19553_v45 }
 0x5be   : > { %8045 = vmatpush.msrb.mxu0 %v19511_v5  ;;  %8097 = vmatpush.msrb.mxu1 %v19514_v57  ;;  %v19634_v58 = vsub.f32 %v13648_v39, %v19599_v18  ;;  %v24217_v39 = vand.u32 4294901760, %v19580_v35  ;;  %v7961_v37 = vand.u32 4294901760, %v7960_v4 }
 0x5bf   : > { %7932 = vmatpush.msrb.mxu3 %v7931_v61  ;;  %v19591_v24 = vand.u32 4294901760, %v7639_v8  ;;  %v19597_v61 = vsub.f32 %v13650_v28, %v19558_v47  ;;  %v24213_v28 = vand.u32 4294901760, %v19534_v9  ;;  %v19622_v8 = vsub.f32 %v19479_v7, %v19514_v57 }
 0x5c0   : > { %8048 = vmatpush.msrb.mxu0 %v19526_v12  ;;  %8099 = vmatpush.msrb.mxu1 %v19540_v30  ;;  %v7955_v7 = vand.u32 4294901760, %v7954_v36  ;;  %v8283_v11 = vsub.f32 %v19580_v35, %v24217_v39  ;;  %v23804_v4 = vand.u32 4294901760, %v19634_v58 }
 0x5c1   : > { %7938 = vmatpush.msrb.mxu3 %v7937_v62  ;;  %v8271_v44 = vsub.f32 %v19534_v9, %v24213_v28  ;;  %7641 = vmatmul.f32.vlgmr.msrb.gmra.mxu2 %v19591_v24  ;;  %v24215_v28 = vand.u32 4294901760, %v19547_v50  ;;  %v24219_v39 = vand.u32 4294901760, %v19597_v61 }
 0x5c2   : > { %8051 = vmatpush.msrb.mxu0 %v19562_v41  ;;  %8101 = vmatpush.msrb.mxu1 %v19565_v16 }
 0x5c3   : > { %7771 = vmatmul.f32.vlgmr.msra.gmra.mxu3 %v19553_v45  ;;  %v8277_v62 = vsub.f32 %v19547_v50, %v24215_v28  ;;  %7875 = vmatpush.msrb.mxu2 %v19314_v42  ;;  %v24216_v28 = vand.u32 4294901760, %v19474_v20  ;;  %v8289_v36 = vsub.f32 %v19597_v61, %v24219_v39 }
 0x5c4   : > { %7944 = vmatpush.msrb.mxu3 %v7943_v55  ;;  %8105 = vmatmul.f32.vlgmr.msrb.gmra.mxu1 %v19283_v25  ;;  %v8272_v55 = vand.u32 4294901760, %v8271_v44  ;;  %v23803_v25 = vand.u32 4294901760, %v19526_v12  ;;  %v24218_v44 = vand.u32 4294901760, %v19511_v5 }
 0x5c5   : > { %8054 = vmatpush.msrb.mxu0 %v19603_v59  ;;  %v7966_v43 = vsub.f32 %v19474_v20, %v24216_v28  ;;  %8261 = vmatpush.msra.mxu1 %v8260_v1  ;;  %v8278_v2 = vand.u32 4294901760, %v8277_v62  ;;  %v19654_v28 = vsub.f32 %v19531_v56, %v19565_v16  ;;  %v8284_v62 = vand.u32 4294901760, %v8283_v11 }
 0x5c6   : > { %7877 = vmatpush.msrb.mxu2 %v19324_v38  ;;  %7950 = vmatpush.msrb.mxu3 %v7949_v54  ;;  %v7972_v1 = vsub.f32 %v19511_v5, %v24218_v44  ;;  %v7983_v54 = vand.u32 4294901760, %v19562_v41  ;;  %v24220_v44 = vand.u32 4294901760, %v19616_v48 }
 0x5c7   : > { %8057 = vmatpush.msrb.mxu0 %v19622_v8  ;;  %8267 = vmatpush.msra.mxu1 %v8266_v34  ;;  %v7967_v56 = vand.u32 4294901760, %v7966_v43  ;;  %v7978_v34 = vsub.f32 %v19526_v12, %v23803_v25  ;;  %v8301_v25 = vsub.f32 %v19634_v58, %v23804_v4 }
 0x5c8   : > { %7879 = vmatpush.msrb.mxu2 %v19335_v3  ;;  %7956 = vmatpush.msrb.mxu3 %v7955_v7  ;;  %v8295_v39 = vsub.f32 %v19616_v48, %v24220_v44  ;;  %v7989_v7 = vand.u32 4294901760, %v19603_v59  ;;  %v7973_v43 = vand.u32 4294901760, %v7972_v1  ;;  %v7984_v11 = vsub.f32 %v19562_v41, %v7983_v54 }
 0x5c9   : > { %8060 = vmatpush.msrb.mxu0 %v19640_v33  ;;  %8273 = vmatpush.msra.mxu1 %v8272_v55  ;;  %v8290_v55 = vand.u32 4294901760, %v8289_v36  ;;  %v8001_v1 = vand.u32 4294901760, %v19640_v33  ;;  %v8302_v4 = vand.u32 4294901760, %v8301_v25 }
 0x5ca   : > { %7881 = vmatpush.msrb.mxu2 %v19345_v51  ;;  %7962 = vmatpush.msrb.mxu3 %v7961_v37  ;;  %v7995_v37 = vand.u32 4294901760, %v19622_v8  ;;  %v8296_v44 = vand.u32 4294901760, %v8295_v39  ;;  %v7990_v36 = vsub.f32 %v19603_v59, %v7989_v7 }
 0x5cb   : > { %8063 = vmatpush.msrb.mxu0 %v19654_v28  ;;  %8279 = vmatpush.msra.mxu1 %v8278_v2  ;;  %v7979_v2 = vand.u32 4294901760, %v7978_v34  ;;  %v8002_v25 = vsub.f32 %v19640_v33, %v8001_v1 }
 0x5cc   : > { %7740 = vmatmul.f32.vlgmr.msra.gmra.mxu2 %v19521_v19  ;;  %7968 = vmatpush.msrb.mxu3 %v7967_v56  ;;  %v7985_v56 = vand.u32 4294901760, %v7984_v11  ;;  %v7991_v34 = vand.u32 4294901760, %v7990_v36 }
 0x5cd   : > { %7883 = vmatpush.msrb.mxu2 %v19358_v17  ;;  %8066 = vmatmul.f32.vlgmr.msrb.gmra.mxu0 %v19278_v63  ;;  %v7996_v63 = vsub.f32 %v19622_v8, %v7995_v37  ;;  %v13674_v8 = vld [vmem:[%s23634_s9 + $0x190] sm:$0xff] }
 0x5ce   : > { %8285 = vmatpush.msra.mxu1 %v8284_v62  ;;  %8224 = vmatpush.msra.mxu0 %v19422_v14  ;;  %v8007_v62 = vand.u32 4294901760, %v19654_v28 }
 0x5cf   : > { %7885 = vmatpush.msrb.mxu2 %v19371_v15  ;;  %7974 = vmatpush.msrb.mxu3 %v7973_v43  ;;  %v7997_v39 = vand.u32 4294901760, %v7996_v63 }
 0x5d0   : > { %8291 = vmatpush.msra.mxu1 %v8290_v55  ;;  %8226 = vmatpush.msra.mxu0 %v19457_v31  ;;  %v8008_v43 = vsub.f32 %v19654_v28, %v8007_v62  ;;  %v8003_v55 = vand.u32 4294901760, %v8002_v25 }
 0x5d1   : > { %7887 = vmatpush.msrb.mxu2 %v19384_v40  ;;  %7980 = vmatpush.msrb.mxu3 %v7979_v2  ;;  %v24231_v2 = vld [vmem:[#allocation44_spill] sm:$0xff] }
 0x5d2   : > { %8297 = vmatpush.msra.mxu1 %v8296_v44  ;;  %8228 = vmatpush.msra.mxu0 %v19481_v49  ;;  %v24232_v44 = vand.u32 4294901760, %v24231_v2 }
 0x5d3   : > { %7889 = vmatpush.msrb.mxu2 %v19394_v21  ;;  %7986 = vmatpush.msrb.mxu3 %v7985_v56  ;;  %v19895_v56 = vand.u32 4294901760, %v13674_v8 }
 0x5d4   : > { %8303 = vmatpush.msra.mxu1 %v8302_v4  ;;  %8230 = vmatpush.msra.mxu0 %v19490_v27  ;;  %v8009_v4 = vand.u32 4294901760, %v8008_v43 }
 0x5d5   : > { %8305 = vmatmul.f32.vlgmr.msra.gmra.mxu1 %v19495_v26  ;;  %7891 = vmatpush.msrb.mxu2 %v19408_v22 }
 0x5d6   : > { %8356 = vmatpush.msrb.mxu1 %v19422_v14  ;;  %7992 = vmatpush.msrb.mxu3 %v7991_v34  ;;  %v13668_v34 = vld [vmem:[%s23634_s9 + $0x160] sm:$0xff] }
 0x5d7   : > { %8232 = vmatpush.msra.mxu0 %v19536_v46  ;;  %7893 = vmatpush.msrb.mxu2 %v19419_v0 }
 0x5d8   : > { %8358 = vmatpush.msrb.mxu1 %v19457_v31  ;;  %7998 = vmatpush.msrb.mxu3 %v7997_v39 }
 0x5d9   : > { %8234 = vmatpush.msra.mxu0 %v19558_v47  ;;  %7895 = vmatpush.msrb.mxu2 %v19440_v53 }
 0x5da   : > { %8360 = vmatpush.msrb.mxu1 %v19481_v49  ;;  %8004 = vmatpush.msrb.mxu3 %v8003_v55 }
 0x5db   : > { %8236 = vmatpush.msra.mxu0 %v19582_v23  ;;  %7897 = vmatpush.msrb.mxu2 %v19465_v29 }
 0x5dc   : > { %8362 = vmatpush.msrb.mxu1 %v19490_v27  ;;  %8010 = vmatpush.msrb.mxu3 %v8009_v4  ;;  %v19915_v4 = vsub.f32 %v13674_v8, %v19895_v56 }
 0x5dd   : > { %8238 = vmatpush.msra.mxu0 %v19599_v18  ;;  %8012 = vmatmul.f32.vlgmr.msrb.gmra.mxu3 %v19275_v32 }
 0x5de   : > { %8244 = vmatmul.f32.vlgmr.msra.gmra.mxu0 %v19591_v24  ;;  %8179 = vmatpush.msra.mxu3 %v19314_v42  ;;  %v24221_v42 = vld [vmem:[#allocation39_spill] sm:$0xff] }
 0x5df   : > { %8319 = vmatpush.msrb.mxu0 %v19471_v6  ;;  %8364 = vmatpush.msrb.mxu1 %v19536_v46 }
 0x5e0   : > { %7899 = vmatpush.msrb.mxu2 %v19487_v52  ;;  %8181 = vmatpush.msra.mxu3 %v19324_v38  ;;  %v24222_v38 = vand.u32 4294901760, %v24221_v42 }
 0x5e1   : > { %8322 = vmatpush.msrb.mxu0 %v19506_v13  ;;  %8366 = vmatpush.msrb.mxu1 %v19558_v47 }
 0x5e2   : > { %7901 = vmatpush.msrb.mxu2 %v19514_v57  ;;  %8183 = vmatpush.msra.mxu3 %v19335_v3  ;;  %v24223_v3 = vld [vmem:[#allocation24_spill] sm:$0xff] }
 0x5e3   : > { %8325 = vmatpush.msrb.mxu0 %v19534_v9  ;;  %8368 = vmatpush.msrb.mxu1 %v19582_v23  ;;  %v24224_v24 = vand.u32 4294901760, %v24223_v3  ;;  %v13666_v3 = vld [vmem:[%s23634_s9 + $0x150] sm:$0xff] }
 0x5e4   : > { %7903 = vmatpush.msrb.mxu2 %v19540_v30  ;;  %8185 = vmatpush.msra.mxu3 %v19345_v51  ;;  %v24225_v51 = vld [vmem:[#allocation41_spill] sm:$0xff] }
 0x5e5   : > { %8328 = vmatpush.msrb.mxu0 %v19547_v50  ;;  %8370 = vmatpush.msrb.mxu1 %v19599_v18  ;;  %v24226_v11 = vand.u32 4294901760, %v24225_v51 }
 0x5e6   : > { %7905 = vmatpush.msrb.mxu2 %v19565_v16  ;;  %8374 = vmatmul.f32.vlgmr.msrb.gmra.mxu1 %v19553_v45 }
 0x5e7   : > { %7911 = vmatmul.f32.vlgmr.msrb.gmra.mxu2 %v19293_v60  ;;  %8187 = vmatpush.msra.mxu3 %v19358_v17  ;;  %v24227_v60 = vld [vmem:[#allocation42_spill] sm:$0xff] }
 0x5e8   : > { %8112 = vmatpush.msra.mxu2 %v24222_v38  ;;  %8331 = vmatpush.msrb.mxu0 %v19580_v35  ;;  %v24228_v45 = vand.u32 4294901760, %v24227_v60  ;;  %v24229_v17 = vld [vmem:[#allocation30_spill] sm:$0xff] }
 0x5e9   : > { %8189 = vmatpush.msra.mxu3 %v19371_v15  ;;  %v24230_v15 = vand.u32 4294901760, %v24229_v17 }
 0x5ea   : > { %8116 = vmatpush.msra.mxu2 %v24224_v24  ;;  %8334 = vmatpush.msrb.mxu0 %v19597_v61 }
 0x5eb   : > { %8191 = vmatpush.msra.mxu3 %v19384_v40  ;;  %v24233_v40 = vld [vmem:[#allocation43_spill] sm:$0xff] }
 0x5ec   : > { %8120 = vmatpush.msra.mxu2 %v24226_v11  ;;  %8337 = vmatpush.msrb.mxu0 %v19616_v48  ;;  %v24234_v36 = vand.u32 4294901760, %v24233_v40  ;;  %v19929_v11 = vand.u32 4294901760, %v13668_v34  ;;  %v19946_v40 = vand.u32 4294901760, %v13666_v3 }
 0x5ed   : > { %8193 = vmatpush.msra.mxu3 %v19394_v21  ;;  %v24235_v21 = vand.u32 4294901760, %v19446_v10  ;;  %v24241_v10 = vand.u32 4294901760, %v19534_v9 }
 0x5ee   : > { %8124 = vmatpush.msra.mxu2 %v24228_v45  ;;  %8340 = vmatpush.msrb.mxu0 %v19634_v58  ;;  %v8600_v45 = vand.u32 4294901760, %v19915_v4 }
 0x5ef   : > { %8343 = vmatmul.f32.vlgmr.msrb.gmra.mxu0 %v19521_v19  ;;  %8195 = vmatpush.msra.mxu3 %v19408_v22  ;;  %v24236_v19 = vand.u32 4294901760, %v19474_v20  ;;  %v24237_v22 = vand.u32 4294901760, %v19511_v5  ;;  %v13686_v20 = vld [vmem:[%s23634_s9 + $0x1f0] sm:$0xff]  ;;  %v13680_v5 = vld [vmem:[%s23634_s9 + $0x1c0] sm:$0xff] }
 0x5f0   : > { %8128 = vmatpush.msra.mxu2 %v24230_v15 }
 0x5f1   : > { %8197 = vmatpush.msra.mxu3 %v19419_v0  ;;  %v24238_v0 = vand.u32 4294901760, %v19526_v12 }
 0x5f2   : > { %8132 = vmatpush.msra.mxu2 %v24232_v44  ;;  %v19943_v44 = vsub.f32 %v13668_v34, %v19929_v11 }
 0x5f3   : > { %8199 = vmatpush.msra.mxu3 %v19440_v53  ;;  %v24239_v53 = vand.u32 4294901760, %v19471_v6  ;;  %v24246_v6 = vand.u32 4294901760, %v19634_v58  ;;  %v13682_v58 = vld [vmem:[%s23634_s9 + $0x1d0] sm:$0xff] }
 0x5f4   : > { %8136 = vmatpush.msra.mxu2 %v24234_v36 }
 0x5f5   : > { %8201 = vmatpush.msra.mxu3 %v19465_v29  ;;  %v24245_v29 = vand.u32 4294901760, %v19616_v48  ;;  %v13672_v48 = vld [vmem:[%s23634_s9 + $0x180] sm:$0xff] }
 0x5f6   : > { %8140 = vmatpush.msra.mxu2 %v24235_v21  ;;  %v19898_v63 = vand.u32 4294901760, %v13672_v48  ;;  %v8601_v21 = vsub.f32 %v19915_v4, %v8600_v45 }
 0x5f7   : > { %8203 = vmatpush.msra.mxu3 %v19487_v52 }
 0x5f8   : > { %8144 = vmatpush.msra.mxu2 %v24236_v19  ;;  %v19918_v42 = vsub.f32 %v13672_v48, %v19898_v63 }
 0x5f9   : > { %8205 = vmatpush.msra.mxu3 %v19514_v57 }
 0x5fa   : > { %8148 = vmatpush.msra.mxu2 %v24237_v22  ;;  %v8606_v17 = vand.u32 4294901760, %v19918_v42 }
 0x5fb   : > { %8207 = vmatpush.msra.mxu3 %v19540_v30  ;;  %v13678_v30 = vld [vmem:[%s23634_s9 + $0x1b0] sm:$0xff] }
 0x5fc   : > { %8152 = vmatpush.msra.mxu2 %v24238_v0  ;;  %v8607_v19 = vsub.f32 %v19918_v42, %v8606_v17  ;;  %v8618_v0 = vand.u32 4294901760, %v19943_v44 }
 0x5fd   : > { %8209 = vmatpush.msra.mxu3 %v19565_v16  ;;  %v24242_v16 = vand.u32 4294901760, %v19547_v50 }
 0x5fe   : > { %8156 = vmatpush.msra.mxu2 %v7983_v54  ;;  %8211 = vmatmul.f32.vlgmr.msra.gmra.mxu3 %v19275_v32 }
 0x5ff   : > { %8432 = vmatpush.msrb.mxu3 %v19422_v14  ;;  %v24240_v14 = vand.u32 4294901760, %v19506_v13  ;;  %v19839_v13 = vand.u32 4294901760, %v13682_v58 }
 0x600   : > { %8160 = vmatpush.msra.mxu2 %v7989_v7 }
 0x601   : > { %8434 = vmatpush.msrb.mxu3 %v19457_v31  ;;  %v24244_v31 = vand.u32 4294901760, %v19597_v61  ;;  %v19851_v9 = vsub.f32 %v13682_v58, %v19839_v13  ;;  %v19870_v61 = vand.u32 4294901760, %v13678_v30  ;;  %v13662_v58 = vld [vmem:[%s23634_s9 + $0x130] sm:$0xff] }
 0x602   : > { %8164 = vmatpush.msra.mxu2 %v7995_v37  ;;  %v13670_v37 = vld [vmem:[%s23634_s9 + $0x170] sm:$0xff] }
 0x603   : > { %8436 = vmatpush.msrb.mxu3 %v19481_v49  ;;  %v19819_v49 = vand.u32 4294901760, %v13686_v20 }
 0x604   : > { %8168 = vmatpush.msra.mxu2 %v8001_v1  ;;  %v19893_v1 = vsub.f32 %v13678_v30, %v19870_v61 }
 0x605   : > { %8438 = vmatpush.msrb.mxu3 %v19490_v27  ;;  %v19825_v52 = vsub.f32 %v13686_v20, %v19819_v49  ;;  %8522 = vmatpush.msra.mxu0 %v19819_v49 }
 0x606   : > { %8172 = vmatpush.msra.mxu2 %v8007_v62  ;;  %v19901_v62 = vand.u32 4294901760, %v13670_v37  ;;  %v8588_v55 = vand.u32 4294901760, %v19893_v1 }
 0x607   : > { %8174 = vmatmul.f32.vlgmr.msra.gmra.mxu2 %v19275_v32  ;;  %8440 = vmatpush.msrb.mxu3 %v19536_v46  ;;  %v24243_v32 = vand.u32 4294901760, %v19580_v35  ;;  %v13684_v35 = vld [vmem:[%s23634_s9 + $0x1e0] sm:$0xff]  ;;  %v8564_v27 = vand.u32 4294901760, %v19825_v52  ;;  %v19854_v46 = vand.u32 4294901760, %v13680_v5 }
 0x608   : > { %8389 = vmatpush.msrb.mxu2 %v24239_v53  ;;  %v19922_v38 = vsub.f32 %v13670_v37, %v19901_v62  ;;  %v8589_v60 = vsub.f32 %v19893_v1, %v8588_v55  ;;  %v19958_v53 = vsub.f32 %v13666_v3, %v19946_v40 }
 0x609   : > { %8442 = vmatpush.msrb.mxu3 %v19558_v47  ;;  %v19827_v47 = vand.u32 4294901760, %v13684_v35  ;;  %v8565_v57 = vsub.f32 %v19825_v52, %v8564_v27  ;;  %v19866_v41 = vsub.f32 %v13680_v5, %v19854_v46 }
 0x60a   : > { %8393 = vmatpush.msrb.mxu2 %v24240_v14  ;;  %v8612_v15 = vand.u32 4294901760, %v19922_v38  ;;  %v8590_v36 = vand.u32 4294901760, %v8589_v60  ;;  %v8602_v14 = vand.u32 4294901760, %v8601_v21 }
 0x60b   : > { %8444 = vmatpush.msrb.mxu3 %v19582_v23  ;;  %8524 = vmatpush.msra.mxu0 %v19827_v47  ;;  %v8566_v59 = vand.u32 4294901760, %v8565_v57  ;;  %v8576_v23 = vand.u32 4294901760, %v19851_v9  ;;  %v8582_v54 = vand.u32 4294901760, %v19866_v41  ;;  %v19989_v57 = vand.u32 4294901760, %v13662_v58 }
 0x60c   : > { %8397 = vmatpush.msrb.mxu2 %v24241_v10  ;;  %v8613_v10 = vsub.f32 %v19922_v38, %v8612_v15 }
 0x60d   : > { %8446 = vmatpush.msrb.mxu3 %v19599_v18  ;;  %8526 = vmatpush.msra.mxu0 %v19839_v13  ;;  %v13676_v18 = vld [vmem:[%s23634_s9 + $0x1a0] sm:$0xff]  ;;  %v8577_v28 = vsub.f32 %v19851_v9, %v8576_v23  ;;  %v8583_v39 = vsub.f32 %v19866_v41, %v8582_v54 }
 0x60e   : > { %8401 = vmatpush.msrb.mxu2 %v24242_v16  ;;  %8448 = vmatmul.f32.vlgmr.msrb.gmra.mxu3 %v19495_v26  ;;  %v19887_v7 = vand.u32 4294901760, %v13676_v18  ;;  %v8624_v16 = vand.u32 4294901760, %v19958_v53  ;;  %v8614_v20 = vand.u32 4294901760, %v8613_v10 }
 0x60f   : > { %8718 = vmatpush.msra.mxu3 %v19819_v49  ;;  %8528 = vmatpush.msra.mxu0 %v19854_v46  ;;  %v8578_v25 = vand.u32 4294901760, %v8577_v28  ;;  %v8584_v24 = vand.u32 4294901760, %v8583_v39  ;;  %v13656_v39 = vld [vmem:[%s23634_s9 + $0x100] sm:$0xff] }
 0x610   : > { %8405 = vmatpush.msrb.mxu2 %v24243_v32  ;;  %8567 = vmatpush.msra.mxu1 %v8566_v59  ;;  %v19910_v43 = vsub.f32 %v13676_v18, %v19887_v7  ;;  %v8608_v32 = vand.u32 4294901760, %v8607_v19  ;;  %v13660_v59 = vld [vmem:[%s23634_s9 + $0x120] sm:$0xff]  ;;  %v19999_v18 = vsub.f32 %v13662_v58, %v19989_v57  ;;  %v20036_v21 = vand.u32 4294901760, %v13656_v39 }
 0x611   : > { %8720 = vmatpush.msra.mxu3 %v19827_v47  ;;  %8530 = vmatpush.msra.mxu0 %v19870_v61  ;;  %v20001_v8 = vand.u32 4294901760, %v13660_v59 }
 0x612   : > { %8409 = vmatpush.msrb.mxu2 %v24244_v31  ;;  %v8594_v51 = vand.u32 4294901760, %v19910_v43  ;;  %v8619_v31 = vsub.f32 %v19943_v44, %v8618_v0  ;;  %v8636_v37 = vand.u32 4294901760, %v19999_v18 }
 0x613   : > { %8722 = vmatpush.msra.mxu3 %v19839_v13  ;;  %8532 = vmatpush.msra.mxu0 %v19887_v7  ;;  %v20014_v34 = vsub.f32 %v13660_v59, %v20001_v8  ;;  %v13685_v59 = vld [vmem:[%s23634_s9 + $0x1e8] sm:$0xff] }
 0x614   : > { %8413 = vmatpush.msrb.mxu2 %v24245_v29  ;;  %v8595_v2 = vsub.f32 %v19910_v43, %v8594_v51  ;;  %v13664_v29 = vld [vmem:[%s23634_s9 + $0x140] sm:$0xff]  ;;  %v8620_v30 = vand.u32 4294901760, %v8619_v31 }
 0x615   : > { %8724 = vmatpush.msra.mxu3 %v19854_v46  ;;  %8534 = vmatpush.msra.mxu0 %v19895_v56  ;;  %v8642_v60 = vand.u32 4294901760, %v20014_v34 }
 0x616   : > { %8417 = vmatpush.msrb.mxu2 %v24246_v6  ;;  %v8596_v22 = vand.u32 4294901760, %v8595_v2  ;;  %v19975_v6 = vand.u32 4294901760, %v13664_v29 }
 0x617   : > { %8419 = vmatmul.f32.vlgmr.msrb.gmra.mxu2 %v19495_v26  ;;  %v19836_v26 = vsub.f32 %v13684_v35, %v19827_v47  ;;  %8726 = vmatpush.msra.mxu3 %v19870_v61  ;;  %v8625_v35 = vsub.f32 %v19958_v53, %v8624_v16 }
 0x618   : > { %8665 = vmatpush.msra.mxu2 %v19825_v52  ;;  %8536 = vmatpush.msra.mxu0 %v19898_v63  ;;  %v19987_v5 = vsub.f32 %v13664_v29, %v19975_v6 }
 0x619   : > { %v8570_v12 = vand.u32 4294901760, %v19836_v26  ;;  %8728 = vmatpush.msra.mxu3 %v19887_v7  ;;  %v8626_v48 = vand.u32 4294901760, %v8625_v35  ;;  %v20044_v10 = vpop.f32.mrf.mxu3 }
 0x61a   : > { %8668 = vmatpush.msra.mxu2 %v19836_v26  ;;  %8538 = vmatpush.msra.mxu0 %v19901_v62 }
 0x61b   : > { %v8571_v50 = vsub.f32 %v19836_v26, %v8570_v12  ;;  %8730 = vmatpush.msra.mxu3 %v19895_v56 }
 0x61c   : > { %8671 = vmatpush.msra.mxu2 %v19851_v9  ;;  %8540 = vmatpush.msra.mxu0 %v19929_v11  ;;  %v13679_v9 = vld [vmem:[%s23634_s9 + $0x1b8] sm:$0xff] }
 0x61d   : > { %v8572_v33 = vand.u32 4294901760, %v8571_v50  ;;  %8732 = vmatpush.msra.mxu3 %v19898_v63  ;;  %v8630_v50 = vand.u32 4294901760, %v19987_v5 }
 0x61e   : > { %8674 = vmatpush.msra.mxu2 %v19866_v41  ;;  %8542 = vmatpush.msra.mxu0 %v19946_v40  ;;  %v13677_v41 = vld [vmem:[%s23634_s9 + $0x1a8] sm:$0xff] }
 0x61f   : > { %8573 = vmatpush.msra.mxu1 %v8572_v33  ;;  %8734 = vmatpush.msra.mxu3 %v19901_v62  ;;  %v13658_v33 = vld [vmem:[%s23634_s9 + $0x110] sm:$0xff]  ;;  %v8631_v28 = vsub.f32 %v19987_v5, %v8630_v50 }
 0x620   : > { %8677 = vmatpush.msra.mxu2 %v19893_v1  ;;  %8544 = vmatpush.msra.mxu0 %v19975_v6  ;;  %v13675_v1 = vld [vmem:[%s23634_s9 + $0x198] sm:$0xff] }
 0x621   : > { %8579 = vmatpush.msra.mxu1 %v8578_v25  ;;  %8736 = vmatpush.msra.mxu3 %v19929_v11  ;;  %v20016_v25 = vand.u32 4294901760, %v13658_v33  ;;  %v8632_v3 = vand.u32 4294901760, %v8631_v28 }
 0x622   : > { %8680 = vmatpush.msra.mxu2 %v19910_v43  ;;  %8546 = vmatpush.msra.mxu0 %v19989_v57 }
 0x623   : > { %8585 = vmatpush.msra.mxu1 %v8584_v24  ;;  %8738 = vmatpush.msra.mxu3 %v19946_v40  ;;  %v8637_v24 = vsub.f32 %v19999_v18, %v8636_v37  ;;  %v20029_v2 = vsub.f32 %v13658_v33, %v20016_v25 }
 0x624   : > { %8683 = vmatpush.msra.mxu2 %v19915_v4  ;;  %8548 = vmatpush.msra.mxu0 %v20001_v8 }
 0x625   : > { %8591 = vmatpush.msra.mxu1 %v8590_v36  ;;  %8740 = vmatpush.msra.mxu3 %v19975_v6  ;;  %v20033_v36 = vpop.f32.mrf.mxu2  ;;  %v8638_v19 = vand.u32 4294901760, %v8637_v24 }
 0x626   : > { %8686 = vmatpush.msra.mxu2 %v19918_v42  ;;  %8550 = vmatpush.msra.mxu0 %v20016_v25 }
 0x627   : > { %8597 = vmatpush.msra.mxu1 %v8596_v22  ;;  %8742 = vmatpush.msra.mxu3 %v19989_v57  ;;  %v8643_v22 = vsub.f32 %v20014_v34, %v8642_v60 }
 0x628   : > { %8689 = vmatpush.msra.mxu2 %v19922_v38  ;;  %8552 = vmatpush.msra.mxu0 %v20036_v21 }
 0x629   : > { %8603 = vmatpush.msra.mxu1 %v8602_v14  ;;  %8744 = vmatpush.msra.mxu3 %v20001_v8  ;;  %v23811_v14 = vand.u32 4294901760, %v20029_v2  ;;  %v8644_v31 = vand.u32 4294901760, %v8643_v22  ;;  %v7410_v22 = vpop.f32.mrf.mxu1 }
 0x62a   : > { %8692 = vmatpush.msra.mxu2 %v19943_v44  ;;  %8759 = vmatpush.msrb.mxu0 %v8564_v27 }
 0x62b   : > { %8609 = vmatpush.msra.mxu1 %v8608_v32  ;;  %8746 = vmatpush.msra.mxu3 %v20016_v25  ;;  %v20047_v32 = vsub.f32 %v13656_v39, %v20036_v21  ;;  %v8649_v29 = vsub.f32 %v20029_v2, %v23811_v14  ;;  %v20076_v39 = vand.u32 4294901760, %v13685_v59 }
 0x62c   : > { %8695 = vmatpush.msra.mxu2 %v19958_v53  ;;  %8763 = vmatpush.msrb.mxu0 %v8570_v12 }
 0x62d   : > { %8615 = vmatpush.msra.mxu1 %v8614_v20  ;;  %v13687_v20 = vld [vmem:[%s23634_s9 + $0x1f8] sm:$0xff]  ;;  %8748 = vmatpush.msra.mxu3 %v20036_v21  ;;  %v23810_v35 = vand.u32 4294901760, %v20047_v32 }
 0x62e   : > { %8698 = vmatpush.msra.mxu2 %v19987_v5  ;;  %v20060_v58 = vand.u32 4294901760, %v13687_v20  ;;  %8767 = vmatpush.msrb.mxu0 %v8576_v23 }
 0x62f   : > { %8621 = vmatpush.msra.mxu1 %v8620_v30  ;;  %v8650_v30 = vand.u32 4294901760, %v8649_v29  ;;  %v8655_v33 = vsub.f32 %v20047_v32, %v23810_v35  ;;  %v13681_v29 = vld [vmem:[%s23634_s9 + $0x1c8] sm:$0xff] }
 0x630   : > { %8701 = vmatpush.msra.mxu2 %v19999_v18  ;;  %v20074_v28 = vsub.f32 %v13687_v20, %v20060_v58  ;;  %v20103_v20 = vand.u32 4294901760, %v13681_v29  ;;  %8771 = vmatpush.msrb.mxu0 %v8582_v54 }
 0x631   : > { %8627 = vmatpush.msra.mxu1 %v8626_v48  ;;  %v20067_v48 = vpop.f32.mrf.mxu0  ;;  %v8656_v27 = vand.u32 4294901760, %v8655_v33 }
 0x632   : > { %8704 = vmatpush.msra.mxu2 %v20014_v34  ;;  %v23808_v24 = vand.u32 4294901760, %v20074_v28  ;;  %8775 = vmatpush.msrb.mxu0 %v8588_v55 }
 0x633   : > { %8633 = vmatpush.msra.mxu1 %v8632_v3  ;;  %v13683_v3 = vld [vmem:[%s23634_s9 + $0x1d8] sm:$0xff] }
 0x634   : > { %8707 = vmatpush.msra.mxu2 %v20029_v2  ;;  %v8906_v12 = vsub.f32 %v20074_v28, %v23808_v24  ;;  %8779 = vmatpush.msrb.mxu0 %v8594_v51  ;;  %v13673_v51 = vld [vmem:[%s23634_s9 + $0x188] sm:$0xff] }
 0x635   : > { %8639 = vmatpush.msra.mxu1 %v8638_v19  ;;  %v20087_v19 = vand.u32 4294901760, %v13683_v3 }
 0x636   : > { %8710 = vmatpush.msra.mxu2 %v20047_v32  ;;  %v8907_v23 = vand.u32 4294901760, %v8906_v12  ;;  %8783 = vmatpush.msrb.mxu0 %v8600_v45 }
 0x637   : > { %8645 = vmatpush.msra.mxu1 %v8644_v31  ;;  %v20090_v31 = vsub.f32 %v13685_v59, %v20076_v39 }
 0x638   : > { %8863 = vmatpush.msrb.mxu2 %v20060_v58  ;;  %8908 = vmatpush.msrb.mxu3 %v8907_v23 }
 0x639   : > { %8651 = vmatpush.msra.mxu1 %v8650_v30  ;;  %v20106_v30 = vsub.f32 %v13683_v3, %v20087_v19  ;;  %v23805_v59 = vand.u32 4294901760, %v20090_v31  ;;  %v20124_v3 = vsub.f32 %v13681_v29, %v20103_v20  ;;  %v20147_v55 = vpop.f32.mrf.mxu0  ;;  %8787 = vmatpush.msrb.mxu0 %v8606_v17 }
 0x63a   : > { %8865 = vmatpush.msrb.mxu2 %v20076_v39 }
 0x63b   : > { %8657 = vmatpush.msra.mxu1 %v8656_v27  ;;  %v23806_v33 = vand.u32 4294901760, %v20106_v30  ;;  %v20117_v27 = vand.u32 4294901760, %v13679_v9  ;;  %8791 = vmatpush.msrb.mxu0 %v8612_v15 }
 0x63c   : > { %8867 = vmatpush.msrb.mxu2 %v20087_v19 }
 0x63d   : > { %v20097_v26 = vpop.f32.mrf.mxu3  ;;  %8826 = vmatpush.msrb.mxu1 %v19819_v49  ;;  %v8912_v49 = vsub.f32 %v20090_v31, %v23805_v59  ;;  %v8918_v54 = vsub.f32 %v20106_v30, %v23806_v33  ;;  %v20138_v12 = vsub.f32 %v13679_v9, %v20117_v27  ;;  %v23807_v59 = vand.u32 4294901760, %v20124_v3  ;;  %8795 = vmatpush.msrb.mxu0 %v8618_v0 }
 0x63e   : > { %8869 = vmatpush.msrb.mxu2 %v20103_v20  ;;  %v20151_v33 = vand.u32 4294901760, %v13675_v1 }
 0x63f   : > { %8828 = vmatpush.msrb.mxu1 %v19827_v47  ;;  %v20135_v47 = vand.u32 4294901760, %v13677_v41  ;;  %v8913_v29 = vand.u32 4294901760, %v8912_v49  ;;  %v8919_v23 = vand.u32 4294901760, %v8918_v54  ;;  %v23809_v9 = vand.u32 4294901760, %v20138_v12  ;;  %8799 = vmatpush.msrb.mxu0 %v8624_v16 }
 0x640   : > { %8871 = vmatpush.msrb.mxu2 %v20117_v27  ;;  %v8924_v43 = vsub.f32 %v20124_v3, %v23807_v59  ;;  %v20177_v59 = vpop.f32.mrf.mxu1 }
 0x641   : > { %8830 = vmatpush.msrb.mxu1 %v19839_v13  ;;  %v20154_v13 = vsub.f32 %v13677_v41, %v20135_v47  ;;  %8914 = vmatpush.msrb.mxu3 %v8913_v29  ;;  %v8930_v54 = vsub.f32 %v20138_v12, %v23809_v9  ;;  %v20173_v29 = vsub.f32 %v13675_v1, %v20151_v33  ;;  %v13671_v9 = vld [vmem:[%s23634_s9 + $0x178] sm:$0xff] }
 0x642   : > { %8873 = vmatpush.msrb.mxu2 %v20135_v47  ;;  %v8925_v24 = vand.u32 4294901760, %v8924_v43  ;;  %v20190_v45 = vand.u32 4294901760, %v13671_v9  ;;  %v13669_v43 = vld [vmem:[%s23634_s9 + $0x168] sm:$0xff]  ;;  %8803 = vmatpush.msrb.mxu0 %v8630_v50 }
 0x643   : > { %8832 = vmatpush.msrb.mxu1 %v19854_v46  ;;  %v23812_v41 = vand.u32 4294901760, %v20154_v13  ;;  %v20170_v46 = vand.u32 4294901760, %v13673_v51  ;;  %8920 = vmatpush.msrb.mxu3 %v8919_v23  ;;  %v8931_v14 = vand.u32 4294901760, %v8930_v54  ;;  %v8941_v4 = vand.u32 4294901760, %v20173_v29 }
 0x644   : > { %v20083_v52 = vpop.f32.mrf.mxu2  ;;  %8875 = vmatpush.msrb.mxu2 %v20151_v33  ;;  %v20206_v42 = vand.u32 4294901760, %v13669_v43  ;;  %v20209_v17 = vsub.f32 %v13671_v9, %v20190_v45  ;;  %8807 = vmatpush.msrb.mxu0 %v8636_v37 }
 0x645   : > { %8834 = vmatpush.msrb.mxu1 %v19870_v61  ;;  %v8936_v1 = vsub.f32 %v20154_v13, %v23812_v41  ;;  %v7411_v61 = vadd.f32 %v7410_v22, %v20067_v48  ;;  %8926 = vmatpush.msrb.mxu3 %v8925_v24  ;;  %v20197_v23 = vsub.f32 %v13673_v51, %v20170_v46  ;;  %v13667_v48 = vld [vmem:[%s23634_s9 + $0x158] sm:$0xff]  ;;  %v20218_v24 = vpop.f32.mrf.mxu0 }
 0x646   : > { %v20183_v35 = vpop.f32.mrf.mxu3  ;;  %8877 = vmatpush.msrb.mxu2 %v20170_v46  ;;  %v8942_v41 = vsub.f32 %v20173_v29, %v8941_v4  ;;  %v23813_v9 = vand.u32 4294901760, %v20209_v17  ;;  %v20222_v51 = vand.u32 4294901760, %v13667_v48  ;;  %v20225_v38 = vsub.f32 %v13669_v43, %v20206_v42  ;;  %v13663_v43 = vld [vmem:[%s23634_s9 + $0x138] sm:$0xff]  ;;  %8811 = vmatpush.msrb.mxu0 %v8642_v60 }
 0x647   : > { %8836 = vmatpush.msrb.mxu1 %v19887_v7  ;;  %v8937_v54 = vand.u32 4294901760, %v8936_v1  ;;  %8932 = vmatpush.msrb.mxu3 %v8931_v14  ;;  %v23815_v7 = vand.u32 4294901760, %v20197_v23  ;;  %v13665_v14 = vld [vmem:[%s23634_s9 + $0x148] sm:$0xff]  ;;  %v20260_v16 = vand.u32 4294901760, %v13663_v43 }
 0x648   : > { %8879 = vmatpush.msrb.mxu2 %v20190_v45  ;;  %v8943_v22 = vand.u32 4294901760, %v8942_v41  ;;  %v8954_v1 = vsub.f32 %v20209_v17, %v23813_v9  ;;  %v23814_v44 = vand.u32 4294901760, %v20225_v38  ;;  %v20242_v0 = vand.u32 4294901760, %v13665_v14 }
 0x649   : > { %8838 = vmatpush.msrb.mxu1 %v19895_v56  ;;  %v7465_v56 = vadd.f32 %v20033_v36, %v7411_v61  ;;  %8938 = vmatpush.msrb.mxu3 %v8937_v54  ;;  %v8948_v15 = vsub.f32 %v20197_v23, %v23815_v7  ;;  %v20249_v36 = vpop.f32.mrf.mxu1  ;;  %v20279_v50 = vsub.f32 %v13663_v43, %v20260_v16 }
 0x64a   : > { %8881 = vmatpush.msrb.mxu2 %v20206_v42  ;;  %v8955_v9 = vand.u32 4294901760, %v8954_v1  ;;  %v13661_v1 = vld [vmem:[%s23634_s9 + $0x128] sm:$0xff] }
 0x64b   : > { %8840 = vmatpush.msrb.mxu1 %v19898_v63  ;;  %v20245_v63 = vsub.f32 %v13667_v48, %v20222_v51  ;;  %8944 = vmatpush.msrb.mxu3 %v8943_v22  ;;  %v8949_v61 = vand.u32 4294901760, %v8948_v15  ;;  %v8960_v48 = vsub.f32 %v20225_v38, %v23814_v44  ;;  %v20267_v15 = vsub.f32 %v13665_v14, %v20242_v0 }
 0x64c   : > { %8883 = vmatpush.msrb.mxu2 %v20222_v51  ;;  %v20276_v5 = vand.u32 4294901760, %v13661_v1 }
 0x64d   : > { %8842 = vmatpush.msrb.mxu1 %v19901_v62  ;;  %v8965_v53 = vand.u32 4294901760, %v20245_v63  ;;  %v7504_v62 = vadd.f32 %v20044_v10, %v7465_v56  ;;  %8950 = vmatpush.msrb.mxu3 %v8949_v61  ;;  %v8961_v44 = vand.u32 4294901760, %v8960_v48  ;;  %v8971_v10 = vand.u32 4294901760, %v20267_v15  ;;  %v8067_v14 = vpop.f32.mrf.mxu0 }
 0x64e   : > { %8885 = vmatpush.msrb.mxu2 %v20242_v0  ;;  %v8977_v61 = vand.u32 4294901760, %v20279_v50  ;;  %v20293_v43 = vsub.f32 %v13661_v1, %v20276_v5  ;;  %v24248_v1 = vand.u32 4294901760, %v20047_v32 }
 0x64f   : > { %v20163_v49 = vpop.f32.mrf.mxu2  ;;  %8844 = vmatpush.msrb.mxu1 %v19929_v11  ;;  %v8966_v7 = vsub.f32 %v20245_v63, %v8965_v53  ;;  %v13659_v11 = vld [vmem:[%s23634_s9 + $0x118] sm:$0xff]  ;;  %8956 = vmatpush.msrb.mxu3 %v8955_v9  ;;  %v7573_v18 = vadd.f32 %v20147_v55, %v7504_v62  ;;  %v8972_v37 = vsub.f32 %v20267_v15, %v8971_v10  ;;  %v24247_v55 = vand.u32 4294901760, %v20029_v2 }
 0x650   : > { %8887 = vmatpush.msrb.mxu2 %v20260_v16  ;;  %v20288_v56 = vand.u32 4294901760, %v13659_v11  ;;  %v8978_v9 = vsub.f32 %v20279_v50, %v8977_v61  ;;  %v8983_v34 = vand.u32 4294901760, %v20293_v43 }
 0x651   : > { %8846 = vmatpush.msrb.mxu1 %v19946_v40  ;;  %8962 = vmatpush.msrb.mxu3 %v8961_v44  ;;  %v8973_v44 = vand.u32 4294901760, %v8972_v37  ;;  %v7610_v2 = vadd.f32 %v20177_v59, %v7573_v18 }
 0x652   : > { %8889 = vmatpush.msrb.mxu2 %v20276_v5  ;;  %8815 = vmatpush.msrb.mxu0 %v24247_v55  ;;  %v8984_v48 = vsub.f32 %v20293_v43, %v8983_v34 }
 0x653   : > { %8848 = vmatpush.msrb.mxu1 %v19975_v6  ;;  %v20313_v6 = vsub.f32 %v13659_v11, %v20288_v56  ;;  %v7643_v32 = vadd.f32 %v20083_v52, %v7610_v2 }
 0x654   : > { %8891 = vmatpush.msrb.mxu2 %v20288_v56  ;;  %8819 = vmatpush.msrb.mxu0 %v24248_v1 }
 0x655   : > { %8850 = vmatpush.msrb.mxu1 %v19989_v57  ;;  %v8989_v62 = vand.u32 4294901760, %v20313_v6  ;;  %v8106_v57 = vpop.f32.mrf.mxu1 }
 0x657   : > { %8852 = vmatpush.msrb.mxu1 %v20001_v8 }
 0x659   : > { %8854 = vmatpush.msrb.mxu1 %v20016_v25 }
 0x65b   : > { %v8245_v18 = vpop.f32.mrf.mxu0  ;;  %8856 = vmatpush.msrb.mxu1 %v20036_v21 }
 0x660   : > { %v8013_v54 = vpop.f32.mrf.mxu3 }
 0x66a   : > { %v7912_v41 = vpop.f32.mrf.mxu2 }
 0x66b   : > { %v8014_v22 = vadd.f32 %v8013_v54, %v7912_v41  ;;  %v8967_v41 = vand.u32 4294901760, %v8966_v7  ;;  %v13657_v7 = vld [vmem:[%s23634_s9 + $0x108] sm:$0xff]  ;;  %v8979_v54 = vand.u32 4294901760, %v8978_v9 }
 0x66c   : > { %v20310_v60 = vand.u32 4294901760, %v13657_v7  ;;  %v8344_v2 = vpop.f32.mrf.mxu0 }
 0x66d   : > { %v8068_v40 = vadd.f32 %v8067_v14, %v8014_v22  ;;  %8968 = vmatpush.msrb.mxu3 %v8967_v41  ;;  %v8985_v14 = vand.u32 4294901760, %v8984_v48  ;;  %v8990_v41 = vsub.f32 %v20313_v6, %v8989_v62  ;;  %v7704_v48 = vadd.f32 %v20097_v26, %v7643_v32 }
 0x66e   : > { %8893 = vmatpush.msrb.mxu2 %v20310_v60  ;;  %v20324_v22 = vsub.f32 %v13657_v7, %v20310_v60 }
 0x66f   : > { %8974 = vmatpush.msrb.mxu3 %v8973_v44  ;;  %v8107_v11 = vadd.f32 %v8106_v57, %v8068_v40  ;;  %v8991_v59 = vand.u32 4294901760, %v8990_v41  ;;  %v7742_v52 = vadd.f32 %v20163_v49, %v7704_v48  ;;  %v24251_v48 = vand.u32 4294901760, %v20106_v30 }
 0x670   : > { %v8995_v37 = vand.u32 4294901760, %v20324_v22 }
 0x671   : > { %8980 = vmatpush.msrb.mxu3 %v8979_v54  ;;  %v8306_v54 = vpop.f32.mrf.mxu1  ;;  %v7773_v57 = vadd.f32 %v20183_v35, %v7742_v52 }
 0x672   : > { %v8996_v8 = vsub.f32 %v20324_v22, %v8995_v37 }
 0x673   : > { %8986 = vmatpush.msrb.mxu3 %v8985_v14 }
 0x674   : > { %v8997_v44 = vand.u32 4294901760, %v8996_v8 }
 0x675   : > { %8992 = vmatpush.msrb.mxu3 %v8991_v59 }
 0x677   : > { %8998 = vmatpush.msrb.mxu3 %v8997_v44 }
 0x679   : > { %v8375_v41 = vpop.f32.mrf.mxu1 }
 0x681   : > { %v8212_v40 = vpop.f32.mrf.mxu3 }
 0x68a   : > { %v8175_v9 = vpop.f32.mrf.mxu2 }
 0x68b   : > { %v8176_v7 = vadd.f32 %v8175_v9, %v8107_v11  ;;  %v7818_v9 = vadd.f32 %v20218_v24, %v7773_v57  ;;  %v24249_v24 = vand.u32 4294901760, %v20074_v28  ;;  %v8475_v57 = vld [vmem:[%s23634_s9 + $0xa0] sm:$0xff] }
 0x68d   : > { %v8213_v55 = vadd.f32 %v8212_v40, %v8176_v7  ;;  %v7847_v59 = vadd.f32 %v20249_v36, %v7818_v9 }
 0x68f   : > { %v8246_v25 = vadd.f32 %v8245_v18, %v8213_v55  ;;  %v24250_v55 = vand.u32 4294901760, %v20090_v31 }
 0x691   : > { %v8307_v1 = vadd.f32 %v8306_v54, %v8246_v25  ;;  %v8449_v8 = vpop.f32.mrf.mxu3  ;;  %v24252_v25 = vand.u32 4294901760, %v20124_v3  ;;  %v24256_v54 = vand.u32 4294901760, %v20209_v17 }
 0x693   : > { %v8345_v11 = vadd.f32 %v8344_v2, %v8307_v1 }
 0x695   : > { %v8376_v21 = vadd.f32 %v8375_v41, %v8345_v11  ;;  %v8471_v41 = vld [vmem:[%s23634_s9 + $0x80] sm:$0xff] }
 0x69a   : > { %v8420_v14 = vpop.f32.mrf.mxu2 }
 0x69b   : > { %v8421_v7 = vadd.f32 %v8420_v14, %v8376_v21  ;;  %v20486_v21 = vand.u32 4294901760, %v8471_v41  ;;  %v8469_v14 = vld [vmem:[%s23634_s9 + $0x70] sm:$0xff] }
 0x69d   : > { %v8450_v26 = vadd.f32 %v8449_v8, %v8421_v7 }
 0x69f   : > { %v8452_v32 = vmax.f32 %v7847_v59, %v8450_v26  ;;  %v20520_v26 = vsub.f32 %v8471_v41, %v20486_v21 }
 0x6a1   : > { %8453 = vst [vmem:[#allocation4] sm:$0xff] %v8452_v32 }
 0x6a8   : > { %v8487_v18 = vld [vmem:[#allocation4 + $0x1] sm:$0x3f] }
 0x6a9   : > { %v20345_v40 = vand.u32 4294901760, %v8487_v18 }
 0x6ab   : > { %8659 = vmatmul.f32.vlgmr.msra.gmra.mxu1 %v20345_v40  ;;  %v20349_v35 = vsub.f32 %v8487_v18, %v20345_v40 }
 0x6ac   : > { %9059 = vmatpush.msra.mxu1 %v20060_v58 }
 0x6ad   : > { %8713 = vmatmul.f32.vlgmr.msra.gmra.mxu2 %v20349_v35  ;;  %v20354_v49 = vand.u32 4294901760, %v20349_v35 }
 0x6ae   : > { %9061 = vmatpush.msra.mxu1 %v20076_v39  ;;  %9100 = vmatpush.msra.mxu2 %v24249_v24 }
 0x6af   : > { %8752 = vmatmul.f32.vlgmr.msra.gmra.mxu3 %v20354_v49  ;;  %v8556_v36 = vsub.f32 %v20349_v35, %v20354_v49 }
 0x6b0   : > { %9063 = vmatpush.msra.mxu1 %v20087_v19  ;;  %9104 = vmatpush.msra.mxu2 %v24250_v55  ;;  %v23825_v55 = vand.u32 4294901760, %v20520_v26 }
 0x6b1   : > { %9167 = vmatpush.msra.mxu3 %v20060_v58  ;;  %v8557_v44 = vand.u32 4294901760, %v8556_v36  ;;  %v24253_v58 = vand.u32 4294901760, %v20138_v12 }
 0x6b2   : > { %9065 = vmatpush.msra.mxu1 %v20103_v20  ;;  %9108 = vmatpush.msra.mxu2 %v24251_v48 }
 0x6b3   : > { %9169 = vmatpush.msra.mxu3 %v20076_v39  ;;  %8558 = vmatmul.f32.vlgmr.msra.gmra.mxu0 %v8557_v44  ;;  %v24254_v39 = vand.u32 4294901760, %v20154_v13 }
 0x6b4   : > { %8858 = vmatmul.f32.vlgmr.msrb.gmra.mxu1 %v20345_v40  ;;  %9006 = vmatpush.msra.mxu0 %v20074_v28  ;;  %v8485_v28 = vld [vmem:[%s23634_s9 + $0xf0] sm:$0xff] }
 0x6b5   : > { %9067 = vmatpush.msra.mxu1 %v20117_v27  ;;  %9112 = vmatpush.msra.mxu2 %v24252_v25 }
 0x6b6   : > { %9171 = vmatpush.msra.mxu3 %v20087_v19  ;;  %8899 = vmatmul.f32.vlgmr.msrb.gmra.mxu2 %v8557_v44  ;;  %v8483_v19 = vld [vmem:[%s23634_s9 + $0xe0] sm:$0xff]  ;;  %v8461_v44 = vld [vmem:[%s23634_s9 + $0x30] sm:$0xff] }
 0x6b7   : > { %9009 = vmatpush.msra.mxu0 %v20090_v31  ;;  %9069 = vmatpush.msra.mxu1 %v20135_v47  ;;  %v20394_v31 = vand.u32 4294901760, %v8485_v28 }
 0x6b8   : > { %9116 = vmatpush.msra.mxu2 %v24253_v58  ;;  %9173 = vmatpush.msra.mxu3 %v20103_v20  ;;  %v8481_v20 = vld [vmem:[%s23634_s9 + $0xd0] sm:$0xff] }
 0x6b9   : > { %9000 = vmatmul.f32.vlgmr.msrb.gmra.mxu3 %v20345_v40  ;;  %9012 = vmatpush.msra.mxu0 %v20106_v30  ;;  %v20404_v30 = vand.u32 4294901760, %v8483_v19 }
 0x6ba   : > { %9071 = vmatpush.msra.mxu1 %v20151_v33  ;;  %9120 = vmatpush.msra.mxu2 %v24254_v39 }
 0x6bb   : > { %9175 = vmatpush.msra.mxu3 %v20117_v27  ;;  %9015 = vmatpush.msra.mxu0 %v20124_v3  ;;  %v8479_v27 = vld [vmem:[%s23634_s9 + $0xc0] sm:$0xff]  ;;  %v24255_v3 = vand.u32 4294901760, %v20197_v23 }
 0x6bc   : > { %9073 = vmatpush.msra.mxu1 %v20170_v46  ;;  %9124 = vmatpush.msra.mxu2 %v8941_v4  ;;  %v20415_v4 = vsub.f32 %v8485_v28, %v20394_v31  ;;  %v20430_v52 = vand.u32 4294901760, %v8479_v27 }
 0x6bd   : > { %9177 = vmatpush.msra.mxu3 %v20135_v47  ;;  %8821 = vmatmul.f32.vlgmr.msrb.gmra.mxu0 %v20345_v40  ;;  %v20417_v47 = vand.u32 4294901760, %v8481_v20 }
 0x6be   : > { %9018 = vmatpush.msra.mxu0 %v20138_v12  ;;  %9075 = vmatpush.msra.mxu1 %v20190_v45  ;;  %v8477_v12 = vld [vmem:[%s23634_s9 + $0xb0] sm:$0xff]  ;;  %v23834_v1 = vand.u32 4294901760, %v20415_v4  ;;  %v20456_v11 = vsub.f32 %v8479_v27, %v20430_v52 }
 0x6bf   : > { %9128 = vmatpush.msra.mxu2 %v24255_v3  ;;  %9179 = vmatpush.msra.mxu3 %v20151_v33  ;;  %v20428_v33 = vsub.f32 %v8483_v19, %v20404_v30  ;;  %v20439_v2 = vsub.f32 %v8481_v20, %v20417_v47  ;;  %v9289_v19 = vsub.f32 %v20520_v26, %v23825_v55  ;;  %v8457_v20 = vld [vmem:[%s23634_s9 + $0x10] sm:$0xff] }
 0x6c0   : > { %9021 = vmatpush.msra.mxu0 %v20154_v13  ;;  %9077 = vmatpush.msra.mxu1 %v20206_v42  ;;  %v24257_v13 = vand.u32 4294901760, %v20225_v38 }
 0x6c1   : > { %9132 = vmatpush.msra.mxu2 %v24256_v54  ;;  %9181 = vmatpush.msra.mxu3 %v20170_v46  ;;  %v20441_v46 = vand.u32 4294901760, %v8477_v12 }
 0x6c2   : > { %9024 = vmatpush.msra.mxu0 %v20173_v29  ;;  %9079 = vmatpush.msra.mxu1 %v20222_v51  ;;  %v8473_v29 = vld [vmem:[%s23634_s9 + $0x90] sm:$0xff] }
 0x6c3   : > { %9136 = vmatpush.msra.mxu2 %v24257_v13  ;;  %9183 = vmatpush.msra.mxu3 %v20190_v45  ;;  %v23832_v45 = vand.u32 4294901760, %v20428_v33  ;;  %v20475_v9 = vand.u32 4294901760, %v8473_v29  ;;  %v8455_v13 = vld [vmem:[%s23634_s9] sm:$0xff] }
 0x6c4   : > { %9027 = vmatpush.msra.mxu0 %v20197_v23  ;;  %9081 = vmatpush.msra.mxu1 %v20242_v0  ;;  %v20460_v23 = vand.u32 4294901760, %v8475_v57 }
 0x6c5   : > { %9140 = vmatpush.msra.mxu2 %v8965_v53  ;;  %9185 = vmatpush.msra.mxu3 %v20206_v42  ;;  %v9247_v42 = vsub.f32 %v20415_v4, %v23834_v1  ;;  %v23831_v53 = vand.u32 4294901760, %v20439_v2  ;;  %v20504_v8 = vsub.f32 %v8473_v29, %v20475_v9 }
 0x6c6   : > { %9030 = vmatpush.msra.mxu0 %v20209_v17  ;;  %9083 = vmatpush.msra.mxu1 %v20260_v16  ;;  %v20473_v17 = vsub.f32 %v8477_v12, %v20441_v46 }
 0x6c7   : > { %9144 = vmatpush.msra.mxu2 %v8971_v10  ;;  %9187 = vmatpush.msra.mxu3 %v20222_v51  ;;  %v9253_v51 = vsub.f32 %v20428_v33, %v23832_v45  ;;  %v23830_v10 = vand.u32 4294901760, %v20456_v11  ;;  %v23826_v24 = vand.u32 4294901760, %v20504_v8  ;;  %v8466_v45 = vld [vmem:[%s23634_s9 + $0x58] sm:$0xff] }
 0x6c8   : > { %9033 = vmatpush.msra.mxu0 %v20225_v38  ;;  %9085 = vmatpush.msra.mxu1 %v20276_v5  ;;  %v20494_v38 = vsub.f32 %v8475_v57, %v20460_v23  ;;  %v23829_v7 = vand.u32 4294901760, %v20473_v17 }
 0x6c9   : > { %9148 = vmatpush.msra.mxu2 %v8977_v61  ;;  %9189 = vmatpush.msra.mxu3 %v20242_v0  ;;  %v9248_v0 = vand.u32 4294901760, %v9247_v42  ;;  %v9259_v61 = vsub.f32 %v20439_v2, %v23831_v53  ;;  %v9265_v59 = vsub.f32 %v20456_v11, %v23830_v10  ;;  %v9283_v28 = vsub.f32 %v20504_v8, %v23826_v24 }
 0x6ca   : > { %9036 = vmatpush.msra.mxu0 %v20245_v63  ;;  %9087 = vmatpush.msra.mxu1 %v20288_v56  ;;  %v8467_v63 = vld [vmem:[%s23634_s9 + $0x60] sm:$0xff]  ;;  %v9271_v18 = vsub.f32 %v20473_v17, %v23829_v7  ;;  %v9290_v42 = vand.u32 4294901760, %v9289_v19 }
 0x6cb   : > { %9152 = vmatpush.msra.mxu2 %v8983_v34  ;;  %9191 = vmatpush.msra.mxu3 %v20260_v16  ;;  %v20511_v34 = vand.u32 4294901760, %v8469_v14  ;;  %v9254_v16 = vand.u32 4294901760, %v9253_v51  ;;  %v20528_v32 = vand.u32 4294901760, %v8467_v63  ;;  %v9284_v54 = vand.u32 4294901760, %v9283_v28  ;;  %v8484_v28 = vld [vmem:[%s23634_s9 + $0xe8] sm:$0xff] }
 0x6cc   : > { %9039 = vmatpush.msra.mxu0 %v20267_v15  ;;  %9089 = vmatpush.msra.mxu1 %v20310_v60  ;;  %v8465_v15 = vld [vmem:[%s23634_s9 + $0x50] sm:$0xff]  ;;  %v9272_v58 = vand.u32 4294901760, %v9271_v18 }
 0x6cd   : > { %9156 = vmatpush.msra.mxu2 %v8989_v62  ;;  %9193 = vmatpush.msra.mxu3 %v20276_v5  ;;  %v23828_v62 = vand.u32 4294901760, %v20494_v38  ;;  %v9260_v5 = vand.u32 4294901760, %v9259_v61  ;;  %v20544_v36 = vand.u32 4294901760, %v8465_v15  ;;  %v20557_v48 = vsub.f32 %v8467_v63, %v20528_v32 }
 0x6ce   : > { %9093 = vmatmul.f32.vlgmr.msra.gmra.mxu1 %v20354_v49  ;;  %9042 = vmatpush.msra.mxu0 %v20279_v50  ;;  %v8463_v49 = vld [vmem:[%s23634_s9 + $0x40] sm:$0xff]  ;;  %v20542_v50 = vsub.f32 %v8469_v14, %v20511_v34 }
 0x6cf   : > { %9249 = vmatpush.msrb.mxu1 %v9248_v0  ;;  %9160 = vmatpush.msra.mxu2 %v8995_v37  ;;  %v9266_v37 = vand.u32 4294901760, %v9265_v59  ;;  %v20559_v25 = vand.u32 4294901760, %v8463_v49  ;;  %v20572_v39 = vsub.f32 %v8465_v15, %v20544_v36  ;;  %v23823_v3 = vand.u32 4294901760, %v20557_v48 }
 0x6d0   : > { %9195 = vmatpush.msra.mxu3 %v20288_v56  ;;  %9162 = vmatmul.f32.vlgmr.msra.gmra.mxu2 %v20345_v40  ;;  %v9277_v56 = vsub.f32 %v20494_v38, %v23828_v62  ;;  %v20616_v0 = vand.u32 4294901760, %v8455_v13  ;;  %v8468_v62 = vld [vmem:[%s23634_s9 + $0x68] sm:$0xff] }
 0x6d1   : > { %9255 = vmatpush.msrb.mxu1 %v9254_v16  ;;  %9347 = vmatpush.msrb.mxu2 %v20415_v4  ;;  %v20587_v12 = vsub.f32 %v8463_v49, %v20559_v25  ;;  %v23821_v29 = vand.u32 4294901760, %v20572_v39 }
 0x6d2   : > { %9045 = vmatpush.msra.mxu0 %v20293_v43  ;;  %9197 = vmatpush.msra.mxu3 %v20310_v60  ;;  %v8459_v43 = vld [vmem:[%s23634_s9 + $0x20] sm:$0xff]  ;;  %v23824_v60 = vand.u32 4294901760, %v20542_v50  ;;  %v9278_v27 = vand.u32 4294901760, %v9277_v56  ;;  %v20636_v49 = vsub.f32 %v8455_v13, %v20616_v0 }
 0x6d3   : > { %9199 = vmatmul.f32.vlgmr.msra.gmra.mxu3 %v20345_v40  ;;  %9261 = vmatpush.msrb.mxu1 %v9260_v5  ;;  %v20574_v40 = vand.u32 4294901760, %v8461_v44  ;;  %v23820_v51 = vand.u32 4294901760, %v20587_v12  ;;  %v9307_v63 = vsub.f32 %v20572_v39, %v23821_v29  ;;  %v8472_v29 = vld [vmem:[%s23634_s9 + $0x88] sm:$0xff] }
 0x6d4   : > { %9350 = vmatpush.msrb.mxu2 %v20428_v33  ;;  %9400 = vmatpush.msrb.mxu3 %v20394_v31  ;;  %v9295_v57 = vsub.f32 %v20542_v50, %v23824_v60  ;;  %v8470_v60 = vld [vmem:[%s23634_s9 + $0x78] sm:$0xff]  ;;  %v20759_v24 = vand.u32 4294901760, %v8472_v29 }
 0x6d5   : > { %9048 = vmatpush.msra.mxu0 %v20313_v6  ;;  %9267 = vmatpush.msrb.mxu1 %v9266_v37  ;;  %v20589_v6 = vand.u32 4294901760, %v8459_v43  ;;  %v20602_v41 = vsub.f32 %v8461_v44, %v20574_v40  ;;  %v9313_v5 = vsub.f32 %v20587_v12, %v23820_v51  ;;  %v8486_v37 = vld [vmem:[%s23634_s9 + $0xf8] sm:$0xff]  ;;  %v9308_v44 = vand.u32 4294901760, %v9307_v63 }
 0x6d6   : > { %9353 = vmatpush.msrb.mxu2 %v20439_v2  ;;  %9402 = vmatpush.msrb.mxu3 %v20404_v30  ;;  %v9296_v61 = vand.u32 4294901760, %v9295_v57  ;;  %v20666_v57 = vand.u32 4294901760, %v8484_v28  ;;  %v8474_v51 = vld [vmem:[%s23634_s9 + $0x98] sm:$0xff]  ;;  %v20775_v10 = vand.u32 4294901760, %v8470_v60 }
 0x6d7   : > { %9051 = vmatpush.msra.mxu0 %v20324_v22  ;;  %9273 = vmatpush.msrb.mxu1 %v9272_v58  ;;  %v20604_v22 = vand.u32 4294901760, %v8457_v20  ;;  %v20614_v14 = vsub.f32 %v8459_v43, %v20589_v6  ;;  %v23819_v16 = vand.u32 4294901760, %v20602_v41  ;;  %v9314_v43 = vand.u32 4294901760, %v9313_v5  ;;  %v8480_v5 = vld [vmem:[%s23634_s9 + $0xc8] sm:$0xff] }
 0x6d8   : > { %9054 = vmatmul.f32.vlgmr.msra.gmra.mxu0 %v20349_v35  ;;  %9356 = vmatpush.msrb.mxu2 %v20456_v11  ;;  %v9301_v35 = vsub.f32 %v20557_v48, %v23823_v3 }
 0x6d9   : > { %9204 = vmatpush.msrb.mxu0 %v20394_v31  ;;  %9404 = vmatpush.msrb.mxu3 %v20417_v47  ;;  %v20626_v59 = vsub.f32 %v8457_v20, %v20604_v22  ;;  %v23818_v18 = vand.u32 4294901760, %v20614_v14  ;;  %v9319_v56 = vsub.f32 %v20602_v41, %v23819_v16  ;;  %v23816_v20 = vand.u32 4294901760, %v20636_v49 }
 0x6da   : > { %9279 = vmatpush.msrb.mxu1 %v9278_v27  ;;  %9359 = vmatpush.msrb.mxu2 %v20473_v17  ;;  %v9302_v15 = vand.u32 4294901760, %v9301_v35  ;;  %v20658_v27 = vand.u32 4294901760, %v8486_v37  ;;  %v8454_v35 = vld [vmem:[#allocation4] sm:$0x3f] }
 0x6db   : > { %9206 = vmatpush.msrb.mxu0 %v20404_v30  ;;  %9406 = vmatpush.msrb.mxu3 %v20430_v52  ;;  %v23817_v58 = vand.u32 4294901760, %v20626_v59  ;;  %v9325_v19 = vsub.f32 %v20614_v14, %v23818_v18  ;;  %v9337_v63 = vsub.f32 %v20636_v49, %v23816_v20  ;;  %v20698_v20 = vand.u32 4294901760, %v8480_v5 }
 0x6dc   : > { %9285 = vmatpush.msrb.mxu1 %v9284_v54  ;;  %9362 = vmatpush.msrb.mxu2 %v20494_v38  ;;  %v9320_v54 = vand.u32 4294901760, %v9319_v56  ;;  %v8478_v56 = vld [vmem:[%s23634_s9 + $0xb8] sm:$0xff] }
 0x6dd   : > { %9208 = vmatpush.msrb.mxu0 %v20417_v47  ;;  %9408 = vmatpush.msrb.mxu3 %v20441_v46  ;;  %v9331_v13 = vsub.f32 %v20626_v59, %v23817_v58  ;;  %v8476_v58 = vld [vmem:[%s23634_s9 + $0xa8] sm:$0xff]  ;;  %v20705_v18 = vand.u32 4294901760, %v8478_v56 }
 0x6de   : > { %9291 = vmatpush.msrb.mxu1 %v9290_v42  ;;  %9365 = vmatpush.msrb.mxu2 %v20504_v8  ;;  %v8482_v42 = vld [vmem:[%s23634_s9 + $0xd8] sm:$0xff] }
 0x6df   : > { %9210 = vmatpush.msrb.mxu0 %v20430_v52  ;;  %9410 = vmatpush.msrb.mxu3 %v20460_v23 }
 0x6e0   : > { %9297 = vmatpush.msrb.mxu1 %v9296_v61  ;;  %9368 = vmatpush.msrb.mxu2 %v20520_v26  ;;  %v9326_v61 = vand.u32 4294901760, %v9325_v19  ;;  %v20694_v19 = vsub.f32 %v8484_v28, %v20666_v57 }
 0x6e1   : > { %9212 = vmatpush.msrb.mxu0 %v20441_v46  ;;  %9412 = vmatpush.msrb.mxu3 %v20475_v9 }
 0x6e2   : > { %9303 = vmatpush.msrb.mxu1 %v9302_v15  ;;  %9371 = vmatpush.msrb.mxu2 %v20542_v50  ;;  %v20678_v15 = vsub.f32 %v8486_v37, %v20658_v27  ;;  %v20691_v37 = vand.u32 4294901760, %v8454_v35 }
 0x6e3   : > { %9214 = vmatpush.msrb.mxu0 %v20460_v23  ;;  %9414 = vmatpush.msrb.mxu3 %v20486_v21 }
 0x6e4   : > { %9309 = vmatpush.msrb.mxu1 %v9308_v44  ;;  %9374 = vmatpush.msrb.mxu2 %v20557_v48  ;;  %v20685_v44 = vand.u32 4294901760, %v8482_v42  ;;  %v20714_v16 = vsub.f32 %v8454_v35, %v20691_v37 }
 0x6e5   : > { %9216 = vmatpush.msrb.mxu0 %v20475_v9  ;;  %9416 = vmatpush.msrb.mxu3 %v20511_v34 }
 0x6e6   : > { %9315 = vmatpush.msrb.mxu1 %v9314_v43  ;;  %9377 = vmatpush.msrb.mxu2 %v20572_v39  ;;  %v9332_v43 = vand.u32 4294901760, %v9331_v13  ;;  %v23822_v13 = vand.u32 4294901760, %v20678_v15  ;;  %v20710_v28 = vsub.f32 %v8482_v42, %v20685_v44  ;;  %24258 = vst [vmem:[#allocation45_spill] sm:$0xff] %v20714_v16  ;;  %v20725_v42 = vsub.f32 %v8480_v5, %v20698_v20 }
 0x6e7   : > { %9218 = vmatpush.msrb.mxu0 %v20486_v21  ;;  %9418 = vmatpush.msrb.mxu3 %v20528_v32 }
 0x6e8   : > { %9321 = vmatpush.msrb.mxu1 %v9320_v54  ;;  %9380 = vmatpush.msrb.mxu2 %v20587_v12  ;;  %v9338_v54 = vand.u32 4294901760, %v9337_v63  ;;  %v20717_v63 = vand.u32 4294901760, %v8476_v58  ;;  %v9588_v35 = vsub.f32 %v20678_v15, %v23822_v13  ;;  %v23833_v5 = vand.u32 4294901760, %v20710_v28 }
 0x6e9   : > { %9220 = vmatpush.msrb.mxu0 %v20511_v34  ;;  %9420 = vmatpush.msrb.mxu3 %v20544_v36  ;;  %v20745_v13 = vand.u32 4294901760, %v20714_v16  ;;  %v23835_v55 = vand.u32 4294901760, %v20725_v42 }
 0x6ea   : > { %9327 = vmatpush.msrb.mxu1 %v9326_v61  ;;  %9383 = vmatpush.msrb.mxu2 %v20602_v41  ;;  %v23827_v61 = vand.u32 4294901760, %v20694_v19  ;;  %v20751_v3 = vsub.f32 %v8476_v58, %v20717_v63 }
 0x6eb   : > { %9222 = vmatpush.msrb.mxu0 %v20528_v32  ;;  %9422 = vmatpush.msrb.mxu3 %v20559_v25  ;;  %24260 = vst [vmem:[#allocation47_spill] sm:$0xff] %v20745_v13  ;;  %v9238_v53 = vsub.f32 %v20714_v16, %v20745_v13 }
 0x6ec   : > { %9333 = vmatpush.msrb.mxu1 %v9332_v43  ;;  %9386 = vmatpush.msrb.mxu2 %v20614_v14  ;;  %v20732_v43 = vsub.f32 %v8478_v56, %v20705_v18  ;;  %v9594_v56 = vsub.f32 %v20694_v19, %v23827_v61  ;;  %24261 = vst [vmem:[#allocation48_spill] sm:$0xff] %v20751_v3  ;;  %v9589_v61 = vand.u32 4294901760, %v9588_v35 }
 0x6ed   : > { %9224 = vmatpush.msrb.mxu0 %v20544_v36  ;;  %9424 = vmatpush.msrb.mxu3 %v20574_v40 }
 0x6ee   : > { %9339 = vmatpush.msrb.mxu1 %v9338_v54  ;;  %9389 = vmatpush.msrb.mxu2 %v20626_v59  ;;  %24259 = vst [vmem:[#allocation46_spill] sm:$0xff] %v20732_v43  ;;  %v20740_v54 = vand.u32 4294901760, %v8474_v51  ;;  %v23837_v58 = vand.u32 4294901760, %v20732_v43  ;;  %v9595_v35 = vand.u32 4294901760, %v9594_v56  ;;  %v20793_v56 = vand.u32 4294901760, %v8468_v62 }
 0x6ef   : > { %9226 = vmatpush.msrb.mxu0 %v20559_v25  ;;  %9426 = vmatpush.msrb.mxu3 %v20589_v6 }
 0x6f0   : > { %9341 = vmatmul.f32.vlgmr.msrb.gmra.mxu1 %v20691_v37  ;;  %9392 = vmatpush.msrb.mxu2 %v20636_v49  ;;  %v20773_v7 = vsub.f32 %v8474_v51, %v20740_v54  ;;  %v9606_v51 = vsub.f32 %v20725_v42, %v23835_v55  ;;  %v9612_v1 = vsub.f32 %v20732_v43, %v23837_v58  ;;  %v24262_v58 = vand.u32 4294901760, %v20751_v3 }
 0x6f1   : > { %9508 = vmatpush.msra.mxu1 %v20394_v31  ;;  %9228 = vmatpush.msrb.mxu0 %v20574_v40  ;;  %v9600_v31 = vsub.f32 %v20710_v28, %v23833_v5  ;;  %v20791_v5 = vsub.f32 %v8472_v29, %v20759_v24  ;;  %v20823_v29 = vsub.f32 %v8468_v62, %v20793_v56 }
 0x6f2   : > { %9428 = vmatpush.msrb.mxu3 %v20604_v22  ;;  %9395 = vmatmul.f32.vlgmr.msrb.gmra.mxu2 %v20714_v16  ;;  %v20808_v16 = vand.u32 4294901760, %v8466_v45 }
 0x6f3   : > { %9510 = vmatpush.msra.mxu1 %v20404_v30  ;;  %9545 = vmatpush.msra.mxu2 %v20658_v27  ;;  %v9601_v55 = vand.u32 4294901760, %v9600_v31  ;;  %v20806_v30 = vsub.f32 %v8470_v60, %v20775_v10  ;;  %v9607_v60 = vand.u32 4294901760, %v9606_v51 }
 0x6f4   : > { %9230 = vmatpush.msrb.mxu0 %v20589_v6  ;;  %9430 = vmatpush.msrb.mxu3 %v20616_v0  ;;  %v20839_v31 = vsub.f32 %v8466_v45, %v20808_v16 }
 0x6f5   : > { %9434 = vmatmul.f32.vlgmr.msrb.gmra.mxu3 %v20745_v13  ;;  %9512 = vmatpush.msra.mxu1 %v20417_v47  ;;  %v8464_v47 = vld [vmem:[%s23634_s9 + $0x48] sm:$0xff]  ;;  %v9618_v13 = vsub.f32 %v20751_v3, %v24262_v58  ;;  %v9613_v58 = vand.u32 4294901760, %v9612_v1  ;;  %v24263_v3 = vand.u32 4294901760, %v20415_v4  ;;  %v24265_v4 = vand.u32 4294901760, %v20428_v33 }
 0x6f6   : > { %9547 = vmatpush.msra.mxu2 %v20666_v57  ;;  %9590 = vmatpush.msra.mxu3 %v9589_v61  ;;  %v20811_v61 = vand.u32 4294901760, %v9238_v53  ;;  %v20825_v53 = vand.u32 4294901760, %v8464_v47  ;;  %v24267_v33 = vand.u32 4294901760, %v20439_v2 }
 0x6f7   : > { %9232 = vmatpush.msrb.mxu0 %v20604_v22  ;;  %9514 = vmatpush.msra.mxu1 %v20430_v52  ;;  %v8462_v52 = vld [vmem:[%s23634_s9 + $0x38] sm:$0xff]  ;;  %v9619_v1 = vand.u32 4294901760, %v9618_v13 }
 0x6f8   : > { %9549 = vmatpush.msra.mxu2 %v20685_v44  ;;  %9596 = vmatpush.msra.mxu3 %v9595_v35  ;;  %v8460_v35 = vld [vmem:[%s23634_s9 + $0x28] sm:$0xff]  ;;  %v20841_v43 = vand.u32 4294901760, %v8462_v52  ;;  %v20852_v45 = vsub.f32 %v8464_v47, %v20825_v53 }
 0x6f9   : > { %9234 = vmatpush.msrb.mxu0 %v20616_v0  ;;  %9516 = vmatpush.msra.mxu1 %v20441_v46  ;;  %v24264_v46 = vand.u32 4294901760, %v20773_v7  ;;  %v20854_v51 = vand.u32 4294901760, %v8460_v35 }
 0x6fa   : > { %9240 = vmatmul.f32.vlgmr.msrb.gmra.mxu0 %v20811_v61  ;;  %9551 = vmatpush.msra.mxu2 %v20698_v20 }
 0x6fb   : > { %9441 = vmatpush.msra.mxu0 %v24263_v3  ;;  %9602 = vmatpush.msra.mxu3 %v9601_v55  ;;  %v9624_v62 = vsub.f32 %v20773_v7, %v24264_v46  ;;  %v24266_v55 = vand.u32 4294901760, %v20791_v5  ;;  %v9641_v46 = vand.u32 4294901760, %v20823_v29 }
 0x6fc   : > { %9518 = vmatpush.msra.mxu1 %v20460_v23  ;;  %9553 = vmatpush.msra.mxu2 %v20705_v18  ;;  %v8458_v23 = vld [vmem:[%s23634_s9 + $0x18] sm:$0xff] }
 0x6fd   : > { %9445 = vmatpush.msra.mxu0 %v24265_v4  ;;  %9608 = vmatpush.msra.mxu3 %v9607_v60  ;;  %v9630_v3 = vsub.f32 %v20791_v5, %v24266_v55  ;;  %v9625_v13 = vand.u32 4294901760, %v9624_v62  ;;  %v24268_v60 = vand.u32 4294901760, %v20806_v30  ;;  %v9647_v4 = vand.u32 4294901760, %v20839_v31 }
 0x6fe   : > { %9520 = vmatpush.msra.mxu1 %v20475_v9  ;;  %9555 = vmatpush.msra.mxu2 %v20717_v63  ;;  %v20868_v55 = vsub.f32 %v8462_v52, %v20841_v43  ;;  %v8456_v9 = vld [vmem:[%s23634_s9 + $0x8] sm:$0xff]  ;;  %v20875_v2 = vand.u32 4294901760, %v8458_v23  ;;  %v9642_v52 = vsub.f32 %v20823_v29, %v9641_v46 }
 0x6ff   : > { %9449 = vmatpush.msra.mxu0 %v24267_v33  ;;  %9614 = vmatpush.msra.mxu3 %v9613_v58  ;;  %v9636_v47 = vsub.f32 %v20806_v30, %v24268_v60  ;;  %v24269_v58 = vand.u32 4294901760, %v20456_v11  ;;  %v9631_v62 = vand.u32 4294901760, %v9630_v3  ;;  %v9653_v33 = vand.u32 4294901760, %v20852_v45 }
 0x700   : > { %9522 = vmatpush.msra.mxu1 %v20486_v21  ;;  %9557 = vmatpush.msra.mxu2 %v20740_v54  ;;  %v20884_v60 = vsub.f32 %v8460_v35, %v20854_v51  ;;  %v20888_v21 = vand.u32 4294901760, %v8456_v9  ;;  %v24270_v11 = vand.u32 4294901760, %v20473_v17  ;;  %v9648_v3 = vsub.f32 %v20839_v31, %v9647_v4 }
 0x701   : > { %9453 = vmatpush.msra.mxu0 %v24269_v58  ;;  %9620 = vmatpush.msra.mxu3 %v9619_v1  ;;  %v9637_v1 = vand.u32 4294901760, %v9636_v47  ;;  %v9659_v58 = vand.u32 4294901760, %v20868_v55  ;;  %v24271_v35 = vand.u32 4294901760, %v20494_v38  ;;  %v9643_v17 = vand.u32 4294901760, %v9642_v52 }
 0x702   : > { %9524 = vmatpush.msra.mxu1 %v20511_v34  ;;  %9559 = vmatpush.msra.mxu2 %v20759_v24  ;;  %v20899_v34 = vsub.f32 %v8458_v23, %v20875_v2  ;;  %v9665_v47 = vand.u32 4294901760, %v20884_v60  ;;  %v24272_v23 = vand.u32 4294901760, %v20504_v8  ;;  %v9649_v38 = vand.u32 4294901760, %v9648_v3 }
 0x703   : > { %9457 = vmatpush.msra.mxu0 %v24270_v11  ;;  %9626 = vmatpush.msra.mxu3 %v9625_v13  ;;  %v9654_v13 = vsub.f32 %v20852_v45, %v9653_v33  ;;  %v24273_v52 = vand.u32 4294901760, %v20520_v26  ;;  %v24275_v3 = vand.u32 4294901760, %v20557_v48 }
 0x704   : > { %9526 = vmatpush.msra.mxu1 %v20528_v32  ;;  %9561 = vmatpush.msra.mxu2 %v20775_v10  ;;  %v20910_v32 = vsub.f32 %v8456_v9, %v20888_v21  ;;  %v9666_v8 = vsub.f32 %v20884_v60, %v9665_v47 }
 0x705   : > { %9461 = vmatpush.msra.mxu0 %v24271_v35  ;;  %9632 = vmatpush.msra.mxu3 %v9631_v62  ;;  %v9660_v62 = vsub.f32 %v20868_v55, %v9659_v58  ;;  %v9655_v9 = vand.u32 4294901760, %v9654_v13  ;;  %v24277_v35 = vand.u32 4294901760, %v20587_v12  ;;  %v24280_v12 = vand.u32 4294901760, %v20614_v14 }
 0x706   : > { %9528 = vmatpush.msra.mxu1 %v20544_v36  ;;  %9563 = vmatpush.msra.mxu2 %v20793_v56  ;;  %v9671_v36 = vand.u32 4294901760, %v20899_v34  ;;  %v9677_v11 = vand.u32 4294901760, %v20910_v32  ;;  %v24284_v14 = vand.u32 4294901760, %v20636_v49  ;;  %v24285_v13 = vand.u32 4294901760, %v20725_v42  ;;  %v13718_v49 = vld [vmem:[%s23634_s9 + $0x2f0] sm:$0xff] }
 0x707   : > { %9465 = vmatpush.msra.mxu0 %v24272_v23  ;;  %9638 = vmatpush.msra.mxu3 %v9637_v1  ;;  %v9661_v1 = vand.u32 4294901760, %v9660_v62 }
 0x708   : > { %9530 = vmatpush.msra.mxu1 %v20559_v25  ;;  %9565 = vmatpush.msra.mxu2 %v20808_v16  ;;  %v24274_v25 = vand.u32 4294901760, %v20542_v50  ;;  %v9672_v26 = vsub.f32 %v20899_v34, %v9671_v36  ;;  %v9678_v50 = vsub.f32 %v20910_v32, %v9677_v11 }
 0x709   : > { %9469 = vmatpush.msra.mxu0 %v24273_v52  ;;  %9644 = vmatpush.msra.mxu3 %v9643_v17  ;;  %v24281_v17 = vand.u32 4294901760, %v20694_v19  ;;  %v13710_v52 = vld [vmem:[%s23634_s9 + $0x2b0] sm:$0xff] }
 0x70a   : > { %9532 = vmatpush.msra.mxu1 %v20574_v40  ;;  %9567 = vmatpush.msra.mxu2 %v20825_v53  ;;  %v9667_v40 = vand.u32 4294901760, %v9666_v8  ;;  %v9673_v48 = vand.u32 4294901760, %v9672_v26 }
 0x70b   : > { %9473 = vmatpush.msra.mxu0 %v24274_v25  ;;  %9650 = vmatpush.msra.mxu3 %v9649_v38 }
 0x70c   : > { %9534 = vmatpush.msra.mxu1 %v20589_v6  ;;  %9569 = vmatpush.msra.mxu2 %v20841_v43  ;;  %v24276_v6 = vand.u32 4294901760, %v20572_v39  ;;  %v24278_v39 = vand.u32 4294901760, %v20602_v41  ;;  %v24282_v41 = vand.u32 4294901760, %v20626_v59  ;;  %v24286_v59 = vld [vmem:[#allocation46_spill] sm:$0xff] }
 0x70d   : > { %9477 = vmatpush.msra.mxu0 %v24275_v3  ;;  %9656 = vmatpush.msra.mxu3 %v9655_v9 }
 0x70e   : > { %9536 = vmatpush.msra.mxu1 %v20604_v22  ;;  %9571 = vmatpush.msra.mxu2 %v20854_v51  ;;  %v9679_v22 = vand.u32 4294901760, %v9678_v50  ;;  %v13702_v50 = vld [vmem:[%s23634_s9 + $0x270] sm:$0xff] }
 0x70f   : > { %9481 = vmatpush.msra.mxu0 %v24276_v6  ;;  %9662 = vmatpush.msra.mxu3 %v9661_v1  ;;  %v13708_v1 = vld [vmem:[%s23634_s9 + $0x2a0] sm:$0xff] }
 0x710   : > { %9538 = vmatpush.msra.mxu1 %v20616_v0  ;;  %9573 = vmatpush.msra.mxu2 %v20875_v2  ;;  %v24279_v0 = vand.u32 4294901760, %v20678_v15  ;;  %v21061_v26 = vand.u32 4294901760, %v13708_v1 }
 0x711   : > { %9485 = vmatpush.msra.mxu0 %v24277_v35  ;;  %9668 = vmatpush.msra.mxu3 %v9667_v40 }
 0x712   : > { %9540 = vmatmul.f32.vlgmr.msra.gmra.mxu1 %v20691_v37  ;;  %9575 = vmatpush.msra.mxu2 %v20888_v21 }
 0x713   : > { %9741 = vmatpush.msrb.mxu1 %v20658_v27  ;;  %9489 = vmatpush.msra.mxu0 %v24278_v39  ;;  %v13698_v39 = vld [vmem:[%s23634_s9 + $0x250] sm:$0xff] }
 0x714   : > { %9674 = vmatpush.msra.mxu3 %v9673_v48  ;;  %9581 = vmatmul.f32.vlgmr.msra.gmra.mxu2 %v20811_v61  ;;  %v24283_v61 = vand.u32 4294901760, %v20710_v28 }
 0x715   : > { %9743 = vmatpush.msrb.mxu1 %v20666_v57  ;;  %9782 = vmatpush.msrb.mxu2 %v24279_v0  ;;  %v24293_v0 = vld [vmem:[#allocation47_spill] sm:$0xff] }
 0x716   : > { %9493 = vmatpush.msra.mxu0 %v24280_v12  ;;  %9680 = vmatpush.msra.mxu3 %v9679_v22 }
 0x717   : > { %9682 = vmatmul.f32.vlgmr.msra.gmra.mxu3 %v20691_v37  ;;  %9745 = vmatpush.msrb.mxu1 %v20685_v44 }
 0x718   : > { %9786 = vmatpush.msrb.mxu2 %v24281_v17  ;;  %9849 = vmatpush.msrb.mxu3 %v20658_v27  ;;  %v24287_v27 = vand.u32 4294901760, %v24286_v59 }
 0x719   : > { %9497 = vmatpush.msra.mxu0 %v24282_v41  ;;  %9747 = vmatpush.msrb.mxu1 %v20698_v20  ;;  %v13696_v41 = vld [vmem:[%s23634_s9 + $0x240] sm:$0xff] }
 0x71a   : > { %9790 = vmatpush.msrb.mxu2 %v24283_v61  ;;  %9851 = vmatpush.msrb.mxu3 %v20666_v57  ;;  %v24288_v57 = vld [vmem:[#allocation48_spill] sm:$0xff]  ;;  %v21144_v61 = vand.u32 4294901760, %v13698_v39 }
 0x71b   : > { %9501 = vmatpush.msra.mxu0 %v24284_v14  ;;  %9749 = vmatpush.msrb.mxu1 %v20705_v18  ;;  %v24289_v23 = vand.u32 4294901760, %v24288_v57 }
 0x71c   : > { %9503 = vmatmul.f32.vlgmr.msra.gmra.mxu0 %v20691_v37  ;;  %9794 = vmatpush.msrb.mxu2 %v24285_v13  ;;  %v13694_v13 = vld [vmem:[%s23634_s9 + $0x230] sm:$0xff] }
 0x71d   : > { %9688 = vmatpush.msrb.mxu0 %v20678_v15  ;;  %9853 = vmatpush.msrb.mxu3 %v20685_v44  ;;  %v13716_v15 = vld [vmem:[%s23634_s9 + $0x2e0] sm:$0xff]  ;;  %v20994_v44 = vand.u32 4294901760, %v13718_v49 }
 0x71e   : > { %9751 = vmatpush.msrb.mxu1 %v20717_v63  ;;  %9798 = vmatpush.msrb.mxu2 %v24287_v27  ;;  %v21004_v38 = vand.u32 4294901760, %v13716_v15  ;;  %v21159_v27 = vand.u32 4294901760, %v13696_v41 }
 0x71f   : > { %9691 = vmatpush.msrb.mxu0 %v20694_v19  ;;  %9855 = vmatpush.msrb.mxu3 %v20698_v20  ;;  %v24290_v19 = vand.u32 4294901760, %v20773_v7  ;;  %v13714_v20 = vld [vmem:[%s23634_s9 + $0x2d0] sm:$0xff]  ;;  %v21015_v62 = vsub.f32 %v13718_v49, %v20994_v44 }
 0x720   : > { %9753 = vmatpush.msrb.mxu1 %v20740_v54  ;;  %9802 = vmatpush.msrb.mxu2 %v24289_v23  ;;  %v21172_v23 = vsub.f32 %v13698_v39, %v21144_v61 }
 0x721   : > { %9694 = vmatpush.msrb.mxu0 %v20710_v28  ;;  %9857 = vmatpush.msrb.mxu3 %v20705_v18  ;;  %v24291_v18 = vand.u32 4294901760, %v20791_v5  ;;  %v13712_v28 = vld [vmem:[%s23634_s9 + $0x2c0] sm:$0xff]  ;;  %v23861_v8 = vand.u32 4294901760, %v21015_v62 }
 0x722   : > { %9755 = vmatpush.msrb.mxu1 %v20759_v24  ;;  %9806 = vmatpush.msrb.mxu2 %v24290_v19  ;;  %v21030_v9 = vand.u32 4294901760, %v13712_v28  ;;  %v13690_v19 = vld [vmem:[%s23634_s9 + $0x210] sm:$0xff] }
 0x723   : > { %9697 = vmatpush.msrb.mxu0 %v20725_v42  ;;  %9859 = vmatpush.msrb.mxu3 %v20717_v63  ;;  %v21017_v42 = vand.u32 4294901760, %v13714_v20  ;;  %v24292_v63 = vand.u32 4294901760, %v20806_v30 }
 0x724   : > { %9757 = vmatpush.msrb.mxu1 %v20775_v10  ;;  %9810 = vmatpush.msrb.mxu2 %v24291_v18 }
 0x725   : > { %9700 = vmatpush.msrb.mxu0 %v24286_v59  ;;  %9861 = vmatpush.msrb.mxu3 %v20740_v54  ;;  %v21028_v54 = vsub.f32 %v13716_v15, %v21004_v38  ;;  %v21039_v25 = vsub.f32 %v13714_v20, %v21017_v42 }
 0x726   : > { %9759 = vmatpush.msrb.mxu1 %v20793_v56  ;;  %9814 = vmatpush.msrb.mxu2 %v24292_v63 }
 0x727   : > { %9703 = vmatpush.msrb.mxu0 %v24288_v57  ;;  %9863 = vmatpush.msrb.mxu3 %v20759_v24  ;;  %v21041_v24 = vand.u32 4294901760, %v13710_v52 }
 0x728   : > { %9761 = vmatpush.msrb.mxu1 %v20808_v16  ;;  %9818 = vmatpush.msrb.mxu2 %v9641_v46  ;;  %v21056_v46 = vsub.f32 %v13712_v28, %v21030_v9  ;;  %v21187_v28 = vsub.f32 %v13696_v41, %v21159_v27 }
 0x729   : > { %9706 = vmatpush.msrb.mxu0 %v20773_v7  ;;  %9865 = vmatpush.msrb.mxu3 %v20775_v10  ;;  %v13706_v10 = vld [vmem:[%s23634_s9 + $0x290] sm:$0xff]  ;;  %v23859_v7 = vand.u32 4294901760, %v21028_v54  ;;  %v21073_v3 = vsub.f32 %v13710_v52, %v21041_v24  ;;  %v13688_v52 = vld [vmem:[%s23634_s9 + $0x200] sm:$0xff] }
 0x72a   : > { %9763 = vmatpush.msrb.mxu1 %v20825_v53  ;;  %9822 = vmatpush.msrb.mxu2 %v9647_v4  ;;  %v13704_v4 = vld [vmem:[%s23634_s9 + $0x280] sm:$0xff] }
 0x72b   : > { %9709 = vmatpush.msrb.mxu0 %v20791_v5  ;;  %9867 = vmatpush.msrb.mxu3 %v20793_v56  ;;  %v9963_v5 = vsub.f32 %v21015_v62, %v23861_v8  ;;  %v23858_v56 = vand.u32 4294901760, %v21039_v25  ;;  %v21086_v40 = vand.u32 4294901760, %v13704_v4  ;;  %v23856_v6 = vand.u32 4294901760, %v21073_v3 }
 0x72c   : > { %9765 = vmatpush.msrb.mxu1 %v20841_v43  ;;  %9826 = vmatpush.msrb.mxu2 %v9653_v33  ;;  %v21075_v33 = vand.u32 4294901760, %v13706_v10 }
 0x72d   : > { %9712 = vmatpush.msrb.mxu0 %v20806_v30  ;;  %9869 = vmatpush.msrb.mxu3 %v20808_v16  ;;  %v9969_v16 = vsub.f32 %v21028_v54, %v23859_v7  ;;  %v23857_v30 = vand.u32 4294901760, %v21056_v46  ;;  %v21120_v22 = vsub.f32 %v13704_v4, %v21086_v40  ;;  %v9987_v12 = vsub.f32 %v21073_v3, %v23856_v6  ;;  %v13699_v7 = vld [vmem:[%s23634_s9 + $0x258] sm:$0xff] }
 0x72e   : > { %9767 = vmatpush.msrb.mxu1 %v20854_v51  ;;  %9830 = vmatpush.msrb.mxu2 %v9659_v58  ;;  %v9975_v58 = vsub.f32 %v21039_v25, %v23858_v56  ;;  %v21104_v48 = vsub.f32 %v13706_v10, %v21075_v33  ;;  %v23848_v4 = vand.u32 4294901760, %v21172_v23 }
 0x72f   : > { %9715 = vmatpush.msrb.mxu0 %v20823_v29  ;;  %9871 = vmatpush.msrb.mxu3 %v20825_v53  ;;  %v21095_v29 = vsub.f32 %v13708_v1, %v21061_v26  ;;  %v9964_v53 = vand.u32 4294901760, %v9963_v5  ;;  %v9981_v35 = vsub.f32 %v21056_v46, %v23857_v30  ;;  %v23852_v14 = vand.u32 4294901760, %v21120_v22  ;;  %v24294_v1 = vld [vmem:[#allocation45_spill] sm:$0xff] }
 0x730   : > { %9769 = vmatpush.msrb.mxu1 %v20875_v2  ;;  %9834 = vmatpush.msrb.mxu2 %v9665_v47  ;;  %v13700_v47 = vld [vmem:[%s23634_s9 + $0x260] sm:$0xff]  ;;  %v23853_v17 = vand.u32 4294901760, %v21104_v48  ;;  %v9988_v49 = vand.u32 4294901760, %v9987_v12 }
 0x731   : > { %9718 = vmatpush.msrb.mxu0 %v20839_v31  ;;  %9873 = vmatpush.msrb.mxu3 %v20841_v43  ;;  %v21112_v43 = vand.u32 4294901760, %v13702_v50  ;;  %v9970_v31 = vand.u32 4294901760, %v9969_v16  ;;  %v10005_v15 = vsub.f32 %v21120_v22, %v23852_v14 }
 0x732   : > { %9771 = vmatpush.msrb.mxu1 %v20888_v21  ;;  %9838 = vmatpush.msrb.mxu2 %v9671_v36  ;;  %v9976_v36 = vand.u32 4294901760, %v9975_v58  ;;  %v9999_v57 = vsub.f32 %v21104_v48, %v23853_v17 }
 0x733   : > { %9721 = vmatpush.msrb.mxu0 %v20852_v45  ;;  %9875 = vmatpush.msrb.mxu3 %v20854_v51  ;;  %v23855_v45 = vand.u32 4294901760, %v21095_v29  ;;  %v21129_v51 = vand.u32 4294901760, %v13700_v47  ;;  %v10006_v16 = vand.u32 4294901760, %v10005_v15 }
 0x734   : > { %9775 = vmatmul.f32.vlgmr.msrb.gmra.mxu1 %v24293_v0  ;;  %9842 = vmatpush.msrb.mxu2 %v9677_v11  ;;  %v21142_v11 = vsub.f32 %v13702_v50, %v21112_v43  ;;  %v10000_v63 = vand.u32 4294901760, %v9999_v57 }
 0x735   : > { %9965 = vmatpush.msra.mxu1 %v9964_v53  ;;  %9724 = vmatpush.msrb.mxu0 %v20868_v55  ;;  %v9982_v55 = vand.u32 4294901760, %v9981_v35  ;;  %v21157_v59 = vsub.f32 %v13700_v47, %v21129_v51  ;;  %v23847_v53 = vand.u32 4294901760, %v21187_v28  ;;  %v21216_v47 = vand.u32 4294901760, %v13688_v52 }
 0x736   : > { %9877 = vmatpush.msrb.mxu3 %v20875_v2  ;;  %9844 = vmatmul.f32.vlgmr.msrb.gmra.mxu2 %v20691_v37  ;;  %v9993_v2 = vsub.f32 %v21095_v29, %v23855_v45  ;;  %v10023_v35 = vsub.f32 %v21172_v23, %v23848_v4  ;;  %v13705_v4 = vld [vmem:[%s23634_s9 + $0x288] sm:$0xff] }
 0x737   : > { %9971 = vmatpush.msra.mxu1 %v9970_v31  ;;  %10063 = vmatpush.msra.mxu2 %v21015_v62  ;;  %v23850_v18 = vand.u32 4294901760, %v21157_v59  ;;  %v10029_v12 = vsub.f32 %v21187_v28, %v23847_v53  ;;  %v13707_v53 = vld [vmem:[%s23634_s9 + $0x298] sm:$0xff]  ;;  %v21359_v17 = vand.u32 4294901760, %v13705_v4  ;;  %v13701_v45 = vld [vmem:[%s23634_s9 + $0x268] sm:$0xff] }
 0x738   : > { %9727 = vmatpush.msrb.mxu0 %v20884_v60  ;;  %9879 = vmatpush.msrb.mxu3 %v20888_v21  ;;  %v13692_v60 = vld [vmem:[%s23634_s9 + $0x220] sm:$0xff]  ;;  %v23851_v21 = vand.u32 4294901760, %v21142_v11  ;;  %v9994_v20 = vand.u32 4294901760, %v9993_v2  ;;  %v10024_v2 = vand.u32 4294901760, %v10023_v35 }
 0x739   : > { %9881 = vmatmul.f32.vlgmr.msrb.gmra.mxu3 %v20691_v37  ;;  %9977 = vmatpush.msra.mxu1 %v9976_v36  ;;  %v21174_v37 = vand.u32 4294901760, %v13694_v13  ;;  %v10017_v50 = vsub.f32 %v21157_v59, %v23850_v18  ;;  %v10030_v15 = vand.u32 4294901760, %v10029_v12  ;;  %v13713_v12 = vld [vmem:[%s23634_s9 + $0x2c8] sm:$0xff] }
 0x73a   : > { %10066 = vmatpush.msra.mxu2 %v21028_v54  ;;  %10116 = vmatpush.msra.mxu3 %v20994_v44  ;;  %v10011_v10 = vsub.f32 %v21142_v11, %v23851_v21  ;;  %v13703_v21 = vld [vmem:[%s23634_s9 + $0x278] sm:$0xff] }
 0x73b   : > { %9730 = vmatpush.msrb.mxu0 %v20899_v34  ;;  %9983 = vmatpush.msra.mxu1 %v9982_v55  ;;  %v21189_v34 = vand.u32 4294901760, %v13692_v60  ;;  %v21202_v5 = vsub.f32 %v13694_v13, %v21174_v37  ;;  %v10018_v36 = vand.u32 4294901760, %v10017_v50  ;;  %v21236_v55 = vsub.f32 %v13688_v52, %v21216_v47  ;;  %v13719_v13 = vld [vmem:[%s23634_s9 + $0x2f8] sm:$0xff]  ;;  %v9885_v50 = vld [vmem:[#allocation4 + $0x2] sm:$0x3f] }
 0x73c   : > { %10069 = vmatpush.msra.mxu2 %v21039_v25  ;;  %10118 = vmatpush.msra.mxu3 %v21004_v38  ;;  %v10012_v31 = vand.u32 4294901760, %v10011_v10  ;;  %v21375_v30 = vand.u32 4294901760, %v13703_v21 }
 0x73d   : > { %9733 = vmatpush.msrb.mxu0 %v20910_v32  ;;  %9989 = vmatpush.msra.mxu1 %v9988_v49  ;;  %v21204_v32 = vand.u32 4294901760, %v13690_v19  ;;  %v21214_v58 = vsub.f32 %v13692_v60, %v21189_v34  ;;  %v23846_v39 = vand.u32 4294901760, %v21202_v5  ;;  %v13717_v60 = vld [vmem:[%s23634_s9 + $0x2e8] sm:$0xff] }
 0x73e   : > { %9736 = vmatmul.f32.vlgmr.msrb.gmra.mxu0 %v24294_v1  ;;  %10072 = vmatpush.msra.mxu2 %v21056_v46  ;;  %v21266_v10 = vand.u32 4294901760, %v13717_v60 }
 0x73f   : > { %9920 = vmatpush.msra.mxu0 %v20994_v44  ;;  %10120 = vmatpush.msra.mxu3 %v21017_v42  ;;  %v21226_v0 = vsub.f32 %v13690_v19, %v21204_v32  ;;  %v23845_v41 = vand.u32 4294901760, %v21214_v58  ;;  %v10035_v49 = vsub.f32 %v21202_v5, %v23846_v39 }
 0x740   : > { %9995 = vmatpush.msra.mxu1 %v9994_v20  ;;  %10075 = vmatpush.msra.mxu2 %v21073_v3  ;;  %v23843_v20 = vand.u32 4294901760, %v21236_v55 }
 0x741   : > { %9922 = vmatpush.msra.mxu0 %v21004_v38  ;;  %10122 = vmatpush.msra.mxu3 %v21030_v9  ;;  %v23844_v57 = vand.u32 4294901760, %v21226_v0  ;;  %v10041_v19 = vsub.f32 %v21214_v58, %v23845_v41  ;;  %v10036_v52 = vand.u32 4294901760, %v10035_v49  ;;  %v13711_v49 = vld [vmem:[%s23634_s9 + $0x2b8] sm:$0xff] }
 0x742   : > { %10001 = vmatpush.msra.mxu1 %v10000_v63  ;;  %10078 = vmatpush.msra.mxu2 %v21095_v29  ;;  %v21258_v63 = vand.u32 4294901760, %v13719_v13  ;;  %v10053_v35 = vsub.f32 %v21236_v55, %v23843_v20  ;;  %v21298_v20 = vand.u32 4294901760, %v13713_v12  ;;  %v21305_v41 = vand.u32 4294901760, %v13711_v49 }
 0x743   : > { %9924 = vmatpush.msra.mxu0 %v21017_v42  ;;  %10124 = vmatpush.msra.mxu3 %v21041_v24  ;;  %v10047_v1 = vsub.f32 %v21226_v0, %v23844_v57  ;;  %v13709_v57 = vld [vmem:[%s23634_s9 + $0x2a8] sm:$0xff] }
 0x744   : > { %10007 = vmatpush.msra.mxu1 %v10006_v16  ;;  %10081 = vmatpush.msra.mxu2 %v21104_v48  ;;  %v13715_v16 = vld [vmem:[%s23634_s9 + $0x2d8] sm:$0xff] }
 0x745   : > { %9926 = vmatpush.msra.mxu0 %v21030_v9  ;;  %10126 = vmatpush.msra.mxu3 %v21061_v26 }
 0x746   : > { %10013 = vmatpush.msra.mxu1 %v10012_v31  ;;  %10084 = vmatpush.msra.mxu2 %v21120_v22  ;;  %v10042_v31 = vand.u32 4294901760, %v10041_v19  ;;  %v21294_v19 = vsub.f32 %v13717_v60, %v21266_v10 }
 0x747   : > { %9928 = vmatpush.msra.mxu0 %v21041_v24  ;;  %10128 = vmatpush.msra.mxu3 %v21075_v33 }
 0x748   : > { %10019 = vmatpush.msra.mxu1 %v10018_v36  ;;  %10087 = vmatpush.msra.mxu2 %v21142_v11  ;;  %v21278_v36 = vsub.f32 %v13719_v13, %v21258_v63  ;;  %v21291_v13 = vand.u32 4294901760, %v9885_v50 }
 0x749   : > { %9930 = vmatpush.msra.mxu0 %v21061_v26  ;;  %10130 = vmatpush.msra.mxu3 %v21086_v40 }
 0x74a   : > { %10025 = vmatpush.msra.mxu1 %v10024_v2  ;;  %10090 = vmatpush.msra.mxu2 %v21157_v59  ;;  %v21285_v2 = vand.u32 4294901760, %v13715_v16  ;;  %v21314_v39 = vsub.f32 %v9885_v50, %v21291_v13 }
 0x74b   : > { %9932 = vmatpush.msra.mxu0 %v21075_v33  ;;  %10132 = vmatpush.msra.mxu3 %v21112_v43 }
 0x74c   : > { %10031 = vmatpush.msra.mxu1 %v10030_v15  ;;  %10093 = vmatpush.msra.mxu2 %v21172_v23  ;;  %v10048_v15 = vand.u32 4294901760, %v10047_v1  ;;  %v23849_v1 = vand.u32 4294901760, %v21278_v36  ;;  %v21310_v60 = vsub.f32 %v13715_v16, %v21285_v2  ;;  %24295 = vst [vmem:[#allocation13_spill] sm:$0xff] %v21314_v39  ;;  %v21325_v16 = vsub.f32 %v13713_v12, %v21298_v20 }
 0x74d   : > { %9934 = vmatpush.msra.mxu0 %v21086_v40  ;;  %10134 = vmatpush.msra.mxu3 %v21129_v51 }
 0x74e   : > { %10037 = vmatpush.msra.mxu1 %v10036_v52  ;;  %10096 = vmatpush.msra.mxu2 %v21187_v28  ;;  %v10054_v52 = vand.u32 4294901760, %v10053_v35  ;;  %v21317_v35 = vand.u32 4294901760, %v13709_v57  ;;  %v10304_v50 = vsub.f32 %v21278_v36, %v23849_v1  ;;  %v23860_v12 = vand.u32 4294901760, %v21310_v60 }
 0x74f   : > { %9936 = vmatpush.msra.mxu0 %v21112_v43  ;;  %10136 = vmatpush.msra.mxu3 %v21144_v61  ;;  %v21345_v1 = vand.u32 4294901760, %v21314_v39  ;;  %v23862_v14 = vand.u32 4294901760, %v21325_v16 }
 0x750   : > { %10043 = vmatpush.msra.mxu1 %v10042_v31  ;;  %10099 = vmatpush.msra.mxu2 %v21202_v5  ;;  %v23854_v31 = vand.u32 4294901760, %v21294_v19  ;;  %v21351_v18 = vsub.f32 %v13709_v57, %v21317_v35 }
 0x751   : > { %9938 = vmatpush.msra.mxu0 %v21129_v51  ;;  %10138 = vmatpush.msra.mxu3 %v21159_v27  ;;  %24297 = vst [vmem:[#allocation23_spill] sm:$0xff] %v21345_v1  ;;  %v9954_v56 = vsub.f32 %v21314_v39, %v21345_v1 }
 0x752   : > { %10049 = vmatpush.msra.mxu1 %v10048_v15  ;;  %10102 = vmatpush.msra.mxu2 %v21214_v58  ;;  %v21332_v15 = vsub.f32 %v13711_v49, %v21305_v41  ;;  %v10310_v49 = vsub.f32 %v21294_v19, %v23854_v31  ;;  %24298 = vst [vmem:[#allocation17_spill] sm:$0xff] %v21351_v18  ;;  %v10305_v31 = vand.u32 4294901760, %v10304_v50 }
 0x753   : > { %9940 = vmatpush.msra.mxu0 %v21144_v61  ;;  %10140 = vmatpush.msra.mxu3 %v21174_v37 }
 0x754   : > { %10055 = vmatpush.msra.mxu1 %v10054_v52  ;;  %10105 = vmatpush.msra.mxu2 %v21226_v0  ;;  %24296 = vst [vmem:[#allocation14_spill] sm:$0xff] %v21332_v15  ;;  %v21340_v52 = vand.u32 4294901760, %v13707_v53  ;;  %v23864_v57 = vand.u32 4294901760, %v21332_v15  ;;  %v10311_v50 = vand.u32 4294901760, %v10310_v49  ;;  %v21393_v49 = vand.u32 4294901760, %v13701_v45 }
 0x755   : > { %9942 = vmatpush.msra.mxu0 %v21159_v27  ;;  %10142 = vmatpush.msra.mxu3 %v21189_v34 }
 0x756   : > { %10057 = vmatmul.f32.vlgmr.msra.gmra.mxu1 %v21291_v13  ;;  %10108 = vmatpush.msra.mxu2 %v21236_v55  ;;  %v21373_v6 = vsub.f32 %v13707_v53, %v21340_v52  ;;  %v10322_v53 = vsub.f32 %v21325_v16, %v23862_v14  ;;  %v10328_v8 = vsub.f32 %v21332_v15, %v23864_v57  ;;  %v24299_v57 = vand.u32 4294901760, %v21351_v18 }
 0x757   : > { %10224 = vmatpush.msrb.mxu1 %v20994_v44  ;;  %9944 = vmatpush.msra.mxu0 %v21174_v37  ;;  %v10316_v44 = vsub.f32 %v21310_v60, %v23860_v12  ;;  %v21391_v12 = vsub.f32 %v13705_v4, %v21359_v17  ;;  %v21423_v4 = vsub.f32 %v13701_v45, %v21393_v49 }
 0x758   : > { %10144 = vmatpush.msra.mxu3 %v21204_v32  ;;  %10111 = vmatmul.f32.vlgmr.msra.gmra.mxu2 %v21314_v39  ;;  %v21408_v39 = vand.u32 4294901760, %v13699_v7 }
 0x759   : > { %10226 = vmatpush.msrb.mxu1 %v21004_v38  ;;  %10261 = vmatpush.msrb.mxu2 %v21258_v63  ;;  %v10317_v14 = vand.u32 4294901760, %v10316_v44  ;;  %v21406_v38 = vsub.f32 %v13703_v21, %v21375_v30  ;;  %v10323_v21 = vand.u32 4294901760, %v10322_v53 }
 0x75a   : > { %9946 = vmatpush.msra.mxu0 %v21189_v34  ;;  %10146 = vmatpush.msra.mxu3 %v21216_v47  ;;  %v21439_v44 = vsub.f32 %v13699_v7, %v21408_v39 }
 0x75b   : > { %10150 = vmatmul.f32.vlgmr.msra.gmra.mxu3 %v21345_v1  ;;  %10228 = vmatpush.msrb.mxu1 %v21017_v42  ;;  %v13697_v42 = vld [vmem:[%s23634_s9 + $0x248] sm:$0xff]  ;;  %v10334_v1 = vsub.f32 %v21351_v18, %v24299_v57  ;;  %v10329_v57 = vand.u32 4294901760, %v10328_v8  ;;  %v24300_v18 = vand.u32 4294901760, %v21015_v62  ;;  %v24302_v62 = vand.u32 4294901760, %v21028_v54 }
 0x75c   : > { %10263 = vmatpush.msrb.mxu2 %v21266_v10  ;;  %10306 = vmatpush.msrb.mxu3 %v10305_v31  ;;  %v21411_v31 = vand.u32 4294901760, %v9954_v56  ;;  %v21425_v56 = vand.u32 4294901760, %v13697_v42  ;;  %v24304_v54 = vand.u32 4294901760, %v21039_v25 }
 0x75d   : > { %9948 = vmatpush.msra.mxu0 %v21204_v32  ;;  %10230 = vmatpush.msrb.mxu1 %v21030_v9  ;;  %v13695_v9 = vld [vmem:[%s23634_s9 + $0x238] sm:$0xff]  ;;  %v10335_v8 = vand.u32 4294901760, %v10334_v1 }
 0x75e   : > { %10265 = vmatpush.msrb.mxu2 %v21285_v2  ;;  %10312 = vmatpush.msrb.mxu3 %v10311_v50  ;;  %v13693_v50 = vld [vmem:[%s23634_s9 + $0x228] sm:$0xff]  ;;  %v21441_v15 = vand.u32 4294901760, %v13695_v9  ;;  %v21452_v7 = vsub.f32 %v13697_v42, %v21425_v56 }
 0x75f   : > { %9950 = vmatpush.msra.mxu0 %v21216_v47  ;;  %10232 = vmatpush.msrb.mxu1 %v21041_v24  ;;  %v24301_v24 = vand.u32 4294901760, %v21373_v6  ;;  %v21454_v53 = vand.u32 4294901760, %v13693_v50 }
 0x760   : > { %9956 = vmatmul.f32.vlgmr.msra.gmra.mxu0 %v21411_v31  ;;  %10267 = vmatpush.msrb.mxu2 %v21298_v20 }
 0x761   : > { %10157 = vmatpush.msrb.mxu0 %v24300_v18  ;;  %10318 = vmatpush.msrb.mxu3 %v10317_v14  ;;  %v10340_v45 = vsub.f32 %v21373_v6, %v24301_v24  ;;  %v24303_v14 = vand.u32 4294901760, %v21391_v12  ;;  %v10357_v24 = vand.u32 4294901760, %v21423_v4 }
 0x762   : > { %10234 = vmatpush.msrb.mxu1 %v21061_v26  ;;  %10269 = vmatpush.msrb.mxu2 %v21305_v41  ;;  %v13691_v26 = vld [vmem:[%s23634_s9 + $0x218] sm:$0xff] }
 0x763   : > { %10161 = vmatpush.msrb.mxu0 %v24302_v62  ;;  %10324 = vmatpush.msrb.mxu3 %v10323_v21  ;;  %v10346_v18 = vsub.f32 %v21391_v12, %v24303_v14  ;;  %v10341_v1 = vand.u32 4294901760, %v10340_v45  ;;  %v24305_v21 = vand.u32 4294901760, %v21406_v38  ;;  %v10363_v62 = vand.u32 4294901760, %v21439_v44 }
 0x764   : > { %10236 = vmatpush.msrb.mxu1 %v21075_v33  ;;  %10271 = vmatpush.msrb.mxu2 %v21317_v35  ;;  %v21468_v14 = vsub.f32 %v13695_v9, %v21441_v15  ;;  %v13689_v33 = vld [vmem:[%s23634_s9 + $0x208] sm:$0xff]  ;;  %v21475_v25 = vand.u32 4294901760, %v13691_v26  ;;  %v10358_v9 = vsub.f32 %v21423_v4, %v10357_v24 }
 0x765   : > { %10165 = vmatpush.msrb.mxu0 %v24304_v54  ;;  %10330 = vmatpush.msrb.mxu3 %v10329_v57  ;;  %v10352_v42 = vsub.f32 %v21406_v38, %v24305_v21  ;;  %v24306_v57 = vand.u32 4294901760, %v21056_v46  ;;  %v10347_v45 = vand.u32 4294901760, %v10346_v18  ;;  %v10369_v54 = vand.u32 4294901760, %v21452_v7 }
 0x766   : > { %10238 = vmatpush.msrb.mxu1 %v21086_v40  ;;  %10273 = vmatpush.msrb.mxu2 %v21340_v52  ;;  %v21484_v21 = vsub.f32 %v13693_v50, %v21454_v53  ;;  %v21488_v40 = vand.u32 4294901760, %v13689_v33  ;;  %v24307_v46 = vand.u32 4294901760, %v21073_v3  ;;  %v10364_v18 = vsub.f32 %v21439_v44, %v10363_v62 }
 0x767   : > { %10169 = vmatpush.msrb.mxu0 %v24306_v57  ;;  %10336 = vmatpush.msrb.mxu3 %v10335_v8  ;;  %v10353_v8 = vand.u32 4294901760, %v10352_v42  ;;  %v10375_v57 = vand.u32 4294901760, %v21468_v14  ;;  %v24308_v50 = vand.u32 4294901760, %v21095_v29  ;;  %v10359_v3 = vand.u32 4294901760, %v10358_v9 }
 0x768   : > { %10240 = vmatpush.msrb.mxu1 %v21112_v43  ;;  %10275 = vmatpush.msrb.mxu2 %v21359_v17  ;;  %v21499_v43 = vsub.f32 %v13691_v26, %v21475_v25  ;;  %v10381_v42 = vand.u32 4294901760, %v21484_v21  ;;  %v24309_v26 = vand.u32 4294901760, %v21104_v48  ;;  %v10365_v29 = vand.u32 4294901760, %v10364_v18 }
 0x769   : > { %10173 = vmatpush.msrb.mxu0 %v24307_v46  ;;  %10342 = vmatpush.msrb.mxu3 %v10341_v1  ;;  %v10370_v1 = vsub.f32 %v21452_v7, %v10369_v54  ;;  %v24310_v9 = vand.u32 4294901760, %v21120_v22  ;;  %v24312_v18 = vand.u32 4294901760, %v21157_v59 }
 0x76a   : > { %10242 = vmatpush.msrb.mxu1 %v21129_v51  ;;  %10277 = vmatpush.msrb.mxu2 %v21375_v30  ;;  %v21510_v51 = vsub.f32 %v13689_v33, %v21488_v40  ;;  %v10382_v48 = vsub.f32 %v21484_v21, %v10381_v42 }
 0x76b   : > { %10177 = vmatpush.msrb.mxu0 %v24308_v50  ;;  %10348 = vmatpush.msrb.mxu3 %v10347_v45  ;;  %v10376_v45 = vsub.f32 %v21468_v14, %v10375_v57  ;;  %v10371_v33 = vand.u32 4294901760, %v10370_v1  ;;  %v24314_v50 = vand.u32 4294901760, %v21187_v28  ;;  %v24317_v28 = vand.u32 4294901760, %v21214_v58 }
 0x76c   : > { %10244 = vmatpush.msrb.mxu1 %v21144_v61  ;;  %10279 = vmatpush.msrb.mxu2 %v21393_v49  ;;  %v10387_v61 = vand.u32 4294901760, %v21499_v43  ;;  %v10393_v46 = vand.u32 4294901760, %v21510_v51  ;;  %v24321_v58 = vand.u32 4294901760, %v21236_v55  ;;  %v24322_v1 = vand.u32 4294901760, %v21325_v16  ;;  %v24325_v55 = vld [vmem:[#allocation17_spill] sm:$0xff] }
 0x76d   : > { %10181 = vmatpush.msrb.mxu0 %v24309_v26  ;;  %10354 = vmatpush.msrb.mxu3 %v10353_v8  ;;  %v10377_v8 = vand.u32 4294901760, %v10376_v45 }
 0x76e   : > { %10246 = vmatpush.msrb.mxu1 %v21159_v27  ;;  %10281 = vmatpush.msrb.mxu2 %v21408_v39  ;;  %v24311_v27 = vand.u32 4294901760, %v21142_v11  ;;  %v10388_v22 = vsub.f32 %v21499_v43, %v10387_v61  ;;  %v10394_v11 = vsub.f32 %v21510_v51, %v10393_v46 }
 0x76f   : > { %10185 = vmatpush.msrb.mxu0 %v24310_v9  ;;  %10360 = vmatpush.msrb.mxu3 %v10359_v3  ;;  %v24318_v3 = vand.u32 4294901760, %v21294_v19 }
 0x770   : > { %10248 = vmatpush.msrb.mxu1 %v21174_v37  ;;  %10283 = vmatpush.msrb.mxu2 %v21425_v56  ;;  %v10383_v37 = vand.u32 4294901760, %v10382_v48  ;;  %v10389_v59 = vand.u32 4294901760, %v10388_v22 }
 0x771   : > { %10189 = vmatpush.msrb.mxu0 %v24311_v27  ;;  %10366 = vmatpush.msrb.mxu3 %v10365_v29 }
 0x772   : > { %10250 = vmatpush.msrb.mxu1 %v21189_v34  ;;  %10285 = vmatpush.msrb.mxu2 %v21441_v15  ;;  %v24313_v34 = vand.u32 4294901760, %v21172_v23  ;;  %v24315_v23 = vand.u32 4294901760, %v21202_v5  ;;  %v24319_v5 = vand.u32 4294901760, %v21226_v0  ;;  %v24323_v0 = vld [vmem:[#allocation14_spill] sm:$0xff] }
 0x773   : > { %10193 = vmatpush.msrb.mxu0 %v24312_v18  ;;  %10372 = vmatpush.msrb.mxu3 %v10371_v33 }
 0x774   : > { %10252 = vmatpush.msrb.mxu1 %v21204_v32  ;;  %10287 = vmatpush.msrb.mxu2 %v21454_v53  ;;  %v10395_v32 = vand.u32 4294901760, %v10394_v11  ;;  %v21652_v11 = vld [vmem:[%s23635_s10] sm:$0x3] }
 0x775   : > { %10197 = vmatpush.msrb.mxu0 %v24313_v34  ;;  %10378 = vmatpush.msrb.mxu3 %v10377_v8 }
 0x776   : > { %10254 = vmatpush.msrb.mxu1 %v21216_v47  ;;  %10289 = vmatpush.msrb.mxu2 %v21475_v25  ;;  %v24316_v47 = vand.u32 4294901760, %v21278_v36 }
 0x777   : > { %10201 = vmatpush.msrb.mxu0 %v24314_v50  ;;  %10384 = vmatpush.msrb.mxu3 %v10383_v37 }
 0x778   : > { %10256 = vmatmul.f32.vlgmr.msrb.gmra.mxu1 %v21291_v13  ;;  %10291 = vmatpush.msrb.mxu2 %v21488_v40 }
 0x779   : > { %10457 = vmatpush.msra.mxu1 %v21258_v63  ;;  %10205 = vmatpush.msrb.mxu0 %v24315_v23 }
 0x77a   : > { %10390 = vmatpush.msrb.mxu3 %v10389_v59  ;;  %10297 = vmatmul.f32.vlgmr.msrb.gmra.mxu2 %v21411_v31  ;;  %v24320_v31 = vand.u32 4294901760, %v21310_v60  ;;  %v10628_v59 = vld [vmem:[%s23636_s11] sm:$0x7] }
 0x77b   : > { %10459 = vmatpush.msra.mxu1 %v21266_v10  ;;  %10498 = vmatpush.msra.mxu2 %v24316_v47  ;;  %v10605_v47 = vperm.slane %v21652_v11, 0 }
 0x77c   : > { %10209 = vmatpush.msrb.mxu0 %v24317_v28  ;;  %10396 = vmatpush.msrb.mxu3 %v10395_v32  ;;  %v10631_v28 = vsel %vm10629_vm9, %v10628_v59, 0 }
 0x77d   : > { %10398 = vmatmul.f32.vlgmr.msrb.gmra.mxu3 %v21291_v13  ;;  %10461 = vmatpush.msra.mxu1 %v21285_v2 }
 0x77e   : > { %10502 = vmatpush.msra.mxu2 %v24318_v3  ;;  %10565 = vmatpush.msra.mxu3 %v21258_v63  ;;  %v24324_v63 = vand.u32 4294901760, %v24323_v0 }
 0x77f   : > { %10213 = vmatpush.msrb.mxu0 %v24319_v5  ;;  %10463 = vmatpush.msra.mxu1 %v21298_v20 }
 0x780   : > { %10506 = vmatpush.msra.mxu2 %v24320_v31  ;;  %10567 = vmatpush.msra.mxu3 %v21266_v10  ;;  %v24326_v10 = vand.u32 4294901760, %v24325_v55 }
 0x781   : > { %10217 = vmatpush.msrb.mxu0 %v24321_v58  ;;  %10465 = vmatpush.msra.mxu1 %v21305_v41 }
 0x782   : > { %10219 = vmatmul.f32.vlgmr.msrb.gmra.mxu0 %v21291_v13  ;;  %10510 = vmatpush.msra.mxu2 %v24322_v1  ;;  %v21658_v1 = vand.u32 4294901760, %v10631_v28 }
 0x783   : > { %10404 = vmatpush.msra.mxu0 %v21278_v36  ;;  %10569 = vmatpush.msra.mxu3 %v21285_v2  ;;  %v24327_v36 = vand.u32 4294901760, %v21373_v6  ;;  %v8714_v2 = vpop.f32.mrf.mxu2 }
 0x784   : > { %10467 = vmatpush.msra.mxu1 %v21317_v35  ;;  %10514 = vmatpush.msra.mxu2 %v24324_v63 }
 0x785   : > { %10407 = vmatpush.msra.mxu0 %v21294_v19  ;;  %10571 = vmatpush.msra.mxu3 %v21298_v20  ;;  %v24328_v20 = vand.u32 4294901760, %v21391_v12  ;;  %v8753_v19 = vpop.f32.mrf.mxu3 }
 0x786   : > { %10469 = vmatpush.msra.mxu1 %v21340_v52  ;;  %10518 = vmatpush.msra.mxu2 %v24326_v10 }
 0x787   : > { %10410 = vmatpush.msra.mxu0 %v21310_v60  ;;  %10573 = vmatpush.msra.mxu3 %v21305_v41  ;;  %v24329_v41 = vand.u32 4294901760, %v21406_v38 }
 0x788   : > { %10471 = vmatpush.msra.mxu1 %v21359_v17  ;;  %10522 = vmatpush.msra.mxu2 %v24327_v36 }
 0x789   : > { %10413 = vmatpush.msra.mxu0 %v21325_v16  ;;  %10575 = vmatpush.msra.mxu3 %v21317_v35 }
 0x78a   : > { %10473 = vmatpush.msra.mxu1 %v21375_v30  ;;  %10526 = vmatpush.msra.mxu2 %v24328_v20 }
 0x78b   : > { %10416 = vmatpush.msra.mxu0 %v24323_v0  ;;  %10577 = vmatpush.msra.mxu3 %v21340_v52  ;;  %v8900_v16 = vpop.f32.mrf.mxu2 }
 0x78c   : > { %10475 = vmatpush.msra.mxu1 %v21393_v49  ;;  %10530 = vmatpush.msra.mxu2 %v24329_v41 }
 0x78d   : > { %10419 = vmatpush.msra.mxu0 %v24325_v55  ;;  %10579 = vmatpush.msra.mxu3 %v21359_v17  ;;  %v8559_v17 = vpop.f32.mrf.mxu0  ;;  %v21661_v55 = vsub.f32 %v10631_v28, %v21658_v1 }
 0x78e   : > { %10477 = vmatpush.msra.mxu1 %v21408_v39  ;;  %10534 = vmatpush.msra.mxu2 %v10357_v24 }
 0x78f   : > { %10422 = vmatpush.msra.mxu0 %v21373_v6  ;;  %10581 = vmatpush.msra.mxu3 %v21375_v30  ;;  %v24330_v30 = vld [vmem:[#allocation23_spill] sm:$0xff]  ;;  %v24331_v6 = vld [vmem:[#allocation13_spill] sm:$0xff]  ;;  %v21664_v36 = vand.u32 4294901760, %v21661_v55 }
 0x790   : > { %10479 = vmatpush.msra.mxu1 %v21425_v56  ;;  %10538 = vmatpush.msra.mxu2 %v10363_v62 }
 0x791   : > { %10425 = vmatpush.msra.mxu0 %v21391_v12  ;;  %10583 = vmatpush.msra.mxu3 %v21393_v49  ;;  %v9001_v12 = vpop.f32.mrf.mxu3 }
 0x792   : > { %10481 = vmatpush.msra.mxu1 %v21441_v15  ;;  %10542 = vmatpush.msra.mxu2 %v10369_v54  ;;  %v9002_v3 = vadd.f32 %v9001_v12, %v8900_v16 }
 0x793   : > { %10428 = vmatpush.msra.mxu0 %v21406_v38  ;;  %10585 = vmatpush.msra.mxu3 %v21408_v39  ;;  %v8660_v39 = vpop.f32.mrf.mxu1  ;;  %v9163_v38 = vpop.f32.mrf.mxu2 }
 0x794   : > { %10483 = vmatpush.msra.mxu1 %v21454_v53  ;;  %10546 = vmatpush.msra.mxu2 %v10375_v57 }
 0x795   : > { %10431 = vmatpush.msra.mxu0 %v21423_v4  ;;  %10587 = vmatpush.msra.mxu3 %v21425_v56  ;;  %v8822_v60 = vpop.f32.mrf.mxu0 }
 0x796   : > { %10485 = vmatpush.msra.mxu1 %v21475_v25  ;;  %10550 = vmatpush.msra.mxu2 %v10381_v42 }
 0x797   : > { %10434 = vmatpush.msra.mxu0 %v21439_v44  ;;  %10589 = vmatpush.msra.mxu3 %v21441_v15  ;;  %v8661_v44 = vadd.f32 %v8660_v39, %v8559_v17 }
 0x798   : > { %10487 = vmatpush.msra.mxu1 %v21488_v40  ;;  %10554 = vmatpush.msra.mxu2 %v10387_v61 }
 0x799   : > { %10437 = vmatpush.msra.mxu0 %v21452_v7  ;;  %10591 = vmatpush.msra.mxu3 %v21454_v53  ;;  %v9200_v4 = vpop.f32.mrf.mxu3  ;;  %v8715_v24 = vadd.f32 %v8714_v2, %v8661_v44 }
 0x79a   : > { %10491 = vmatmul.f32.vlgmr.msra.gmra.mxu1 %v24330_v30  ;;  %10558 = vmatpush.msra.mxu2 %v10393_v46 }
 0x79b   : > { %10440 = vmatpush.msra.mxu0 %v21468_v14  ;;  %10593 = vmatpush.msra.mxu3 %v21475_v25  ;;  %v8859_v35 = vpop.f32.mrf.mxu1  ;;  %v9396_v56 = vpop.f32.mrf.mxu2  ;;  %v8754_v14 = vadd.f32 %v8753_v19, %v8715_v24 }
 0x79c   : > { %10560 = vmatmul.f32.vlgmr.msra.gmra.mxu2 %v21291_v13 }
 0x79d   : > { %10443 = vmatpush.msra.mxu0 %v21484_v21  ;;  %10595 = vmatpush.msra.mxu3 %v21488_v40  ;;  %v9055_v15 = vpop.f32.mrf.mxu0  ;;  %v8823_v54 = vadd.f32 %v8822_v60, %v8754_v14 }
 0x79e   : > { %10597 = vmatmul.f32.vlgmr.msra.gmra.mxu3 %v21291_v13  ;;  %v9056_v31 = vadd.f32 %v9055_v15, %v9002_v3  ;;  %v10940_v3 = vld [vmem:[%s23637_s12 + $0x40] sm:$0xff] }
 0x79f   : > { %10446 = vmatpush.msra.mxu0 %v21499_v43  ;;  %v8860_v43 = vadd.f32 %v8859_v35, %v8823_v54 }
 0x7a1   : > { %10449 = vmatpush.msra.mxu0 %v21510_v51  ;;  %v9435_v7 = vpop.f32.mrf.mxu3 }
 0x7a2   : > { %10452 = vmatmul.f32.vlgmr.msra.gmra.mxu0 %v24331_v6  ;;  %v10660_v6 = vsub.f32 %v21661_v55, %v21664_v36 }
 0x7a3   : > { %v9094_v52 = vpop.f32.mrf.mxu1  ;;  %v9582_v25 = vpop.f32.mrf.mxu2 }
 0x7a4   : > { %v9095_v63 = vadd.f32 %v9094_v52, %v9056_v31  ;;  %v21669_v60 = vand.u32 4294901760, %v10660_v6  ;;  %v10939_v6 = vld [vmem:[%s23637_s12 + $0x38] sm:$0xff] }
 0x7a5   : > { %v9241_v49 = vpop.f32.mrf.mxu0 }
 0x7a6   : > { %v9242_v42 = vadd.f32 %v9241_v49, %v8860_v43  ;;  %v9164_v10 = vadd.f32 %v9163_v38, %v9095_v63  ;;  %v10606_v43 = vperm.slane %v21652_v11, 1 }
 0x7a8   : > { %v9201_v41 = vadd.f32 %v9200_v4, %v9164_v10 }
 0x7a9   : > { %v9683_v40 = vpop.f32.mrf.mxu3 }
 0x7aa   : > { %v9583_v39 = vadd.f32 %v9582_v25, %v9201_v41 }
 0x7ab   : > { %v9342_v13 = vpop.f32.mrf.mxu1 }
 0x7ac   : > { %v9343_v29 = vadd.f32 %v9342_v13, %v9242_v42  ;;  %v9684_v16 = vadd.f32 %v9683_v40, %v9583_v39 }
 0x7ad   : > { %v9504_v53 = vpop.f32.mrf.mxu0 }
 0x7ae   : > { %v9397_v33 = vadd.f32 %v9396_v56, %v9343_v29  ;;  %v10947_v29 = vld [vmem:[%s23637_s12 + $0x78] sm:$0xff] }
 0x7b0   : > { %v9436_v27 = vadd.f32 %v9435_v7, %v9397_v33 }
 0x7b2   : > { %v9505_v22 = vadd.f32 %v9504_v53, %v9436_v27  ;;  %v10943_v27 = vld [vmem:[%s23637_s12 + $0x58] sm:$0xff] }
 0x7b3   : > { %v9541_v62 = vpop.f32.mrf.mxu1  ;;  %v21712_v11 = vand.u32 4294901760, %v10943_v27 }
 0x7b4   : > { %v9542_v32 = vadd.f32 %v9541_v62, %v9505_v22 }
 0x7b5   : > { %v21731_v31 = vsub.f32 %v10943_v27, %v21712_v11 }
 0x7b9   : > { %v21645_v51 = vpop.f32.mrf.mxu2 }
 0x7bb   : > { %v9737_v21 = vpop.f32.mrf.mxu0  ;;  %v9776_v57 = vpop.f32.mrf.mxu1 }
 0x7bc   : > { %v21647_v45 = vpop.f32.mrf.mxu3  ;;  %v9738_v12 = vadd.f32 %v9737_v21, %v9684_v16  ;;  %v10938_v16 = vld [vmem:[%s23637_s12 + $0x30] sm:$0xff] }
 0x7be   : > { %v9777_v13 = vadd.f32 %v9776_v57, %v9738_v12 }
 0x7c0   : > { %v9846_v62 = vadd.f32 %v21645_v51, %v9777_v13  ;;  %v10937_v13 = vld [vmem:[%s23637_s12 + $0x28] sm:$0xff] }
 0x7c2   : > { %v9883_v40 = vadd.f32 %v21647_v45, %v9846_v62  ;;  %v10945_v45 = vld [vmem:[%s23637_s12 + $0x68] sm:$0xff] }
 0x7d3   : > { %v10058_v61 = vpop.f32.mrf.mxu1 }
 0x7db   : > { %v10112_v48 = vpop.f32.mrf.mxu2 }
 0x7dd   : > { %v9957_v26 = vpop.f32.mrf.mxu0 }
 0x7de   : > { %v10059_v9 = vadd.f32 %v10058_v61, %v9957_v26  ;;  %v10151_v8 = vpop.f32.mrf.mxu3  ;;  %v10946_v61 = vld [vmem:[%s23637_s12 + $0x70] sm:$0xff] }
 0x7df   : > { %v21691_v33 = vand.u32 4294901760, %v10946_v61 }
 0x7e0   : > { %v10113_v46 = vadd.f32 %v10112_v48, %v10059_v9  ;;  %v21689_v9 = vand.u32 4294901760, %v10947_v29  ;;  %v21693_v48 = vand.u32 4294901760, %v10945_v45 }
 0x7e1   : > { %v21705_v22 = vsub.f32 %v10946_v61, %v21691_v33  ;;  %v10934_v61 = vld [vmem:[%s23637_s12 + $0x10] sm:$0xff] }
 0x7e2   : > { %v10152_v18 = vadd.f32 %v10151_v8, %v10113_v46  ;;  %v10944_v46 = vld [vmem:[%s23637_s12 + $0x60] sm:$0xff]  ;;  %v21702_v8 = vsub.f32 %v10947_v29, %v21689_v9  ;;  %v21716_v59 = vsub.f32 %v10945_v45, %v21693_v48 }
 0x7e4   : > { %v11014_v10 = vand.u32 4294901760, %v21716_v59 }
 0x7f5   : > { %v10257_v50 = vpop.f32.mrf.mxu1 }
 0x7fd   : > { %v10298_v52 = vpop.f32.mrf.mxu2 }
 0x7ff   : > { %v10220_v37 = vpop.f32.mrf.mxu0 }
 0x800   : > { %v10221_v34 = vadd.f32 %v10220_v37, %v10152_v18  ;;  %v10399_v38 = vpop.f32.mrf.mxu3  ;;  %v21707_v18 = vand.u32 4294901760, %v10944_v46  ;;  %v10942_v37 = vld [vmem:[%s23637_s12 + $0x50] sm:$0xff] }
 0x801   : > { %v10400_v44 = vadd.f32 %v10399_v38, %v10298_v52  ;;  %v11015_v52 = vsub.f32 %v21716_v59, %v11014_v10  ;;  %v21762_v38 = vand.u32 4294901760, %v10939_v6 }
 0x802   : > { %v10258_v23 = vadd.f32 %v10257_v50, %v10221_v34  ;;  %v11002_v34 = vand.u32 4294901760, %v21702_v8  ;;  %v10941_v50 = vld [vmem:[%s23637_s12 + $0x48] sm:$0xff]  ;;  %v21725_v28 = vsub.f32 %v10944_v46, %v21707_v18 }
 0x804   : > { %v10601_v5 = vadd.f32 %v10258_v23, %v9542_v32  ;;  %v21721_v32 = vand.u32 4294901760, %v10942_v37  ;;  %v11003_v63 = vsub.f32 %v21702_v8, %v11002_v34  ;;  %v11020_v39 = vand.u32 4294901760, %v21725_v28 }
 0x806   : > { %v10609_v58 = vadd.f32 %v10605_v47, %v10601_v5  ;;  %v11008_v47 = vand.u32 4294901760, %v21705_v22  ;;  %v21740_v41 = vsub.f32 %v10942_v37, %v21721_v32  ;;  %v11004_v12 = vand.u32 4294901760, %v11003_v63 }
 0x807   : > { %v21829_v63 = vand.u32 4294901760, %v10934_v61 }
 0x808   : > { %v10611_v0 = vmax.f32 %v10609_v58, 0.0  ;;  %v21733_v58 = vand.u32 4294901760, %v10941_v50 }
 0x80a   : > { %10613 = vst [vmem:[#allocation2] sm:$0x3f] %v10611_v0 }
 0x811   : > { %v10618_v20 = vld [vmem:[#allocation2] sm:$0x3e] }
 0x812   : > { %v10622_v30 = vrot.slane %v10618_v20, 1  ;;  %v10616_v17 = vld [vmem:[#allocation2] sm:$0x1f] }
 0x814   : > { %v10626_v2 = vmax.f32 %v10616_v17, %v10622_v30  ;;  %v21742_v30 = vand.u32 4294901760, %v10940_v3  ;;  %v11009_v17 = vsub.f32 %v21705_v22, %v11008_v47 }
 0x816   : > { %v10635_v19 = vsel %vm10633_vm10, %v10626_v2, 0 }
 0x817   : > { %v10655_v35 = vand.u32 4294901760, %v10635_v19  ;;  %v10492_v7 = vpop.f32.mrf.mxu1 }
 0x819   : > { %10656 = vmatpush.msrb.mxu0 %v10655_v35  ;;  %10732 = vmatpush.msrb.mxu3 %v10655_v35  ;;  %v10682_v15 = vsub.f32 %v10635_v19, %v10655_v35  ;;  %v11026_v19 = vand.u32 4294901760, %v21731_v31 }
 0x81a   : > { %10662 = vmatmul.f32.vlgmr.msrb.gmra.mxu0 %v21669_v60  ;;  %10736 = vmatmul.f32.vlgmr.msrb.gmra.mxu3 %v21664_v36 }
 0x81b   : > { %10709 = vmatpush.msrb.mxu2 %v10682_v15  ;;  %v10683_v49 = vand.u32 4294901760, %v10682_v15 }
 0x81c   : > { %10712 = vmatmul.f32.vlgmr.msrb.gmra.mxu2 %v21661_v55 }
 0x81d   : > { %10758 = vmatpush.msra.mxu0 %v10683_v49  ;;  %v10684_v4 = vsub.f32 %v10682_v15, %v10683_v49  ;;  %v11032_v49 = vand.u32 4294901760, %v21740_v41 }
 0x81f   : > { %v10453_v56 = vpop.f32.mrf.mxu0  ;;  %v10685_v53 = vand.u32 4294901760, %v10684_v4  ;;  %v10561_v25 = vpop.f32.mrf.mxu2  ;;  %v21766_v4 = vsub.f32 %v10940_v3, %v21742_v30 }
 0x820   : > { %v10454_v24 = vadd.f32 %v10453_v56, %v10400_v44  ;;  %v11010_v56 = vand.u32 4294901760, %v11009_v17 }
 0x821   : > { %10686 = vmatpush.msrb.mxu1 %v10685_v53  ;;  %v10598_v21 = vpop.f32.mrf.mxu3  ;;  %v11021_v53 = vsub.f32 %v21725_v28, %v11020_v39 }
 0x822   : > { %v10493_v14 = vadd.f32 %v10492_v7, %v10454_v24  ;;  %10688 = vmatmul.f32.vlgmr.msrb.gmra.mxu1 %v21658_v1  ;;  %10760 = vmatmul.f32.vlgmr.msra.gmra.mxu0 %v21658_v1  ;;  %v21774_v24 = vand.u32 4294901760, %v10938_v16  ;;  %v11027_v7 = vsub.f32 %v21731_v31, %v11026_v19 }
 0x823   : > { %10780 = vmatpush.msra.mxu1 %v10655_v35  ;;  %v21754_v35 = vsub.f32 %v10941_v50, %v21733_v58 }
 0x824   : > { %v10562_v54 = vadd.f32 %v10561_v25, %v10493_v14  ;;  %v10936_v14 = vld [vmem:[%s23637_s12 + $0x20] sm:$0xff] }
 0x825   : > { %v11038_v62 = vand.u32 4294901760, %v21754_v35 }
 0x826   : > { %v10599_v57 = vadd.f32 %v10598_v21, %v10562_v54  ;;  %v11016_v54 = vand.u32 4294901760, %v11015_v52  ;;  %v21786_v21 = vsub.f32 %v10939_v6, %v21762_v38  ;;  %v10932_v6 = vld [vmem:[%s23637_s12] sm:$0xff] }
 0x827   : > { %v11039_v29 = vsub.f32 %v21754_v35, %v11038_v62 }
 0x828   : > { %v10602_v42 = vadd.f32 %v10599_v57, %v9883_v40  ;;  %v11044_v40 = vand.u32 4294901760, %v21766_v4  ;;  %v10935_v57 = vld [vmem:[%s23637_s12 + $0x18] sm:$0xff]  ;;  %v11050_v46 = vand.u32 4294901760, %v21786_v21 }
 0x829   : > { %v21815_v37 = vand.u32 4294901760, %v10935_v57 }
 0x82a   : > { %v10610_v26 = vadd.f32 %v10606_v43, %v10602_v42  ;;  %10782 = vmatmul.f32.vlgmr.msra.gmra.mxu1 %v21658_v1  ;;  %v11022_v42 = vand.u32 4294901760, %v11021_v53  ;;  %v11045_v50 = vsub.f32 %v21766_v4, %v11044_v40  ;;  %v11051_v17 = vsub.f32 %v21786_v21, %v11050_v46 }
 0x82c   : > { %v10612_v51 = vmax.f32 %v10610_v26, 0.0  ;;  %v21799_v26 = vsub.f32 %v10938_v16, %v21774_v24  ;;  %v21841_v16 = vsub.f32 %v10935_v57, %v21815_v37  ;;  %v11046_v52 = vand.u32 4294901760, %v11045_v50 }
 0x82d   : > { %v11052_v53 = vand.u32 4294901760, %v11051_v17 }
 0x82e   : > { %10615 = vst.msk [vmem:[#allocation2 + $0x8] sm:$0x3f] %vm10614_vm11, %v10612_v51  ;;  %v21801_v51 = vand.u32 4294901760, %v10936_v14 }
 0x835   : > { %v10619_v23 = vld [vmem:[#allocation2 + $0x8] sm:$0x3e] }
 0x836   : > { %v10623_v5 = vrot.slane %v10619_v23, 1  ;;  %v10617_v0 = vld [vmem:[#allocation2 + $0x8] sm:$0x1f] }
 0x837   : > { %v10933_v23 = vld [vmem:[%s23637_s12 + $0x8] sm:$0xff] }
 0x838   : > { %v10627_v20 = vmax.f32 %v10617_v0, %v10623_v5  ;;  %v11056_v5 = vand.u32 4294901760, %v21799_v26  ;;  %v21827_v0 = vsub.f32 %v10936_v14, %v21801_v51  ;;  %v11074_v14 = vand.u32 4294901760, %v21841_v16 }
 0x83a   : > { %v10638_v2 = vsel %vm10633_vm10, %v10627_v20, 0  ;;  %v11040_v20 = vand.u32 4294901760, %v11039_v29 }
 0x83b   : > { %v10801_v15 = vand.u32 4294901760, %v10638_v2 }
 0x83d   : > { %10802 = vmatpush.msra.mxu2 %v10801_v15  ;;  %10878 = vmatpush.msrb.mxu1 %v10801_v15  ;;  %v10828_v44 = vsub.f32 %v10638_v2, %v10801_v15 }
 0x83e   : > { %10808 = vmatmul.f32.vlgmr.msra.gmra.mxu2 %v21669_v60  ;;  %10882 = vmatmul.f32.vlgmr.msrb.gmra.mxu1 %v21664_v36  ;;  %v21788_v60 = vand.u32 4294901760, %v10937_v13  ;;  %v11033_v36 = vsub.f32 %v21740_v41, %v11032_v49 }
 0x83f   : > { %10855 = vmatpush.msrb.mxu0 %v10828_v44  ;;  %v10829_v25 = vand.u32 4294901760, %v10828_v44  ;;  %11005 = vmatpush.msra.mxu1 %v11004_v12  ;;  %v21843_v12 = vand.u32 4294901760, %v10933_v23 }
 0x840   : > { %10858 = vmatmul.f32.vlgmr.msrb.gmra.mxu0 %v21661_v55  ;;  %v11028_v55 = vand.u32 4294901760, %v11027_v7  ;;  %v21813_v27 = vsub.f32 %v10937_v13, %v21788_v60  ;;  %v11034_v3 = vand.u32 4294901760, %v11033_v36  ;;  %v11068_v13 = vand.u32 4294901760, %v21827_v0 }
 0x841   : > { %10904 = vmatpush.msrb.mxu2 %v10829_v25  ;;  %v10830_v43 = vsub.f32 %v10828_v44, %v10829_v25  ;;  %11011 = vmatpush.msra.mxu1 %v11010_v56  ;;  %v21852_v44 = vsub.f32 %v10934_v61, %v21829_v63  ;;  %v21854_v56 = vand.u32 4294901760, %v10932_v6  ;;  %v21864_v25 = vsub.f32 %v10933_v23, %v21843_v12 }
 0x842   : > { %10960 = vmatpush.msra.mxu0 %v21689_v9  ;;  %v11062_v2 = vand.u32 4294901760, %v21813_v27  ;;  %v11069_v36 = vsub.f32 %v21827_v0, %v11068_v13 }
 0x843   : > { %11103 = vmatpush.msra.mxu2 %v21702_v8  ;;  %v10831_v45 = vand.u32 4294901760, %v10830_v43  ;;  %11017 = vmatpush.msra.mxu1 %v11016_v54  ;;  %v11080_v57 = vand.u32 4294901760, %v21852_v44  ;;  %v21874_v43 = vsub.f32 %v10932_v6, %v21854_v56  ;;  %v11086_v29 = vand.u32 4294901760, %v21864_v25 }
 0x844   : > { %10962 = vmatpush.msra.mxu0 %v21691_v33  ;;  %v11063_v7 = vsub.f32 %v21813_v27, %v11062_v2  ;;  %v11070_v61 = vand.u32 4294901760, %v11069_v36 }
 0x845   : > { %11106 = vmatpush.msra.mxu2 %v21705_v22  ;;  %10832 = vmatpush.msra.mxu3 %v10831_v45  ;;  %v11092_v45 = vand.u32 4294901760, %v21874_v43  ;;  %v11087_v23 = vsub.f32 %v21864_v25, %v11086_v29  ;;  %v10953_v22 = vld [vmem:[%s23637_s12 + $0xa8] sm:$0xff] }
 0x846   : > { %11023 = vmatpush.msra.mxu1 %v11022_v42  ;;  %10834 = vmatmul.f32.vlgmr.msra.gmra.mxu3 %v21658_v1  ;;  %v11064_v42 = vand.u32 4294901760, %v11063_v7 }
 0x847   : > { %10906 = vmatmul.f32.vlgmr.msrb.gmra.mxu2 %v21658_v1  ;;  %10926 = vmatpush.msrb.mxu3 %v10801_v15  ;;  %v11057_v15 = vsub.f32 %v21799_v26, %v11056_v5  ;;  %v11088_v6 = vand.u32 4294901760, %v11087_v23 }
 0x848   : > { %11029 = vmatpush.msra.mxu1 %v11028_v55  ;;  %10964 = vmatpush.msra.mxu0 %v21693_v48  ;;  %v11075_v55 = vsub.f32 %v21841_v16, %v11074_v14 }
 0x849   : > { %11156 = vmatpush.msra.mxu3 %v21689_v9  ;;  %11109 = vmatpush.msra.mxu2 %v21716_v59  ;;  %v11058_v54 = vand.u32 4294901760, %v11057_v15 }
 0x84a   : > { %11035 = vmatpush.msra.mxu1 %v11034_v3  ;;  %10966 = vmatpush.msra.mxu0 %v21707_v18  ;;  %v11076_v50 = vand.u32 4294901760, %v11075_v55 }
 0x84b   : > { %11158 = vmatpush.msra.mxu3 %v21691_v33  ;;  %11112 = vmatpush.msra.mxu2 %v21725_v28 }
 0x84c   : > { %11041 = vmatpush.msra.mxu1 %v11040_v20  ;;  %10968 = vmatpush.msra.mxu0 %v21712_v11  ;;  %v11093_v20 = vsub.f32 %v21874_v43, %v11092_v45 }
 0x84d   : > { %11160 = vmatpush.msra.mxu3 %v21693_v48  ;;  %11115 = vmatpush.msra.mxu2 %v21731_v31 }
 0x84e   : > { %11047 = vmatpush.msra.mxu1 %v11046_v52  ;;  %10928 = vmatmul.f32.vlgmr.msrb.gmra.mxu3 %v21658_v1  ;;  %v11081_v1 = vsub.f32 %v21852_v44, %v11080_v57  ;;  %v11094_v17 = vand.u32 4294901760, %v11093_v20 }
 0x84f   : > { %10970 = vmatpush.msra.mxu0 %v21721_v32  ;;  %11162 = vmatpush.msra.mxu3 %v21707_v18 }
 0x850   : > { %11053 = vmatpush.msra.mxu1 %v11052_v53  ;;  %11118 = vmatpush.msra.mxu2 %v21740_v41  ;;  %v11082_v3 = vand.u32 4294901760, %v11081_v1 }
 0x851   : > { %10972 = vmatpush.msra.mxu0 %v21733_v58  ;;  %11164 = vmatpush.msra.mxu3 %v21712_v11 }
 0x852   : > { %11059 = vmatpush.msra.mxu1 %v11058_v54  ;;  %11121 = vmatpush.msra.mxu2 %v21754_v35 }
 0x853   : > { %10974 = vmatpush.msra.mxu0 %v21742_v30  ;;  %11166 = vmatpush.msra.mxu3 %v21721_v32 }
 0x854   : > { %11065 = vmatpush.msra.mxu1 %v11064_v42  ;;  %11124 = vmatpush.msra.mxu2 %v21766_v4 }
 0x855   : > { %10976 = vmatpush.msra.mxu0 %v21762_v38  ;;  %11168 = vmatpush.msra.mxu3 %v21733_v58 }
 0x856   : > { %11071 = vmatpush.msra.mxu1 %v11070_v61  ;;  %11127 = vmatpush.msra.mxu2 %v21786_v21  ;;  %v10948_v21 = vld [vmem:[%s23637_s12 + $0x80] sm:$0xff] }
 0x857   : > { %10978 = vmatpush.msra.mxu0 %v21774_v24  ;;  %11170 = vmatpush.msra.mxu3 %v21742_v30 }
 0x858   : > { %11077 = vmatpush.msra.mxu1 %v11076_v50  ;;  %11130 = vmatpush.msra.mxu2 %v21799_v26 }
 0x859   : > { %10980 = vmatpush.msra.mxu0 %v21788_v60  ;;  %11172 = vmatpush.msra.mxu3 %v21762_v38 }
 0x85a   : > { %11083 = vmatpush.msra.mxu1 %v11082_v3  ;;  %11133 = vmatpush.msra.mxu2 %v21813_v27 }
 0x85b   : > { %10982 = vmatpush.msra.mxu0 %v21801_v51  ;;  %11174 = vmatpush.msra.mxu3 %v21774_v24 }
 0x85c   : > { %11089 = vmatpush.msra.mxu1 %v11088_v6  ;;  %11136 = vmatpush.msra.mxu2 %v21827_v0 }
 0x85d   : > { %10984 = vmatpush.msra.mxu0 %v21815_v37  ;;  %11176 = vmatpush.msra.mxu3 %v21788_v60 }
 0x85e   : > { %11095 = vmatpush.msra.mxu1 %v11094_v17  ;;  %11139 = vmatpush.msra.mxu2 %v21841_v16 }
 0x85f   : > { %10986 = vmatpush.msra.mxu0 %v21829_v63  ;;  %11178 = vmatpush.msra.mxu3 %v21801_v51 }
 0x860   : > { %11264 = vmatpush.msrb.mxu1 %v21689_v9  ;;  %11142 = vmatpush.msra.mxu2 %v21852_v44  ;;  %v10955_v9 = vld [vmem:[%s23637_s12 + $0xb8] sm:$0xff] }
 0x861   : > { %10988 = vmatpush.msra.mxu0 %v21843_v12  ;;  %11180 = vmatpush.msra.mxu3 %v21815_v37 }
 0x862   : > { %11266 = vmatpush.msrb.mxu1 %v21691_v33  ;;  %11145 = vmatpush.msra.mxu2 %v21864_v25  ;;  %v21978_v33 = vand.u32 4294901760, %v10955_v9 }
 0x863   : > { %10990 = vmatpush.msra.mxu0 %v21854_v56  ;;  %11182 = vmatpush.msra.mxu3 %v21829_v63 }
 0x864   : > { %11268 = vmatpush.msrb.mxu1 %v21693_v48  ;;  %11148 = vmatpush.msra.mxu2 %v21874_v43  ;;  %v10954_v48 = vld [vmem:[%s23637_s12 + $0xb0] sm:$0xff] }
 0x865   : > { %11197 = vmatpush.msrb.mxu0 %v11002_v34  ;;  %11184 = vmatpush.msra.mxu3 %v21843_v12  ;;  %v21983_v8 = vand.u32 4294901760, %v10954_v48  ;;  %v21996_v34 = vsub.f32 %v10955_v9, %v21978_v33  ;;  %v13735_v9 = vld [vmem:[%s23637_s12 + $0x138] sm:$0xff] }
 0x866   : > { %11270 = vmatpush.msrb.mxu1 %v21707_v18  ;;  %11309 = vmatpush.msrb.mxu2 %v21978_v33  ;;  %v21989_v18 = vand.u32 4294901760, %v10953_v22 }
 0x867   : > { %11201 = vmatpush.msrb.mxu0 %v11008_v47  ;;  %11186 = vmatpush.msra.mxu3 %v21854_v56  ;;  %v11343_v47 = vand.u32 4294901760, %v21996_v34  ;;  %v22008_v31 = vsub.f32 %v10954_v48, %v21983_v8  ;;  %v22118_v48 = vand.u32 4294901760, %v13735_v9 }
 0x868   : > { %11272 = vmatpush.msrb.mxu1 %v21712_v11  ;;  %11311 = vmatpush.msrb.mxu2 %v21983_v8  ;;  %v10952_v11 = vld [vmem:[%s23637_s12 + $0xa0] sm:$0xff] }
 0x869   : > { %11205 = vmatpush.msrb.mxu0 %v11014_v10  ;;  %v21998_v59 = vand.u32 4294901760, %v10952_v11  ;;  %v11349_v10 = vand.u32 4294901760, %v22008_v31 }
 0x86a   : > { %11274 = vmatpush.msrb.mxu1 %v21721_v32  ;;  %11313 = vmatpush.msrb.mxu2 %v21989_v18  ;;  %v10951_v32 = vld [vmem:[%s23637_s12 + $0x98] sm:$0xff] }
 0x86b   : > { %11209 = vmatpush.msrb.mxu0 %v11020_v39  ;;  %v22005_v28 = vand.u32 4294901760, %v10951_v32  ;;  %v22021_v39 = vsub.f32 %v10953_v22, %v21989_v18  ;;  %v11350_v4 = vsub.f32 %v22008_v31, %v11349_v10 }
 0x86c   : > { %11276 = vmatpush.msrb.mxu1 %v21733_v58  ;;  %11315 = vmatpush.msrb.mxu2 %v21998_v59  ;;  %v10950_v58 = vld [vmem:[%s23637_s12 + $0x90] sm:$0xff] }
 0x86d   : > { %11213 = vmatpush.msrb.mxu0 %v11026_v19  ;;  %v22015_v41 = vand.u32 4294901760, %v10950_v58  ;;  %v10949_v19 = vld [vmem:[%s23637_s12 + $0x88] sm:$0xff] }
 0x86e   : > { %11278 = vmatpush.msrb.mxu1 %v21742_v30  ;;  %v11344_v30 = vsub.f32 %v21996_v34, %v11343_v47  ;;  %11317 = vmatpush.msrb.mxu2 %v22005_v28 }
 0x86f   : > { %11217 = vmatpush.msrb.mxu0 %v11032_v49  ;;  %v22028_v49 = vand.u32 4294901760, %v10949_v19 }
 0x870   : > { %11280 = vmatpush.msrb.mxu1 %v21762_v38  ;;  %v11345_v35 = vand.u32 4294901760, %v11344_v30  ;;  %v11355_v38 = vand.u32 4294901760, %v22021_v39  ;;  %11319 = vmatpush.msrb.mxu2 %v22015_v41  ;;  %v13728_v30 = vld [vmem:[%s23637_s12 + $0x100] sm:$0xff] }
 0x871   : > { %11221 = vmatpush.msrb.mxu0 %v11038_v62  ;;  %v22035_v62 = vsub.f32 %v10952_v11, %v21998_v59  ;;  %v22063_v16 = vsub.f32 %v10949_v19, %v22028_v49 }
 0x872   : > { %11282 = vmatpush.msrb.mxu1 %v21774_v24  ;;  %11346 = vmatpush.msrb.mxu3 %v11345_v35  ;;  %v11356_v26 = vsub.f32 %v22021_v39, %v11355_v38  ;;  %v13743_v35 = vld [vmem:[%s23637_s12 + $0x178] sm:$0xff] }
 0x873   : > { %11225 = vmatpush.msrb.mxu0 %v11044_v40  ;;  %v22040_v40 = vand.u32 4294901760, %v10948_v21  ;;  %11321 = vmatpush.msrb.mxu2 %v22028_v49 }
 0x874   : > { %11284 = vmatpush.msrb.mxu1 %v21788_v60  ;;  %v11351_v60 = vand.u32 4294901760, %v11350_v4  ;;  %v11357_v27 = vand.u32 4294901760, %v11356_v26  ;;  %v22201_v4 = vand.u32 4294901760, %v13728_v30 }
 0x875   : > { %11229 = vmatpush.msrb.mxu0 %v11050_v46  ;;  %v11361_v46 = vand.u32 4294901760, %v22035_v62  ;;  %11323 = vmatpush.msrb.mxu2 %v22040_v40 }
 0x876   : > { %11286 = vmatpush.msrb.mxu1 %v21801_v51  ;;  %v22046_v51 = vsub.f32 %v10951_v32, %v22005_v28  ;;  %11352 = vmatpush.msrb.mxu3 %v11351_v60  ;;  %v13730_v32 = vld [vmem:[%s23637_s12 + $0x110] sm:$0xff] }
 0x877   : > { %11233 = vmatpush.msrb.mxu0 %v11056_v5  ;;  %v22052_v5 = vsub.f32 %v10950_v58, %v22015_v41  ;;  %v11362_v0 = vsub.f32 %v22035_v62, %v11361_v46 }
 0x878   : > { %11288 = vmatpush.msrb.mxu1 %v21815_v37  ;;  %v11367_v37 = vand.u32 4294901760, %v22046_v51  ;;  %11358 = vmatpush.msrb.mxu3 %v11357_v27 }
 0x879   : > { %11237 = vmatpush.msrb.mxu0 %v11062_v2  ;;  %v11363_v15 = vand.u32 4294901760, %v11362_v0 }
 0x87a   : > { %11290 = vmatpush.msrb.mxu1 %v21829_v63  ;;  %v11373_v63 = vand.u32 4294901760, %v22052_v5  ;;  %v11368_v2 = vsub.f32 %v22046_v51, %v11367_v37 }
 0x87b   : > { %11241 = vmatpush.msrb.mxu0 %v11068_v13  ;;  %11364 = vmatpush.msrb.mxu3 %v11363_v15  ;;  %v13741_v15 = vld [vmem:[%s23637_s12 + $0x168] sm:$0xff] }
 0x87c   : > { %11292 = vmatpush.msrb.mxu1 %v21843_v12  ;;  %v11369_v44 = vand.u32 4294901760, %v11368_v2  ;;  %v11374_v53 = vsub.f32 %v22052_v5, %v11373_v63 }
 0x87d   : > { %11245 = vmatpush.msrb.mxu0 %v11074_v14  ;;  %v22070_v14 = vsub.f32 %v10948_v21, %v22040_v40  ;;  %v22209_v21 = vand.u32 4294901760, %v13743_v35 }
 0x87e   : > { %11294 = vmatpush.msrb.mxu1 %v21854_v56  ;;  %v11379_v56 = vand.u32 4294901760, %v22063_v16  ;;  %v11375_v54 = vand.u32 4294901760, %v11374_v53  ;;  %11370 = vmatpush.msrb.mxu3 %v11369_v44  ;;  %v13740_v53 = vld [vmem:[%s23637_s12 + $0x160] sm:$0xff] }
 0x87f   : > { %11249 = vmatpush.msrb.mxu0 %v11080_v57  ;;  %v11385_v43 = vand.u32 4294901760, %v22070_v14 }
 0x880   : > { %v11380_v36 = vsub.f32 %v22063_v16, %v11379_v56  ;;  %11376 = vmatpush.msrb.mxu3 %v11375_v54 }
 0x881   : > { %11253 = vmatpush.msrb.mxu0 %v11086_v29  ;;  %v11386_v29 = vsub.f32 %v22070_v14, %v11385_v43 }
 0x882   : > { %v11381_v55 = vand.u32 4294901760, %v11380_v36 }
 0x883   : > { %11257 = vmatpush.msrb.mxu0 %v11092_v45  ;;  %v11387_v45 = vand.u32 4294901760, %v11386_v29  ;;  %v22277_v29 = vand.u32 4294901760, %v13741_v15 }
 0x884   : > { %11382 = vmatpush.msrb.mxu3 %v11381_v55 }
 0x886   : > { %11388 = vmatpush.msrb.mxu3 %v11387_v45 }
 0x897   : > { %v10663_v24 = vpop.f32.mrf.mxu0 }
 0x89d   : > { %v10737_v7 = vpop.f32.mrf.mxu3 }
 0x89f   : > { %v10689_v12 = vpop.f32.mrf.mxu1  ;;  %v10713_v52 = vpop.f32.mrf.mxu2 }
 0x8a0   : > { %v10690_v13 = vadd.f32 %v10689_v12, %v10663_v24  ;;  %v10761_v57 = vpop.f32.mrf.mxu0  ;;  %v13742_v24 = vld [vmem:[%s23637_s12 + $0x170] sm:$0xff] }
 0x8a2   : > { %v10714_v25 = vadd.f32 %v10713_v52, %v10690_v13  ;;  %v22236_v52 = vsub.f32 %v13743_v35, %v22209_v21 }
 0x8a4   : > { %v10738_v42 = vadd.f32 %v10737_v7, %v10714_v25  ;;  %v22257_v25 = vld [vmem:[%s23637_s12 + $0xd8] sm:$0xff]  ;;  %v23870_v45 = vand.u32 4294901760, %v22236_v52 }
 0x8a6   : > { %v10762_v61 = vadd.f32 %v10761_v57, %v10738_v42  ;;  %v22274_v42 = vld [vmem:[%s23637_s12 + $0xd0] sm:$0xff] }
 0x8a7   : > { %v10783_v1 = vpop.f32.mrf.mxu1 }
 0x8a8   : > { %v10784_v50 = vadd.f32 %v10783_v1, %v10762_v61 }
 0x8aa   : > { %v22079_v23 = vand.u32 4294901760, %v10784_v50 }
 0x8ac   : > { %v22082_v3 = vsub.f32 %v10784_v50, %v22079_v23  ;;  %11097 = vmatmul.f32.vlgmr.msra.gmra.mxu1 %v22079_v23  ;;  %v22288_v50 = vand.u32 4294901760, %v13740_v53 }
 0x8ad   : > { %11517 = vmatpush.msra.mxu1 %v21978_v33 }
 0x8ae   : > { %v22087_v20 = vand.u32 4294901760, %v22082_v3  ;;  %11151 = vmatmul.f32.vlgmr.msra.gmra.mxu2 %v22082_v3 }
 0x8af   : > { %11519 = vmatpush.msra.mxu1 %v21983_v8  ;;  %11404 = vmatpush.msra.mxu2 %v21996_v34  ;;  %v13731_v34 = vld [vmem:[%s23637_s12 + $0x118] sm:$0xff] }
 0x8b0   : > { %v10994_v6 = vsub.f32 %v22082_v3, %v22087_v20  ;;  %11190 = vmatmul.f32.vlgmr.msra.gmra.mxu3 %v22087_v20 }
 0x8b1   : > { %11521 = vmatpush.msra.mxu1 %v21989_v18  ;;  %11441 = vmatpush.msra.mxu3 %v21978_v33  ;;  %v13734_v33 = vld [vmem:[%s23637_s12 + $0x130] sm:$0xff] }
 0x8b2   : > { %v22097_v17 = vand.u32 4294901760, %v10994_v6  ;;  %11407 = vmatpush.msra.mxu2 %v22008_v31  ;;  %v22128_v22 = vand.u32 4294901760, %v13734_v33  ;;  %v13729_v31 = vld [vmem:[%s23637_s12 + $0x108] sm:$0xff]  ;;  %v13739_v6 = vld [vmem:[%s23637_s12 + $0x158] sm:$0xff] }
 0x8b3   : > { %11523 = vmatpush.msra.mxu1 %v21998_v59  ;;  %11443 = vmatpush.msra.mxu3 %v21983_v8  ;;  %v13733_v8 = vld [vmem:[%s23637_s12 + $0x128] sm:$0xff]  ;;  %v22188_v19 = vand.u32 4294901760, %v13729_v31 }
 0x8b4   : > { %24332 = vst [vmem:[#allocation15_spill] sm:$0xff] %v22097_v17  ;;  %10996 = vmatmul.f32.vlgmr.msra.gmra.mxu0 %v22097_v17  ;;  %11296 = vmatmul.f32.vlgmr.msrb.gmra.mxu1 %v22079_v23  ;;  %v22139_v11 = vand.u32 4294901760, %v13733_v8  ;;  %v22173_v58 = vsub.f32 %v13734_v33, %v22128_v22  ;;  %v22296_v33 = vand.u32 4294901760, %v22257_v25 }
 0x8b5   : > { %11474 = vmatpush.msra.mxu0 %v11343_v47  ;;  %11525 = vmatpush.msra.mxu1 %v22005_v28  ;;  %v22160_v47 = vsub.f32 %v13735_v9, %v22118_v48  ;;  %v22244_v44 = vsub.f32 %v13729_v31, %v22188_v19  ;;  %v22308_v31 = vand.u32 4294901760, %v22274_v42 }
 0x8b6   : > { %11445 = vmatpush.msra.mxu3 %v21989_v18  ;;  %11410 = vmatpush.msra.mxu2 %v22021_v39  ;;  %v13732_v18 = vld [vmem:[%s23637_s12 + $0x120] sm:$0xff]  ;;  %24334 = vst [vmem:[#allocation12_spill] sm:$0xff] %v22173_v58  ;;  %v22186_v39 = vsub.f32 %v13733_v8, %v22139_v11  ;;  %v23873_v12 = vand.u32 4294901760, %v22173_v58 }
 0x8b7   : > { %11478 = vmatpush.msra.mxu0 %v11349_v10  ;;  %11527 = vmatpush.msra.mxu1 %v22015_v41  ;;  %24333 = vst [vmem:[#allocation18_spill] sm:$0xff] %v22160_v47  ;;  %v22175_v10 = vand.u32 4294901760, %v13730_v32  ;;  %v23874_v27 = vand.u32 4294901760, %v22160_v47  ;;  %v24344_v17 = vand.u32 4294901760, %v22244_v44 }
 0x8b8   : > { %11447 = vmatpush.msra.mxu3 %v21998_v59  ;;  %11413 = vmatpush.msra.mxu2 %v22035_v62  ;;  %v22149_v59 = vand.u32 4294901760, %v13732_v18  ;;  %24335 = vst [vmem:[#allocation16_spill] sm:$0xff] %v22186_v39  ;;  %v13726_v62 = vld [vmem:[%s23637_s12 + $0xf0] sm:$0xff]  ;;  %v23872_v55 = vand.u32 4294901760, %v22186_v39  ;;  %v22285_v1 = vsub.f32 %v22173_v58, %v23873_v12 }
 0x8b9   : > { %11482 = vmatpush.msra.mxu0 %v11355_v38  ;;  %11529 = vmatpush.msra.mxu1 %v22028_v49  ;;  %v13727_v38 = vld [vmem:[%s23637_s12 + $0xf8] sm:$0xff]  ;;  %v22227_v0 = vsub.f32 %v13730_v32, %v22175_v10  ;;  %v22262_v54 = vsub.f32 %v22160_v47, %v23874_v27  ;;  %24339 = vst [vmem:[#allocation21_spill] sm:$0xff] %v22308_v31 }
 0x8ba   : > { %11449 = vmatpush.msra.mxu3 %v22005_v28  ;;  %11416 = vmatpush.msra.mxu2 %v22046_v51  ;;  %v22162_v28 = vand.u32 4294901760, %v13731_v34 }
 0x8bb   : > { %11486 = vmatpush.msra.mxu0 %v11361_v46  ;;  %11531 = vmatpush.msra.mxu1 %v22040_v40  ;;  %v13725_v46 = vld [vmem:[%s23637_s12 + $0xe8] sm:$0xff]  ;;  %24338 = vst [vmem:[#allocation20_spill] sm:$0xff] %v22227_v0  ;;  %v10883_v2 = vpop.f32.mrf.mxu1 }
 0x8bc   : > { %11259 = vmatmul.f32.vlgmr.msrb.gmra.mxu0 %v22079_v23  ;;  %11451 = vmatpush.msra.mxu3 %v22015_v41  ;;  %v22214_v60 = vsub.f32 %v13731_v34, %v22162_v28 }
 0x8bd   : > { %11759 = vmatpush.msrb.mxu1 %v22118_v48  ;;  %11490 = vmatpush.msra.mxu0 %v11367_v37  ;;  %v10859_v51 = vpop.f32.mrf.mxu0  ;;  %v22222_v37 = vand.u32 4294901760, %v13742_v24 }
 0x8be   : > { %11419 = vmatpush.msra.mxu2 %v22052_v5  ;;  %11453 = vmatpush.msra.mxu3 %v22028_v49  ;;  %v22199_v49 = vsub.f32 %v13732_v18, %v22149_v59  ;;  %24337 = vst [vmem:[#allocation26_spill] sm:$0xff] %v22214_v60  ;;  %v22304_v18 = vld [vmem:[%s23637_s12 + $0xc8] sm:$0xff] }
 0x8bf   : > { %11761 = vmatpush.msrb.mxu1 %v22128_v22  ;;  %11494 = vmatpush.msra.mxu0 %v11373_v63  ;;  %v22229_v63 = vand.u32 4294901760, %v13726_v62  ;;  %v22265_v36 = vsub.f32 %v13742_v24, %v22222_v37 }
 0x8c0   : > { %11422 = vmatpush.msra.mxu2 %v22063_v16  ;;  %11455 = vmatpush.msra.mxu3 %v22040_v40  ;;  %24336 = vst [vmem:[#allocation22_spill] sm:$0xff] %v22199_v49  ;;  %v22216_v40 = vand.u32 4294901760, %v13727_v38  ;;  %v13724_v16 = vld [vmem:[%s23637_s12 + $0xe0] sm:$0xff]  ;;  %v23871_v34 = vand.u32 4294901760, %v22199_v49 }
 0x8c1   : > { %11763 = vmatpush.msrb.mxu1 %v22139_v11  ;;  %11498 = vmatpush.msra.mxu0 %v11379_v56  ;;  %v10809_v41 = vpop.f32.mrf.mxu2  ;;  %v22246_v56 = vand.u32 4294901760, %v13725_v46  ;;  %v22299_v8 = vsub.f32 %v13726_v62, %v22229_v63  ;;  %v23875_v35 = vand.u32 4294901760, %v22265_v36  ;;  %v22323_v62 = vld [vmem:[%s23637_s12 + $0xc0] sm:$0xff] }
 0x8c2   : > { %11425 = vmatpush.msra.mxu2 %v22070_v14  ;;  %v22252_v14 = vsub.f32 %v13728_v30, %v22201_v4  ;;  %v22280_v61 = vsub.f32 %v13727_v38, %v22216_v40  ;;  %v13738_v38 = vld [vmem:[%s23637_s12 + $0x150] sm:$0xff] }
 0x8c3   : > { %11765 = vmatpush.msrb.mxu1 %v22149_v59  ;;  %11502 = vmatpush.msra.mxu0 %v11385_v43  ;;  %v22269_v43 = vand.u32 4294901760, %v13724_v16  ;;  %v22312_v30 = vsub.f32 %v13725_v46, %v22246_v56  ;;  %v22331_v46 = vand.u32 4294901760, %v13739_v6 }
 0x8c5   : > { %11706 = vmatpush.msrb.mxu0 %v22160_v47  ;;  %11767 = vmatpush.msrb.mxu1 %v22162_v28  ;;  %v22371_v27 = vsub.f32 %v13739_v6, %v22331_v46  ;;  %v22387_v6 = vsub.f32 %v22257_v25, %v22296_v33 }
 0x8c7   : > { %11709 = vmatpush.msrb.mxu0 %v22173_v58  ;;  %11769 = vmatpush.msrb.mxu1 %v22175_v10 }
 0x8c9   : > { %11712 = vmatpush.msrb.mxu0 %v22186_v39  ;;  %11771 = vmatpush.msrb.mxu1 %v22188_v19  ;;  %v10835_v26 = vpop.f32.mrf.mxu3 }
 0x8ca   : > { %v10836_v5 = vadd.f32 %v10835_v26, %v10809_v41  ;;  %v10907_v7 = vpop.f32.mrf.mxu2  ;;  %v11607_v41 = vand.u32 4294901760, %v22262_v54  ;;  %v11618_v26 = vsub.f32 %v22186_v39, %v23872_v55 }
 0x8cb   : > { %11715 = vmatpush.msrb.mxu0 %v22199_v49  ;;  %11773 = vmatpush.msrb.mxu1 %v22201_v4 }
 0x8cc   : > { %v10860_v13 = vadd.f32 %v10859_v51, %v10836_v5  ;;  %v22329_v51 = vsub.f32 %v13741_v15, %v22277_v29  ;;  %v22334_v5 = vand.u32 4294901760, %v22304_v18  ;;  %v11624_v15 = vsub.f32 %v22199_v49, %v23871_v34 }
 0x8cd   : > { %11718 = vmatpush.msrb.mxu0 %v22214_v60  ;;  %11775 = vmatpush.msrb.mxu1 %v22216_v40  ;;  %v11619_v34 = vand.u32 4294901760, %v11618_v26 }
 0x8ce   : > { %v10884_v57 = vadd.f32 %v10883_v2, %v10860_v13  ;;  %v11613_v2 = vand.u32 4294901760, %v22285_v1  ;;  %v11947_v13 = vsub.f32 %v22236_v52, %v23870_v45  ;;  %v22350_v1 = vand.u32 4294901760, %v13738_v38 }
 0x8cf   : > { %11721 = vmatpush.msrb.mxu0 %v22227_v0  ;;  %11777 = vmatpush.msrb.mxu1 %v22229_v63  ;;  %v11953_v45 = vsub.f32 %v22265_v36, %v23875_v35  ;;  %v11625_v12 = vand.u32 4294901760, %v11624_v15  ;;  %v22405_v15 = vsub.f32 %v22274_v42, %v22308_v31 }
 0x8d0   : > { %v10908_v9 = vadd.f32 %v10907_v7, %v10884_v57  ;;  %v22341_v7 = vsub.f32 %v13740_v53, %v22288_v50  ;;  %v11948_v35 = vand.u32 4294901760, %v11947_v13  ;;  %v22393_v39 = vsub.f32 %v13738_v38, %v22350_v1 }
 0x8d1   : > { %11724 = vmatpush.msrb.mxu0 %v22244_v44  ;;  %11779 = vmatpush.msrb.mxu1 %v22246_v56  ;;  %v10929_v32 = vpop.f32.mrf.mxu3  ;;  %v24341_v38 = vand.u32 4294901760, %v22329_v51 }
 0x8d2   : > { %v10930_v24 = vadd.f32 %v10929_v32, %v10908_v9  ;;  %v13737_v9 = vld [vmem:[%s23637_s12 + $0x148] sm:$0xff]  ;;  %v22358_v32 = vsub.f32 %v13724_v16, %v22269_v43  ;;  %v13736_v16 = vld [vmem:[%s23637_s12 + $0x140] sm:$0xff]  ;;  %v24343_v42 = vand.u32 4294901760, %v22341_v7 }
 0x8d3   : > { %11727 = vmatpush.msrb.mxu0 %v22252_v14  ;;  %11781 = vmatpush.msrb.mxu1 %v22269_v43  ;;  %v22382_v55 = vand.u32 4294901760, %v13737_v9  ;;  %v22401_v25 = vand.u32 4294901760, %v13736_v16 }
 0x8d4   : > { %v10957_v54 = vsel %vm2872_vm3, %v10930_v24, 0  ;;  %v22361_v24 = vand.u32 4294901760, %v22323_v62 }
 0x8d5   : > { %11730 = vmatpush.msrb.mxu0 %v22280_v61  ;;  %11783 = vmatpush.msrb.mxu1 %v22296_v33  ;;  %v22355_v53 = vand.u32 4294901760, %v10957_v54  ;;  %v22422_v26 = vsub.f32 %v13737_v9, %v22382_v55  ;;  %v24345_v9 = vand.u32 4294901760, %v22371_v27 }
 0x8d7   : > { %11733 = vmatpush.msrb.mxu0 %v22299_v8  ;;  %11785 = vmatpush.msrb.mxu1 %v22308_v31  ;;  %v22377_v57 = vsub.f32 %v10957_v54, %v22355_v53  ;;  %v24340_v54 = vand.u32 4294901760, %v22214_v60  ;;  %v11642_v31 = vsub.f32 %v22244_v44, %v24344_v17 }
 0x8d8   : > { %11390 = vmatmul.f32.vlgmr.msrb.gmra.mxu3 %v22355_v53  ;;  %11504 = vmatmul.f32.vlgmr.msra.gmra.mxu0 %v22355_v53 }
 0x8d9   : > { %11533 = vmatmul.f32.vlgmr.msra.gmra.mxu1 %v22355_v53  ;;  %11608 = vmatpush.msrb.mxu3 %v11607_v41  ;;  %v11630_v49 = vsub.f32 %v22214_v60, %v24340_v54  ;;  %v22396_v13 = vand.u32 4294901760, %v22377_v57  ;;  %v11954_v41 = vand.u32 4294901760, %v11953_v45  ;;  %v11959_v54 = vsub.f32 %v22329_v51, %v24341_v38 }
 0x8da   : > { %11736 = vmatpush.msrb.mxu0 %v22312_v30  ;;  %11787 = vmatpush.msrb.mxu1 %v22334_v5  ;;  %v24342_v60 = vand.u32 4294901760, %v22227_v0  ;;  %v11976_v38 = vand.u32 4294901760, %v22393_v39 }
 0x8db   : > { %11614 = vmatpush.msrb.mxu3 %v11613_v2  ;;  %v11327_v45 = vsub.f32 %v22377_v57, %v22396_v13  ;;  %v11965_v2 = vsub.f32 %v22341_v7, %v24343_v42  ;;  %v22433_v42 = vsub.f32 %v13736_v16, %v22401_v25 }
 0x8dc   : > { %v11636_v58 = vsub.f32 %v22227_v0, %v24342_v60  ;;  %11739 = vmatpush.msrb.mxu0 %v22358_v32  ;;  %11789 = vmatpush.msrb.mxu1 %v22361_v24  ;;  %v23885_v60 = vand.u32 4294901760, %v22252_v14  ;;  %v11631_v0 = vand.u32 4294901760, %v11630_v49  ;;  %v11653_v49 = vand.u32 4294901760, %v22280_v61 }
 0x8dd   : > { %11620 = vmatpush.msrb.mxu3 %v11619_v34  ;;  %v22427_v47 = vand.u32 4294901760, %v11327_v45  ;;  %v11960_v34 = vand.u32 4294901760, %v11959_v54  ;;  %v11971_v45 = vsub.f32 %v22371_v27, %v24345_v9  ;;  %v11966_v16 = vand.u32 4294901760, %v11965_v2 }
 0x8de   : > { %11949 = vmatpush.msra.mxu1 %v11948_v35  ;;  %11742 = vmatpush.msrb.mxu0 %v22387_v6  ;;  %v22437_v35 = vsub.f32 %v22304_v18, %v22334_v5  ;;  %v11637_v17 = vand.u32 4294901760, %v11636_v58  ;;  %v22450_v18 = vsub.f32 %v22323_v62, %v22361_v24  ;;  %v11977_v54 = vsub.f32 %v22393_v39, %v11976_v38 }
 0x8df   : > { %11626 = vmatpush.msrb.mxu3 %v11625_v12  ;;  %11329 = vmatmul.f32.vlgmr.msrb.gmra.mxu2 %v22427_v47  ;;  %v23886_v12 = vand.u32 4294901760, %v22422_v26  ;;  %v11659_v58 = vand.u32 4294901760, %v22299_v8  ;;  %v11643_v2 = vand.u32 4294901760, %v11642_v31  ;;  %v23887_v9 = vand.u32 4294901760, %v22433_v42 }
 0x8e0   : > { %11955 = vmatpush.msra.mxu1 %v11954_v41  ;;  %11745 = vmatpush.msrb.mxu0 %v22405_v15  ;;  %v11648_v41 = vsub.f32 %v22252_v14, %v23885_v60  ;;  %v11972_v62 = vand.u32 4294901760, %v11971_v45  ;;  %v11654_v60 = vsub.f32 %v22280_v61, %v11653_v49 }
 0x8e1   : > { %11459 = vmatmul.f32.vlgmr.msra.gmra.mxu3 %v22396_v13  ;;  %11563 = vmatpush.msrb.mxu2 %v22118_v48  ;;  %v11660_v45 = vsub.f32 %v22299_v8, %v11659_v58 }
 0x8e2   : > { %11632 = vmatpush.msrb.mxu3 %v11631_v0  ;;  %11793 = vmatmul.f32.vlgmr.msrb.gmra.mxu1 %v22087_v20  ;;  %v11983_v0 = vsub.f32 %v22422_v26, %v23886_v12  ;;  %v11665_v20 = vand.u32 4294901760, %v22312_v30  ;;  %v11649_v31 = vand.u32 4294901760, %v11648_v41  ;;  %v11671_v12 = vand.u32 4294901760, %v22358_v32 }
 0x8e3   : > { %11961 = vmatpush.msra.mxu1 %v11960_v34  ;;  %11748 = vmatpush.msrb.mxu0 %v22437_v35  ;;  %v11978_v34 = vand.u32 4294901760, %v11977_v54 }
 0x8e4   : > { %11565 = vmatpush.msrb.mxu2 %v22128_v22  ;;  %11638 = vmatpush.msrb.mxu3 %v11637_v17  ;;  %v11989_v17 = vsub.f32 %v22433_v42, %v23887_v9  ;;  %v11984_v41 = vand.u32 4294901760, %v11983_v0  ;;  %v11666_v54 = vsub.f32 %v22312_v30, %v11665_v20  ;;  %v11661_v9 = vand.u32 4294901760, %v11660_v45 }
 0x8e5   : > { %11967 = vmatpush.msra.mxu1 %v11966_v16  ;;  %11751 = vmatpush.msrb.mxu0 %v22450_v18  ;;  %v11655_v16 = vand.u32 4294901760, %v11654_v60  ;;  %v11672_v60 = vsub.f32 %v22358_v32, %v11671_v12  ;;  %v12152_v32 = vld [vmem:[%s23638_s13 + $0x38] sm:$0xff] }
 0x8e6   : > { %11567 = vmatpush.msrb.mxu2 %v22139_v11  ;;  %11644 = vmatpush.msrb.mxu3 %v11643_v2  ;;  %v11677_v2 = vand.u32 4294901760, %v22387_v6  ;;  %v11667_v0 = vand.u32 4294901760, %v11666_v54 }
 0x8e7   : > { %11754 = vmatmul.f32.vlgmr.msrb.gmra.mxu0 %v22082_v3  ;;  %11973 = vmatpush.msra.mxu1 %v11972_v62  ;;  %v11990_v3 = vand.u32 4294901760, %v11989_v17  ;;  %v11683_v62 = vand.u32 4294901760, %v22405_v15  ;;  %v11673_v45 = vand.u32 4294901760, %v11672_v60 }
 0x8e8   : > { %11912 = vmatpush.msra.mxu0 %v22209_v21  ;;  %11569 = vmatpush.msrb.mxu2 %v22149_v59 }
 0x8e9   : > { %11650 = vmatpush.msrb.mxu3 %v11649_v31  ;;  %11979 = vmatpush.msra.mxu1 %v11978_v34  ;;  %v11678_v31 = vsub.f32 %v22387_v6, %v11677_v2  ;;  %v11689_v34 = vand.u32 4294901760, %v22437_v35  ;;  %v11684_v17 = vsub.f32 %v22405_v15, %v11683_v62  ;;  %v12151_v6 = vld [vmem:[%s23638_s13 + $0x30] sm:$0xff] }
 0x8ea   : > { %11914 = vmatpush.msra.mxu0 %v22222_v37  ;;  %11428 = vmatmul.f32.vlgmr.msra.gmra.mxu2 %v22377_v57 }
 0x8eb   : > { %11571 = vmatpush.msrb.mxu2 %v22162_v28  ;;  %11656 = vmatpush.msrb.mxu3 %v11655_v16  ;;  %v11695_v16 = vand.u32 4294901760, %v22450_v18  ;;  %v11685_v54 = vand.u32 4294901760, %v11684_v17 }
 0x8ec   : > { %11916 = vmatpush.msra.mxu0 %v22277_v29  ;;  %11985 = vmatpush.msra.mxu1 %v11984_v41  ;;  %v11690_v41 = vsub.f32 %v22437_v35, %v11689_v34 }
 0x8ed   : > { %11573 = vmatpush.msrb.mxu2 %v22175_v10  ;;  %11662 = vmatpush.msrb.mxu3 %v11661_v9  ;;  %v11679_v9 = vand.u32 4294901760, %v11678_v31 }
 0x8ee   : > { %11918 = vmatpush.msra.mxu0 %v22288_v50  ;;  %11991 = vmatpush.msra.mxu1 %v11990_v3  ;;  %v11696_v3 = vsub.f32 %v22450_v18, %v11695_v16  ;;  %v11691_v60 = vand.u32 4294901760, %v11690_v41  ;;  %v24358_v41 = vld [vmem:[#allocation20_spill] sm:$0xff] }
 0x8ef   : > { %11993 = vmatmul.f32.vlgmr.msra.gmra.mxu1 %v22355_v53  ;;  %11575 = vmatpush.msrb.mxu2 %v22188_v19 }
 0x8f0   : > { %12044 = vmatpush.msrb.mxu1 %v22209_v21  ;;  %11668 = vmatpush.msrb.mxu3 %v11667_v0  ;;  %v11697_v0 = vand.u32 4294901760, %v11696_v3  ;;  %v12148_v3 = vld [vmem:[%s23638_s13 + $0x18] sm:$0xff] }
 0x8f1   : > { %11920 = vmatpush.msra.mxu0 %v22331_v46  ;;  %11577 = vmatpush.msrb.mxu2 %v22201_v4 }
 0x8f2   : > { %12046 = vmatpush.msrb.mxu1 %v22222_v37  ;;  %11674 = vmatpush.msrb.mxu3 %v11673_v45 }
 0x8f3   : > { %11922 = vmatpush.msra.mxu0 %v22350_v1  ;;  %11579 = vmatpush.msrb.mxu2 %v22216_v40 }
 0x8f4   : > { %12048 = vmatpush.msrb.mxu1 %v22277_v29  ;;  %11680 = vmatpush.msrb.mxu3 %v11679_v9 }
 0x8f5   : > { %11924 = vmatpush.msra.mxu0 %v22382_v55  ;;  %11581 = vmatpush.msrb.mxu2 %v22229_v63 }
 0x8f6   : > { %12050 = vmatpush.msrb.mxu1 %v22288_v50  ;;  %11686 = vmatpush.msrb.mxu3 %v11685_v54  ;;  %v24359_v54 = vand.u32 4294901760, %v24358_v41 }
 0x8f7   : > { %11926 = vmatpush.msra.mxu0 %v22401_v25  ;;  %11583 = vmatpush.msrb.mxu2 %v22246_v56 }
 0x8f8   : > { %11932 = vmatmul.f32.vlgmr.msra.gmra.mxu0 %v22427_v47  ;;  %12052 = vmatpush.msrb.mxu1 %v22331_v46  ;;  %v24346_v47 = vld [vmem:[#allocation21_spill] sm:$0xff] }
 0x8f9   : > { %12007 = vmatpush.msrb.mxu0 %v22236_v52  ;;  %11692 = vmatpush.msrb.mxu3 %v11691_v60 }
 0x8fa   : > { %12054 = vmatpush.msrb.mxu1 %v22350_v1  ;;  %11585 = vmatpush.msrb.mxu2 %v22269_v43 }
 0x8fb   : > { %12010 = vmatpush.msrb.mxu0 %v22265_v36  ;;  %11698 = vmatpush.msrb.mxu3 %v11697_v0 }
 0x8fc   : > { %11700 = vmatmul.f32.vlgmr.msrb.gmra.mxu3 %v22079_v23  ;;  %12056 = vmatpush.msrb.mxu1 %v22382_v55 }
 0x8fd   : > { %11867 = vmatpush.msra.mxu3 %v22118_v48  ;;  %12013 = vmatpush.msrb.mxu0 %v22329_v51  ;;  %v24347_v48 = vld [vmem:[#allocation15_spill] sm:$0xff] }
 0x8fe   : > { %11587 = vmatpush.msrb.mxu2 %v22296_v33  ;;  %12058 = vmatpush.msrb.mxu1 %v22401_v25 }
 0x8ff   : > { %11869 = vmatpush.msra.mxu3 %v22128_v22  ;;  %12016 = vmatpush.msrb.mxu0 %v22341_v7  ;;  %v24348_v22 = vld [vmem:[#allocation18_spill] sm:$0xff] }
 0x900   : > { %11589 = vmatpush.msrb.mxu2 %v24346_v47  ;;  %12062 = vmatmul.f32.vlgmr.msrb.gmra.mxu1 %v22396_v13  ;;  %v24349_v31 = vand.u32 4294901760, %v24348_v22  ;;  %v22734_v22 = vand.u32 4294901760, %v12148_v3 }
 0x901   : > { %11871 = vmatpush.msra.mxu3 %v22139_v11  ;;  %12019 = vmatpush.msrb.mxu0 %v22371_v27  ;;  %v24350_v11 = vld [vmem:[#allocation12_spill] sm:$0xff] }
 0x902   : > { %11591 = vmatpush.msrb.mxu2 %v22334_v5  ;;  %v24351_v13 = vand.u32 4294901760, %v24350_v11  ;;  %v12147_v11 = vld [vmem:[%s23638_s13 + $0x10] sm:$0xff] }
 0x903   : > { %11873 = vmatpush.msra.mxu3 %v22149_v59  ;;  %12022 = vmatpush.msrb.mxu0 %v22393_v39  ;;  %v24352_v59 = vld [vmem:[#allocation16_spill] sm:$0xff] }
 0x904   : > { %11593 = vmatpush.msrb.mxu2 %v22361_v24  ;;  %v24353_v45 = vand.u32 4294901760, %v24352_v59  ;;  %v12154_v39 = vld [vmem:[%s23638_s13 + $0x48] sm:$0xff] }
 0x905   : > { %11599 = vmatmul.f32.vlgmr.msrb.gmra.mxu2 %v24347_v48  ;;  %11875 = vmatpush.msra.mxu3 %v22162_v28  ;;  %v24354_v28 = vld [vmem:[#allocation22_spill] sm:$0xff] }
 0x906   : > { %11800 = vmatpush.msra.mxu2 %v24349_v31  ;;  %12025 = vmatpush.msrb.mxu0 %v22422_v26  ;;  %v24355_v17 = vand.u32 4294901760, %v24354_v28  ;;  %v22750_v28 = vsub.f32 %v12148_v3, %v22734_v22 }
 0x907   : > { %11877 = vmatpush.msra.mxu3 %v22175_v10  ;;  %v24356_v10 = vld [vmem:[#allocation26_spill] sm:$0xff] }
 0x908   : > { %11804 = vmatpush.msra.mxu2 %v24351_v13  ;;  %12028 = vmatpush.msrb.mxu0 %v22433_v42  ;;  %v24357_v9 = vand.u32 4294901760, %v24356_v10 }
 0x909   : > { %12031 = vmatmul.f32.vlgmr.msrb.gmra.mxu0 %v22377_v57  ;;  %11879 = vmatpush.msra.mxu3 %v22188_v19  ;;  %v24360_v19 = vand.u32 4294901760, %v22244_v44  ;;  %v24368_v44 = vand.u32 4294901760, %v22433_v42  ;;  %v12150_v42 = vld [vmem:[%s23638_s13 + $0x28] sm:$0xff] }
 0x90a   : > { %11808 = vmatpush.msra.mxu2 %v24353_v45  ;;  %v22705_v18 = vand.u32 4294901760, %v12150_v42 }
 0x90b   : > { %11881 = vmatpush.msra.mxu3 %v22201_v4  ;;  %v24361_v4 = vand.u32 4294901760, %v22252_v14 }
 0x90c   : > { %11812 = vmatpush.msra.mxu2 %v24355_v17  ;;  %v22752_v17 = vand.u32 4294901760, %v12147_v11 }
 0x90d   : > { %11883 = vmatpush.msra.mxu3 %v22216_v40  ;;  %v24363_v40 = vand.u32 4294901760, %v22265_v36 }
 0x90e   : > { %11816 = vmatpush.msra.mxu2 %v24357_v9  ;;  %v12146_v9 = vld [vmem:[%s23638_s13 + $0x8] sm:$0xff] }
 0x90f   : > { %11885 = vmatpush.msra.mxu3 %v22229_v63  ;;  %v24365_v63 = vand.u32 4294901760, %v22341_v7 }
 0x910   : > { %11820 = vmatpush.msra.mxu2 %v24359_v54  ;;  %v12252_v54 = vand.u32 4294901760, %v22750_v28 }
 0x911   : > { %11887 = vmatpush.msra.mxu3 %v22246_v56  ;;  %v12156_v56 = vld [vmem:[%s23638_s13 + $0x58] sm:$0xff] }
 0x912   : > { %11824 = vmatpush.msra.mxu2 %v24360_v19  ;;  %v22631_v14 = vand.u32 4294901760, %v12156_v56  ;;  %v22762_v19 = vsub.f32 %v12147_v11, %v22752_v17 }
 0x913   : > { %11889 = vmatpush.msra.mxu3 %v22269_v43  ;;  %v22635_v43 = vand.u32 4294901760, %v12154_v39 }
 0x914   : > { %11828 = vmatpush.msra.mxu2 %v24361_v4  ;;  %12166 = vmatpush.msra.mxu0 %v22631_v14  ;;  %v22764_v4 = vand.u32 4294901760, %v12146_v9 }
 0x915   : > { %11891 = vmatpush.msra.mxu3 %v22296_v33  ;;  %v22644_v61 = vsub.f32 %v12154_v39, %v22635_v43 }
 0x916   : > { %11832 = vmatpush.msra.mxu2 %v11653_v49 }
 0x917   : > { %11893 = vmatpush.msra.mxu3 %v24346_v47  ;;  %v12216_v8 = vand.u32 4294901760, %v22644_v61 }
 0x918   : > { %11836 = vmatpush.msra.mxu2 %v11659_v58  ;;  %v12149_v58 = vld [vmem:[%s23638_s13 + $0x20] sm:$0xff] }
 0x919   : > { %11895 = vmatpush.msra.mxu3 %v22334_v5 }
 0x91a   : > { %11840 = vmatpush.msra.mxu2 %v11665_v20 }
 0x91b   : > { %11897 = vmatpush.msra.mxu3 %v22361_v24 }
 0x91c   : > { %11844 = vmatpush.msra.mxu2 %v11671_v12  ;;  %11899 = vmatmul.f32.vlgmr.msra.gmra.mxu3 %v22079_v23 }
 0x91d   : > { %12120 = vmatpush.msrb.mxu3 %v22209_v21  ;;  %v24362_v21 = vand.u32 4294901760, %v22236_v52  ;;  %v24367_v52 = vand.u32 4294901760, %v22422_v26  ;;  %v22678_v26 = vand.u32 4294901760, %v12152_v32 }
 0x91e   : > { %11848 = vmatpush.msra.mxu2 %v11677_v2 }
 0x91f   : > { %12122 = vmatpush.msrb.mxu3 %v22222_v37  ;;  %v24364_v37 = vand.u32 4294901760, %v22329_v51  ;;  %v22687_v15 = vsub.f32 %v12152_v32, %v22678_v26 }
 0x920   : > { %11852 = vmatpush.msra.mxu2 %v11683_v62 }
 0x921   : > { %12124 = vmatpush.msrb.mxu3 %v22277_v29  ;;  %v12228_v49 = vand.u32 4294901760, %v22687_v15 }
 0x922   : > { %11856 = vmatpush.msra.mxu2 %v11689_v34  ;;  %v22717_v34 = vsub.f32 %v12150_v42, %v22705_v18 }
 0x923   : > { %12126 = vmatpush.msrb.mxu3 %v22288_v50  ;;  %v12229_v2 = vsub.f32 %v22687_v15, %v12228_v49 }
 0x924   : > { %11860 = vmatpush.msra.mxu2 %v11695_v16  ;;  %v22721_v16 = vand.u32 4294901760, %v12149_v58  ;;  %v12240_v48 = vand.u32 4294901760, %v22717_v34 }
 0x925   : > { %11862 = vmatmul.f32.vlgmr.msra.gmra.mxu2 %v22079_v23  ;;  %12128 = vmatpush.msrb.mxu3 %v22331_v46  ;;  %v24366_v23 = vand.u32 4294901760, %v22371_v27  ;;  %v12155_v27 = vld [vmem:[%s23638_s13 + $0x50] sm:$0xff]  ;;  %v12217_v46 = vsub.f32 %v22644_v61, %v12216_v8  ;;  %v12230_v0 = vand.u32 4294901760, %v12229_v2 }
 0x926   : > { %12077 = vmatpush.msrb.mxu2 %v24362_v21  ;;  %v22633_v36 = vand.u32 4294901760, %v12155_v27  ;;  %v22737_v31 = vsub.f32 %v12149_v58, %v22721_v16  ;;  %v12241_v45 = vsub.f32 %v22717_v34, %v12240_v48 }
 0x927   : > { %12130 = vmatpush.msrb.mxu3 %v22350_v1  ;;  %v12218_v57 = vand.u32 4294901760, %v12217_v46  ;;  %v12153_v1 = vld [vmem:[%s23638_s13 + $0x40] sm:$0xff] }
 0x928   : > { %12081 = vmatpush.msrb.mxu2 %v24363_v40  ;;  %v22641_v29 = vsub.f32 %v12155_v27, %v22633_v36  ;;  %12168 = vmatpush.msra.mxu0 %v22633_v36  ;;  %v12246_v10 = vand.u32 4294901760, %v22737_v31  ;;  %v12242_v41 = vand.u32 4294901760, %v12241_v45  ;;  %v12145_v40 = vld [vmem:[%s23638_s13] sm:$0xff] }
 0x929   : > { %12132 = vmatpush.msrb.mxu3 %v22382_v55  ;;  %v22638_v55 = vsub.f32 %v12156_v56, %v22631_v14  ;;  %v11098_v27 = vpop.f32.mrf.mxu1  ;;  %v13752_v45 = vld [vmem:[%s23638_s13 + $0xa0] sm:$0xff] }
 0x92a   : > { %12085 = vmatpush.msrb.mxu2 %v24364_v37  ;;  %v12210_v33 = vand.u32 4294901760, %v22641_v29  ;;  %12170 = vmatpush.msra.mxu0 %v22635_v43  ;;  %v12247_v21 = vsub.f32 %v22737_v31, %v12246_v10 }
 0x92b   : > { %12134 = vmatpush.msrb.mxu3 %v22401_v25  ;;  %v12204_v50 = vand.u32 4294901760, %v22638_v55 }
 0x92c   : > { %12089 = vmatpush.msrb.mxu2 %v24365_v63  ;;  %12136 = vmatmul.f32.vlgmr.msrb.gmra.mxu3 %v22355_v53  ;;  %v12211_v51 = vsub.f32 %v22641_v29, %v12210_v33  ;;  %v12253_v63 = vsub.f32 %v22750_v28, %v12252_v54  ;;  %v12248_v56 = vand.u32 4294901760, %v12247_v21 }
 0x92d   : > { %12330 = vmatpush.msra.mxu3 %v22631_v14  ;;  %v12205_v30 = vsub.f32 %v22638_v55, %v12204_v50 }
 0x92e   : > { %12093 = vmatpush.msrb.mxu2 %v24366_v23  ;;  %v12212_v7 = vand.u32 4294901760, %v12211_v51  ;;  %v12258_v23 = vand.u32 4294901760, %v22762_v19 }
 0x92f   : > { %12332 = vmatpush.msra.mxu3 %v22633_v36  ;;  %v12206_v5 = vand.u32 4294901760, %v12205_v30  ;;  %v12254_v30 = vand.u32 4294901760, %v12253_v63 }
 0x930   : > { %12097 = vmatpush.msrb.mxu2 %v11976_v38  ;;  %v22690_v38 = vand.u32 4294901760, %v12151_v6  ;;  %v12259_v51 = vsub.f32 %v22762_v19, %v12258_v23 }
 0x931   : > { %12334 = vmatpush.msra.mxu3 %v22635_v43  ;;  %12207 = vmatpush.msra.mxu1 %v12206_v5  ;;  %v22727_v60 = vpop.f32.mrf.mxu2  ;;  %v22775_v37 = vpop.f32.mrf.mxu0 }
 0x932   : > { %12101 = vmatpush.msrb.mxu2 %v24367_v52  ;;  %v22702_v12 = vsub.f32 %v12151_v6, %v22690_v38  ;;  %v22782_v52 = vsub.f32 %v12146_v9, %v22764_v4  ;;  %v13755_v6 = vld [vmem:[%s23638_s13 + $0xb8] sm:$0xff]  ;;  %v22852_v9 = vand.u32 4294901760, %v13752_v45  ;;  %v22857_v21 = vpop.f32.mrf.mxu1 }
 0x933   : > { %12213 = vmatpush.msra.mxu1 %v12212_v7  ;;  %v22744_v13 = vpop.f32.mrf.mxu3  ;;  %v22812_v42 = vand.u32 4294901760, %v13755_v6 }
 0x934   : > { %12105 = vmatpush.msrb.mxu2 %v24368_v44  ;;  %v12234_v62 = vand.u32 4294901760, %v22702_v12  ;;  %v22784_v44 = vand.u32 4294901760, %v12145_v40  ;;  %v12264_v46 = vand.u32 4294901760, %v22782_v52 }
 0x935   : > { %12107 = vmatmul.f32.vlgmr.msrb.gmra.mxu2 %v22355_v53  ;;  %v22670_v53 = vand.u32 4294901760, %v12153_v1  ;;  %12219 = vmatpush.msra.mxu1 %v12218_v57  ;;  %v12260_v57 = vand.u32 4294901760, %v12259_v51  ;;  %v22824_v2 = vsub.f32 %v13755_v6, %v22812_v42 }
 0x936   : > { %12285 = vmatpush.msra.mxu2 %v22638_v55  ;;  %v12235_v47 = vsub.f32 %v22702_v12, %v12234_v62  ;;  %v22796_v5 = vsub.f32 %v12145_v40, %v22784_v44 }
 0x937   : > { %v22676_v24 = vsub.f32 %v12153_v1, %v22670_v53  ;;  %12336 = vmatpush.msra.mxu3 %v22670_v53  ;;  %12172 = vmatpush.msra.mxu0 %v22670_v53  ;;  %v12265_v1 = vsub.f32 %v22782_v52, %v12264_v46  ;;  %v12511_v55 = vand.u32 4294901760, %v22824_v2 }
 0x938   : > { %12288 = vmatpush.msra.mxu2 %v22641_v29  ;;  %v12236_v59 = vand.u32 4294901760, %v12235_v47  ;;  %v12270_v32 = vand.u32 4294901760, %v22796_v5  ;;  %v13753_v47 = vld [vmem:[%s23638_s13 + $0xa8] sm:$0xff] }
 0x939   : > { %v12222_v25 = vand.u32 4294901760, %v22676_v24  ;;  %12338 = vmatpush.msra.mxu3 %v22678_v26  ;;  %12174 = vmatpush.msra.mxu0 %v22678_v26  ;;  %v12512_v29 = vsub.f32 %v22824_v2, %v12511_v55 }
 0x93a   : > { %12291 = vmatpush.msra.mxu2 %v22644_v61  ;;  %v12271_v58 = vsub.f32 %v22796_v5, %v12270_v32  ;;  %v13751_v61 = vld [vmem:[%s23638_s13 + $0x98] sm:$0xff] }
 0x93b   : > { %v12223_v35 = vsub.f32 %v22676_v24, %v12222_v25  ;;  %12340 = vmatpush.msra.mxu3 %v22690_v38  ;;  %12176 = vmatpush.msra.mxu0 %v22690_v38 }
 0x93c   : > { %12294 = vmatpush.msra.mxu2 %v22676_v24  ;;  %v22879_v24 = vsub.f32 %v13752_v45, %v22852_v9 }
 0x93d   : > { %v12224_v20 = vand.u32 4294901760, %v12223_v35  ;;  %12342 = vmatpush.msra.mxu3 %v22705_v18  ;;  %12178 = vmatpush.msra.mxu0 %v22705_v18  ;;  %v12266_v35 = vand.u32 4294901760, %v12265_v1 }
 0x93e   : > { %12297 = vmatpush.msra.mxu2 %v22687_v15  ;;  %v12529_v1 = vand.u32 4294901760, %v22879_v24  ;;  %v13749_v15 = vld [vmem:[%s23638_s13 + $0x88] sm:$0xff] }
 0x93f   : > { %12225 = vmatpush.msra.mxu1 %v12224_v20  ;;  %12344 = vmatpush.msra.mxu3 %v22721_v16  ;;  %v13754_v20 = vld [vmem:[%s23638_s13 + $0xb0] sm:$0xff] }
 0x940   : > { %12300 = vmatpush.msra.mxu2 %v22702_v12  ;;  %12180 = vmatpush.msra.mxu0 %v22721_v16  ;;  %v22826_v3 = vand.u32 4294901760, %v13754_v20  ;;  %v12530_v12 = vsub.f32 %v22879_v24, %v12529_v1 }
 0x941   : > { %12231 = vmatpush.msra.mxu1 %v12230_v0  ;;  %12346 = vmatpush.msra.mxu3 %v22734_v22  ;;  %v12272_v0 = vand.u32 4294901760, %v12271_v58 }
 0x942   : > { %12303 = vmatpush.msra.mxu2 %v22717_v34  ;;  %12182 = vmatpush.msra.mxu0 %v22734_v22  ;;  %v22838_v11 = vsub.f32 %v13754_v20, %v22826_v3  ;;  %v12531_v34 = vand.u32 4294901760, %v12530_v12 }
 0x943   : > { %12237 = vmatpush.msra.mxu1 %v12236_v59  ;;  %12348 = vmatpush.msra.mxu3 %v22752_v17  ;;  %v22840_v59 = vpop.f32.mrf.mxu0 }
 0x944   : > { %12306 = vmatpush.msra.mxu2 %v22737_v31  ;;  %12184 = vmatpush.msra.mxu0 %v22752_v17 }
 0x945   : > { %12243 = vmatpush.msra.mxu1 %v12242_v41  ;;  %12350 = vmatpush.msra.mxu3 %v22764_v4 }
 0x946   : > { %12309 = vmatpush.msra.mxu2 %v22750_v28  ;;  %12186 = vmatpush.msra.mxu0 %v22764_v4 }
 0x947   : > { %12249 = vmatpush.msra.mxu1 %v12248_v56  ;;  %12352 = vmatpush.msra.mxu3 %v22784_v44 }
 0x948   : > { %12312 = vmatpush.msra.mxu2 %v22762_v19  ;;  %12188 = vmatpush.msra.mxu0 %v22784_v44  ;;  %v13744_v19 = vld [vmem:[%s23638_s13 + $0x60] sm:$0xff] }
 0x949   : > { %12255 = vmatpush.msra.mxu1 %v12254_v30  ;;  %v22872_v30 = vand.u32 4294901760, %v13751_v61 }
 0x94a   : > { %12315 = vmatpush.msra.mxu2 %v22782_v52  ;;  %12367 = vmatpush.msrb.mxu0 %v12204_v50  ;;  %v22835_v50 = vand.u32 4294901760, %v13753_v47 }
 0x94b   : > { %12261 = vmatpush.msra.mxu1 %v12260_v57 }
 0x94c   : > { %12318 = vmatpush.msra.mxu2 %v22796_v5  ;;  %12371 = vmatpush.msrb.mxu0 %v12210_v33  ;;  %v12517_v33 = vand.u32 4294901760, %v22838_v11  ;;  %v22855_v41 = vsub.f32 %v13753_v47, %v22835_v50 }
 0x94d   : > { %12267 = vmatpush.msra.mxu1 %v12266_v35  ;;  %v22904_v35 = vand.u32 4294901760, %v13749_v15 }
 0x94e   : > { %12473 = vmatpush.msrb.mxu2 %v22812_v42  ;;  %12375 = vmatpush.msrb.mxu0 %v12216_v8  ;;  %v12513_v8 = vand.u32 4294901760, %v12512_v29  ;;  %v12518_v63 = vsub.f32 %v22838_v11, %v12517_v33  ;;  %v12523_v56 = vand.u32 4294901760, %v22855_v41 }
 0x94f   : > { %12273 = vmatpush.msra.mxu1 %v12272_v0  ;;  %v22929_v47 = vsub.f32 %v13749_v15, %v22904_v35 }
 0x950   : > { %12475 = vmatpush.msrb.mxu2 %v22826_v3  ;;  %12379 = vmatpush.msrb.mxu0 %v12222_v25  ;;  %v13750_v25 = vld [vmem:[%s23638_s13 + $0x90] sm:$0xff]  ;;  %v12519_v57 = vand.u32 4294901760, %v12518_v63 }
 0x951   : > { %12422 = vmatpush.msrb.mxu1 %v22631_v14  ;;  %v11099_v14 = vadd.f32 %v11098_v27, %v22775_v37  ;;  %12514 = vmatpush.msrb.mxu3 %v12513_v8  ;;  %v12524_v37 = vsub.f32 %v22855_v41, %v12523_v56  ;;  %v22890_v27 = vand.u32 4294901760, %v13750_v25  ;;  %v12547_v63 = vand.u32 4294901760, %v22929_v47 }
 0x952   : > { %12477 = vmatpush.msrb.mxu2 %v22835_v50  ;;  %12383 = vmatpush.msrb.mxu0 %v12228_v49 }
 0x953   : > { %12424 = vmatpush.msrb.mxu1 %v22633_v36  ;;  %v22893_v36 = vsub.f32 %v13751_v61, %v22872_v30  ;;  %12520 = vmatpush.msrb.mxu3 %v12519_v57  ;;  %v12525_v49 = vand.u32 4294901760, %v12524_v37  ;;  %v22907_v58 = vsub.f32 %v13750_v25, %v22890_v27  ;;  %v12548_v15 = vsub.f32 %v22929_v47, %v12547_v63 }
 0x954   : > { %12479 = vmatpush.msrb.mxu2 %v22852_v9  ;;  %12387 = vmatpush.msrb.mxu0 %v12234_v62  ;;  %v13748_v62 = vld [vmem:[%s23638_s13 + $0x80] sm:$0xff] }
 0x955   : > { %12426 = vmatpush.msrb.mxu1 %v22635_v43  ;;  %v12535_v6 = vand.u32 4294901760, %v22893_v36  ;;  %v11153_v43 = vadd.f32 %v22727_v60, %v11099_v14  ;;  %v22910_v20 = vpop.f32.mrf.mxu0  ;;  %12526 = vmatpush.msrb.mxu3 %v12525_v49  ;;  %v22926_v0 = vand.u32 4294901760, %v13748_v62 }
 0x956   : > { %12481 = vmatpush.msrb.mxu2 %v22872_v30  ;;  %12391 = vmatpush.msrb.mxu0 %v12240_v48  ;;  %v22931_v45 = vpop.f32.mrf.mxu1  ;;  %v13747_v48 = vld [vmem:[%s23638_s13 + $0x78] sm:$0xff] }
 0x957   : > { %12428 = vmatpush.msrb.mxu1 %v22670_v53  ;;  %v12536_v60 = vsub.f32 %v22893_v36, %v12535_v6  ;;  %v12541_v53 = vand.u32 4294901760, %v22907_v58  ;;  %v11192_v14 = vadd.f32 %v22744_v13, %v11153_v43  ;;  %12532 = vmatpush.msrb.mxu3 %v12531_v34  ;;  %v22946_v25 = vand.u32 4294901760, %v13747_v48 }
 0x958   : > { %12483 = vmatpush.msrb.mxu2 %v22890_v27  ;;  %12395 = vmatpush.msrb.mxu0 %v12246_v10  ;;  %v22949_v31 = vsub.f32 %v13748_v62, %v22926_v0  ;;  %v13746_v10 = vld [vmem:[%s23638_s13 + $0x70] sm:$0xff]  ;;  %v12549_v62 = vand.u32 4294901760, %v12548_v15 }
 0x959   : > { %12430 = vmatpush.msrb.mxu1 %v22678_v26  ;;  %v12537_v61 = vand.u32 4294901760, %v12536_v60  ;;  %v12542_v8 = vsub.f32 %v22907_v58, %v12541_v53  ;;  %v22957_v13 = vand.u32 4294901760, %v13746_v10  ;;  %v22967_v43 = vsub.f32 %v13747_v48, %v22946_v25 }
 0x95a   : > { %12485 = vmatpush.msrb.mxu2 %v22904_v35  ;;  %12399 = vmatpush.msrb.mxu0 %v12252_v54  ;;  %v12553_v49 = vand.u32 4294901760, %v22949_v31 }
 0x95b   : > { %v22800_v7 = vpop.f32.mrf.mxu3  ;;  %12432 = vmatpush.msrb.mxu1 %v22690_v38  ;;  %v12543_v37 = vand.u32 4294901760, %v12542_v8  ;;  %v13745_v38 = vld [vmem:[%s23638_s13 + $0x68] sm:$0xff]  ;;  %12538 = vmatpush.msrb.mxu3 %v12537_v61  ;;  %v22973_v60 = vsub.f32 %v13746_v10, %v22957_v13  ;;  %v12559_v54 = vand.u32 4294901760, %v22967_v43 }
 0x95c   : > { %12487 = vmatpush.msrb.mxu2 %v22926_v0  ;;  %v22969_v12 = vand.u32 4294901760, %v13745_v38  ;;  %12403 = vmatpush.msrb.mxu0 %v12258_v23 }
 0x95d   : > { %12434 = vmatpush.msrb.mxu1 %v22705_v18  ;;  %12544 = vmatpush.msrb.mxu3 %v12543_v37  ;;  %v12554_v18 = vsub.f32 %v22949_v31, %v12553_v49  ;;  %v12565_v48 = vand.u32 4294901760, %v22973_v60  ;;  %v12560_v23 = vsub.f32 %v22967_v43, %v12559_v54 }
 0x95e   : > { %12489 = vmatpush.msrb.mxu2 %v22946_v25  ;;  %12407 = vmatpush.msrb.mxu0 %v12264_v46  ;;  %v22997_v61 = vsub.f32 %v13745_v38, %v22969_v12 }
 0x95f   : > { %12436 = vmatpush.msrb.mxu1 %v22721_v16  ;;  %12550 = vmatpush.msrb.mxu3 %v12549_v62  ;;  %v12555_v16 = vand.u32 4294901760, %v12554_v18  ;;  %v12566_v52 = vsub.f32 %v22973_v60, %v12565_v48  ;;  %v12561_v46 = vand.u32 4294901760, %v12560_v23 }
 0x960   : > { %12491 = vmatpush.msrb.mxu2 %v22957_v13  ;;  %12411 = vmatpush.msrb.mxu0 %v12270_v32  ;;  %v12571_v8 = vand.u32 4294901760, %v22997_v61 }
 0x961   : > { %12438 = vmatpush.msrb.mxu1 %v22734_v22  ;;  %v11794_v22 = vpop.f32.mrf.mxu1  ;;  %12556 = vmatpush.msrb.mxu3 %v12555_v16 }
 0x962   : > { %v22789_v39 = vpop.f32.mrf.mxu2  ;;  %12493 = vmatpush.msrb.mxu2 %v22969_v12 }
 0x963   : > { %12440 = vmatpush.msrb.mxu1 %v22752_v17  ;;  %12562 = vmatpush.msrb.mxu3 %v12561_v46  ;;  %v12572_v17 = vsub.f32 %v22997_v61, %v12571_v8 }
 0x964   : > { %v22875_v51 = vpop.f32.mrf.mxu3  ;;  %v11755_v28 = vpop.f32.mrf.mxu0 }
 0x965   : > { %12442 = vmatpush.msrb.mxu1 %v22764_v4 }
 0x967   : > { %12444 = vmatpush.msrb.mxu1 %v22784_v44 }
 0x96d   : > { %v22859_v40 = vpop.f32.mrf.mxu2 }
 0x975   : > { %v11933_v38 = vpop.f32.mrf.mxu0 }
 0x97f   : > { %v11701_v26 = vpop.f32.mrf.mxu3 }
 0x986   : > { %v12032_v23 = vpop.f32.mrf.mxu0 }
 0x988   : > { %v11600_v29 = vpop.f32.mrf.mxu2 }
 0x989   : > { %v11702_v57 = vadd.f32 %v11701_v26, %v11600_v29  ;;  %v11261_v29 = vadd.f32 %v22840_v59, %v11192_v14  ;;  %v22994_v59 = vand.u32 4294901760, %v13744_v19 }
 0x98b   : > { %v11756_v34 = vadd.f32 %v11755_v28, %v11702_v57  ;;  %v23008_v14 = vsub.f32 %v13744_v19, %v22994_v59  ;;  %v11298_v26 = vadd.f32 %v22857_v21, %v11261_v29  ;;  %v12567_v57 = vand.u32 4294901760, %v12566_v52  ;;  %12495 = vmatpush.msrb.mxu2 %v22994_v59  ;;  %v11994_v19 = vpop.f32.mrf.mxu1 }
 0x98c   : > { %v12573_v21 = vand.u32 4294901760, %v12572_v17 }
 0x98d   : > { %v11795_v10 = vadd.f32 %v11794_v22, %v11756_v34  ;;  %v12577_v5 = vand.u32 4294901760, %v23008_v14  ;;  %v11331_v32 = vadd.f32 %v22789_v39, %v11298_v26  ;;  %12568 = vmatpush.msrb.mxu3 %v12567_v57 }
 0x98f   : > { %v12578_v4 = vsub.f32 %v23008_v14, %v12577_v5  ;;  %12574 = vmatpush.msrb.mxu3 %v12573_v21  ;;  %v11392_v29 = vadd.f32 %v22800_v7, %v11331_v32 }
 0x991   : > { %v12579_v18 = vand.u32 4294901760, %v12578_v4  ;;  %v11430_v39 = vadd.f32 %v22859_v40, %v11392_v29 }
 0x993   : > { %12580 = vmatpush.msrb.mxu3 %v12579_v18  ;;  %v11461_v44 = vadd.f32 %v22875_v51, %v11430_v39  ;;  %v12063_v22 = vpop.f32.mrf.mxu1 }
 0x995   : > { %v11506_v46 = vadd.f32 %v22910_v20, %v11461_v44 }
 0x997   : > { %v11535_v17 = vadd.f32 %v22931_v45, %v11506_v46  ;;  %v13759_v46 = vld [vmem:[%s23638_s13 + $0xd8] sm:$0xff] }
 0x99f   : > { %v11900_v62 = vpop.f32.mrf.mxu3 }
 0x9a8   : > { %v11863_v37 = vpop.f32.mrf.mxu2 }
 0x9a9   : > { %v11864_v15 = vadd.f32 %v11863_v37, %v11795_v10 }
 0x9ab   : > { %v11901_v28 = vadd.f32 %v11900_v62, %v11864_v15 }
 0x9ad   : > { %v11934_v34 = vadd.f32 %v11933_v38, %v11901_v28 }
 0x9af   : > { %v11995_v16 = vadd.f32 %v11994_v19, %v11934_v34  ;;  %v12137_v37 = vpop.f32.mrf.mxu3  ;;  %v13767_v34 = vld [vmem:[%s23638_s13 + $0x118] sm:$0xff] }
 0x9b1   : > { %v12033_v52 = vadd.f32 %v12032_v23, %v11995_v16  ;;  %v13762_v23 = vld [vmem:[%s23638_s13 + $0xf0] sm:$0xff] }
 0x9b2   : > { %v23118_v44 = vand.u32 4294901760, %v13762_v23 }
 0x9b3   : > { %v12064_v26 = vadd.f32 %v12063_v22, %v12033_v52 }
 0x9b8   : > { %v12108_v10 = vpop.f32.mrf.mxu2 }
 0x9b9   : > { %v12109_v57 = vadd.f32 %v12108_v10, %v12064_v26 }
 0x9bb   : > { %v12138_v7 = vadd.f32 %v12137_v37, %v12109_v57 }
 0x9bd   : > { %v12140_v32 = vmax.f32 %v11535_v17, %v12138_v7 }
 0x9bf   : > { %12142 = vst.msk [vmem:[#allocation5] sm:$0x7] %vm12141_vm12, %v12140_v32 }
 0x9c6   : > { %v12144_v40 = vld [vmem:[#allocation5] sm:$0x1]  ;;  %v12451_v15 = vld [vmem:[#allocation5 + $0x1] sm:$0x1] }
 0x9c7   : > { %v12159_v38 = vsel %vm12157_vm13, %v12144_v40, 0  ;;  %v12466_v51 = vsel %vm12157_vm13, %v12451_v15, 0 }
 0x9c8   : > { %v12189_v62 = vand.u32 4294901760, %v12159_v38  ;;  %v23029_v21 = vand.u32 4294901760, %v12466_v51 }
 0x9ca   : > { %12275 = vmatmul.f32.vlgmr.msra.gmra.mxu1 %v12189_v62  ;;  %v12190_v20 = vsub.f32 %v12159_v38, %v12189_v62  ;;  %v23032_v4 = vsub.f32 %v12466_v51, %v23029_v21 }
 0x9cb   : > { %12637 = vmatpush.msra.mxu1 %v22812_v42 }
 0x9cc   : > { %12321 = vmatmul.f32.vlgmr.msra.gmra.mxu2 %v12190_v20  ;;  %v12191_v45 = vand.u32 4294901760, %v12190_v20  ;;  %v12498_v28 = vand.u32 4294901760, %v23032_v4 }
 0x9cd   : > { %12639 = vmatpush.msra.mxu1 %v22826_v3  ;;  %12674 = vmatpush.msra.mxu2 %v12511_v55  ;;  %v13766_v55 = vld [vmem:[%s23638_s13 + $0x110] sm:$0xff] }
 0x9ce   : > { %12356 = vmatmul.f32.vlgmr.msra.gmra.mxu3 %v12191_v45  ;;  %v12192_v18 = vsub.f32 %v12190_v20, %v12191_v45  ;;  %v12499_v29 = vsub.f32 %v23032_v4, %v12498_v28 }
 0x9cf   : > { %12641 = vmatpush.msra.mxu1 %v22835_v50  ;;  %12678 = vmatpush.msra.mxu2 %v12517_v33  ;;  %v23056_v33 = vand.u32 4294901760, %v13767_v34 }
 0x9d0   : > { %12729 = vmatpush.msra.mxu3 %v22812_v42  ;;  %v12193_v19 = vand.u32 4294901760, %v12192_v18  ;;  %v12500_v39 = vand.u32 4294901760, %v12499_v29  ;;  %v13765_v42 = vld [vmem:[%s23638_s13 + $0x108] sm:$0xff] }
 0x9d1   : > { %12643 = vmatpush.msra.mxu1 %v22852_v9  ;;  %12682 = vmatpush.msra.mxu2 %v12523_v56  ;;  %v23065_v56 = vand.u32 4294901760, %v13766_v55  ;;  %v23076_v16 = vand.u32 4294901760, %v13765_v42 }
 0x9d2   : > { %12731 = vmatpush.msra.mxu3 %v22826_v3  ;;  %12194 = vmatmul.f32.vlgmr.msra.gmra.mxu0 %v12193_v19  ;;  %v13764_v3 = vld [vmem:[%s23638_s13 + $0x100] sm:$0xff] }
 0x9d3   : > { %12446 = vmatmul.f32.vlgmr.msrb.gmra.mxu1 %v12189_v62  ;;  %12592 = vmatpush.msra.mxu0 %v22824_v2  ;;  %v23074_v2 = vsub.f32 %v13767_v34, %v23056_v33 }
 0x9d4   : > { %12645 = vmatpush.msra.mxu1 %v22872_v30  ;;  %12686 = vmatpush.msra.mxu2 %v12529_v1  ;;  %v23089_v1 = vand.u32 4294901760, %v13764_v3 }
 0x9d5   : > { %12733 = vmatpush.msra.mxu3 %v22835_v50  ;;  %12501 = vmatmul.f32.vlgmr.msrb.gmra.mxu2 %v12500_v39  ;;  %v13763_v50 = vld [vmem:[%s23638_s13 + $0xf8] sm:$0xff]  ;;  %v12758_v39 = vld [vmem:[#allocation5 + $0x2] sm:$0x1] }
 0x9d6   : > { %12595 = vmatpush.msra.mxu0 %v22838_v11  ;;  %12647 = vmatpush.msra.mxu1 %v22890_v27  ;;  %v23087_v11 = vsub.f32 %v13766_v55, %v23065_v56 }
 0x9d7   : > { %12690 = vmatpush.msra.mxu2 %v12535_v6  ;;  %12735 = vmatpush.msra.mxu3 %v22852_v9  ;;  %v12818_v9 = vand.u32 4294901760, %v23074_v2  ;;  %v23098_v6 = vsub.f32 %v13765_v42, %v23076_v16 }
 0x9d8   : > { %12582 = vmatmul.f32.vlgmr.msrb.gmra.mxu3 %v23029_v21  ;;  %12598 = vmatpush.msra.mxu0 %v22855_v41  ;;  %v23100_v41 = vand.u32 4294901760, %v13763_v50 }
 0x9d9   : > { %12649 = vmatpush.msra.mxu1 %v22904_v35  ;;  %12694 = vmatpush.msra.mxu2 %v12541_v53  ;;  %v13761_v53 = vld [vmem:[%s23638_s13 + $0xe8] sm:$0xff] }
 0x9da   : > { %12737 = vmatpush.msra.mxu3 %v22872_v30  ;;  %12601 = vmatpush.msra.mxu0 %v22879_v24  ;;  %v12824_v30 = vand.u32 4294901760, %v23087_v11  ;;  %v23111_v24 = vsub.f32 %v13764_v3, %v23089_v1  ;;  %v23128_v52 = vsub.f32 %v13763_v50, %v23100_v41 }
 0x9db   : > { %12651 = vmatpush.msra.mxu1 %v22926_v0  ;;  %12698 = vmatpush.msra.mxu2 %v12547_v63  ;;  %v12830_v63 = vand.u32 4294901760, %v23098_v6 }
 0x9dc   : > { %12739 = vmatpush.msra.mxu3 %v22890_v27  ;;  %12413 = vmatmul.f32.vlgmr.msrb.gmra.mxu0 %v12189_v62  ;;  %v12819_v27 = vsub.f32 %v23074_v2, %v12818_v9  ;;  %v12836_v22 = vand.u32 4294901760, %v23111_v24  ;;  %v12842_v10 = vand.u32 4294901760, %v23128_v52 }
 0x9dd   : > { %12604 = vmatpush.msra.mxu0 %v22893_v36  ;;  %12653 = vmatpush.msra.mxu1 %v22946_v25  ;;  %v13760_v36 = vld [vmem:[%s23638_s13 + $0xe0] sm:$0xff]  ;;  %v12831_v26 = vsub.f32 %v23098_v6, %v12830_v63 }
 0x9de   : > { %12702 = vmatpush.msra.mxu2 %v12553_v49  ;;  %12741 = vmatpush.msra.mxu3 %v22904_v35  ;;  %v23135_v49 = vand.u32 4294901760, %v13761_v53  ;;  %v12825_v35 = vsub.f32 %v23087_v11, %v12824_v30  ;;  %v12837_v37 = vsub.f32 %v23111_v24, %v12836_v22  ;;  %v12843_v32 = vsub.f32 %v23128_v52, %v12842_v10 }
 0x9df   : > { %12607 = vmatpush.msra.mxu0 %v22907_v58  ;;  %12655 = vmatpush.msra.mxu1 %v22957_v13  ;;  %v23150_v58 = vsub.f32 %v13762_v23, %v23118_v44  ;;  %v12832_v7 = vand.u32 4294901760, %v12831_v26  ;;  %v12773_v23 = vsel %vm12157_vm13, %v12758_v39, 0 }
 0x9e0   : > { %12706 = vmatpush.msra.mxu2 %v12559_v54  ;;  %12743 = vmatpush.msra.mxu3 %v22926_v0  ;;  %v23152_v54 = vand.u32 4294901760, %v13760_v36  ;;  %v12820_v0 = vand.u32 4294901760, %v12819_v27  ;;  %v23167_v57 = vsub.f32 %v13761_v53, %v23135_v49  ;;  %v12844_v45 = vand.u32 4294901760, %v12843_v32 }
 0x9e1   : > { %12610 = vmatpush.msra.mxu0 %v22929_v47  ;;  %12657 = vmatpush.msra.mxu1 %v22969_v12  ;;  %v13758_v47 = vld [vmem:[%s23638_s13 + $0xd0] sm:$0xff]  ;;  %v12848_v17 = vand.u32 4294901760, %v23150_v58 }
 0x9e2   : > { %12710 = vmatpush.msra.mxu2 %v12565_v48  ;;  %12745 = vmatpush.msra.mxu3 %v22946_v25  ;;  %v23169_v48 = vand.u32 4294901760, %v13759_v46  ;;  %v12826_v25 = vand.u32 4294901760, %v12825_v35  ;;  %v12854_v40 = vand.u32 4294901760, %v23167_v57 }
 0x9e3   : > { %12613 = vmatpush.msra.mxu0 %v22949_v31  ;;  %12659 = vmatpush.msra.mxu1 %v22994_v59  ;;  %v13757_v31 = vld [vmem:[%s23638_s13 + $0xc8] sm:$0xff] }
 0x9e4   : > { %12714 = vmatpush.msra.mxu2 %v12571_v8  ;;  %12747 = vmatpush.msra.mxu3 %v22957_v13  ;;  %v23185_v8 = vsub.f32 %v13760_v36, %v23152_v54  ;;  %v23187_v13 = vand.u32 4294901760, %v13758_v47  ;;  %v23201_v15 = vsub.f32 %v13759_v46, %v23169_v48  ;;  %v23203_v38 = vand.u32 4294901760, %v13757_v31 }
 0x9e5   : > { %12663 = vmatmul.f32.vlgmr.msra.gmra.mxu1 %v12498_v28  ;;  %12616 = vmatpush.msra.mxu0 %v22967_v43  ;;  %v13756_v43 = vld [vmem:[%s23638_s13 + $0xc0] sm:$0xff]  ;;  %v12803_v36 = vand.u32 4294901760, %v12773_v23 }
 0x9e6   : > { %12821 = vmatpush.msrb.mxu1 %v12820_v0  ;;  %12718 = vmatpush.msra.mxu2 %v12577_v5  ;;  %v12838_v5 = vand.u32 4294901760, %v12837_v37  ;;  %v12860_v51 = vand.u32 4294901760, %v23185_v8  ;;  %v23213_v62 = vsub.f32 %v13758_v47, %v23187_v13  ;;  %v23215_v20 = vand.u32 4294901760, %v13756_v43 }
 0x9e7   : > { %12749 = vmatpush.msra.mxu3 %v22969_v12  ;;  %12720 = vmatmul.f32.vlgmr.msra.gmra.mxu2 %v23029_v21  ;;  %v12849_v12 = vsub.f32 %v23150_v58, %v12848_v17  ;;  %v23225_v28 = vsub.f32 %v13757_v31, %v23203_v38  ;;  %v12804_v0 = vsub.f32 %v12773_v23, %v12803_v36 }
 0x9e8   : > { %12827 = vmatpush.msrb.mxu1 %v12826_v25  ;;  %12899 = vmatpush.msrb.mxu2 %v23074_v2  ;;  %v12861_v18 = vsub.f32 %v23185_v8, %v12860_v51  ;;  %v12872_v29 = vand.u32 4294901760, %v23213_v62  ;;  %v23235_v34 = vsub.f32 %v13756_v43, %v23215_v20  ;;  %v13076_v25 = vld [vmem:[%s23640_s15 + $0x50] sm:$0xff] }
 0x9e9   : > { %12619 = vmatpush.msra.mxu0 %v22973_v60  ;;  %12751 = vmatpush.msra.mxu3 %v22994_v59  ;;  %v12855_v60 = vsub.f32 %v23167_v57, %v12854_v40  ;;  %v12866_v59 = vand.u32 4294901760, %v23201_v15  ;;  %v12878_v55 = vand.u32 4294901760, %v23225_v28  ;;  %v12805_v26 = vand.u32 4294901760, %v12804_v0 }
 0x9ea   : > { %12753 = vmatmul.f32.vlgmr.msra.gmra.mxu3 %v23029_v21  ;;  %12833 = vmatpush.msrb.mxu1 %v12832_v7  ;;  %v12850_v21 = vand.u32 4294901760, %v12849_v12  ;;  %v12884_v42 = vand.u32 4294901760, %v23235_v34  ;;  %v13075_v7 = vld [vmem:[%s23640_s15 + $0x48] sm:$0xff] }
 0x9eb   : > { %12902 = vmatpush.msrb.mxu2 %v23087_v11  ;;  %12944 = vmatpush.msrb.mxu3 %v23056_v33  ;;  %v12867_v19 = vsub.f32 %v23201_v15, %v12866_v59  ;;  %v12879_v50 = vsub.f32 %v23225_v28, %v12878_v55  ;;  %v12806_v47 = vsub.f32 %v12804_v0, %v12805_v26 }
 0x9ec   : > { %12622 = vmatpush.msra.mxu0 %v22997_v61  ;;  %12839 = vmatpush.msrb.mxu1 %v12838_v5  ;;  %v12856_v61 = vand.u32 4294901760, %v12855_v60  ;;  %v12885_v27 = vsub.f32 %v23235_v34, %v12884_v42  ;;  %v13074_v5 = vld [vmem:[%s23640_s15 + $0x40] sm:$0xff]  ;;  %v13073_v60 = vld [vmem:[%s23640_s15 + $0x38] sm:$0xff] }
 0x9ed   : > { %12905 = vmatpush.msrb.mxu2 %v23098_v6  ;;  %12946 = vmatpush.msrb.mxu3 %v23065_v56  ;;  %v12868_v3 = vand.u32 4294901760, %v12867_v19  ;;  %v12880_v35 = vand.u32 4294901760, %v12879_v50 }
 0x9ee   : > { %12625 = vmatpush.msra.mxu0 %v23008_v14  ;;  %12845 = vmatpush.msrb.mxu1 %v12844_v45  ;;  %v12862_v14 = vand.u32 4294901760, %v12861_v18  ;;  %v12886_v46 = vand.u32 4294901760, %v12885_v27  ;;  %v23432_v18 = vand.u32 4294901760, %v13073_v60  ;;  %v13070_v27 = vld [vmem:[%s23640_s15 + $0x20] sm:$0xff] }
 0x9ef   : > { %12628 = vmatmul.f32.vlgmr.msra.gmra.mxu0 %v23032_v4  ;;  %12908 = vmatpush.msrb.mxu2 %v23111_v24  ;;  %v12873_v4 = vsub.f32 %v23213_v62, %v12872_v29  ;;  %v13078_v24 = vld [vmem:[%s23640_s15 + $0x60] sm:$0xff] }
 0x9f0   : > { %12780 = vmatpush.msrb.mxu0 %v23056_v33  ;;  %12948 = vmatpush.msrb.mxu3 %v23076_v16  ;;  %v23446_v39 = vsub.f32 %v13073_v60, %v23432_v18 }
 0x9f1   : > { %12851 = vmatpush.msrb.mxu1 %v12850_v21  ;;  %12911 = vmatpush.msrb.mxu2 %v23128_v52  ;;  %v12874_v53 = vand.u32 4294901760, %v12873_v4  ;;  %v13071_v4 = vld [vmem:[%s23640_s15 + $0x28] sm:$0xff] }
 0x9f2   : > { %12782 = vmatpush.msrb.mxu0 %v23065_v56  ;;  %12950 = vmatpush.msrb.mxu3 %v23089_v1  ;;  %v13174_v50 = vand.u32 4294901760, %v23446_v39 }
 0x9f3   : > { %12857 = vmatpush.msrb.mxu1 %v12856_v61  ;;  %12914 = vmatpush.msrb.mxu2 %v23150_v58 }
 0x9f4   : > { %12784 = vmatpush.msrb.mxu0 %v23076_v16  ;;  %12952 = vmatpush.msrb.mxu3 %v23100_v41 }
 0x9f5   : > { %12863 = vmatpush.msrb.mxu1 %v12862_v14  ;;  %12917 = vmatpush.msrb.mxu2 %v23167_v57 }
 0x9f6   : > { %12786 = vmatpush.msrb.mxu0 %v23089_v1  ;;  %12954 = vmatpush.msrb.mxu3 %v23118_v44 }
 0x9f7   : > { %12869 = vmatpush.msrb.mxu1 %v12868_v3  ;;  %12920 = vmatpush.msrb.mxu2 %v23185_v8 }
 0x9f8   : > { %12788 = vmatpush.msrb.mxu0 %v23100_v41  ;;  %12956 = vmatpush.msrb.mxu3 %v23135_v49 }
 0x9f9   : > { %12875 = vmatpush.msrb.mxu1 %v12874_v53  ;;  %12923 = vmatpush.msrb.mxu2 %v23201_v15  ;;  %v23463_v53 = vand.u32 4294901760, %v13071_v4 }
 0x9fa   : > { %12790 = vmatpush.msrb.mxu0 %v23118_v44  ;;  %12958 = vmatpush.msrb.mxu3 %v23152_v54 }
 0x9fb   : > { %12881 = vmatpush.msrb.mxu1 %v12880_v35  ;;  %12926 = vmatpush.msrb.mxu2 %v23213_v62  ;;  %v23414_v62 = vand.u32 4294901760, %v13074_v5  ;;  %v23469_v35 = vand.u32 4294901760, %v13070_v27 }
 0x9fc   : > { %12792 = vmatpush.msrb.mxu0 %v23135_v49  ;;  %12960 = vmatpush.msrb.mxu3 %v23169_v48 }
 0x9fd   : > { %12887 = vmatpush.msrb.mxu1 %v12886_v46  ;;  %12929 = vmatpush.msrb.mxu2 %v23225_v28  ;;  %v23430_v21 = vsub.f32 %v13074_v5, %v23414_v62  ;;  %v13175_v46 = vsub.f32 %v23446_v39, %v13174_v50 }
 0x9fe   : > { %12794 = vmatpush.msrb.mxu0 %v23152_v54  ;;  %12962 = vmatpush.msrb.mxu3 %v23187_v13 }
 0x9ff   : > { %12889 = vmatmul.f32.vlgmr.msrb.gmra.mxu1 %v12803_v36  ;;  %12932 = vmatpush.msrb.mxu2 %v23235_v34  ;;  %v13072_v34 = vld [vmem:[%s23640_s15 + $0x30] sm:$0xff] }
 0xa00   : > { %13036 = vmatpush.msra.mxu1 %v23056_v33  ;;  %12796 = vmatpush.msrb.mxu0 %v23169_v48  ;;  %v12807_v33 = vand.u32 4294901760, %v12806_v47  ;;  %v23448_v14 = vand.u32 4294901760, %v13072_v34  ;;  %v13069_v47 = vld [vmem:[%s23640_s15 + $0x18] sm:$0xff] }
 0xa01   : > { %12964 = vmatpush.msrb.mxu3 %v23203_v38  ;;  %12935 = vmatmul.f32.vlgmr.msrb.gmra.mxu2 %v12804_v0 }
 0xa02   : > { %13038 = vmatpush.msra.mxu1 %v23065_v56  ;;  %12798 = vmatpush.msrb.mxu0 %v23187_v13  ;;  %v13081_v56 = vld [vmem:[%s23640_s15 + $0x78] sm:$0xff]  ;;  %v23461_v23 = vsub.f32 %v13072_v34, %v23448_v14 }
 0xa03   : > { %12966 = vmatpush.msrb.mxu3 %v23215_v20  ;;  %v23324_v2 = vand.u32 4294901760, %v13081_v56 }
 0xa04   : > { %12970 = vmatmul.f32.vlgmr.msrb.gmra.mxu3 %v12805_v26  ;;  %13040 = vmatpush.msra.mxu1 %v23076_v16  ;;  %v13080_v16 = vld [vmem:[%s23640_s15 + $0x70] sm:$0xff]  ;;  %v13180_v0 = vand.u32 4294901760, %v23461_v23  ;;  %v23478_v26 = vsub.f32 %v13071_v4, %v23463_v53 }
 0xa05   : > { %12800 = vmatpush.msrb.mxu0 %v23203_v38  ;;  %v23330_v11 = vsub.f32 %v13081_v56, %v23324_v2  ;;  %13084 = vmatpush.msra.mxu2 %v23324_v2  ;;  %v23487_v56 = vand.u32 4294901760, %v13069_v47 }
 0xa06   : > { %13042 = vmatpush.msra.mxu1 %v23089_v1  ;;  %v23332_v1 = vand.u32 4294901760, %v13080_v16 }
 0xa07   : > { %12802 = vmatpush.msrb.mxu0 %v23215_v20  ;;  %v13126_v6 = vand.u32 4294901760, %v23330_v11 }
 0xa08   : > { %12808 = vmatmul.f32.vlgmr.msrb.gmra.mxu0 %v12807_v33  ;;  %13044 = vmatpush.msra.mxu1 %v23100_v41  ;;  %v23341_v41 = vsub.f32 %v13080_v16, %v23332_v1  ;;  %v23485_v33 = vsub.f32 %v13070_v27, %v23469_v35  ;;  %v13176_v16 = vand.u32 4294901760, %v13175_v46 }
 0xa09   : > { %12981 = vmatpush.msra.mxu0 %v12818_v9  ;;  %v13079_v9 = vld [vmem:[%s23640_s15 + $0x68] sm:$0xff]  ;;  %13086 = vmatpush.msra.mxu2 %v23332_v1 }
 0xa0a   : > { %13046 = vmatpush.msra.mxu1 %v23118_v44  ;;  %v13127_v44 = vsub.f32 %v23330_v11, %v13126_v6 }
 0xa0b   : > { %12985 = vmatpush.msra.mxu0 %v12824_v30  ;;  %v23343_v30 = vand.u32 4294901760, %v13079_v9 }
 0xa0c   : > { %13048 = vmatpush.msra.mxu1 %v23135_v49  ;;  %v23358_v49 = vand.u32 4294901760, %v13078_v24  ;;  %v13128_v58 = vand.u32 4294901760, %v13127_v44  ;;  %v13068_v44 = vld [vmem:[%s23640_s15 + $0x10] sm:$0xff] }
 0xa0d   : > { %12989 = vmatpush.msra.mxu0 %v12830_v63  ;;  %v13132_v63 = vand.u32 4294901760, %v23341_v41  ;;  %v23356_v52 = vsub.f32 %v13079_v9, %v23343_v30  ;;  %13088 = vmatpush.msra.mxu2 %v23343_v30  ;;  %v13181_v9 = vsub.f32 %v23461_v23, %v13180_v0 }
 0xa0e   : > { %13050 = vmatpush.msra.mxu1 %v23152_v54  ;;  %v23373_v57 = vsub.f32 %v13078_v24, %v23358_v49  ;;  %13129 = vmatpush.msra.mxu3 %v13128_v58  ;;  %v13186_v24 = vand.u32 4294901760, %v23478_v26  ;;  %v23501_v58 = vsub.f32 %v13069_v47, %v23487_v56 }
 0xa0f   : > { %12993 = vmatpush.msra.mxu0 %v12836_v22  ;;  %v13077_v22 = vld [vmem:[%s23640_s15 + $0x58] sm:$0xff]  ;;  %v13133_v54 = vsub.f32 %v23341_v41, %v13132_v63  ;;  %13090 = vmatpush.msra.mxu2 %v23358_v49 }
 0xa10   : > { %13052 = vmatpush.msra.mxu1 %v23169_v48  ;;  %v23375_v48 = vand.u32 4294901760, %v13077_v22  ;;  %v13144_v8 = vand.u32 4294901760, %v23373_v57 }
 0xa11   : > { %12997 = vmatpush.msra.mxu0 %v12842_v10  ;;  %v13138_v10 = vand.u32 4294901760, %v23356_v52  ;;  %v13134_v37 = vand.u32 4294901760, %v13133_v54  ;;  %v23503_v54 = vand.u32 4294901760, %v13068_v44 }
 0xa12   : > { %13054 = vmatpush.msra.mxu1 %v23187_v13  ;;  %v23388_v13 = vsub.f32 %v13077_v22, %v23375_v48  ;;  %13092 = vmatpush.msra.mxu2 %v23375_v48  ;;  %v13145_v15 = vsub.f32 %v23373_v57, %v13144_v8  ;;  %v13192_v22 = vand.u32 4294901760, %v23485_v33 }
 0xa13   : > { %13001 = vmatpush.msra.mxu0 %v12848_v17  ;;  %v13139_v31 = vsub.f32 %v23356_v52, %v13138_v10  ;;  %v23384_v17 = vand.u32 4294901760, %v13076_v25  ;;  %13135 = vmatpush.msra.mxu3 %v13134_v37  ;;  %v13187_v37 = vsub.f32 %v23478_v26, %v13186_v24 }
 0xa14   : > { %13056 = vmatpush.msra.mxu1 %v23203_v38  ;;  %v13150_v38 = vand.u32 4294901760, %v23388_v13 }
 0xa15   : > { %13005 = vmatpush.msra.mxu0 %v12854_v40  ;;  %v13140_v32 = vand.u32 4294901760, %v13139_v31  ;;  %v23396_v43 = vsub.f32 %v13076_v25, %v23384_v17  ;;  %v23398_v40 = vand.u32 4294901760, %v13075_v7  ;;  %13094 = vmatpush.msra.mxu2 %v23384_v17  ;;  %v13182_v25 = vand.u32 4294901760, %v13181_v9  ;;  %v13067_v31 = vld [vmem:[%s23640_s15 + $0x8] sm:$0xff] }
 0xa16   : > { %13058 = vmatpush.msra.mxu1 %v23215_v20  ;;  %v13146_v20 = vand.u32 4294901760, %v13145_v15  ;;  %v13151_v45 = vsub.f32 %v23388_v13, %v13150_v38  ;;  %v23519_v15 = vsub.f32 %v13068_v44, %v23503_v54  ;;  %v23521_v5 = vand.u32 4294901760, %v13067_v31 }
 0xa17   : > { %13009 = vmatpush.msra.mxu0 %v12860_v51  ;;  %13060 = vmatmul.f32.vlgmr.msra.gmra.mxu1 %v12803_v36  ;;  %v13156_v12 = vand.u32 4294901760, %v23396_v43  ;;  %v23412_v51 = vsub.f32 %v13075_v7, %v23398_v40  ;;  %v13193_v7 = vsub.f32 %v23485_v33, %v13192_v22 }
 0xa18   : > { %13280 = vmatpush.msrb.mxu1 %v23324_v2  ;;  %13141 = vmatpush.msra.mxu3 %v13140_v32  ;;  %v13198_v32 = vand.u32 4294901760, %v23501_v58  ;;  %v13209_v34 = vsub.f32 %v13067_v31, %v23521_v5 }
 0xa19   : > { %13013 = vmatpush.msra.mxu0 %v12866_v59  ;;  %13096 = vmatpush.msra.mxu2 %v23398_v40  ;;  %v13157_v59 = vsub.f32 %v23396_v43, %v13156_v12  ;;  %v13162_v28 = vand.u32 4294901760, %v23412_v51  ;;  %v13194_v60 = vand.u32 4294901760, %v13193_v7  ;;  %v13082_v7 = vld [vmem:[%s23641_s16] sm:$0x1] }
 0xa1a   : > { %13282 = vmatpush.msrb.mxu1 %v23332_v1  ;;  %13147 = vmatpush.msra.mxu3 %v13146_v20  ;;  %v13188_v20 = vand.u32 4294901760, %v13187_v37 }
 0xa1b   : > { %13017 = vmatpush.msra.mxu0 %v12872_v29  ;;  %v13152_v29 = vand.u32 4294901760, %v13151_v45  ;;  %13098 = vmatpush.msra.mxu2 %v23414_v62  ;;  %v13158_v61 = vand.u32 4294901760, %v13157_v59  ;;  %v13163_v19 = vsub.f32 %v23412_v51, %v13162_v28  ;;  %v13066_v45 = vld [vmem:[%s23640_s15] sm:$0xff]  ;;  %v13199_v59 = vsub.f32 %v23501_v58, %v13198_v32 }
 0xa1c   : > { %13284 = vmatpush.msrb.mxu1 %v23343_v30 }
 0xa1d   : > { %13021 = vmatpush.msra.mxu0 %v12878_v55  ;;  %v13168_v55 = vand.u32 4294901760, %v23430_v21  ;;  %13153 = vmatpush.msra.mxu3 %v13152_v29  ;;  %v13204_v29 = vand.u32 4294901760, %v23519_v15 }
 0xa1e   : > { %13286 = vmatpush.msrb.mxu1 %v23358_v49  ;;  %13100 = vmatpush.msra.mxu2 %v23432_v18 }
 0xa1f   : > { %13025 = vmatpush.msra.mxu0 %v12884_v42  ;;  %v13164_v42 = vand.u32 4294901760, %v13163_v19  ;;  %v13169_v3 = vsub.f32 %v23430_v21, %v13168_v55  ;;  %13159 = vmatpush.msra.mxu3 %v13158_v61  ;;  %v23536_v61 = vand.u32 4294901760, %v13066_v45  ;;  %v13200_v19 = vand.u32 4294901760, %v13199_v59 }
 0xa20   : > { %13027 = vmatmul.f32.vlgmr.msra.gmra.mxu0 %v12803_v36  ;;  %13288 = vmatpush.msrb.mxu1 %v23375_v48  ;;  %v13205_v4 = vsub.f32 %v23519_v15, %v13204_v29 }
 0xa21   : > { %13227 = vmatpush.msrb.mxu0 %v23330_v11  ;;  %13102 = vmatpush.msra.mxu2 %v23448_v14  ;;  %v13170_v36 = vand.u32 4294901760, %v13169_v3  ;;  %v13215_v3 = vsub.f32 %v13066_v45, %v23536_v61 }
 0xa22   : > { %13290 = vmatpush.msrb.mxu1 %v23384_v17  ;;  %13165 = vmatpush.msra.mxu3 %v13164_v42  ;;  %v13210_v42 = vand.u32 4294901760, %v13209_v34  ;;  %v13206_v27 = vand.u32 4294901760, %v13205_v4 }
 0xa23   : > { %13230 = vmatpush.msrb.mxu0 %v23341_v41  ;;  %13104 = vmatpush.msra.mxu2 %v23463_v53  ;;  %v13216_v46 = vand.u32 4294901760, %v13215_v3 }
 0xa24   : > { %13292 = vmatpush.msrb.mxu1 %v23398_v40  ;;  %13171 = vmatpush.msra.mxu3 %v13170_v36  ;;  %v13211_v36 = vsub.f32 %v13209_v34, %v13210_v42 }
 0xa25   : > { %13233 = vmatpush.msrb.mxu0 %v23356_v52  ;;  %13106 = vmatpush.msra.mxu2 %v23469_v35 }
 0xa26   : > { %13294 = vmatpush.msrb.mxu1 %v23414_v62  ;;  %13177 = vmatpush.msra.mxu3 %v13176_v16  ;;  %v13212_v47 = vand.u32 4294901760, %v13211_v36  ;;  %v13217_v16 = vsub.f32 %v13215_v3, %v13216_v46 }
 0xa27   : > { %13236 = vmatpush.msrb.mxu0 %v23373_v57  ;;  %13108 = vmatpush.msra.mxu2 %v23487_v56 }
 0xa28   : > { %13296 = vmatpush.msrb.mxu1 %v23432_v18  ;;  %13183 = vmatpush.msra.mxu3 %v13182_v25  ;;  %v13218_v9 = vand.u32 4294901760, %v13217_v16 }
 0xa29   : > { %13239 = vmatpush.msrb.mxu0 %v23388_v13  ;;  %13110 = vmatpush.msra.mxu2 %v23503_v54 }
 0xa2a   : > { %13298 = vmatpush.msrb.mxu1 %v23448_v14  ;;  %13189 = vmatpush.msra.mxu3 %v13188_v20 }
 0xa2b   : > { %13242 = vmatpush.msrb.mxu0 %v23396_v43  ;;  %13112 = vmatpush.msra.mxu2 %v23521_v5 }
 0xa2c   : > { %13300 = vmatpush.msrb.mxu1 %v23463_v53  ;;  %13195 = vmatpush.msra.mxu3 %v13194_v60 }
 0xa2d   : > { %13245 = vmatpush.msrb.mxu0 %v23412_v51  ;;  %13114 = vmatpush.msra.mxu2 %v23536_v61 }
 0xa2e   : > { %13302 = vmatpush.msrb.mxu1 %v23469_v35  ;;  %13201 = vmatpush.msra.mxu3 %v13200_v19 }
 0xa2f   : > { %13248 = vmatpush.msrb.mxu0 %v23430_v21  ;;  %13321 = vmatpush.msrb.mxu2 %v13126_v6 }
 0xa30   : > { %13304 = vmatpush.msrb.mxu1 %v23487_v56  ;;  %13207 = vmatpush.msra.mxu3 %v13206_v27 }
 0xa31   : > { %13251 = vmatpush.msrb.mxu0 %v23446_v39  ;;  %13325 = vmatpush.msrb.mxu2 %v13132_v63 }
 0xa32   : > { %13306 = vmatpush.msrb.mxu1 %v23503_v54  ;;  %13213 = vmatpush.msra.mxu3 %v13212_v47 }
 0xa33   : > { %13254 = vmatpush.msrb.mxu0 %v23461_v23  ;;  %13329 = vmatpush.msrb.mxu2 %v13138_v10 }
 0xa34   : > { %13308 = vmatpush.msrb.mxu1 %v23521_v5  ;;  %13219 = vmatpush.msra.mxu3 %v13218_v9 }
 0xa35   : > { %13257 = vmatpush.msrb.mxu0 %v23478_v26  ;;  %13333 = vmatpush.msrb.mxu2 %v13144_v8 }
 0xa36   : > { %13310 = vmatpush.msrb.mxu1 %v23536_v61  ;;  %13388 = vmatpush.msrb.mxu3 %v23324_v2 }
 0xa37   : > { %13260 = vmatpush.msrb.mxu0 %v23485_v33  ;;  %13337 = vmatpush.msrb.mxu2 %v13150_v38 }
 0xa38   : > { %13390 = vmatpush.msrb.mxu3 %v23332_v1 }
 0xa39   : > { %13263 = vmatpush.msrb.mxu0 %v23501_v58  ;;  %13341 = vmatpush.msrb.mxu2 %v13156_v12 }
 0xa3a   : > { %13392 = vmatpush.msrb.mxu3 %v23343_v30 }
 0xa3b   : > { %13266 = vmatpush.msrb.mxu0 %v23519_v15  ;;  %13345 = vmatpush.msrb.mxu2 %v13162_v28 }
 0xa3c   : > { %13394 = vmatpush.msrb.mxu3 %v23358_v49 }
 0xa3d   : > { %13269 = vmatpush.msrb.mxu0 %v13209_v34  ;;  %13349 = vmatpush.msrb.mxu2 %v13168_v55 }
 0xa3e   : > { %13396 = vmatpush.msrb.mxu3 %v23375_v48 }
 0xa3f   : > { %13272 = vmatpush.msrb.mxu0 %v13215_v3  ;;  %13353 = vmatpush.msrb.mxu2 %v13174_v50 }
 0xa40   : > { %13398 = vmatpush.msrb.mxu3 %v23384_v17 }
 0xa41   : > { %13357 = vmatpush.msrb.mxu2 %v13180_v0 }
 0xa42   : > { %13400 = vmatpush.msrb.mxu3 %v23398_v40 }
 0xa43   : > { %13361 = vmatpush.msrb.mxu2 %v13186_v24 }
 0xa44   : > { %13402 = vmatpush.msrb.mxu3 %v23414_v62 }
 0xa45   : > { %13365 = vmatpush.msrb.mxu2 %v13192_v22 }
 0xa46   : > { %13404 = vmatpush.msrb.mxu3 %v23432_v18 }
 0xa47   : > { %v12276_v2 = vpop.f32.mrf.mxu1  ;;  %13369 = vmatpush.msrb.mxu2 %v13198_v32 }
 0xa48   : > { %13406 = vmatpush.msrb.mxu3 %v23448_v14  ;;  %v12143_v14 = vld [vmem:[%s23639_s14] sm:$0x1] }
 0xa49   : > { %13373 = vmatpush.msrb.mxu2 %v13204_v29 }
 0xa4a   : > { %13408 = vmatpush.msrb.mxu3 %v23463_v53 }
 0xa4b   : > { %13377 = vmatpush.msrb.mxu2 %v13210_v42 }
 0xa4c   : > { %13410 = vmatpush.msrb.mxu3 %v23469_v35 }
 0xa4d   : > { %13381 = vmatpush.msrb.mxu2 %v13216_v46 }
 0xa4e   : > { %13412 = vmatpush.msrb.mxu3 %v23487_v56 }
 0xa4f   : > { %v12195_v11 = vpop.f32.mrf.mxu0  ;;  %v12322_v1 = vpop.f32.mrf.mxu2 }
 0xa50   : > { %v12447_v30 = vpop.f32.mrf.mxu1  ;;  %v12277_v57 = vadd.f32 %v12276_v2, %v12195_v11  ;;  %13414 = vmatpush.msrb.mxu3 %v23503_v54 }
 0xa51   : > { %v12357_v6 = vpop.f32.mrf.mxu3 }
 0xa52   : > { %13416 = vmatpush.msrb.mxu3 %v23521_v5  ;;  %v12323_v8 = vadd.f32 %v12322_v1, %v12277_v57 }
 0xa54   : > { %13418 = vmatpush.msrb.mxu3 %v23536_v61  ;;  %v12358_v12 = vadd.f32 %v12357_v6, %v12323_v8 }
 0xa58   : > { %v12502_v63 = vpop.f32.mrf.mxu2 }
 0xa59   : > { %v12414_v41 = vpop.f32.mrf.mxu0 }
 0xa5a   : > { %v12415_v28 = vadd.f32 %v12414_v41, %v12358_v12 }
 0xa5b   : > { %v12583_v49 = vpop.f32.mrf.mxu3 }
 0xa5c   : > { %v12584_v48 = vadd.f32 %v12583_v49, %v12502_v63  ;;  %v12448_v39 = vadd.f32 %v12447_v30, %v12415_v28 }
 0xa5e   : > { %v12450_v0 = vadd.f32 %v12448_v39, %v12143_v14 }
 0xa62   : > { %v12664_v10 = vpop.f32.mrf.mxu1 }
 0xa6a   : > { %v12721_v17 = vpop.f32.mrf.mxu2 }
 0xa6c   : > { %v12629_v52 = vpop.f32.mrf.mxu0 }
 0xa6d   : > { %v12630_v13 = vadd.f32 %v12629_v52, %v12584_v48  ;;  %v12754_v40 = vpop.f32.mrf.mxu3 }
 0xa6f   : > { %v12665_v51 = vadd.f32 %v12664_v10, %v12630_v13 }
 0xa71   : > { %v12722_v18 = vadd.f32 %v12721_v17, %v12665_v51 }
 0xa73   : > { %v12755_v23 = vadd.f32 %v12754_v40, %v12722_v18 }
 0xa75   : > { %v12757_v56 = vadd.f32 %v12755_v23, %v12450_v0 }
 0xa7c   : > { %v12890_v38 = vpop.f32.mrf.mxu1 }
 0xa84   : > { %v12936_v21 = vpop.f32.mrf.mxu2 }
 0xa85   : > { %v12809_v43 = vpop.f32.mrf.mxu0 }
 0xa86   : > { %v12891_v62 = vadd.f32 %v12890_v38, %v12809_v43 }
 0xa87   : > { %v12971_v50 = vpop.f32.mrf.mxu3 }
 0xa88   : > { %v12937_v55 = vadd.f32 %v12936_v21, %v12891_v62 }
 0xa8a   : > { %v12972_v53 = vadd.f32 %v12971_v50, %v12937_v55 }
 0xa94   : > { %v13061_v33 = vpop.f32.mrf.mxu1 }
 0xa9d   : > { %v13028_v35 = vpop.f32.mrf.mxu0 }
 0xa9e   : > { %v13029_v26 = vadd.f32 %v13028_v35, %v12972_v53 }
 0xaa0   : > { %v13062_v24 = vadd.f32 %v13061_v33, %v13029_v26 }
 0xaa2   : > { %v13064_v44 = vadd.f32 %v13062_v24, %v12757_v56 }
 0xaa4   : > { %v13065_v22 = vmax.f32 %v13064_v44, 0.0 }
 0xaa6   : > { %v13115_v58 = vand.u32 4294901760, %v13065_v22 }
 0xaa8   : > { %v13116_v54 = vsub.f32 %v13065_v22, %v13115_v58  ;;  %13221 = vmatmul.f32.vlgmr.msra.gmra.mxu3 %v13115_v58 }
 0xaaa   : > { %v13117_v25 = vand.u32 4294901760, %v13116_v54  ;;  %13275 = vmatmul.f32.vlgmr.msrb.gmra.mxu0 %v13116_v54 }
 0xaac   : > { %v13118_v37 = vsub.f32 %v13116_v54, %v13117_v25  ;;  %13314 = vmatmul.f32.vlgmr.msrb.gmra.mxu1 %v13117_v25 }
 0xaae   : > { %v13119_v31 = vand.u32 4294901760, %v13118_v37 }
 0xab0   : > { %13120 = vmatmul.f32.vlgmr.msra.gmra.mxu2 %v13119_v31  ;;  %13420 = vmatmul.f32.vlgmr.msrb.gmra.mxu3 %v13115_v58 }
 0xab8   : > { %13383 = vmatmul.f32.vlgmr.msrb.gmra.mxu2 %v13115_v58 }
 0xb27   : > { %v13276_v45 = vpop.f32.mrf.mxu0 }
 0xb29   : > { %v13315_v59 = vpop.f32.mrf.mxu1 }
 0xb2b   : > { %v13222_v32 = vpop.f32.mrf.mxu3 }
 0xb33   : > { %v13121_v15 = vpop.f32.mrf.mxu2  ;;  %v13421_v19 = vpop.f32.mrf.mxu3 }
 0xb34   : > { %v13122_v5 = vadd.f32 %v13121_v15, %v13082_v7 }
 0xb36   : > { %v13223_v20 = vadd.f32 %v13222_v32, %v13122_v5 }
 0xb38   : > { %v13277_v60 = vadd.f32 %v13276_v45, %v13223_v20 }
 0xb3a   : > { %v13316_v29 = vadd.f32 %v13315_v59, %v13277_v60 }
 0xb3b   : > { %v13384_v34 = vpop.f32.mrf.mxu2 }
 0xb3c   : > { %v13385_v61 = vadd.f32 %v13384_v34, %v13316_v29 }
 0xb3e   : > { %v13422_v4 = vadd.f32 %v13421_v19, %v13385_v61 }
 0xb40   : > { %13425 = vst.msk [vmem:[%s540_s26] sm:$0x1] %vm13424_vm14, %v13422_v4 }
 0xb41   : > { %13837 = shalt.err (!%p13834_p3)
}
 0xb42   : > { %13771 = dma.vmem_to_hbm [thread:$0]  (%p14002_p5), %s13438_s29, 16, %s13440_s2, %s13427_s30  }
 0xb43 PF: > { %p13777_p4 = scmp.ge.s32.totalorder %s13872_s27, 2  ;;  %s13451_s0 = sand.u32 1, %s13860_s24  }
 0xb44   : > { %s13452_s26 = scalar_lea.sflag [#allocation7], %s13451_s0 }
 0xb45   : > { %p13774_p7 = pnand %p13777_p4, %p14006_p6 }
 0xb47   : > { %p13775_p8 = pneg %p13774_p7 }
 0xb49   : > { %13855 = dma.done.wait (%p13775_p8), %s13452_s26, 16  }
 0xb4a   : > { %13857 = vsyncadd (%p13775_p8), %s13452_s26, 4294967280  ;;  %s24369_s27 = sld [smem:[#allocation10_spill]]  ;;  %s24372_s24 = smov %s13864_s25 }
 0xb4b   : > { %s24370_s3 = sld [smem:[#allocation9_spill]] }
 0xb4c   : > { %s24371_s26 = sld [smem:[#allocation11_spill]] }
 0xb50   : > { %p27_p9 = scmp.ge.s32.totalorder %s24369_s27, 4  }
 0xb51   : > { %s24373_s25 = smov %s24370_s3 }
 0xb52   :  { %29 = sbr.rel (!%p27_p9) target bundleno = 9 (0x9), region = 134 }
 0xb57   :  { %13457 = vsyncpa [#allocation7], 1 }
 0xb58   :  { %13459 = vsyncpa [#allocation7 + $0x1], 1 }

</bundles_post_ra>
